<compile_context>
chip_gen: v7x
topology: tpu7x:2x2x1
jax: 0.10.0
libtpu: 0.0.40
codegen_flags: <defaults>
</compile_context>

<pallas_src>
import functools

import numpy as np

import jax
import jax.numpy as jnp
from jax.experimental import pallas as pl
from jax.experimental.pallas import tpu as pltpu

EPS = 1e-5      # PyTorch BatchNorm default eps
_PAD = 16       # row margin of the padded activation scratch (|row shift| <= 9)


# ---------------------------------------------------------------------------
# Kernel 1: fused conv tower (initial conv + residual blocks + 1x1 head convs)
# ---------------------------------------------------------------------------
def _tower_kernel(x_ref, masks_ref, w0_ref, s0_ref, sh0_ref,
                  tw_ref, ts_ref, tsh_ref, wpv_ref, spv_ref, shpv_ref,
                  pv_ref, xin_ref, act_ref, *, res_blocks, mrows):
    """Whole conv tower for one tile of `mrows = tile_b * 64` board rows.

    A 3x3 conv on the 8x8 board is computed as 9 shifted K=C matmuls: the
    source slab lives in a row-padded VMEM scratch; kernel offset (dh, dw) is a
    static row shift of dh*8 + dw, and rows whose (h+dh, w+dw) falls outside
    the board are zeroed with a precomputed f32 mask (== zero padding).
    """
    relu = lambda z: jnp.maximum(z, 0.0)

    # Zero the padded scratches once so the margin rows are well defined
    # (they only ever contribute through a zero mask, but keep them clean).
    xin_ref[...] = jnp.zeros_like(xin_ref)
    act_ref[...] = jnp.zeros_like(act_ref)

    offs = [dh * 8 + dw for dh in (-1, 0, 1) for dw in (-1, 0, 1)]

    def conv3x3(src_ref, w_of_k):
        acc = None
        for k, off in enumerate(offs):
            sh = src_ref[pl.ds(_PAD + off, mrows), :]
            if off != 0:
                sh = sh * masks_ref[k]            # zero rows crossing the border
            part = jnp.dot(sh.astype(jnp.bfloat16), w_of_k(k),
                           preferred_element_type=jnp.float32)
            acc = part if acc is None else acc + part
        return acc

    # initial 3x3 conv + folded BN + ReLU
    xin_ref[pl.ds(_PAD, mrows), :] = x_ref[...]
    h = relu(conv3x3(xin_ref, lambda k: w0_ref[k]) * s0_ref[...] + sh0_ref[...])

    # residual tower (residual carried in f32, resident on-chip)
    for l in range(res_blocks):
        act_ref[pl.ds(_PAD, mrows), :] = h
        t = conv3x3(act_ref, lambda k, i=2 * l: tw_ref[i * 9 + k])
        t = relu(t * ts_ref[2 * l] + tsh_ref[2 * l])
        act_ref[pl.ds(_PAD, mrows), :] = t
        u = conv3x3(act_ref, lambda k, i=2 * l + 1: tw_ref[i * 9 + k])
        h = relu(u * ts_ref[2 * l + 1] + tsh_ref[2 * l + 1] + h)

    # fused policy(2ch) + value(1ch) 1x1 conv + folded BN + ReLU
    pv = jnp.dot(h.astype(jnp.bfloat16), wpv_ref[...],
                 preferred_element_type=jnp.float32)
    pv_ref[...] = relu(pv * spv_ref[...] + shpv_ref[...])


def _build_masks(mrows):
    """(9, mrows, 1) f32 validity masks for the nine 3x3 offsets."""
    r = np.arange(mrows)
    hh, ww = (r // 8) % 8, r % 8
    m = []
    for dh in (-1, 0, 1):
        for dw in (-1, 0, 1):
            valid = ((hh + dh >= 0) & (hh + dh < 8) &
                     (ww + dw >= 0) & (ww + dw < 8))
            m.append(valid.astype(np.float32))
    return jnp.asarray(np.stack(m, 0)[:, :, None])


def _pick_batch_tile(batch):
    # Aim for 512-1024 rows (8-16 board images) per grid step; whole images only.
    for t in (16, 8, 4, 2, 1):
        if t <= batch and batch % t == 0:
            return t
    return 1


def tower_forward(x_slab, pp):
    rows, cin = x_slab.shape
    batch = rows // 64
    filters = pp["w0"].shape[2]
    r2 = pp["ts"].shape[0]
    res_blocks = r2 // 2
    tile_b = _pick_batch_tile(batch)
    mrows = tile_b * 64
    masks = _build_masks(mrows)

    kern = functools.partial(_tower_kernel, res_blocks=res_blocks, mrows=mrows)
    return pl.pallas_call(
        kern,
        out_shape=jax.ShapeDtypeStruct((rows, 3), jnp.float32),
        grid=(batch // tile_b,),
        in_specs=[
            pl.BlockSpec((mrows, cin), lambda i: (i, 0)),
            pl.BlockSpec((9, mrows, 1), lambda i: (0, 0, 0)),
            pl.BlockSpec((9, cin, filters), lambda i: (0, 0, 0)),
            pl.BlockSpec((1, filters), lambda i: (0, 0)),
            pl.BlockSpec((1, filters), lambda i: (0, 0)),
            pl.BlockSpec((r2 * 9, filters, filters), lambda i: (0, 0, 0)),
            pl.BlockSpec((r2, 1, filters), lambda i: (0, 0, 0)),
            pl.BlockSpec((r2, 1, filters), lambda i: (0, 0, 0)),
            pl.BlockSpec((filters, 3), lambda i: (0, 0)),
            pl.BlockSpec((1, 3), lambda i: (0, 0)),
            pl.BlockSpec((1, 3), lambda i: (0, 0)),
        ],
        out_specs=pl.BlockSpec((mrows, 3), lambda i: (i, 0)),
        scratch_shapes=[
            pltpu.VMEM((mrows + 2 * _PAD, cin), jnp.float32),      # padded input slab
            pltpu.VMEM((mrows + 2 * _PAD, filters), jnp.float32),  # padded activation slab
        ],
        compiler_params=pltpu.CompilerParams(
            dimension_semantics=("parallel",)),
    )(x_slab, masks, pp["w0"], pp["s0"], pp["sh0"], pp["tw"], pp["ts"],
      pp["tsh"], pp["wpv"], pp["spv"], pp["shpv"])


# ---------------------------------------------------------------------------
# Kernel 2: fused policy + value heads (FCs, BN1d folded, ReLU, tanh)
# ---------------------------------------------------------------------------
def _head_kernel(p_ref, v_ref, wp_ref, bp_ref, w1_ref, s1_ref, b1_ref,
                 w2_ref, b2_ref, pol_ref, val_ref):
    pol = jnp.dot(p_ref[...].astype(jnp.bfloat16), wp_ref[...],
                  preferred_element_type=jnp.float32) + bp_ref[...]
    pol_ref[...] = pol
    v1 = jnp.dot(v_ref[...].astype(jnp.bfloat16), w1_ref[...],
                 preferred_element_type=jnp.float32)
    v1 = jnp.maximum(v1 * s1_ref[...] + b1_ref[...], 0.0)
    v2 = jnp.dot(v1.astype(jnp.bfloat16), w2_ref[...],
                 preferred_element_type=jnp.float32) + b2_ref[...]
    val_ref[...] = jnp.tanh(v2)


def head_forward(p_flat, v_flat, pp):
    batch = p_flat.shape[0]
    num_moves = pp["wp"].shape[1]

    def full(shape):
        return pl.BlockSpec(shape, lambda: (0,) * len(shape))

    return pl.pallas_call(
        _head_kernel,
        out_shape=(jax.ShapeDtypeStruct((batch, num_moves), jnp.float32),
                   jax.ShapeDtypeStruct((batch, 1), jnp.float32)),
        in_specs=[
            full((batch, 128)), full((batch, 64)),
            full((128, num_moves)), full((1, num_moves)),
            full((64, 256)), full((1, 256)), full((1, 256)),
            full((256, 1)), full((1, 1)),
        ],
        out_specs=(full((batch, num_moves)), full((batch, 1))),
    )(p_flat, v_flat, pp["wp"], pp["bp"], pp["w1"], pp["s1"], pp["b1"],
      pp["w2"], pp["b2"])


# ---------------------------------------------------------------------------
# One-time weight preprocessing (BN folding, layouts, bf16 casts) — hoisted
# out of the per-forward path per the performance review.
# ---------------------------------------------------------------------------
def prepare_params(params, *, filters, res_blocks, num_moves):
    f32, bf16 = jnp.float32, jnp.bfloat16
    assert res_blocks >= 1

    def conv3_to_9(w):                      # (cout, cin, 3, 3) -> (9, cin, cout)
        cout, cin = w.shape[0], w.shape[1]
        return jnp.transpose(w, (2, 3, 1, 0)).reshape(9, cin, cout)

    def fold(bn, bias):                     # eval-mode BN after biased linear op
        s = bn["gamma"] / jnp.sqrt(bn["var"] + EPS)
        return s.astype(f32), (s * (bias - bn["mean"]) + bn["beta"]).astype(f32)

    pp = {}
    pp["w0"] = conv3_to_9(params["initial_conv"]["w"]).astype(bf16)
    s0, sh0 = fold(params["initial_bn"], params["initial_conv"]["b"])
    pp["s0"], pp["sh0"] = s0.reshape(1, filters), sh0.reshape(1, filters)

    tw, ts, tsh = [], [], []
    for rp in params["res"]:
        for cname, bname in (("conv1", "bn1"), ("conv2", "bn2")):
            tw.append(conv3_to_9(rp[cname]["w"]))
            s, sh = fold(rp[bname], rp[cname]["b"])
            ts.append(s.reshape(1, filters))
            tsh.append(sh.reshape(1, filters))
    pp["tw"] = jnp.concatenate(tw, axis=0).astype(bf16)        # (2R*9, F, F)
    pp["ts"] = jnp.stack(ts, axis=0)                           # (2R, 1, F)
    pp["tsh"] = jnp.stack(tsh, axis=0)                         # (2R, 1, F)

    # fused policy(2) + value(1) 1x1 conv, lane-packed as 3 output channels
    wp1 = params["policy_conv"]["w"].reshape(2, filters)
    wv1 = params["value_conv"]["w"].reshape(1, filters)
    pp["wpv"] = jnp.concatenate([wp1, wv1], axis=0).T.astype(bf16)   # (F, 3)
    sp, shp = fold(params["policy_bn"], params["policy_conv"]["b"])
    sv, shv = fold(params["value_bn"], params["value_conv"]["b"])
    pp["spv"] = jnp.concatenate([sp, sv]).reshape(1, 3)
    pp["shpv"] = jnp.concatenate([shp, shv]).reshape(1, 3)

    # policy FC: permute weight rows from NCHW flatten order (c*64 + h*8 + w)
    # to our NHWC slab order (q = (h*8+w)*2 + c) so no activation transpose.
    idx = jnp.asarray([(q % 2) * 64 + q // 2 for q in range(128)], jnp.int32)
    pp["wp"] = params["policy_fc"]["w"].T[idx].astype(bf16)          # (128, M)
    pp["bp"] = params["policy_fc"]["b"].reshape(1, num_moves).astype(f32)

    # value head FCs (BatchNorm1d folded into fc1 scale/shift)
    pp["w1"] = params["value_fc1"]["w"].T.astype(bf16)               # (64, 256)
    s1, b1 = fold(params["value_fc1_bn"], params["value_fc1"]["b"])
    pp["s1"], pp["b1"] = s1.reshape(1, 256), b1.reshape(1, 256)
    pp["w2"] = params["value_fc2"]["w"].T.astype(bf16)               # (256, 1)
    pp["b2"] = params["value_fc2"]["b"].reshape(1, 1).astype(f32)
    return pp


# ---------------------------------------------------------------------------
# Forward pass
# ---------------------------------------------------------------------------
def chess_model_forward(x_nchw, pp):
    """ChessModel forward (policy logits, tanh value)."""
    # TODO(synk): BatchNorm is eval-mode (running stats folded into scale/shift);
    # the training-mode batch-statistics path is not reproduced.
    batch, cin = x_nchw.shape[0], x_nchw.shape[1]
    x_slab = jnp.transpose(x_nchw, (0, 2, 3, 1)).reshape(batch * 64, cin)
    pv = tower_forward(x_slab, pp)                 # (B*64, 3): [policy0, policy1, value]
    p_flat = pv[:, 0:2].reshape(batch, 128)        # plain reshape; wp rows pre-permuted
    v_flat = pv[:, 2:3].reshape(batch, 64)
    return head_forward(p_flat, v_flat, pp)


# ---------------------------------------------------------------------------
# Deterministic synthetic parameters (matching the PyTorch module's shapes)
# ---------------------------------------------------------------------------
def init_params(key, filters, res_blocks, num_moves, in_ch=20):
    keys = iter(jax.random.split(key, 16 + 8 * res_blocks + 32))

    def nrm(shape, s=0.1):
        return jax.random.normal(next(keys), shape, jnp.float32) * s

    def pos(shape):
        return jax.random.uniform(next(keys), shape, jnp.float32, 0.5, 1.5)

    def conv_p(cin, cout, k):
        return {"w": nrm((cout, cin, k, k)), "b": nrm((cout,))}

    def bn_p(c):
        return {"gamma": pos((c,)), "beta": nrm((c,)),
                "mean": nrm((c,)), "var": pos((c,))}

    return {
        "initial_conv": conv_p(in_ch, filters, 3),
        "initial_bn": bn_p(filters),
        "res": [
            {"conv1": conv_p(filters, filters, 3), "bn1": bn_p(filters),
             "conv2": conv_p(filters, filters, 3), "bn2": bn_p(filters)}
            for _ in range(res_blocks)
        ],
        "policy_conv": conv_p(filters, 2, 1),
        "policy_bn": bn_p(2),
        "policy_fc": {"w": nrm((num_moves, 2 * 8 * 8)), "b": nrm((num_moves,))},
        "value_conv": conv_p(filters, 1, 1),
        "value_bn": bn_p(1),
        "value_fc1": {"w": nrm((256, 64)), "b": nrm((256,))},
        "value_fc1_bn": bn_p(256),
        "value_fc2": {"w": nrm((1, 256)), "b": nrm((1,))},
    }


# ---------------------------------------------------------------------------
# Pure-JAX reference (mirrors the PyTorch forward, NCHW, f32) for verification
# ---------------------------------------------------------------------------
def ref_forward(x, params):
    def conv(x, w, b, pad):
        y = jax.lax.conv_general_dilated(
            x, w, window_strides=(1, 1), padding=[(pad, pad), (pad, pad)],
            dimension_numbers=("NCHW", "OIHW", "NCHW"))
        return y + b[None, :, None, None]

    def bn(x, p):
        return (p["gamma"][None, :, None, None]
                * (x - p["mean"][None, :, None, None])
                / jnp.sqrt(p["var"][None, :, None, None] + EPS)
                + p["beta"][None, :, None, None])

    def bn1d(x, p):
        return p["gamma"] * (x - p["mean"]) / jnp.sqrt(p["var"] + EPS) + p["beta"]

    relu = lambda z: jnp.maximum(z, 0.0)

    h = relu(bn(conv(x, params["initial_conv"]["w"],
                     params["initial_conv"]["b"], 1), params["initial_bn"]))
    for rp in params["res"]:
        t = relu(bn(conv(h, rp["conv1"]["w"], rp["conv1"]["b"], 1), rp["bn1"]))
        t = bn(conv(t, rp["conv2"]["w"], rp["conv2"]["b"], 1), rp["bn2"])
        h = relu(t + h)
    p = relu(bn(conv(h, params["policy_conv"]["w"],
                     params["policy_conv"]["b"], 0), params["policy_bn"]))
    p = p.reshape(p.shape[0], -1)
    p = p @ params["policy_fc"]["w"].T + params["policy_fc"]["b"]
    v = relu(bn(conv(h, params["value_conv"]["w"],
                     params["value_conv"]["b"], 0), params["value_bn"]))
    v = v.reshape(v.shape[0], -1)
    v = relu(bn1d(v @ params["value_fc1"]["w"].T + params["value_fc1"]["b"],
                  params["value_fc1_bn"]))
    v = jnp.tanh(v @ params["value_fc2"]["w"].T + params["value_fc2"]["b"])
    return p, v


# ---------------------------------------------------------------------------
if __name__ == "__main__":
    # Small, architecture-consistent shapes: board is fixed 8x8 with 20 planes.
    B, filters, res_blocks, num_moves = 2, 32, 2, 128

    key = jax.random.PRNGKey(0)
    kx, kp = jax.random.split(key)
    x = jax.random.normal(kx, (B, 20, 8, 8), jnp.float32)
    params = init_params(kp, filters, res_blocks, num_moves)

    # One-time weight preprocessing (outside the jitted per-step path).
    prepared = prepare_params(params, filters=filters, res_blocks=res_blocks,
                              num_moves=num_moves)
    prepared = jax.tree_util.tree_map(jnp.asarray, prepared)

    fwd = jax.jit(chess_model_forward)
    p, v = fwd(x, prepared)
    jax.block_until_ready((p, v))

    pr, vr = ref_forward(x, params)
    assert p.shape == (B, num_moves) and v.shape == (B, 1)
    # bf16 MXU operands (f32 accumulate + f32 BN/ReLU/tanh epilogue) -> slightly
    # looser tolerance than a pure-f32 path.
    assert jnp.allclose(p, pr, atol=5e-2, rtol=5e-2), "policy head mismatch"
    assert jnp.allclose(v, vr, atol=5e-2, rtol=5e-2), "value head mismatch"

    print("KERNEL_OK")
</pallas_src>

<mosaic_0001>
module attributes {stable_mosaic.version = 11 : i64} {
  func.func @_tower_kernel(%arg0: i32, %arg1: memref<128x20xf32, #tpu.memory_space<vmem>>, %arg2: memref<9x128x1xf32, #tpu.memory_space<vmem>>, %arg3: memref<9x20x32xbf16, #tpu.memory_space<vmem>>, %arg4: memref<1x32xf32, #tpu.memory_space<vmem>>, %arg5: memref<1x32xf32, #tpu.memory_space<vmem>>, %arg6: memref<36x32x32xbf16, #tpu.memory_space<vmem>>, %arg7: memref<4x1x32xf32, #tpu.memory_space<vmem>>, %arg8: memref<4x1x32xf32, #tpu.memory_space<vmem>>, %arg9: memref<32x3xbf16, #tpu.memory_space<vmem>>, %arg10: memref<1x3xf32, #tpu.memory_space<vmem>>, %arg11: memref<1x3xf32, #tpu.memory_space<vmem>>, %arg12: memref<128x3xf32, #tpu.memory_space<vmem>>, %arg13: memref<160x20xf32, #tpu.memory_space<vmem>>, %arg14: memref<160x32xf32, #tpu.memory_space<vmem>>) attributes {dimension_semantics = [#tpu.dimension_semantics<parallel>], iteration_bounds = array<i64: 1>, scalar_prefetch = 0 : i64, scratch_operands = 2 : i64, tpu.core_type = #tpu.core_type<tc>, window_params = [{transform_indices = @transform_0, window_bounds = array<i64: 128, 20>}, {pipeline_mode = #tpu.pipeline_mode<synchronous>, transform_indices = @transform_1, window_bounds = array<i64: 9, 128, 1>}, {pipeline_mode = #tpu.pipeline_mode<synchronous>, transform_indices = @transform_2, window_bounds = array<i64: 9, 20, 32>}, {pipeline_mode = #tpu.pipeline_mode<synchronous>, transform_indices = @transform_3, window_bounds = array<i64: 1, 32>}, {pipeline_mode = #tpu.pipeline_mode<synchronous>, transform_indices = @transform_4, window_bounds = array<i64: 1, 32>}, {pipeline_mode = #tpu.pipeline_mode<synchronous>, transform_indices = @transform_5, window_bounds = array<i64: 36, 32, 32>}, {pipeline_mode = #tpu.pipeline_mode<synchronous>, transform_indices = @transform_6, window_bounds = array<i64: 4, 1, 32>}, {pipeline_mode = #tpu.pipeline_mode<synchronous>, transform_indices = @transform_7, window_bounds = array<i64: 4, 1, 32>}, {pipeline_mode = #tpu.pipeline_mode<synchronous>, transform_indices = @transform_8, window_bounds = array<i64: 32, 3>}, {pipeline_mode = #tpu.pipeline_mode<synchronous>, transform_indices = @transform_9, window_bounds = array<i64: 1, 3>}, {pipeline_mode = #tpu.pipeline_mode<synchronous>, transform_indices = @transform_10, window_bounds = array<i64: 1, 3>}, {transform_indices = @transform_11, window_bounds = array<i64: 128, 3>}]} {
    %cst = arith.constant 0.000000e+00 : f32
    %0 = vector.broadcast %cst : f32 to vector<160x20xf32>
    %c0 = arith.constant 0 : index
    %c0_0 = arith.constant 0 : index
    %1 = vector.load %arg13[%c0, %c0_0] : memref<160x20xf32, #tpu.memory_space<vmem>>, vector<160x20xf32>
    tpu.vector_store %arg13[%c0, %c0_0], %0 {strides = array<i32>} : memref<160x20xf32, #tpu.memory_space<vmem>>, vector<160x20xf32>,
    %cst_1 = arith.constant 0.000000e+00 : f32
    %2 = vector.broadcast %cst_1 : f32 to vector<160x32xf32>
    %c0_2 = arith.constant 0 : index
    %c0_3 = arith.constant 0 : index
    %3 = vector.load %arg14[%c0_2, %c0_3] : memref<160x32xf32, #tpu.memory_space<vmem>>, vector<160x32xf32>
    tpu.vector_store %arg14[%c0_2, %c0_3], %2 {strides = array<i32>} : memref<160x32xf32, #tpu.memory_space<vmem>>, vector<160x32xf32>,
    %c0_4 = arith.constant 0 : index
    %c0_5 = arith.constant 0 : index
    %4 = vector.load %arg1[%c0_4, %c0_5] : memref<128x20xf32, #tpu.memory_space<vmem>>, vector<128x20xf32>
    %c16 = arith.constant 16 : index
    %c0_6 = arith.constant 0 : index
    %5 = vector.load %arg13[%c16, %c0_6] : memref<160x20xf32, #tpu.memory_space<vmem>>, vector<128x20xf32>
    tpu.vector_store %arg13[%c16, %c0_6], %4 {strides = array<i32>} : memref<160x20xf32, #tpu.memory_space<vmem>>, vector<128x20xf32>,
    %c7 = arith.constant 7 : index
    %c0_7 = arith.constant 0 : index
    %6 = vector.load %arg13[%c7, %c0_7] : memref<160x20xf32, #tpu.memory_space<vmem>>, vector<128x20xf32>
    %c0_8 = arith.constant 0 : index
    %c0_9 = arith.constant 0 : index
    %c0_10 = arith.constant 0 : index
    %7 = vector.load %arg2[%c0_8, %c0_9, %c0_10] : memref<9x128x1xf32, #tpu.memory_space<vmem>>, vector<1x128x1xf32>
    %8 = vector.shape_cast %7 : vector<1x128x1xf32> to vector<128x1xf32>
    %9 = vector.broadcast %8 : vector<128x1xf32> to vector<128x20xf32>
    %10 = arith.mulf %6, %9 : vector<128x20xf32>
    %11 = arith.truncf %10 : vector<128x20xf32> to vector<128x20xbf16>
    %c0_11 = arith.constant 0 : index
    %c0_12 = arith.constant 0 : index
    %c0_13 = arith.constant 0 : index
    %12 = vector.load %arg3[%c0_11, %c0_12, %c0_13] : memref<9x20x32xbf16, #tpu.memory_space<vmem>>, vector<1x20x32xbf16>
    %13 = vector.shape_cast %12 : vector<1x20x32xbf16> to vector<20x32xbf16>
    %cst_14 = arith.constant dense<0.000000e+00> : vector<128x32xf32>
    %14 = tpu.matmul %11, %13, %cst_14 {dimension_numbers = #tpu.dot_dimension_numbers<[1], [0], [0], [1], [0, 0, 1, 1], [], []>} : vector<128x20xbf16>, vector<20x32xbf16>, vector<128x32xf32> -> vector<128x32xf32>
    %c8 = arith.constant 8 : index
    %c0_15 = arith.constant 0 : index
    %15 = vector.load %arg13[%c8, %c0_15] : memref<160x20xf32, #tpu.memory_space<vmem>>, vector<128x20xf32>
    %c1 = arith.constant 1 : index
    %c0_16 = arith.constant 0 : index
    %c0_17 = arith.constant 0 : index
    %16 = vector.load %arg2[%c1, %c0_16, %c0_17] : memref<9x128x1xf32, #tpu.memory_space<vmem>>, vector<1x128x1xf32>
    %17 = vector.shape_cast %16 : vector<1x128x1xf32> to vector<128x1xf32>
    %18 = vector.broadcast %17 : vector<128x1xf32> to vector<128x20xf32>
    %19 = arith.mulf %15, %18 : vector<128x20xf32>
    %20 = arith.truncf %19 : vector<128x20xf32> to vector<128x20xbf16>
    %c1_18 = arith.constant 1 : index
    %c0_19 = arith.constant 0 : index
    %c0_20 = arith.constant 0 : index
    %21 = vector.load %arg3[%c1_18, %c0_19, %c0_20] : memref<9x20x32xbf16, #tpu.memory_space<vmem>>, vector<1x20x32xbf16>
    %22 = vector.shape_cast %21 : vector<1x20x32xbf16> to vector<20x32xbf16>
    %cst_21 = arith.constant dense<0.000000e+00> : vector<128x32xf32>
    %23 = tpu.matmul %20, %22, %cst_21 {dimension_numbers = #tpu.dot_dimension_numbers<[1], [0], [0], [1], [0, 0, 1, 1], [], []>} : vector<128x20xbf16>, vector<20x32xbf16>, vector<128x32xf32> -> vector<128x32xf32>
    %24 = arith.addf %14, %23 : vector<128x32xf32>
    %c9 = arith.constant 9 : index
    %c0_22 = arith.constant 0 : index
    %25 = vector.load %arg13[%c9, %c0_22] : memref<160x20xf32, #tpu.memory_space<vmem>>, vector<128x20xf32>
    %c2 = arith.constant 2 : index
    %c0_23 = arith.constant 0 : index
    %c0_24 = arith.constant 0 : index
    %26 = vector.load %arg2[%c2, %c0_23, %c0_24] : memref<9x128x1xf32, #tpu.memory_space<vmem>>, vector<1x128x1xf32>
    %27 = vector.shape_cast %26 : vector<1x128x1xf32> to vector<128x1xf32>
    %28 = vector.broadcast %27 : vector<128x1xf32> to vector<128x20xf32>
    %29 = arith.mulf %25, %28 : vector<128x20xf32>
    %30 = arith.truncf %29 : vector<128x20xf32> to vector<128x20xbf16>
    %c2_25 = arith.constant 2 : index
    %c0_26 = arith.constant 0 : index
    %c0_27 = arith.constant 0 : index
    %31 = vector.load %arg3[%c2_25, %c0_26, %c0_27] : memref<9x20x32xbf16, #tpu.memory_space<vmem>>, vector<1x20x32xbf16>
    %32 = vector.shape_cast %31 : vector<1x20x32xbf16> to vector<20x32xbf16>
    %cst_28 = arith.constant dense<0.000000e+00> : vector<128x32xf32>
    %33 = tpu.matmul %30, %32, %cst_28 {dimension_numbers = #tpu.dot_dimension_numbers<[1], [0], [0], [1], [0, 0, 1, 1], [], []>} : vector<128x20xbf16>, vector<20x32xbf16>, vector<128x32xf32> -> vector<128x32xf32>
    %34 = arith.addf %24, %33 : vector<128x32xf32>
    %c15 = arith.constant 15 : index
    %c0_29 = arith.constant 0 : index
    %35 = vector.load %arg13[%c15, %c0_29] : memref<160x20xf32, #tpu.memory_space<vmem>>, vector<128x20xf32>
    %c3 = arith.constant 3 : index
    %c0_30 = arith.constant 0 : index
    %c0_31 = arith.constant 0 : index
    %36 = vector.load %arg2[%c3, %c0_30, %c0_31] : memref<9x128x1xf32, #tpu.memory_space<vmem>>, vector<1x128x1xf32>
    %37 = vector.shape_cast %36 : vector<1x128x1xf32> to vector<128x1xf32>
    %38 = vector.broadcast %37 : vector<128x1xf32> to vector<128x20xf32>
    %39 = arith.mulf %35, %38 : vector<128x20xf32>
    %40 = arith.truncf %39 : vector<128x20xf32> to vector<128x20xbf16>
    %c3_32 = arith.constant 3 : index
    %c0_33 = arith.constant 0 : index
    %c0_34 = arith.constant 0 : index
    %41 = vector.load %arg3[%c3_32, %c0_33, %c0_34] : memref<9x20x32xbf16, #tpu.memory_space<vmem>>, vector<1x20x32xbf16>
    %42 = vector.shape_cast %41 : vector<1x20x32xbf16> to vector<20x32xbf16>
    %cst_35 = arith.constant dense<0.000000e+00> : vector<128x32xf32>
    %43 = tpu.matmul %40, %42, %cst_35 {dimension_numbers = #tpu.dot_dimension_numbers<[1], [0], [0], [1], [0, 0, 1, 1], [], []>} : vector<128x20xbf16>, vector<20x32xbf16>, vector<128x32xf32> -> vector<128x32xf32>
    %44 = arith.addf %34, %43 : vector<128x32xf32>
    %c16_36 = arith.constant 16 : index
    %c0_37 = arith.constant 0 : index
    %45 = vector.load %arg13[%c16_36, %c0_37] : memref<160x20xf32, #tpu.memory_space<vmem>>, vector<128x20xf32>
    %46 = arith.truncf %45 : vector<128x20xf32> to vector<128x20xbf16>
    %c4 = arith.constant 4 : index
    %c0_38 = arith.constant 0 : index
    %c0_39 = arith.constant 0 : index
    %47 = vector.load %arg3[%c4, %c0_38, %c0_39] : memref<9x20x32xbf16, #tpu.memory_space<vmem>>, vector<1x20x32xbf16>
    %48 = vector.shape_cast %47 : vector<1x20x32xbf16> to vector<20x32xbf16>
    %cst_40 = arith.constant dense<0.000000e+00> : vector<128x32xf32>
    %49 = tpu.matmul %46, %48, %cst_40 {dimension_numbers = #tpu.dot_dimension_numbers<[1], [0], [0], [1], [0, 0, 1, 1], [], []>} : vector<128x20xbf16>, vector<20x32xbf16>, vector<128x32xf32> -> vector<128x32xf32>
    %50 = arith.addf %44, %49 : vector<128x32xf32>
    %c17 = arith.constant 17 : index
    %c0_41 = arith.constant 0 : index
    %51 = vector.load %arg13[%c17, %c0_41] : memref<160x20xf32, #tpu.memory_space<vmem>>, vector<128x20xf32>
    %c5 = arith.constant 5 : index
    %c0_42 = arith.constant 0 : index
    %c0_43 = arith.constant 0 : index
    %52 = vector.load %arg2[%c5, %c0_42, %c0_43] : memref<9x128x1xf32, #tpu.memory_space<vmem>>, vector<1x128x1xf32>
    %53 = vector.shape_cast %52 : vector<1x128x1xf32> to vector<128x1xf32>
    %54 = vector.broadcast %53 : vector<128x1xf32> to vector<128x20xf32>
    %55 = arith.mulf %51, %54 : vector<128x20xf32>
    %56 = arith.truncf %55 : vector<128x20xf32> to vector<128x20xbf16>
    %c5_44 = arith.constant 5 : index
    %c0_45 = arith.constant 0 : index
    %c0_46 = arith.constant 0 : index
    %57 = vector.load %arg3[%c5_44, %c0_45, %c0_46] : memref<9x20x32xbf16, #tpu.memory_space<vmem>>, vector<1x20x32xbf16>
    %58 = vector.shape_cast %57 : vector<1x20x32xbf16> to vector<20x32xbf16>
    %cst_47 = arith.constant dense<0.000000e+00> : vector<128x32xf32>
    %59 = tpu.matmul %56, %58, %cst_47 {dimension_numbers = #tpu.dot_dimension_numbers<[1], [0], [0], [1], [0, 0, 1, 1], [], []>} : vector<128x20xbf16>, vector<20x32xbf16>, vector<128x32xf32> -> vector<128x32xf32>
    %60 = arith.addf %50, %59 : vector<128x32xf32>
    %c23 = arith.constant 23 : index
    %c0_48 = arith.constant 0 : index
    %61 = vector.load %arg13[%c23, %c0_48] : memref<160x20xf32, #tpu.memory_space<vmem>>, vector<128x20xf32>
    %c6 = arith.constant 6 : index
    %c0_49 = arith.constant 0 : index
    %c0_50 = arith.constant 0 : index
    %62 = vector.load %arg2[%c6, %c0_49, %c0_50] : memref<9x128x1xf32, #tpu.memory_space<vmem>>, vector<1x128x1xf32>
    %63 = vector.shape_cast %62 : vector<1x128x1xf32> to vector<128x1xf32>
    %64 = vector.broadcast %63 : vector<128x1xf32> to vector<128x20xf32>
    %65 = arith.mulf %61, %64 : vector<128x20xf32>
    %66 = arith.truncf %65 : vector<128x20xf32> to vector<128x20xbf16>
    %c6_51 = arith.constant 6 : index
    %c0_52 = arith.constant 0 : index
    %c0_53 = arith.constant 0 : index
    %67 = vector.load %arg3[%c6_51, %c0_52, %c0_53] : memref<9x20x32xbf16, #tpu.memory_space<vmem>>, vector<1x20x32xbf16>
    %68 = vector.shape_cast %67 : vector<1x20x32xbf16> to vector<20x32xbf16>
    %cst_54 = arith.constant dense<0.000000e+00> : vector<128x32xf32>
    %69 = tpu.matmul %66, %68, %cst_54 {dimension_numbers = #tpu.dot_dimension_numbers<[1], [0], [0], [1], [0, 0, 1, 1], [], []>} : vector<128x20xbf16>, vector<20x32xbf16>, vector<128x32xf32> -> vector<128x32xf32>
    %70 = arith.addf %60, %69 : vector<128x32xf32>
    %c24 = arith.constant 24 : index
    %c0_55 = arith.constant 0 : index
    %71 = vector.load %arg13[%c24, %c0_55] : memref<160x20xf32, #tpu.memory_space<vmem>>, vector<128x20xf32>
    %c7_56 = arith.constant 7 : index
    %c0_57 = arith.constant 0 : index
    %c0_58 = arith.constant 0 : index
    %72 = vector.load %arg2[%c7_56, %c0_57, %c0_58] : memref<9x128x1xf32, #tpu.memory_space<vmem>>, vector<1x128x1xf32>
    %73 = vector.shape_cast %72 : vector<1x128x1xf32> to vector<128x1xf32>
    %74 = vector.broadcast %73 : vector<128x1xf32> to vector<128x20xf32>
    %75 = arith.mulf %71, %74 : vector<128x20xf32>
    %76 = arith.truncf %75 : vector<128x20xf32> to vector<128x20xbf16>
    %c7_59 = arith.constant 7 : index
    %c0_60 = arith.constant 0 : index
    %c0_61 = arith.constant 0 : index
    %77 = vector.load %arg3[%c7_59, %c0_60, %c0_61] : memref<9x20x32xbf16, #tpu.memory_space<vmem>>, vector<1x20x32xbf16>
    %78 = vector.shape_cast %77 : vector<1x20x32xbf16> to vector<20x32xbf16>
    %cst_62 = arith.constant dense<0.000000e+00> : vector<128x32xf32>
    %79 = tpu.matmul %76, %78, %cst_62 {dimension_numbers = #tpu.dot_dimension_numbers<[1], [0], [0], [1], [0, 0, 1, 1], [], []>} : vector<128x20xbf16>, vector<20x32xbf16>, vector<128x32xf32> -> vector<128x32xf32>
    %80 = arith.addf %70, %79 : vector<128x32xf32>
    %c25 = arith.constant 25 : index
    %c0_63 = arith.constant 0 : index
    %81 = vector.load %arg13[%c25, %c0_63] : memref<160x20xf32, #tpu.memory_space<vmem>>, vector<128x20xf32>
    %c8_64 = arith.constant 8 : index
    %c0_65 = arith.constant 0 : index
    %c0_66 = arith.constant 0 : index
    %82 = vector.load %arg2[%c8_64, %c0_65, %c0_66] : memref<9x128x1xf32, #tpu.memory_space<vmem>>, vector<1x128x1xf32>
    %83 = vector.shape_cast %82 : vector<1x128x1xf32> to vector<128x1xf32>
    %84 = vector.broadcast %83 : vector<128x1xf32> to vector<128x20xf32>
    %85 = arith.mulf %81, %84 : vector<128x20xf32>
    %86 = arith.truncf %85 : vector<128x20xf32> to vector<128x20xbf16>
    %c8_67 = arith.constant 8 : index
    %c0_68 = arith.constant 0 : index
    %c0_69 = arith.constant 0 : index
    %87 = vector.load %arg3[%c8_67, %c0_68, %c0_69] : memref<9x20x32xbf16, #tpu.memory_space<vmem>>, vector<1x20x32xbf16>
    %88 = vector.shape_cast %87 : vector<1x20x32xbf16> to vector<20x32xbf16>
    %cst_70 = arith.constant dense<0.000000e+00> : vector<128x32xf32>
    %89 = tpu.matmul %86, %88, %cst_70 {dimension_numbers = #tpu.dot_dimension_numbers<[1], [0], [0], [1], [0, 0, 1, 1], [], []>} : vector<128x20xbf16>, vector<20x32xbf16>, vector<128x32xf32> -> vector<128x32xf32>
    %90 = arith.addf %80, %89 : vector<128x32xf32>
    %c0_71 = arith.constant 0 : index
    %c0_72 = arith.constant 0 : index
    %91 = vector.load %arg4[%c0_71, %c0_72] : memref<1x32xf32, #tpu.memory_space<vmem>>, vector<1x32xf32>
    %92 = vector.broadcast %91 : vector<1x32xf32> to vector<128x32xf32>
    %93 = arith.mulf %90, %92 : vector<128x32xf32>
    %c0_73 = arith.constant 0 : index
    %c0_74 = arith.constant 0 : index
    %94 = vector.load %arg5[%c0_73, %c0_74] : memref<1x32xf32, #tpu.memory_space<vmem>>, vector<1x32xf32>
    %95 = vector.broadcast %94 : vector<1x32xf32> to vector<128x32xf32>
    %96 = arith.addf %93, %95 : vector<128x32xf32>
    %cst_75 = arith.constant 0.000000e+00 : f32
    %97 = vector.broadcast %cst_75 : f32 to vector<128x32xf32>
    %98 = arith.maximumf %96, %97 : vector<128x32xf32>
    %c16_76 = arith.constant 16 : index
    %c0_77 = arith.constant 0 : index
    %99 = vector.load %arg14[%c16_76, %c0_77] : memref<160x32xf32, #tpu.memory_space<vmem>>, vector<128x32xf32>
    tpu.vector_store %arg14[%c16_76, %c0_77], %98 {strides = array<i32>} : memref<160x32xf32, #tpu.memory_space<vmem>>, vector<128x32xf32>,
    %c7_78 = arith.constant 7 : index
    %c0_79 = arith.constant 0 : index
    %100 = vector.load %arg14[%c7_78, %c0_79] : memref<160x32xf32, #tpu.memory_space<vmem>>, vector<128x32xf32>
    %c0_80 = arith.constant 0 : index
    %c0_81 = arith.constant 0 : index
    %c0_82 = arith.constant 0 : index
    %101 = vector.load %arg2[%c0_80, %c0_81, %c0_82] : memref<9x128x1xf32, #tpu.memory_space<vmem>>, vector<1x128x1xf32>
    %102 = vector.shape_cast %101 : vector<1x128x1xf32> to vector<128x1xf32>
    %103 = vector.broadcast %102 : vector<128x1xf32> to vector<128x32xf32>
    %104 = arith.mulf %100, %103 : vector<128x32xf32>
    %105 = arith.truncf %104 : vector<128x32xf32> to vector<128x32xbf16>
    %c0_83 = arith.constant 0 : index
    %c0_84 = arith.constant 0 : index
    %c0_85 = arith.constant 0 : index
    %106 = vector.load %arg6[%c0_83, %c0_84, %c0_85] : memref<36x32x32xbf16, #tpu.memory_space<vmem>>, vector<1x32x32xbf16>
    %107 = vector.shape_cast %106 : vector<1x32x32xbf16> to vector<32x32xbf16>
    %cst_86 = arith.constant dense<0.000000e+00> : vector<128x32xf32>
    %108 = tpu.matmul %105, %107, %cst_86 {dimension_numbers = #tpu.dot_dimension_numbers<[1], [0], [0], [1], [0, 0, 1, 1], [], []>} : vector<128x32xbf16>, vector<32x32xbf16>, vector<128x32xf32> -> vector<128x32xf32>
    %c8_87 = arith.constant 8 : index
    %c0_88 = arith.constant 0 : index
    %109 = vector.load %arg14[%c8_87, %c0_88] : memref<160x32xf32, #tpu.memory_space<vmem>>, vector<128x32xf32>
    %c1_89 = arith.constant 1 : index
    %c0_90 = arith.constant 0 : index
    %c0_91 = arith.constant 0 : index
    %110 = vector.load %arg2[%c1_89, %c0_90, %c0_91] : memref<9x128x1xf32, #tpu.memory_space<vmem>>, vector<1x128x1xf32>
    %111 = vector.shape_cast %110 : vector<1x128x1xf32> to vector<128x1xf32>
    %112 = vector.broadcast %111 : vector<128x1xf32> to vector<128x32xf32>
    %113 = arith.mulf %109, %112 : vector<128x32xf32>
    %114 = arith.truncf %113 : vector<128x32xf32> to vector<128x32xbf16>
    %c1_92 = arith.constant 1 : index
    %c0_93 = arith.constant 0 : index
    %c0_94 = arith.constant 0 : index
    %115 = vector.load %arg6[%c1_92, %c0_93, %c0_94] : memref<36x32x32xbf16, #tpu.memory_space<vmem>>, vector<1x32x32xbf16>
    %116 = vector.shape_cast %115 : vector<1x32x32xbf16> to vector<32x32xbf16>
    %cst_95 = arith.constant dense<0.000000e+00> : vector<128x32xf32>
    %117 = tpu.matmul %114, %116, %cst_95 {dimension_numbers = #tpu.dot_dimension_numbers<[1], [0], [0], [1], [0, 0, 1, 1], [], []>} : vector<128x32xbf16>, vector<32x32xbf16>, vector<128x32xf32> -> vector<128x32xf32>
    %118 = arith.addf %108, %117 : vector<128x32xf32>
    %c9_96 = arith.constant 9 : index
    %c0_97 = arith.constant 0 : index
    %119 = vector.load %arg14[%c9_96, %c0_97] : memref<160x32xf32, #tpu.memory_space<vmem>>, vector<128x32xf32>
    %c2_98 = arith.constant 2 : index
    %c0_99 = arith.constant 0 : index
    %c0_100 = arith.constant 0 : index
    %120 = vector.load %arg2[%c2_98, %c0_99, %c0_100] : memref<9x128x1xf32, #tpu.memory_space<vmem>>, vector<1x128x1xf32>
    %121 = vector.shape_cast %120 : vector<1x128x1xf32> to vector<128x1xf32>
    %122 = vector.broadcast %121 : vector<128x1xf32> to vector<128x32xf32>
    %123 = arith.mulf %119, %122 : vector<128x32xf32>
    %124 = arith.truncf %123 : vector<128x32xf32> to vector<128x32xbf16>
    %c2_101 = arith.constant 2 : index
    %c0_102 = arith.constant 0 : index
    %c0_103 = arith.constant 0 : index
    %125 = vector.load %arg6[%c2_101, %c0_102, %c0_103] : memref<36x32x32xbf16, #tpu.memory_space<vmem>>, vector<1x32x32xbf16>
    %126 = vector.shape_cast %125 : vector<1x32x32xbf16> to vector<32x32xbf16>
    %cst_104 = arith.constant dense<0.000000e+00> : vector<128x32xf32>
    %127 = tpu.matmul %124, %126, %cst_104 {dimension_numbers = #tpu.dot_dimension_numbers<[1], [0], [0], [1], [0, 0, 1, 1], [], []>} : vector<128x32xbf16>, vector<32x32xbf16>, vector<128x32xf32> -> vector<128x32xf32>
    %128 = arith.addf %118, %127 : vector<128x32xf32>
    %c15_105 = arith.constant 15 : index
    %c0_106 = arith.constant 0 : index
    %129 = vector.load %arg14[%c15_105, %c0_106] : memref<160x32xf32, #tpu.memory_space<vmem>>, vector<128x32xf32>
    %c3_107 = arith.constant 3 : index
    %c0_108 = arith.constant 0 : index
    %c0_109 = arith.constant 0 : index
    %130 = vector.load %arg2[%c3_107, %c0_108, %c0_109] : memref<9x128x1xf32, #tpu.memory_space<vmem>>, vector<1x128x1xf32>
    %131 = vector.shape_cast %130 : vector<1x128x1xf32> to vector<128x1xf32>
    %132 = vector.broadcast %131 : vector<128x1xf32> to vector<128x32xf32>
    %133 = arith.mulf %129, %132 : vector<128x32xf32>
    %134 = arith.truncf %133 : vector<128x32xf32> to vector<128x32xbf16>
    %c3_110 = arith.constant 3 : index
    %c0_111 = arith.constant 0 : index
    %c0_112 = arith.constant 0 : index
    %135 = vector.load %arg6[%c3_110, %c0_111, %c0_112] : memref<36x32x32xbf16, #tpu.memory_space<vmem>>, vector<1x32x32xbf16>
    %136 = vector.shape_cast %135 : vector<1x32x32xbf16> to vector<32x32xbf16>
    %cst_113 = arith.constant dense<0.000000e+00> : vector<128x32xf32>
    %137 = tpu.matmul %134, %136, %cst_113 {dimension_numbers = #tpu.dot_dimension_numbers<[1], [0], [0], [1], [0, 0, 1, 1], [], []>} : vector<128x32xbf16>, vector<32x32xbf16>, vector<128x32xf32> -> vector<128x32xf32>
    %138 = arith.addf %128, %137 : vector<128x32xf32>
    %c16_114 = arith.constant 16 : index
    %c0_115 = arith.constant 0 : index
    %139 = vector.load %arg14[%c16_114, %c0_115] : memref<160x32xf32, #tpu.memory_space<vmem>>, vector<128x32xf32>
    %140 = arith.truncf %139 : vector<128x32xf32> to vector<128x32xbf16>
    %c4_116 = arith.constant 4 : index
    %c0_117 = arith.constant 0 : index
    %c0_118 = arith.constant 0 : index
    %141 = vector.load %arg6[%c4_116, %c0_117, %c0_118] : memref<36x32x32xbf16, #tpu.memory_space<vmem>>, vector<1x32x32xbf16>
    %142 = vector.shape_cast %141 : vector<1x32x32xbf16> to vector<32x32xbf16>
    %cst_119 = arith.constant dense<0.000000e+00> : vector<128x32xf32>
    %143 = tpu.matmul %140, %142, %cst_119 {dimension_numbers = #tpu.dot_dimension_numbers<[1], [0], [0], [1], [0, 0, 1, 1], [], []>} : vector<128x32xbf16>, vector<32x32xbf16>, vector<128x32xf32> -> vector<128x32xf32>
    %144 = arith.addf %138, %143 : vector<128x32xf32>
    %c17_120 = arith.constant 17 : index
    %c0_121 = arith.constant 0 : index
    %145 = vector.load %arg14[%c17_120, %c0_121] : memref<160x32xf32, #tpu.memory_space<vmem>>, vector<128x32xf32>
    %c5_122 = arith.constant 5 : index
    %c0_123 = arith.constant 0 : index
    %c0_124 = arith.constant 0 : index
    %146 = vector.load %arg2[%c5_122, %c0_123, %c0_124] : memref<9x128x1xf32, #tpu.memory_space<vmem>>, vector<1x128x1xf32>
    %147 = vector.shape_cast %146 : vector<1x128x1xf32> to vector<128x1xf32>
    %148 = vector.broadcast %147 : vector<128x1xf32> to vector<128x32xf32>
    %149 = arith.mulf %145, %148 : vector<128x32xf32>
    %150 = arith.truncf %149 : vector<128x32xf32> to vector<128x32xbf16>
    %c5_125 = arith.constant 5 : index
    %c0_126 = arith.constant 0 : index
    %c0_127 = arith.constant 0 : index
    %151 = vector.load %arg6[%c5_125, %c0_126, %c0_127] : memref<36x32x32xbf16, #tpu.memory_space<vmem>>, vector<1x32x32xbf16>
    %152 = vector.shape_cast %151 : vector<1x32x32xbf16> to vector<32x32xbf16>
    %cst_128 = arith.constant dense<0.000000e+00> : vector<128x32xf32>
    %153 = tpu.matmul %150, %152, %cst_128 {dimension_numbers = #tpu.dot_dimension_numbers<[1], [0], [0], [1], [0, 0, 1, 1], [], []>} : vector<128x32xbf16>, vector<32x32xbf16>, vector<128x32xf32> -> vector<128x32xf32>
    %154 = arith.addf %144, %153 : vector<128x32xf32>
    %c23_129 = arith.constant 23 : index
    %c0_130 = arith.constant 0 : index
    %155 = vector.load %arg14[%c23_129, %c0_130] : memref<160x32xf32, #tpu.memory_space<vmem>>, vector<128x32xf32>
    %c6_131 = arith.constant 6 : index
    %c0_132 = arith.constant 0 : index
    %c0_133 = arith.constant 0 : index
    %156 = vector.load %arg2[%c6_131, %c0_132, %c0_133] : memref<9x128x1xf32, #tpu.memory_space<vmem>>, vector<1x128x1xf32>
    %157 = vector.shape_cast %156 : vector<1x128x1xf32> to vector<128x1xf32>
    %158 = vector.broadcast %157 : vector<128x1xf32> to vector<128x32xf32>
    %159 = arith.mulf %155, %158 : vector<128x32xf32>
    %160 = arith.truncf %159 : vector<128x32xf32> to vector<128x32xbf16>
    %c6_134 = arith.constant 6 : index
    %c0_135 = arith.constant 0 : index
    %c0_136 = arith.constant 0 : index
    %161 = vector.load %arg6[%c6_134, %c0_135, %c0_136] : memref<36x32x32xbf16, #tpu.memory_space<vmem>>, vector<1x32x32xbf16>
    %162 = vector.shape_cast %161 : vector<1x32x32xbf16> to vector<32x32xbf16>
    %cst_137 = arith.constant dense<0.000000e+00> : vector<128x32xf32>
    %163 = tpu.matmul %160, %162, %cst_137 {dimension_numbers = #tpu.dot_dimension_numbers<[1], [0], [0], [1], [0, 0, 1, 1], [], []>} : vector<128x32xbf16>, vector<32x32xbf16>, vector<128x32xf32> -> vector<128x32xf32>
    %164 = arith.addf %154, %163 : vector<128x32xf32>
    %c24_138 = arith.constant 24 : index
    %c0_139 = arith.constant 0 : index
    %165 = vector.load %arg14[%c24_138, %c0_139] : memref<160x32xf32, #tpu.memory_space<vmem>>, vector<128x32xf32>
    %c7_140 = arith.constant 7 : index
    %c0_141 = arith.constant 0 : index
    %c0_142 = arith.constant 0 : index
    %166 = vector.load %arg2[%c7_140, %c0_141, %c0_142] : memref<9x128x1xf32, #tpu.memory_space<vmem>>, vector<1x128x1xf32>
    %167 = vector.shape_cast %166 : vector<1x128x1xf32> to vector<128x1xf32>
    %168 = vector.broadcast %167 : vector<128x1xf32> to vector<128x32xf32>
    %169 = arith.mulf %165, %168 : vector<128x32xf32>
    %170 = arith.truncf %169 : vector<128x32xf32> to vector<128x32xbf16>
    %c7_143 = arith.constant 7 : index
    %c0_144 = arith.constant 0 : index
    %c0_145 = arith.constant 0 : index
    %171 = vector.load %arg6[%c7_143, %c0_144, %c0_145] : memref<36x32x32xbf16, #tpu.memory_space<vmem>>, vector<1x32x32xbf16>
    %172 = vector.shape_cast %171 : vector<1x32x32xbf16> to vector<32x32xbf16>
    %cst_146 = arith.constant dense<0.000000e+00> : vector<128x32xf32>
    %173 = tpu.matmul %170, %172, %cst_146 {dimension_numbers = #tpu.dot_dimension_numbers<[1], [0], [0], [1], [0, 0, 1, 1], [], []>} : vector<128x32xbf16>, vector<32x32xbf16>, vector<128x32xf32> -> vector<128x32xf32>
    %174 = arith.addf %164, %173 : vector<128x32xf32>
    %c25_147 = arith.constant 25 : index
    %c0_148 = arith.constant 0 : index
    %175 = vector.load %arg14[%c25_147, %c0_148] : memref<160x32xf32, #tpu.memory_space<vmem>>, vector<128x32xf32>
    %c8_149 = arith.constant 8 : index
    %c0_150 = arith.constant 0 : index
    %c0_151 = arith.constant 0 : index
    %176 = vector.load %arg2[%c8_149, %c0_150, %c0_151] : memref<9x128x1xf32, #tpu.memory_space<vmem>>, vector<1x128x1xf32>
    %177 = vector.shape_cast %176 : vector<1x128x1xf32> to vector<128x1xf32>
    %178 = vector.broadcast %177 : vector<128x1xf32> to vector<128x32xf32>
    %179 = arith.mulf %175, %178 : vector<128x32xf32>
    %180 = arith.truncf %179 : vector<128x32xf32> to vector<128x32xbf16>
    %c8_152 = arith.constant 8 : index
    %c0_153 = arith.constant 0 : index
    %c0_154 = arith.constant 0 : index
    %181 = vector.load %arg6[%c8_152, %c0_153, %c0_154] : memref<36x32x32xbf16, #tpu.memory_space<vmem>>, vector<1x32x32xbf16>
    %182 = vector.shape_cast %181 : vector<1x32x32xbf16> to vector<32x32xbf16>
    %cst_155 = arith.constant dense<0.000000e+00> : vector<128x32xf32>
    %183 = tpu.matmul %180, %182, %cst_155 {dimension_numbers = #tpu.dot_dimension_numbers<[1], [0], [0], [1], [0, 0, 1, 1], [], []>} : vector<128x32xbf16>, vector<32x32xbf16>, vector<128x32xf32> -> vector<128x32xf32>
    %184 = arith.addf %174, %183 : vector<128x32xf32>
    %c0_156 = arith.constant 0 : index
    %c0_157 = arith.constant 0 : index
    %c0_158 = arith.constant 0 : index
    %185 = vector.load %arg7[%c0_156, %c0_157, %c0_158] : memref<4x1x32xf32, #tpu.memory_space<vmem>>, vector<1x1x32xf32>
    %186 = vector.shape_cast %185 : vector<1x1x32xf32> to vector<1x32xf32>
    %187 = vector.broadcast %186 : vector<1x32xf32> to vector<128x32xf32>
    %188 = arith.mulf %184, %187 : vector<128x32xf32>
    %c0_159 = arith.constant 0 : index
    %c0_160 = arith.constant 0 : index
    %c0_161 = arith.constant 0 : index
    %189 = vector.load %arg8[%c0_159, %c0_160, %c0_161] : memref<4x1x32xf32, #tpu.memory_space<vmem>>, vector<1x1x32xf32>
    %190 = vector.shape_cast %189 : vector<1x1x32xf32> to vector<1x32xf32>
    %191 = vector.broadcast %190 : vector<1x32xf32> to vector<128x32xf32>
    %192 = arith.addf %188, %191 : vector<128x32xf32>
    %cst_162 = arith.constant 0.000000e+00 : f32
    %193 = vector.broadcast %cst_162 : f32 to vector<128x32xf32>
    %194 = arith.maximumf %192, %193 : vector<128x32xf32>
    %c16_163 = arith.constant 16 : index
    %c0_164 = arith.constant 0 : index
    %195 = vector.load %arg14[%c16_163, %c0_164] : memref<160x32xf32, #tpu.memory_space<vmem>>, vector<128x32xf32>
    tpu.vector_store %arg14[%c16_163, %c0_164], %194 {strides = array<i32>} : memref<160x32xf32, #tpu.memory_space<vmem>>, vector<128x32xf32>,
    %c7_165 = arith.constant 7 : index
    %c0_166 = arith.constant 0 : index
    %196 = vector.load %arg14[%c7_165, %c0_166] : memref<160x32xf32, #tpu.memory_space<vmem>>, vector<128x32xf32>
    %c0_167 = arith.constant 0 : index
    %c0_168 = arith.constant 0 : index
    %c0_169 = arith.constant 0 : index
    %197 = vector.load %arg2[%c0_167, %c0_168, %c0_169] : memref<9x128x1xf32, #tpu.memory_space<vmem>>, vector<1x128x1xf32>
    %198 = vector.shape_cast %197 : vector<1x128x1xf32> to vector<128x1xf32>
    %199 = vector.broadcast %198 : vector<128x1xf32> to vector<128x32xf32>
    %200 = arith.mulf %196, %199 : vector<128x32xf32>
    %201 = arith.truncf %200 : vector<128x32xf32> to vector<128x32xbf16>
    %c9_170 = arith.constant 9 : index
    %c0_171 = arith.constant 0 : index
    %c0_172 = arith.constant 0 : index
    %202 = vector.load %arg6[%c9_170, %c0_171, %c0_172] : memref<36x32x32xbf16, #tpu.memory_space<vmem>>, vector<1x32x32xbf16>
    %203 = vector.shape_cast %202 : vector<1x32x32xbf16> to vector<32x32xbf16>
    %cst_173 = arith.constant dense<0.000000e+00> : vector<128x32xf32>
    %204 = tpu.matmul %201, %203, %cst_173 {dimension_numbers = #tpu.dot_dimension_numbers<[1], [0], [0], [1], [0, 0, 1, 1], [], []>} : vector<128x32xbf16>, vector<32x32xbf16>, vector<128x32xf32> -> vector<128x32xf32>
    %c8_174 = arith.constant 8 : index
    %c0_175 = arith.constant 0 : index
    %205 = vector.load %arg14[%c8_174, %c0_175] : memref<160x32xf32, #tpu.memory_space<vmem>>, vector<128x32xf32>
    %c1_176 = arith.constant 1 : index
    %c0_177 = arith.constant 0 : index
    %c0_178 = arith.constant 0 : index
    %206 = vector.load %arg2[%c1_176, %c0_177, %c0_178] : memref<9x128x1xf32, #tpu.memory_space<vmem>>, vector<1x128x1xf32>
    %207 = vector.shape_cast %206 : vector<1x128x1xf32> to vector<128x1xf32>
    %208 = vector.broadcast %207 : vector<128x1xf32> to vector<128x32xf32>
    %209 = arith.mulf %205, %208 : vector<128x32xf32>
    %210 = arith.truncf %209 : vector<128x32xf32> to vector<128x32xbf16>
    %c10 = arith.constant 10 : index
    %c0_179 = arith.constant 0 : index
    %c0_180 = arith.constant 0 : index
    %211 = vector.load %arg6[%c10, %c0_179, %c0_180] : memref<36x32x32xbf16, #tpu.memory_space<vmem>>, vector<1x32x32xbf16>
    %212 = vector.shape_cast %211 : vector<1x32x32xbf16> to vector<32x32xbf16>
    %cst_181 = arith.constant dense<0.000000e+00> : vector<128x32xf32>
    %213 = tpu.matmul %210, %212, %cst_181 {dimension_numbers = #tpu.dot_dimension_numbers<[1], [0], [0], [1], [0, 0, 1, 1], [], []>} : vector<128x32xbf16>, vector<32x32xbf16>, vector<128x32xf32> -> vector<128x32xf32>
    %214 = arith.addf %204, %213 : vector<128x32xf32>
    %c9_182 = arith.constant 9 : index
    %c0_183 = arith.constant 0 : index
    %215 = vector.load %arg14[%c9_182, %c0_183] : memref<160x32xf32, #tpu.memory_space<vmem>>, vector<128x32xf32>
    %c2_184 = arith.constant 2 : index
    %c0_185 = arith.constant 0 : index
    %c0_186 = arith.constant 0 : index
    %216 = vector.load %arg2[%c2_184, %c0_185, %c0_186] : memref<9x128x1xf32, #tpu.memory_space<vmem>>, vector<1x128x1xf32>
    %217 = vector.shape_cast %216 : vector<1x128x1xf32> to vector<128x1xf32>
    %218 = vector.broadcast %217 : vector<128x1xf32> to vector<128x32xf32>
    %219 = arith.mulf %215, %218 : vector<128x32xf32>
    %220 = arith.truncf %219 : vector<128x32xf32> to vector<128x32xbf16>
    %c11 = arith.constant 11 : index
    %c0_187 = arith.constant 0 : index
    %c0_188 = arith.constant 0 : index
    %221 = vector.load %arg6[%c11, %c0_187, %c0_188] : memref<36x32x32xbf16, #tpu.memory_space<vmem>>, vector<1x32x32xbf16>
    %222 = vector.shape_cast %221 : vector<1x32x32xbf16> to vector<32x32xbf16>
    %cst_189 = arith.constant dense<0.000000e+00> : vector<128x32xf32>
    %223 = tpu.matmul %220, %222, %cst_189 {dimension_numbers = #tpu.dot_dimension_numbers<[1], [0], [0], [1], [0, 0, 1, 1], [], []>} : vector<128x32xbf16>, vector<32x32xbf16>, vector<128x32xf32> -> vector<128x32xf32>
    %224 = arith.addf %214, %223 : vector<128x32xf32>
    %c15_190 = arith.constant 15 : index
    %c0_191 = arith.constant 0 : index
    %225 = vector.load %arg14[%c15_190, %c0_191] : memref<160x32xf32, #tpu.memory_space<vmem>>, vector<128x32xf32>
    %c3_192 = arith.constant 3 : index
    %c0_193 = arith.constant 0 : index
    %c0_194 = arith.constant 0 : index
    %226 = vector.load %arg2[%c3_192, %c0_193, %c0_194] : memref<9x128x1xf32, #tpu.memory_space<vmem>>, vector<1x128x1xf32>
    %227 = vector.shape_cast %226 : vector<1x128x1xf32> to vector<128x1xf32>
    %228 = vector.broadcast %227 : vector<128x1xf32> to vector<128x32xf32>
    %229 = arith.mulf %225, %228 : vector<128x32xf32>
    %230 = arith.truncf %229 : vector<128x32xf32> to vector<128x32xbf16>
    %c12 = arith.constant 12 : index
    %c0_195 = arith.constant 0 : index
    %c0_196 = arith.constant 0 : index
    %231 = vector.load %arg6[%c12, %c0_195, %c0_196] : memref<36x32x32xbf16, #tpu.memory_space<vmem>>, vector<1x32x32xbf16>
    %232 = vector.shape_cast %231 : vector<1x32x32xbf16> to vector<32x32xbf16>
    %cst_197 = arith.constant dense<0.000000e+00> : vector<128x32xf32>
    %233 = tpu.matmul %230, %232, %cst_197 {dimension_numbers = #tpu.dot_dimension_numbers<[1], [0], [0], [1], [0, 0, 1, 1], [], []>} : vector<128x32xbf16>, vector<32x32xbf16>, vector<128x32xf32> -> vector<128x32xf32>
    %234 = arith.addf %224, %233 : vector<128x32xf32>
    %c16_198 = arith.constant 16 : index
    %c0_199 = arith.constant 0 : index
    %235 = vector.load %arg14[%c16_198, %c0_199] : memref<160x32xf32, #tpu.memory_space<vmem>>, vector<128x32xf32>
    %236 = arith.truncf %235 : vector<128x32xf32> to vector<128x32xbf16>
    %c13 = arith.constant 13 : index
    %c0_200 = arith.constant 0 : index
    %c0_201 = arith.constant 0 : index
    %237 = vector.load %arg6[%c13, %c0_200, %c0_201] : memref<36x32x32xbf16, #tpu.memory_space<vmem>>, vector<1x32x32xbf16>
    %238 = vector.shape_cast %237 : vector<1x32x32xbf16> to vector<32x32xbf16>
    %cst_202 = arith.constant dense<0.000000e+00> : vector<128x32xf32>
    %239 = tpu.matmul %236, %238, %cst_202 {dimension_numbers = #tpu.dot_dimension_numbers<[1], [0], [0], [1], [0, 0, 1, 1], [], []>} : vector<128x32xbf16>, vector<32x32xbf16>, vector<128x32xf32> -> vector<128x32xf32>
    %240 = arith.addf %234, %239 : vector<128x32xf32>
    %c17_203 = arith.constant 17 : index
    %c0_204 = arith.constant 0 : index
    %241 = vector.load %arg14[%c17_203, %c0_204] : memref<160x32xf32, #tpu.memory_space<vmem>>, vector<128x32xf32>
    %c5_205 = arith.constant 5 : index
    %c0_206 = arith.constant 0 : index
    %c0_207 = arith.constant 0 : index
    %242 = vector.load %arg2[%c5_205, %c0_206, %c0_207] : memref<9x128x1xf32, #tpu.memory_space<vmem>>, vector<1x128x1xf32>
    %243 = vector.shape_cast %242 : vector<1x128x1xf32> to vector<128x1xf32>
    %244 = vector.broadcast %243 : vector<128x1xf32> to vector<128x32xf32>
    %245 = arith.mulf %241, %244 : vector<128x32xf32>
    %246 = arith.truncf %245 : vector<128x32xf32> to vector<128x32xbf16>
    %c14 = arith.constant 14 : index
    %c0_208 = arith.constant 0 : index
    %c0_209 = arith.constant 0 : index
    %247 = vector.load %arg6[%c14, %c0_208, %c0_209] : memref<36x32x32xbf16, #tpu.memory_space<vmem>>, vector<1x32x32xbf16>
    %248 = vector.shape_cast %247 : vector<1x32x32xbf16> to vector<32x32xbf16>
    %cst_210 = arith.constant dense<0.000000e+00> : vector<128x32xf32>
    %249 = tpu.matmul %246, %248, %cst_210 {dimension_numbers = #tpu.dot_dimension_numbers<[1], [0], [0], [1], [0, 0, 1, 1], [], []>} : vector<128x32xbf16>, vector<32x32xbf16>, vector<128x32xf32> -> vector<128x32xf32>
    %250 = arith.addf %240, %249 : vector<128x32xf32>
    %c23_211 = arith.constant 23 : index
    %c0_212 = arith.constant 0 : index
    %251 = vector.load %arg14[%c23_211, %c0_212] : memref<160x32xf32, #tpu.memory_space<vmem>>, vector<128x32xf32>
    %c6_213 = arith.constant 6 : index
    %c0_214 = arith.constant 0 : index
    %c0_215 = arith.constant 0 : index
    %252 = vector.load %arg2[%c6_213, %c0_214, %c0_215] : memref<9x128x1xf32, #tpu.memory_space<vmem>>, vector<1x128x1xf32>
    %253 = vector.shape_cast %252 : vector<1x128x1xf32> to vector<128x1xf32>
    %254 = vector.broadcast %253 : vector<128x1xf32> to vector<128x32xf32>
    %255 = arith.mulf %251, %254 : vector<128x32xf32>
    %256 = arith.truncf %255 : vector<128x32xf32> to vector<128x32xbf16>
    %c15_216 = arith.constant 15 : index
    %c0_217 = arith.constant 0 : index
    %c0_218 = arith.constant 0 : index
    %257 = vector.load %arg6[%c15_216, %c0_217, %c0_218] : memref<36x32x32xbf16, #tpu.memory_space<vmem>>, vector<1x32x32xbf16>
    %258 = vector.shape_cast %257 : vector<1x32x32xbf16> to vector<32x32xbf16>
    %cst_219 = arith.constant dense<0.000000e+00> : vector<128x32xf32>
    %259 = tpu.matmul %256, %258, %cst_219 {dimension_numbers = #tpu.dot_dimension_numbers<[1], [0], [0], [1], [0, 0, 1, 1], [], []>} : vector<128x32xbf16>, vector<32x32xbf16>, vector<128x32xf32> -> vector<128x32xf32>
    %260 = arith.addf %250, %259 : vector<128x32xf32>
    %c24_220 = arith.constant 24 : index
    %c0_221 = arith.constant 0 : index
    %261 = vector.load %arg14[%c24_220, %c0_221] : memref<160x32xf32, #tpu.memory_space<vmem>>, vector<128x32xf32>
    %c7_222 = arith.constant 7 : index
    %c0_223 = arith.constant 0 : index
    %c0_224 = arith.constant 0 : index
    %262 = vector.load %arg2[%c7_222, %c0_223, %c0_224] : memref<9x128x1xf32, #tpu.memory_space<vmem>>, vector<1x128x1xf32>
    %263 = vector.shape_cast %262 : vector<1x128x1xf32> to vector<128x1xf32>
    %264 = vector.broadcast %263 : vector<128x1xf32> to vector<128x32xf32>
    %265 = arith.mulf %261, %264 : vector<128x32xf32>
    %266 = arith.truncf %265 : vector<128x32xf32> to vector<128x32xbf16>
    %c16_225 = arith.constant 16 : index
    %c0_226 = arith.constant 0 : index
    %c0_227 = arith.constant 0 : index
    %267 = vector.load %arg6[%c16_225, %c0_226, %c0_227] : memref<36x32x32xbf16, #tpu.memory_space<vmem>>, vector<1x32x32xbf16>
    %268 = vector.shape_cast %267 : vector<1x32x32xbf16> to vector<32x32xbf16>
    %cst_228 = arith.constant dense<0.000000e+00> : vector<128x32xf32>
    %269 = tpu.matmul %266, %268, %cst_228 {dimension_numbers = #tpu.dot_dimension_numbers<[1], [0], [0], [1], [0, 0, 1, 1], [], []>} : vector<128x32xbf16>, vector<32x32xbf16>, vector<128x32xf32> -> vector<128x32xf32>
    %270 = arith.addf %260, %269 : vector<128x32xf32>
    %c25_229 = arith.constant 25 : index
    %c0_230 = arith.constant 0 : index
    %271 = vector.load %arg14[%c25_229, %c0_230] : memref<160x32xf32, #tpu.memory_space<vmem>>, vector<128x32xf32>
    %c8_231 = arith.constant 8 : index
    %c0_232 = arith.constant 0 : index
    %c0_233 = arith.constant 0 : index
    %272 = vector.load %arg2[%c8_231, %c0_232, %c0_233] : memref<9x128x1xf32, #tpu.memory_space<vmem>>, vector<1x128x1xf32>
    %273 = vector.shape_cast %272 : vector<1x128x1xf32> to vector<128x1xf32>
    %274 = vector.broadcast %273 : vector<128x1xf32> to vector<128x32xf32>
    %275 = arith.mulf %271, %274 : vector<128x32xf32>
    %276 = arith.truncf %275 : vector<128x32xf32> to vector<128x32xbf16>
    %c17_234 = arith.constant 17 : index
    %c0_235 = arith.constant 0 : index
    %c0_236 = arith.constant 0 : index
    %277 = vector.load %arg6[%c17_234, %c0_235, %c0_236] : memref<36x32x32xbf16, #tpu.memory_space<vmem>>, vector<1x32x32xbf16>
    %278 = vector.shape_cast %277 : vector<1x32x32xbf16> to vector<32x32xbf16>
    %cst_237 = arith.constant dense<0.000000e+00> : vector<128x32xf32>
    %279 = tpu.matmul %276, %278, %cst_237 {dimension_numbers = #tpu.dot_dimension_numbers<[1], [0], [0], [1], [0, 0, 1, 1], [], []>} : vector<128x32xbf16>, vector<32x32xbf16>, vector<128x32xf32> -> vector<128x32xf32>
    %280 = arith.addf %270, %279 : vector<128x32xf32>
    %c1_238 = arith.constant 1 : index
    %c0_239 = arith.constant 0 : index
    %c0_240 = arith.constant 0 : index
    %281 = vector.load %arg7[%c1_238, %c0_239, %c0_240] : memref<4x1x32xf32, #tpu.memory_space<vmem>>, vector<1x1x32xf32>
    %282 = vector.shape_cast %281 : vector<1x1x32xf32> to vector<1x32xf32>
    %283 = vector.broadcast %282 : vector<1x32xf32> to vector<128x32xf32>
    %284 = arith.mulf %280, %283 : vector<128x32xf32>
    %c1_241 = arith.constant 1 : index
    %c0_242 = arith.constant 0 : index
    %c0_243 = arith.constant 0 : index
    %285 = vector.load %arg8[%c1_241, %c0_242, %c0_243] : memref<4x1x32xf32, #tpu.memory_space<vmem>>, vector<1x1x32xf32>
    %286 = vector.shape_cast %285 : vector<1x1x32xf32> to vector<1x32xf32>
    %287 = vector.broadcast %286 : vector<1x32xf32> to vector<128x32xf32>
    %288 = arith.addf %284, %287 : vector<128x32xf32>
    %289 = arith.addf %288, %98 : vector<128x32xf32>
    %cst_244 = arith.constant 0.000000e+00 : f32
    %290 = vector.broadcast %cst_244 : f32 to vector<128x32xf32>
    %291 = arith.maximumf %289, %290 : vector<128x32xf32>
    %c16_245 = arith.constant 16 : index
    %c0_246 = arith.constant 0 : index
    %292 = vector.load %arg14[%c16_245, %c0_246] : memref<160x32xf32, #tpu.memory_space<vmem>>, vector<128x32xf32>
    tpu.vector_store %arg14[%c16_245, %c0_246], %291 {strides = array<i32>} : memref<160x32xf32, #tpu.memory_space<vmem>>, vector<128x32xf32>,
    %c7_247 = arith.constant 7 : index
    %c0_248 = arith.constant 0 : index
    %293 = vector.load %arg14[%c7_247, %c0_248] : memref<160x32xf32, #tpu.memory_space<vmem>>, vector<128x32xf32>
    %c0_249 = arith.constant 0 : index
    %c0_250 = arith.constant 0 : index
    %c0_251 = arith.constant 0 : index
    %294 = vector.load %arg2[%c0_249, %c0_250, %c0_251] : memref<9x128x1xf32, #tpu.memory_space<vmem>>, vector<1x128x1xf32>
    %295 = vector.shape_cast %294 : vector<1x128x1xf32> to vector<128x1xf32>
    %296 = vector.broadcast %295 : vector<128x1xf32> to vector<128x32xf32>
    %297 = arith.mulf %293, %296 : vector<128x32xf32>
    %298 = arith.truncf %297 : vector<128x32xf32> to vector<128x32xbf16>
    %c18 = arith.constant 18 : index
    %c0_252 = arith.constant 0 : index
    %c0_253 = arith.constant 0 : index
    %299 = vector.load %arg6[%c18, %c0_252, %c0_253] : memref<36x32x32xbf16, #tpu.memory_space<vmem>>, vector<1x32x32xbf16>
    %300 = vector.shape_cast %299 : vector<1x32x32xbf16> to vector<32x32xbf16>
    %cst_254 = arith.constant dense<0.000000e+00> : vector<128x32xf32>
    %301 = tpu.matmul %298, %300, %cst_254 {dimension_numbers = #tpu.dot_dimension_numbers<[1], [0], [0], [1], [0, 0, 1, 1], [], []>} : vector<128x32xbf16>, vector<32x32xbf16>, vector<128x32xf32> -> vector<128x32xf32>
    %c8_255 = arith.constant 8 : index
    %c0_256 = arith.constant 0 : index
    %302 = vector.load %arg14[%c8_255, %c0_256] : memref<160x32xf32, #tpu.memory_space<vmem>>, vector<128x32xf32>
    %c1_257 = arith.constant 1 : index
    %c0_258 = arith.constant 0 : index
    %c0_259 = arith.constant 0 : index
    %303 = vector.load %arg2[%c1_257, %c0_258, %c0_259] : memref<9x128x1xf32, #tpu.memory_space<vmem>>, vector<1x128x1xf32>
    %304 = vector.shape_cast %303 : vector<1x128x1xf32> to vector<128x1xf32>
    %305 = vector.broadcast %304 : vector<128x1xf32> to vector<128x32xf32>
    %306 = arith.mulf %302, %305 : vector<128x32xf32>
    %307 = arith.truncf %306 : vector<128x32xf32> to vector<128x32xbf16>
    %c19 = arith.constant 19 : index
    %c0_260 = arith.constant 0 : index
    %c0_261 = arith.constant 0 : index
    %308 = vector.load %arg6[%c19, %c0_260, %c0_261] : memref<36x32x32xbf16, #tpu.memory_space<vmem>>, vector<1x32x32xbf16>
    %309 = vector.shape_cast %308 : vector<1x32x32xbf16> to vector<32x32xbf16>
    %cst_262 = arith.constant dense<0.000000e+00> : vector<128x32xf32>
    %310 = tpu.matmul %307, %309, %cst_262 {dimension_numbers = #tpu.dot_dimension_numbers<[1], [0], [0], [1], [0, 0, 1, 1], [], []>} : vector<128x32xbf16>, vector<32x32xbf16>, vector<128x32xf32> -> vector<128x32xf32>
    %311 = arith.addf %301, %310 : vector<128x32xf32>
    %c9_263 = arith.constant 9 : index
    %c0_264 = arith.constant 0 : index
    %312 = vector.load %arg14[%c9_263, %c0_264] : memref<160x32xf32, #tpu.memory_space<vmem>>, vector<128x32xf32>
    %c2_265 = arith.constant 2 : index
    %c0_266 = arith.constant 0 : index
    %c0_267 = arith.constant 0 : index
    %313 = vector.load %arg2[%c2_265, %c0_266, %c0_267] : memref<9x128x1xf32, #tpu.memory_space<vmem>>, vector<1x128x1xf32>
    %314 = vector.shape_cast %313 : vector<1x128x1xf32> to vector<128x1xf32>
    %315 = vector.broadcast %314 : vector<128x1xf32> to vector<128x32xf32>
    %316 = arith.mulf %312, %315 : vector<128x32xf32>
    %317 = arith.truncf %316 : vector<128x32xf32> to vector<128x32xbf16>
    %c20 = arith.constant 20 : index
    %c0_268 = arith.constant 0 : index
    %c0_269 = arith.constant 0 : index
    %318 = vector.load %arg6[%c20, %c0_268, %c0_269] : memref<36x32x32xbf16, #tpu.memory_space<vmem>>, vector<1x32x32xbf16>
    %319 = vector.shape_cast %318 : vector<1x32x32xbf16> to vector<32x32xbf16>
    %cst_270 = arith.constant dense<0.000000e+00> : vector<128x32xf32>
    %320 = tpu.matmul %317, %319, %cst_270 {dimension_numbers = #tpu.dot_dimension_numbers<[1], [0], [0], [1], [0, 0, 1, 1], [], []>} : vector<128x32xbf16>, vector<32x32xbf16>, vector<128x32xf32> -> vector<128x32xf32>
    %321 = arith.addf %311, %320 : vector<128x32xf32>
    %c15_271 = arith.constant 15 : index
    %c0_272 = arith.constant 0 : index
    %322 = vector.load %arg14[%c15_271, %c0_272] : memref<160x32xf32, #tpu.memory_space<vmem>>, vector<128x32xf32>
    %c3_273 = arith.constant 3 : index
    %c0_274 = arith.constant 0 : index
    %c0_275 = arith.constant 0 : index
    %323 = vector.load %arg2[%c3_273, %c0_274, %c0_275] : memref<9x128x1xf32, #tpu.memory_space<vmem>>, vector<1x128x1xf32>
    %324 = vector.shape_cast %323 : vector<1x128x1xf32> to vector<128x1xf32>
    %325 = vector.broadcast %324 : vector<128x1xf32> to vector<128x32xf32>
    %326 = arith.mulf %322, %325 : vector<128x32xf32>
    %327 = arith.truncf %326 : vector<128x32xf32> to vector<128x32xbf16>
    %c21 = arith.constant 21 : index
    %c0_276 = arith.constant 0 : index
    %c0_277 = arith.constant 0 : index
    %328 = vector.load %arg6[%c21, %c0_276, %c0_277] : memref<36x32x32xbf16, #tpu.memory_space<vmem>>, vector<1x32x32xbf16>
    %329 = vector.shape_cast %328 : vector<1x32x32xbf16> to vector<32x32xbf16>
    %cst_278 = arith.constant dense<0.000000e+00> : vector<128x32xf32>
    %330 = tpu.matmul %327, %329, %cst_278 {dimension_numbers = #tpu.dot_dimension_numbers<[1], [0], [0], [1], [0, 0, 1, 1], [], []>} : vector<128x32xbf16>, vector<32x32xbf16>, vector<128x32xf32> -> vector<128x32xf32>
    %331 = arith.addf %321, %330 : vector<128x32xf32>
    %c16_279 = arith.constant 16 : index
    %c0_280 = arith.constant 0 : index
    %332 = vector.load %arg14[%c16_279, %c0_280] : memref<160x32xf32, #tpu.memory_space<vmem>>, vector<128x32xf32>
    %333 = arith.truncf %332 : vector<128x32xf32> to vector<128x32xbf16>
    %c22 = arith.constant 22 : index
    %c0_281 = arith.constant 0 : index
    %c0_282 = arith.constant 0 : index
    %334 = vector.load %arg6[%c22, %c0_281, %c0_282] : memref<36x32x32xbf16, #tpu.memory_space<vmem>>, vector<1x32x32xbf16>
    %335 = vector.shape_cast %334 : vector<1x32x32xbf16> to vector<32x32xbf16>
    %cst_283 = arith.constant dense<0.000000e+00> : vector<128x32xf32>
    %336 = tpu.matmul %333, %335, %cst_283 {dimension_numbers = #tpu.dot_dimension_numbers<[1], [0], [0], [1], [0, 0, 1, 1], [], []>} : vector<128x32xbf16>, vector<32x32xbf16>, vector<128x32xf32> -> vector<128x32xf32>
    %337 = arith.addf %331, %336 : vector<128x32xf32>
    %c17_284 = arith.constant 17 : index
    %c0_285 = arith.constant 0 : index
    %338 = vector.load %arg14[%c17_284, %c0_285] : memref<160x32xf32, #tpu.memory_space<vmem>>, vector<128x32xf32>
    %c5_286 = arith.constant 5 : index
    %c0_287 = arith.constant 0 : index
    %c0_288 = arith.constant 0 : index
    %339 = vector.load %arg2[%c5_286, %c0_287, %c0_288] : memref<9x128x1xf32, #tpu.memory_space<vmem>>, vector<1x128x1xf32>
    %340 = vector.shape_cast %339 : vector<1x128x1xf32> to vector<128x1xf32>
    %341 = vector.broadcast %340 : vector<128x1xf32> to vector<128x32xf32>
    %342 = arith.mulf %338, %341 : vector<128x32xf32>
    %343 = arith.truncf %342 : vector<128x32xf32> to vector<128x32xbf16>
    %c23_289 = arith.constant 23 : index
    %c0_290 = arith.constant 0 : index
    %c0_291 = arith.constant 0 : index
    %344 = vector.load %arg6[%c23_289, %c0_290, %c0_291] : memref<36x32x32xbf16, #tpu.memory_space<vmem>>, vector<1x32x32xbf16>
    %345 = vector.shape_cast %344 : vector<1x32x32xbf16> to vector<32x32xbf16>
    %cst_292 = arith.constant dense<0.000000e+00> : vector<128x32xf32>
    %346 = tpu.matmul %343, %345, %cst_292 {dimension_numbers = #tpu.dot_dimension_numbers<[1], [0], [0], [1], [0, 0, 1, 1], [], []>} : vector<128x32xbf16>, vector<32x32xbf16>, vector<128x32xf32> -> vector<128x32xf32>
    %347 = arith.addf %337, %346 : vector<128x32xf32>
    %c23_293 = arith.constant 23 : index
    %c0_294 = arith.constant 0 : index
    %348 = vector.load %arg14[%c23_293, %c0_294] : memref<160x32xf32, #tpu.memory_space<vmem>>, vector<128x32xf32>
    %c6_295 = arith.constant 6 : index
    %c0_296 = arith.constant 0 : index
    %c0_297 = arith.constant 0 : index
    %349 = vector.load %arg2[%c6_295, %c0_296, %c0_297] : memref<9x128x1xf32, #tpu.memory_space<vmem>>, vector<1x128x1xf32>
    %350 = vector.shape_cast %349 : vector<1x128x1xf32> to vector<128x1xf32>
    %351 = vector.broadcast %350 : vector<128x1xf32> to vector<128x32xf32>
    %352 = arith.mulf %348, %351 : vector<128x32xf32>
    %353 = arith.truncf %352 : vector<128x32xf32> to vector<128x32xbf16>
    %c24_298 = arith.constant 24 : index
    %c0_299 = arith.constant 0 : index
    %c0_300 = arith.constant 0 : index
    %354 = vector.load %arg6[%c24_298, %c0_299, %c0_300] : memref<36x32x32xbf16, #tpu.memory_space<vmem>>, vector<1x32x32xbf16>
    %355 = vector.shape_cast %354 : vector<1x32x32xbf16> to vector<32x32xbf16>
    %cst_301 = arith.constant dense<0.000000e+00> : vector<128x32xf32>
    %356 = tpu.matmul %353, %355, %cst_301 {dimension_numbers = #tpu.dot_dimension_numbers<[1], [0], [0], [1], [0, 0, 1, 1], [], []>} : vector<128x32xbf16>, vector<32x32xbf16>, vector<128x32xf32> -> vector<128x32xf32>
    %357 = arith.addf %347, %356 : vector<128x32xf32>
    %c24_302 = arith.constant 24 : index
    %c0_303 = arith.constant 0 : index
    %358 = vector.load %arg14[%c24_302, %c0_303] : memref<160x32xf32, #tpu.memory_space<vmem>>, vector<128x32xf32>
    %c7_304 = arith.constant 7 : index
    %c0_305 = arith.constant 0 : index
    %c0_306 = arith.constant 0 : index
    %359 = vector.load %arg2[%c7_304, %c0_305, %c0_306] : memref<9x128x1xf32, #tpu.memory_space<vmem>>, vector<1x128x1xf32>
    %360 = vector.shape_cast %359 : vector<1x128x1xf32> to vector<128x1xf32>
    %361 = vector.broadcast %360 : vector<128x1xf32> to vector<128x32xf32>
    %362 = arith.mulf %358, %361 : vector<128x32xf32>
    %363 = arith.truncf %362 : vector<128x32xf32> to vector<128x32xbf16>
    %c25_307 = arith.constant 25 : index
    %c0_308 = arith.constant 0 : index
    %c0_309 = arith.constant 0 : index
    %364 = vector.load %arg6[%c25_307, %c0_308, %c0_309] : memref<36x32x32xbf16, #tpu.memory_space<vmem>>, vector<1x32x32xbf16>
    %365 = vector.shape_cast %364 : vector<1x32x32xbf16> to vector<32x32xbf16>
    %cst_310 = arith.constant dense<0.000000e+00> : vector<128x32xf32>
    %366 = tpu.matmul %363, %365, %cst_310 {dimension_numbers = #tpu.dot_dimension_numbers<[1], [0], [0], [1], [0, 0, 1, 1], [], []>} : vector<128x32xbf16>, vector<32x32xbf16>, vector<128x32xf32> -> vector<128x32xf32>
    %367 = arith.addf %357, %366 : vector<128x32xf32>
    %c25_311 = arith.constant 25 : index
    %c0_312 = arith.constant 0 : index
    %368 = vector.load %arg14[%c25_311, %c0_312] : memref<160x32xf32, #tpu.memory_space<vmem>>, vector<128x32xf32>
    %c8_313 = arith.constant 8 : index
    %c0_314 = arith.constant 0 : index
    %c0_315 = arith.constant 0 : index
    %369 = vector.load %arg2[%c8_313, %c0_314, %c0_315] : memref<9x128x1xf32, #tpu.memory_space<vmem>>, vector<1x128x1xf32>
    %370 = vector.shape_cast %369 : vector<1x128x1xf32> to vector<128x1xf32>
    %371 = vector.broadcast %370 : vector<128x1xf32> to vector<128x32xf32>
    %372 = arith.mulf %368, %371 : vector<128x32xf32>
    %373 = arith.truncf %372 : vector<128x32xf32> to vector<128x32xbf16>
    %c26 = arith.constant 26 : index
    %c0_316 = arith.constant 0 : index
    %c0_317 = arith.constant 0 : index
    %374 = vector.load %arg6[%c26, %c0_316, %c0_317] : memref<36x32x32xbf16, #tpu.memory_space<vmem>>, vector<1x32x32xbf16>
    %375 = vector.shape_cast %374 : vector<1x32x32xbf16> to vector<32x32xbf16>
    %cst_318 = arith.constant dense<0.000000e+00> : vector<128x32xf32>
    %376 = tpu.matmul %373, %375, %cst_318 {dimension_numbers = #tpu.dot_dimension_numbers<[1], [0], [0], [1], [0, 0, 1, 1], [], []>} : vector<128x32xbf16>, vector<32x32xbf16>, vector<128x32xf32> -> vector<128x32xf32>
    %377 = arith.addf %367, %376 : vector<128x32xf32>
    %c2_319 = arith.constant 2 : index
    %c0_320 = arith.constant 0 : index
    %c0_321 = arith.constant 0 : index
    %378 = vector.load %arg7[%c2_319, %c0_320, %c0_321] : memref<4x1x32xf32, #tpu.memory_space<vmem>>, vector<1x1x32xf32>
    %379 = vector.shape_cast %378 : vector<1x1x32xf32> to vector<1x32xf32>
    %380 = vector.broadcast %379 : vector<1x32xf32> to vector<128x32xf32>
    %381 = arith.mulf %377, %380 : vector<128x32xf32>
    %c2_322 = arith.constant 2 : index
    %c0_323 = arith.constant 0 : index
    %c0_324 = arith.constant 0 : index
    %382 = vector.load %arg8[%c2_322, %c0_323, %c0_324] : memref<4x1x32xf32, #tpu.memory_space<vmem>>, vector<1x1x32xf32>
    %383 = vector.shape_cast %382 : vector<1x1x32xf32> to vector<1x32xf32>
    %384 = vector.broadcast %383 : vector<1x32xf32> to vector<128x32xf32>
    %385 = arith.addf %381, %384 : vector<128x32xf32>
    %cst_325 = arith.constant 0.000000e+00 : f32
    %386 = vector.broadcast %cst_325 : f32 to vector<128x32xf32>
    %387 = arith.maximumf %385, %386 : vector<128x32xf32>
    %c16_326 = arith.constant 16 : index
    %c0_327 = arith.constant 0 : index
    %388 = vector.load %arg14[%c16_326, %c0_327] : memref<160x32xf32, #tpu.memory_space<vmem>>, vector<128x32xf32>
    tpu.vector_store %arg14[%c16_326, %c0_327], %387 {strides = array<i32>} : memref<160x32xf32, #tpu.memory_space<vmem>>, vector<128x32xf32>,
    %c7_328 = arith.constant 7 : index
    %c0_329 = arith.constant 0 : index
    %389 = vector.load %arg14[%c7_328, %c0_329] : memref<160x32xf32, #tpu.memory_space<vmem>>, vector<128x32xf32>
    %c0_330 = arith.constant 0 : index
    %c0_331 = arith.constant 0 : index
    %c0_332 = arith.constant 0 : index
    %390 = vector.load %arg2[%c0_330, %c0_331, %c0_332] : memref<9x128x1xf32, #tpu.memory_space<vmem>>, vector<1x128x1xf32>
    %391 = vector.shape_cast %390 : vector<1x128x1xf32> to vector<128x1xf32>
    %392 = vector.broadcast %391 : vector<128x1xf32> to vector<128x32xf32>
    %393 = arith.mulf %389, %392 : vector<128x32xf32>
    %394 = arith.truncf %393 : vector<128x32xf32> to vector<128x32xbf16>
    %c27 = arith.constant 27 : index
    %c0_333 = arith.constant 0 : index
    %c0_334 = arith.constant 0 : index
    %395 = vector.load %arg6[%c27, %c0_333, %c0_334] : memref<36x32x32xbf16, #tpu.memory_space<vmem>>, vector<1x32x32xbf16>
    %396 = vector.shape_cast %395 : vector<1x32x32xbf16> to vector<32x32xbf16>
    %cst_335 = arith.constant dense<0.000000e+00> : vector<128x32xf32>
    %397 = tpu.matmul %394, %396, %cst_335 {dimension_numbers = #tpu.dot_dimension_numbers<[1], [0], [0], [1], [0, 0, 1, 1], [], []>} : vector<128x32xbf16>, vector<32x32xbf16>, vector<128x32xf32> -> vector<128x32xf32>
    %c8_336 = arith.constant 8 : index
    %c0_337 = arith.constant 0 : index
    %398 = vector.load %arg14[%c8_336, %c0_337] : memref<160x32xf32, #tpu.memory_space<vmem>>, vector<128x32xf32>
    %c1_338 = arith.constant 1 : index
    %c0_339 = arith.constant 0 : index
    %c0_340 = arith.constant 0 : index
    %399 = vector.load %arg2[%c1_338, %c0_339, %c0_340] : memref<9x128x1xf32, #tpu.memory_space<vmem>>, vector<1x128x1xf32>
    %400 = vector.shape_cast %399 : vector<1x128x1xf32> to vector<128x1xf32>
    %401 = vector.broadcast %400 : vector<128x1xf32> to vector<128x32xf32>
    %402 = arith.mulf %398, %401 : vector<128x32xf32>
    %403 = arith.truncf %402 : vector<128x32xf32> to vector<128x32xbf16>
    %c28 = arith.constant 28 : index
    %c0_341 = arith.constant 0 : index
    %c0_342 = arith.constant 0 : index
    %404 = vector.load %arg6[%c28, %c0_341, %c0_342] : memref<36x32x32xbf16, #tpu.memory_space<vmem>>, vector<1x32x32xbf16>
    %405 = vector.shape_cast %404 : vector<1x32x32xbf16> to vector<32x32xbf16>
    %cst_343 = arith.constant dense<0.000000e+00> : vector<128x32xf32>
    %406 = tpu.matmul %403, %405, %cst_343 {dimension_numbers = #tpu.dot_dimension_numbers<[1], [0], [0], [1], [0, 0, 1, 1], [], []>} : vector<128x32xbf16>, vector<32x32xbf16>, vector<128x32xf32> -> vector<128x32xf32>
    %407 = arith.addf %397, %406 : vector<128x32xf32>
    %c9_344 = arith.constant 9 : index
    %c0_345 = arith.constant 0 : index
    %408 = vector.load %arg14[%c9_344, %c0_345] : memref<160x32xf32, #tpu.memory_space<vmem>>, vector<128x32xf32>
    %c2_346 = arith.constant 2 : index
    %c0_347 = arith.constant 0 : index
    %c0_348 = arith.constant 0 : index
    %409 = vector.load %arg2[%c2_346, %c0_347, %c0_348] : memref<9x128x1xf32, #tpu.memory_space<vmem>>, vector<1x128x1xf32>
    %410 = vector.shape_cast %409 : vector<1x128x1xf32> to vector<128x1xf32>
    %411 = vector.broadcast %410 : vector<128x1xf32> to vector<128x32xf32>
    %412 = arith.mulf %408, %411 : vector<128x32xf32>
    %413 = arith.truncf %412 : vector<128x32xf32> to vector<128x32xbf16>
    %c29 = arith.constant 29 : index
    %c0_349 = arith.constant 0 : index
    %c0_350 = arith.constant 0 : index
    %414 = vector.load %arg6[%c29, %c0_349, %c0_350] : memref<36x32x32xbf16, #tpu.memory_space<vmem>>, vector<1x32x32xbf16>
    %415 = vector.shape_cast %414 : vector<1x32x32xbf16> to vector<32x32xbf16>
    %cst_351 = arith.constant dense<0.000000e+00> : vector<128x32xf32>
    %416 = tpu.matmul %413, %415, %cst_351 {dimension_numbers = #tpu.dot_dimension_numbers<[1], [0], [0], [1], [0, 0, 1, 1], [], []>} : vector<128x32xbf16>, vector<32x32xbf16>, vector<128x32xf32> -> vector<128x32xf32>
    %417 = arith.addf %407, %416 : vector<128x32xf32>
    %c15_352 = arith.constant 15 : index
    %c0_353 = arith.constant 0 : index
    %418 = vector.load %arg14[%c15_352, %c0_353] : memref<160x32xf32, #tpu.memory_space<vmem>>, vector<128x32xf32>
    %c3_354 = arith.constant 3 : index
    %c0_355 = arith.constant 0 : index
    %c0_356 = arith.constant 0 : index
    %419 = vector.load %arg2[%c3_354, %c0_355, %c0_356] : memref<9x128x1xf32, #tpu.memory_space<vmem>>, vector<1x128x1xf32>
    %420 = vector.shape_cast %419 : vector<1x128x1xf32> to vector<128x1xf32>
    %421 = vector.broadcast %420 : vector<128x1xf32> to vector<128x32xf32>
    %422 = arith.mulf %418, %421 : vector<128x32xf32>
    %423 = arith.truncf %422 : vector<128x32xf32> to vector<128x32xbf16>
    %c30 = arith.constant 30 : index
    %c0_357 = arith.constant 0 : index
    %c0_358 = arith.constant 0 : index
    %424 = vector.load %arg6[%c30, %c0_357, %c0_358] : memref<36x32x32xbf16, #tpu.memory_space<vmem>>, vector<1x32x32xbf16>
    %425 = vector.shape_cast %424 : vector<1x32x32xbf16> to vector<32x32xbf16>
    %cst_359 = arith.constant dense<0.000000e+00> : vector<128x32xf32>
    %426 = tpu.matmul %423, %425, %cst_359 {dimension_numbers = #tpu.dot_dimension_numbers<[1], [0], [0], [1], [0, 0, 1, 1], [], []>} : vector<128x32xbf16>, vector<32x32xbf16>, vector<128x32xf32> -> vector<128x32xf32>
    %427 = arith.addf %417, %426 : vector<128x32xf32>
    %c16_360 = arith.constant 16 : index
    %c0_361 = arith.constant 0 : index
    %428 = vector.load %arg14[%c16_360, %c0_361] : memref<160x32xf32, #tpu.memory_space<vmem>>, vector<128x32xf32>
    %429 = arith.truncf %428 : vector<128x32xf32> to vector<128x32xbf16>
    %c31 = arith.constant 31 : index
    %c0_362 = arith.constant 0 : index
    %c0_363 = arith.constant 0 : index
    %430 = vector.load %arg6[%c31, %c0_362, %c0_363] : memref<36x32x32xbf16, #tpu.memory_space<vmem>>, vector<1x32x32xbf16>
    %431 = vector.shape_cast %430 : vector<1x32x32xbf16> to vector<32x32xbf16>
    %cst_364 = arith.constant dense<0.000000e+00> : vector<128x32xf32>
    %432 = tpu.matmul %429, %431, %cst_364 {dimension_numbers = #tpu.dot_dimension_numbers<[1], [0], [0], [1], [0, 0, 1, 1], [], []>} : vector<128x32xbf16>, vector<32x32xbf16>, vector<128x32xf32> -> vector<128x32xf32>
    %433 = arith.addf %427, %432 : vector<128x32xf32>
    %c17_365 = arith.constant 17 : index
    %c0_366 = arith.constant 0 : index
    %434 = vector.load %arg14[%c17_365, %c0_366] : memref<160x32xf32, #tpu.memory_space<vmem>>, vector<128x32xf32>
    %c5_367 = arith.constant 5 : index
    %c0_368 = arith.constant 0 : index
    %c0_369 = arith.constant 0 : index
    %435 = vector.load %arg2[%c5_367, %c0_368, %c0_369] : memref<9x128x1xf32, #tpu.memory_space<vmem>>, vector<1x128x1xf32>
    %436 = vector.shape_cast %435 : vector<1x128x1xf32> to vector<128x1xf32>
    %437 = vector.broadcast %436 : vector<128x1xf32> to vector<128x32xf32>
    %438 = arith.mulf %434, %437 : vector<128x32xf32>
    %439 = arith.truncf %438 : vector<128x32xf32> to vector<128x32xbf16>
    %c32 = arith.constant 32 : index
    %c0_370 = arith.constant 0 : index
    %c0_371 = arith.constant 0 : index
    %440 = vector.load %arg6[%c32, %c0_370, %c0_371] : memref<36x32x32xbf16, #tpu.memory_space<vmem>>, vector<1x32x32xbf16>
    %441 = vector.shape_cast %440 : vector<1x32x32xbf16> to vector<32x32xbf16>
    %cst_372 = arith.constant dense<0.000000e+00> : vector<128x32xf32>
    %442 = tpu.matmul %439, %441, %cst_372 {dimension_numbers = #tpu.dot_dimension_numbers<[1], [0], [0], [1], [0, 0, 1, 1], [], []>} : vector<128x32xbf16>, vector<32x32xbf16>, vector<128x32xf32> -> vector<128x32xf32>
    %443 = arith.addf %433, %442 : vector<128x32xf32>
    %c23_373 = arith.constant 23 : index
    %c0_374 = arith.constant 0 : index
    %444 = vector.load %arg14[%c23_373, %c0_374] : memref<160x32xf32, #tpu.memory_space<vmem>>, vector<128x32xf32>
    %c6_375 = arith.constant 6 : index
    %c0_376 = arith.constant 0 : index
    %c0_377 = arith.constant 0 : index
    %445 = vector.load %arg2[%c6_375, %c0_376, %c0_377] : memref<9x128x1xf32, #tpu.memory_space<vmem>>, vector<1x128x1xf32>
    %446 = vector.shape_cast %445 : vector<1x128x1xf32> to vector<128x1xf32>
    %447 = vector.broadcast %446 : vector<128x1xf32> to vector<128x32xf32>
    %448 = arith.mulf %444, %447 : vector<128x32xf32>
    %449 = arith.truncf %448 : vector<128x32xf32> to vector<128x32xbf16>
    %c33 = arith.constant 33 : index
    %c0_378 = arith.constant 0 : index
    %c0_379 = arith.constant 0 : index
    %450 = vector.load %arg6[%c33, %c0_378, %c0_379] : memref<36x32x32xbf16, #tpu.memory_space<vmem>>, vector<1x32x32xbf16>
    %451 = vector.shape_cast %450 : vector<1x32x32xbf16> to vector<32x32xbf16>
    %cst_380 = arith.constant dense<0.000000e+00> : vector<128x32xf32>
    %452 = tpu.matmul %449, %451, %cst_380 {dimension_numbers = #tpu.dot_dimension_numbers<[1], [0], [0], [1], [0, 0, 1, 1], [], []>} : vector<128x32xbf16>, vector<32x32xbf16>, vector<128x32xf32> -> vector<128x32xf32>
    %453 = arith.addf %443, %452 : vector<128x32xf32>
    %c24_381 = arith.constant 24 : index
    %c0_382 = arith.constant 0 : index
    %454 = vector.load %arg14[%c24_381, %c0_382] : memref<160x32xf32, #tpu.memory_space<vmem>>, vector<128x32xf32>
    %c7_383 = arith.constant 7 : index
    %c0_384 = arith.constant 0 : index
    %c0_385 = arith.constant 0 : index
    %455 = vector.load %arg2[%c7_383, %c0_384, %c0_385] : memref<9x128x1xf32, #tpu.memory_space<vmem>>, vector<1x128x1xf32>
    %456 = vector.shape_cast %455 : vector<1x128x1xf32> to vector<128x1xf32>
    %457 = vector.broadcast %456 : vector<128x1xf32> to vector<128x32xf32>
    %458 = arith.mulf %454, %457 : vector<128x32xf32>
    %459 = arith.truncf %458 : vector<128x32xf32> to vector<128x32xbf16>
    %c34 = arith.constant 34 : index
    %c0_386 = arith.constant 0 : index
    %c0_387 = arith.constant 0 : index
    %460 = vector.load %arg6[%c34, %c0_386, %c0_387] : memref<36x32x32xbf16, #tpu.memory_space<vmem>>, vector<1x32x32xbf16>
    %461 = vector.shape_cast %460 : vector<1x32x32xbf16> to vector<32x32xbf16>
    %cst_388 = arith.constant dense<0.000000e+00> : vector<128x32xf32>
    %462 = tpu.matmul %459, %461, %cst_388 {dimension_numbers = #tpu.dot_dimension_numbers<[1], [0], [0], [1], [0, 0, 1, 1], [], []>} : vector<128x32xbf16>, vector<32x32xbf16>, vector<128x32xf32> -> vector<128x32xf32>
    %463 = arith.addf %453, %462 : vector<128x32xf32>
    %c25_389 = arith.constant 25 : index
    %c0_390 = arith.constant 0 : index
    %464 = vector.load %arg14[%c25_389, %c0_390] : memref<160x32xf32, #tpu.memory_space<vmem>>, vector<128x32xf32>
    %c8_391 = arith.constant 8 : index
    %c0_392 = arith.constant 0 : index
    %c0_393 = arith.constant 0 : index
    %465 = vector.load %arg2[%c8_391, %c0_392, %c0_393] : memref<9x128x1xf32, #tpu.memory_space<vmem>>, vector<1x128x1xf32>
    %466 = vector.shape_cast %465 : vector<1x128x1xf32> to vector<128x1xf32>
    %467 = vector.broadcast %466 : vector<128x1xf32> to vector<128x32xf32>
    %468 = arith.mulf %464, %467 : vector<128x32xf32>
    %469 = arith.truncf %468 : vector<128x32xf32> to vector<128x32xbf16>
    %c35 = arith.constant 35 : index
    %c0_394 = arith.constant 0 : index
    %c0_395 = arith.constant 0 : index
    %470 = vector.load %arg6[%c35, %c0_394, %c0_395] : memref<36x32x32xbf16, #tpu.memory_space<vmem>>, vector<1x32x32xbf16>
    %471 = vector.shape_cast %470 : vector<1x32x32xbf16> to vector<32x32xbf16>
    %cst_396 = arith.constant dense<0.000000e+00> : vector<128x32xf32>
    %472 = tpu.matmul %469, %471, %cst_396 {dimension_numbers = #tpu.dot_dimension_numbers<[1], [0], [0], [1], [0, 0, 1, 1], [], []>} : vector<128x32xbf16>, vector<32x32xbf16>, vector<128x32xf32> -> vector<128x32xf32>
    %473 = arith.addf %463, %472 : vector<128x32xf32>
    %c3_397 = arith.constant 3 : index
    %c0_398 = arith.constant 0 : index
    %c0_399 = arith.constant 0 : index
    %474 = vector.load %arg7[%c3_397, %c0_398, %c0_399] : memref<4x1x32xf32, #tpu.memory_space<vmem>>, vector<1x1x32xf32>
    %475 = vector.shape_cast %474 : vector<1x1x32xf32> to vector<1x32xf32>
    %476 = vector.broadcast %475 : vector<1x32xf32> to vector<128x32xf32>
    %477 = arith.mulf %473, %476 : vector<128x32xf32>
    %c3_400 = arith.constant 3 : index
    %c0_401 = arith.constant 0 : index
    %c0_402 = arith.constant 0 : index
    %478 = vector.load %arg8[%c3_400, %c0_401, %c0_402] : memref<4x1x32xf32, #tpu.memory_space<vmem>>, vector<1x1x32xf32>
    %479 = vector.shape_cast %478 : vector<1x1x32xf32> to vector<1x32xf32>
    %480 = vector.broadcast %479 : vector<1x32xf32> to vector<128x32xf32>
    %481 = arith.addf %477, %480 : vector<128x32xf32>
    %482 = arith.addf %481, %291 : vector<128x32xf32>
    %cst_403 = arith.constant 0.000000e+00 : f32
    %483 = vector.broadcast %cst_403 : f32 to vector<128x32xf32>
    %484 = arith.maximumf %482, %483 : vector<128x32xf32>
    %485 = arith.truncf %484 : vector<128x32xf32> to vector<128x32xbf16>
    %c0_404 = arith.constant 0 : index
    %c0_405 = arith.constant 0 : index
    %486 = vector.load %arg9[%c0_404, %c0_405] : memref<32x3xbf16, #tpu.memory_space<vmem>>, vector<32x3xbf16>
    %cst_406 = arith.constant dense<0.000000e+00> : vector<128x3xf32>
    %487 = tpu.matmul %485, %486, %cst_406 {dimension_numbers = #tpu.dot_dimension_numbers<[1], [0], [0], [1], [0, 0, 1, 1], [], []>} : vector<128x32xbf16>, vector<32x3xbf16>, vector<128x3xf32> -> vector<128x3xf32>
    %c0_407 = arith.constant 0 : index
    %c0_408 = arith.constant 0 : index
    %488 = vector.load %arg10[%c0_407, %c0_408] : memref<1x3xf32, #tpu.memory_space<vmem>>, vector<1x3xf32>
    %489 = vector.broadcast %488 : vector<1x3xf32> to vector<128x3xf32>
    %490 = arith.mulf %487, %489 : vector<128x3xf32>
    %c0_409 = arith.constant 0 : index
    %c0_410 = arith.constant 0 : index
    %491 = vector.load %arg11[%c0_409, %c0_410] : memref<1x3xf32, #tpu.memory_space<vmem>>, vector<1x3xf32>
    %492 = vector.broadcast %491 : vector<1x3xf32> to vector<128x3xf32>
    %493 = arith.addf %490, %492 : vector<128x3xf32>
    %cst_411 = arith.constant 0.000000e+00 : f32
    %494 = vector.broadcast %cst_411 : f32 to vector<128x3xf32>
    %495 = arith.maximumf %493, %494 : vector<128x3xf32>
    %c0_412 = arith.constant 0 : index
    %c0_413 = arith.constant 0 : index
    %496 = vector.load %arg12[%c0_412, %c0_413] : memref<128x3xf32, #tpu.memory_space<vmem>>, vector<128x3xf32>
    tpu.vector_store %arg12[%c0_412, %c0_413], %495 {strides = array<i32>} : memref<128x3xf32, #tpu.memory_space<vmem>>, vector<128x3xf32>,
    return
  }
  func.func @transform_0(%arg0: i32) -> (i32, i32) {
    %c0_i32 = arith.constant 0 : i32
    %c0_i32_0 = arith.constant 0 : i32
    return %arg0, %c0_i32 : i32, i32
  }
  func.func @transform_1(%arg0: i32) -> (i32, i32, i32) {
    %c0_i32 = arith.constant 0 : i32
    %c0_i32_0 = arith.constant 0 : i32
    %c0_i32_1 = arith.constant 0 : i32
    %c0_i32_2 = arith.constant 0 : i32
    return %c0_i32, %c0_i32_0, %c0_i32_1 : i32, i32, i32
  }
  func.func @transform_2(%arg0: i32) -> (i32, i32, i32) {
    %c0_i32 = arith.constant 0 : i32
    %c0_i32_0 = arith.constant 0 : i32
    %c0_i32_1 = arith.constant 0 : i32
    %c0_i32_2 = arith.constant 0 : i32
    return %c0_i32, %c0_i32_0, %c0_i32_1 : i32, i32, i32
  }
  func.func @transform_3(%arg0: i32) -> (i32, i32) {
    %c0_i32 = arith.constant 0 : i32
    %c0_i32_0 = arith.constant 0 : i32
    %c0_i32_1 = arith.constant 0 : i32
    return %c0_i32, %c0_i32_0 : i32, i32
  }
  func.func @transform_4(%arg0: i32) -> (i32, i32) {
    %c0_i32 = arith.constant 0 : i32
    %c0_i32_0 = arith.constant 0 : i32
    %c0_i32_1 = arith.constant 0 : i32
    return %c0_i32, %c0_i32_0 : i32, i32
  }
  func.func @transform_5(%arg0: i32) -> (i32, i32, i32) {
    %c0_i32 = arith.constant 0 : i32
    %c0_i32_0 = arith.constant 0 : i32
    %c0_i32_1 = arith.constant 0 : i32
    %c0_i32_2 = arith.constant 0 : i32
    return %c0_i32, %c0_i32_0, %c0_i32_1 : i32, i32, i32
  }
  func.func @transform_6(%arg0: i32) -> (i32, i32, i32) {
    %c0_i32 = arith.constant 0 : i32
    %c0_i32_0 = arith.constant 0 : i32
    %c0_i32_1 = arith.constant 0 : i32
    %c0_i32_2 = arith.constant 0 : i32
    return %c0_i32, %c0_i32_0, %c0_i32_1 : i32, i32, i32
  }
  func.func @transform_7(%arg0: i32) -> (i32, i32, i32) {
    %c0_i32 = arith.constant 0 : i32
    %c0_i32_0 = arith.constant 0 : i32
    %c0_i32_1 = arith.constant 0 : i32
    %c0_i32_2 = arith.constant 0 : i32
    return %c0_i32, %c0_i32_0, %c0_i32_1 : i32, i32, i32
  }
  func.func @transform_8(%arg0: i32) -> (i32, i32) {
    %c0_i32 = arith.constant 0 : i32
    %c0_i32_0 = arith.constant 0 : i32
    %c0_i32_1 = arith.constant 0 : i32
    return %c0_i32, %c0_i32_0 : i32, i32
  }
  func.func @transform_9(%arg0: i32) -> (i32, i32) {
    %c0_i32 = arith.constant 0 : i32
    %c0_i32_0 = arith.constant 0 : i32
    %c0_i32_1 = arith.constant 0 : i32
    return %c0_i32, %c0_i32_0 : i32, i32
  }
  func.func @transform_10(%arg0: i32) -> (i32, i32) {
    %c0_i32 = arith.constant 0 : i32
    %c0_i32_0 = arith.constant 0 : i32
    %c0_i32_1 = arith.constant 0 : i32
    return %c0_i32, %c0_i32_0 : i32, i32
  }
  func.func @transform_11(%arg0: i32) -> (i32, i32) {
    %c0_i32 = arith.constant 0 : i32
    %c0_i32_0 = arith.constant 0 : i32
    return %arg0, %c0_i32 : i32, i32
  }
}

module attributes {stable_mosaic.version = 11 : i64} {
  func.func @_head_kernel(%arg0: memref<2x128xf32, #tpu.memory_space<vmem>>, %arg1: memref<2x64xf32, #tpu.memory_space<vmem>>, %arg2: memref<128x128xbf16, #tpu.memory_space<vmem>>, %arg3: memref<1x128xf32, #tpu.memory_space<vmem>>, %arg4: memref<64x256xbf16, #tpu.memory_space<vmem>>, %arg5: memref<1x256xf32, #tpu.memory_space<vmem>>, %arg6: memref<1x256xf32, #tpu.memory_space<vmem>>, %arg7: memref<256x1xbf16, #tpu.memory_space<vmem>>, %arg8: memref<1x1xf32, #tpu.memory_space<vmem>>, %arg9: memref<2x128xf32, #tpu.memory_space<vmem>>, %arg10: memref<2x1xf32, #tpu.memory_space<vmem>>) attributes {dimension_semantics = [], scalar_prefetch = 0 : i64, scratch_operands = 0 : i64, tpu.core_type = #tpu.core_type<tc>} {
    %c0 = arith.constant 0 : index
    %c0_0 = arith.constant 0 : index
    %0 = vector.load %arg0[%c0, %c0_0] : memref<2x128xf32, #tpu.memory_space<vmem>>, vector<2x128xf32>
    %1 = arith.truncf %0 : vector<2x128xf32> to vector<2x128xbf16>
    %c0_1 = arith.constant 0 : index
    %c0_2 = arith.constant 0 : index
    %2 = vector.load %arg2[%c0_1, %c0_2] : memref<128x128xbf16, #tpu.memory_space<vmem>>, vector<128x128xbf16>
    %cst = arith.constant dense<0.000000e+00> : vector<2x128xf32>
    %3 = tpu.matmul %1, %2, %cst {dimension_numbers = #tpu.dot_dimension_numbers<[1], [0], [0], [1], [0, 0, 1, 1], [], []>} : vector<2x128xbf16>, vector<128x128xbf16>, vector<2x128xf32> -> vector<2x128xf32>
    %c0_3 = arith.constant 0 : index
    %c0_4 = arith.constant 0 : index
    %4 = vector.load %arg3[%c0_3, %c0_4] : memref<1x128xf32, #tpu.memory_space<vmem>>, vector<1x128xf32>
    %5 = vector.broadcast %4 : vector<1x128xf32> to vector<2x128xf32>
    %6 = arith.addf %3, %5 : vector<2x128xf32>
    %c0_5 = arith.constant 0 : index
    %c0_6 = arith.constant 0 : index
    %7 = vector.load %arg9[%c0_5, %c0_6] : memref<2x128xf32, #tpu.memory_space<vmem>>, vector<2x128xf32>
    tpu.vector_store %arg9[%c0_5, %c0_6], %6 {strides = array<i32>} : memref<2x128xf32, #tpu.memory_space<vmem>>, vector<2x128xf32>,
    %c0_7 = arith.constant 0 : index
    %c0_8 = arith.constant 0 : index
    %8 = vector.load %arg1[%c0_7, %c0_8] : memref<2x64xf32, #tpu.memory_space<vmem>>, vector<2x64xf32>
    %9 = arith.truncf %8 : vector<2x64xf32> to vector<2x64xbf16>
    %c0_9 = arith.constant 0 : index
    %c0_10 = arith.constant 0 : index
    %10 = vector.load %arg4[%c0_9, %c0_10] : memref<64x256xbf16, #tpu.memory_space<vmem>>, vector<64x256xbf16>
    %cst_11 = arith.constant dense<0.000000e+00> : vector<2x256xf32>
    %11 = tpu.matmul %9, %10, %cst_11 {dimension_numbers = #tpu.dot_dimension_numbers<[1], [0], [0], [1], [0, 0, 1, 1], [], []>} : vector<2x64xbf16>, vector<64x256xbf16>, vector<2x256xf32> -> vector<2x256xf32>
    %c0_12 = arith.constant 0 : index
    %c0_13 = arith.constant 0 : index
    %12 = vector.load %arg5[%c0_12, %c0_13] : memref<1x256xf32, #tpu.memory_space<vmem>>, vector<1x256xf32>
    %13 = vector.broadcast %12 : vector<1x256xf32> to vector<2x256xf32>
    %14 = arith.mulf %11, %13 : vector<2x256xf32>
    %c0_14 = arith.constant 0 : index
    %c0_15 = arith.constant 0 : index
    %15 = vector.load %arg6[%c0_14, %c0_15] : memref<1x256xf32, #tpu.memory_space<vmem>>, vector<1x256xf32>
    %16 = vector.broadcast %15 : vector<1x256xf32> to vector<2x256xf32>
    %17 = arith.addf %14, %16 : vector<2x256xf32>
    %cst_16 = arith.constant 0.000000e+00 : f32
    %18 = vector.broadcast %cst_16 : f32 to vector<2x256xf32>
    %19 = arith.maximumf %17, %18 : vector<2x256xf32>
    %20 = arith.truncf %19 : vector<2x256xf32> to vector<2x256xbf16>
    %c0_17 = arith.constant 0 : index
    %c0_18 = arith.constant 0 : index
    %21 = vector.load %arg7[%c0_17, %c0_18] : memref<256x1xbf16, #tpu.memory_space<vmem>>, vector<256x1xbf16>
    %cst_19 = arith.constant dense<0.000000e+00> : vector<2x1xf32>
    %22 = tpu.matmul %20, %21, %cst_19 {dimension_numbers = #tpu.dot_dimension_numbers<[1], [0], [0], [1], [0, 0, 1, 1], [], []>} : vector<2x256xbf16>, vector<256x1xbf16>, vector<2x1xf32> -> vector<2x1xf32>
    %c0_20 = arith.constant 0 : index
    %c0_21 = arith.constant 0 : index
    %23 = vector.load %arg8[%c0_20, %c0_21] : memref<1x1xf32, #tpu.memory_space<vmem>>, vector<1x1xf32>
    %24 = vector.broadcast %23 : vector<1x1xf32> to vector<2x1xf32>
    %25 = arith.addf %22, %24 : vector<2x1xf32>
    %26 = math.tanh %25 : vector<2x1xf32>
    %c0_22 = arith.constant 0 : index
    %c0_23 = arith.constant 0 : index
    %27 = vector.load %arg10[%c0_22, %c0_23] : memref<2x1xf32, #tpu.memory_space<vmem>>, vector<2x1xf32>
    tpu.vector_store %arg10[%c0_22, %c0_23], %26 {strides = array<i32>} : memref<2x1xf32, #tpu.memory_space<vmem>>, vector<2x1xf32>,
    return
  }
}

</mosaic_0001>

<bundles_post_ra>
// kernel: chess_model_forward.3
= control target key start
LH: loop header
LB: loop body
LE: loop exit
PB: predicated region body
PF: predicated region fallthrough
CT: control target
= control target key end

     0   :  { %s824_s0 = inlined_call_operand.vmem [shape: f32[2,128], index: 0, kind: input, shape index: {}]   ;;  %s825_s1 = inlined_call_operand.vmem [shape: f32[2,64], index: 1, kind: input, shape index: {}]   ;;  %s826_s2 = inlined_call_operand.vmem [shape: bf16[128,128], index: 2, kind: input, shape index: {}]   ;;  %s827_s3 = inlined_call_operand.vmem [shape: f32[1,128], index: 3, kind: input, shape index: {}]   ;;  %s828_s4 = inlined_call_operand.vmem [shape: bf16[64,256], index: 4, kind: input, shape index: {}]   ;;  %s829_s5 = inlined_call_operand.vmem [shape: f32[1,256], index: 5, kind: input, shape index: {}]   ;;  %s830_s6 = inlined_call_operand.vmem [shape: f32[1,256], index: 6, kind: input, shape index: {}]   ;;  %s831_s7 = inlined_call_operand.vmem [shape: bf16[256,1], index: 7, kind: input, shape index: {}]   ;;  %s832_s8 = inlined_call_operand.<no memory space> [shape: f32[1,1], index: 8, kind: input, shape index: {}]   ;;  %s833_s9 = inlined_call_operand.hbm [shape: f32[2,128], index: 9, kind: output, shape index: {0}]   ;;  %s834_s10 = inlined_call_operand.vmem [shape: f32[2,1], index: 10, kind: output, shape index: {1}]  }
   0x1   :  { %v16_v0 = vstv %s832_s8 }
   0x2   :  { %17 = vst [vmem:[#allocation2] sm:$0x1] %v16_v0 }
   0x3   :  { %v565_v1 = vld [vmem:[%s828_s4 + $0x4] ss:$8 sps:$4 sm:$0xff]   ;;  %v567_v2 = vld [vmem:[%s828_s4] ss:$8 sps:$4 sm:$0xff]   ;;  %v627_v3 = vmov 0   ;;  %v628_v5 = vmov 0.0  }
   0x4   :  { %238 = vmatprep.mubr.bf16.mxu1 %v627_v3  ;;  %206 = vmatprep.subr.bf16.mxu1 %v565_v1  ;;  %v568_v4 = vld [vmem:[%s828_s4 + $0x14] ss:$8 sps:$4 sm:$0xff]   ;;  %v570_v6 = vld [vmem:[%s828_s4 + $0x10] ss:$8 sps:$4 sm:$0xff]   ;;  %v571_v7 = vld [vmem:[%s828_s4 + $0x24] ss:$8 sps:$4 sm:$0xff]  }
   0x5   :  { %541 = vmatprep.subr.bf16.mxu0 %v628_v5  ;;  %207 = vmatpush1.bf16.msra.mxu1 %v567_v2  ;;  %v573_v8 = vld [vmem:[%s828_s4 + $0x20] ss:$8 sps:$4 sm:$0xff]   ;;  %v574_v9 = vld [vmem:[%s828_s4 + $0x34] ss:$8 sps:$4 sm:$0xff]   ;;  %v576_v10 = vld [vmem:[%s828_s4 + $0x30] ss:$8 sps:$4 sm:$0xff]  }
   0x6   :  { %208 = vmatprep.subr.bf16.mxu1 %v568_v4  ;;  %v152_v11 = vld [vmem:[%s825_s1] sm:$0x3]  ;;  %vm202_vm0 = vcmask 523264   ;;  %v586_v16 = vld [vmem:[%s826_s2 + $0x8] sm:$0xff]   ;;  %v589_v19 = vld [vmem:[%s826_s2 + $0x10] sm:$0xff]  }
   0x7   :  { %v577_v12 = vld [vmem:[%s831_s7 + $0x40] sm:$0xff]   ;;  %v153_v14 = vpack.c.bf16 %v152_v11, %v152_v11  ;;  %v579_v17 = vld [vmem:[%s831_s7 + $0x48] sm:$0xff]   ;;  %v581_v20 = vld [vmem:[%s831_s7 + $0x50] sm:$0xff]  }
   0x8   :  { %v583_v13 = vld [vmem:[%s826_s2] sm:$0xff]   ;;  %v580_v18 = vld [vmem:[%s831_s7 + $0x8] sm:$0xff]   ;;  %v582_v21 = vld [vmem:[%s831_s7 + $0x10] sm:$0xff]  }
   0x9   :  { %209 = vmatpush1.bf16.msra.mxu1 %v570_v6  ;;  %v578_v15 = vld [vmem:[%s831_s7] sm:$0xff]   ;;  %542 = vmatpush3.bf16.msra.mxu0 %v583_v13  ;;  %v584_v22 = vld [vmem:[%s831_s7 + $0x58] sm:$0xff]  }
   0xa   :  { %210 = vmatprep.subr.bf16.mxu1 %v571_v7  ;;  %543 = vmatprep.subr.bf16.mxu0 %v628_v5 }
   0xd   :  { %211 = vmatpush1.bf16.msra.mxu1 %v573_v8  ;;  %544 = vmatpush3.bf16.msra.mxu0 %v586_v16 }
   0xe   :  { %212 = vmatprep.subr.bf16.mxu1 %v574_v9  ;;  %545 = vmatprep.subr.bf16.mxu0 %v628_v5 }
  0x11   :  { %213 = vmatpush1.bf16.msra.mxu1 %v576_v10  ;;  %546 = vmatpush3.bf16.msra.mxu0 %v589_v19 }
  0x12   :  { %519 = vmatprep.subr.bf16.mxu1 %v577_v12  ;;  %547 = vmatprep.subr.bf16.mxu0 %v628_v5 }
  0x14   :  { %492 = vmatmul.mubr.msk.bf16.vlgmr.msra.gmra.mrb[0].mxu1 %vm202_vm0, %v153_v14 }
  0x15   :  { %520 = vmatpush3.bf16.msra.mxu1 %v578_v15 }
  0x16   :  { %521 = vmatprep.subr.bf16.mxu1 %v579_v17 }
  0x19   :  { %522 = vmatpush3.bf16.msra.mxu1 %v580_v18 }
  0x1a   :  { %523 = vmatprep.subr.bf16.mxu1 %v581_v20 }
  0x1b   :  { %18 = vsyncpa [#allocation4], 0  ;;  %v585_v23 = vld [vmem:[%s831_s7 + $0x18] sm:$0xff]   ;;  %v587_v24 = vld [vmem:[%s831_s7 + $0x60] sm:$0xff]   ;;  %vm629_vm1 = vmmov 0   ;;  %v249_v39 = vlaneseq }
  0x1c   :  { %v588_v25 = vld [vmem:[%s831_s7 + $0x20] sm:$0xff]   ;;  %v590_v26 = vld [vmem:[%s831_s7 + $0x68] sm:$0xff]   ;;  %v592_v28 = vld [vmem:[%s826_s2 + $0x18] sm:$0xff]   ;;  %557 = vmatprep.mubr.msk.bf16.mxu0 %vm629_vm1, %v628_v5 }
  0x1d   :  { %524 = vmatpush3.bf16.msra.mxu1 %v582_v21  ;;  %v591_v27 = vld [vmem:[%s831_s7 + $0x28] sm:$0xff]   ;;  %v593_v29 = vld [vmem:[%s831_s7 + $0x70] sm:$0xff]   ;;  %548 = vmatpush3.bf16.msra.mxu0 %v592_v28  ;;  %v595_v31 = vld [vmem:[%s826_s2 + $0x20] sm:$0xff]   ;;  %v250_v40 = vshrl.u32 %v249_v39, 7 }
  0x1e   :  { %525 = vmatprep.subr.bf16.mxu1 %v584_v22  ;;  %v594_v30 = vld [vmem:[%s831_s7 + $0x30] sm:$0xff]   ;;  %549 = vmatprep.subr.bf16.mxu0 %v628_v5  ;;  %v596_v32 = vld [vmem:[%s831_s7 + $0x78] sm:$0xff]   ;;  %v598_v34 = vld [vmem:[%s826_s2 + $0x28] sm:$0xff]  }
  0x1f   :  { %v597_v33 = vld [vmem:[%s831_s7 + $0x38] sm:$0xff]   ;;  %v599_v35 = vld [vmem:[%s826_s2 + $0x30] sm:$0xff]   ;;  %v38_v37 = vld [vmem:[%s824_s0] sm:$0x3]  ;;  %v251_v41 = vsub.s32 0, %v250_v40  ;;  %v255_v43 = vsub.s32 1, %v250_v40 }
  0x20   :  { %v600_v36 = vld [vmem:[%s826_s2 + $0x38] sm:$0xff]   ;;  %v39_v38 = vpack.c.bf16 %v38_v37, %v38_v37  ;;  %v247_v42 = vld [vmem:[%s829_s5] sm:$0x3]  ;;  %s630_s5 = smov [#allocation3]  }
  0x21   :  { %526 = vmatpush3.bf16.msra.mxu1 %v585_v23  ;;  %550 = vmatpush3.bf16.msra.mxu0 %v595_v31  ;;  %v261_v44 = vld [vmem:[%s830_s6] sm:$0x3]  ;;  %v252_v45 = vrot.slane %v247_v42, %v251_v41  ;;  %v256_v46 = vrot.slane %v247_v42, %v255_v43  ;;  %s463_s6 = sshll.u32 %s630_s5, 4  ;;  %s464_s6 = int_to_ptr.vmem [resolvable:$true] %s463_s6 }
  0x22   :  { %527 = vmatprep.subr.bf16.mxu1 %v587_v24  ;;  %551 = vmatprep.subr.bf16.mxu0 %v628_v5  ;;  %v266_v47 = vrot.slane %v261_v44, %v251_v41  ;;  %v270_v49 = vrot.slane %v261_v44, %v255_v43  ;;  %v475_v0 = vld [vmem:[%s827_s3] ss:$0 sm:$0xff]  ;;  %s603_s4 = scalar_lea.vmem %s464_s6, 32  ;;  %p608_p1 = scmp.lt.s32.totalorder %s464_s6, %s464_s6 }
  0x23   :  { %p604_p0 = scmp.ne.s32.totalorder %s464_s6, %s603_s4  ;;  %p609_p2 = scmp.lt.s32.totalorder %s603_s4, %s603_s4 }
  0x25   :  { %528 = vmatpush3.bf16.msra.mxu1 %v588_v25  ;;  %552 = vmatpush3.bf16.msra.mxu0 %v598_v34  ;;  %p610_p3 = por %p609_p2, %p608_p1 }
  0x26   :  { %529 = vmatprep.subr.bf16.mxu1 %v590_v26  ;;  %553 = vmatprep.subr.bf16.mxu0 %v628_v5 }
  0x27   :  { %p611_p4 = pnand %p610_p3, %p604_p0 }
  0x29   :  { %530 = vmatpush3.bf16.msra.mxu1 %v591_v27  ;;  %554 = vmatpush3.bf16.msra.mxu0 %v599_v35 }
  0x2a   :  { %531 = vmatprep.subr.bf16.mxu1 %v593_v29  ;;  %555 = vmatprep.subr.bf16.mxu0 %v628_v5 }
  0x2d   :  { %532 = vmatpush3.bf16.msra.mxu1 %v594_v30  ;;  %556 = vmatpush3.bf16.msra.mxu0 %v600_v36 }
  0x2e   :  { %533 = vmatprep.subr.bf16.mxu1 %v596_v32 }
  0x30   :  { %558 = vmatmul.mubr.bf16.vlgmr.msra.gmra.mrb[0].mxu0 %v39_v38 }
  0x31   :  { %534 = vmatpush3.bf16.msra.mxu1 %v597_v33 }
  0xe7   :  { %v240_v48 = vpop.f32.mrb[0].mxu1 }
  0xe8   :  { %v259_v50 = vmul.f32 %v252_v45, %v240_v48  ;;  %v242_v51 = vpop.f32.mrb[1].mxu1 }
  0xe9   :  { %v260_v52 = vmul.f32 %v256_v46, %v242_v51  ;;  %v244_v53 = vpop.f32.mrb[2].mxu1 }
  0xea   :  { %v273_v54 = vadd.f32 %v266_v47, %v259_v50  ;;  %v245_v55 = vpop.f32.mrb[3].mxu1 }
  0xeb   :  { %v274_v56 = vadd.f32 %v270_v49, %v260_v52 }
  0xec   :  { %v275_v57 = vmax.f32 %v273_v54, 0.0 }
  0xed   :  { %v276_v58 = vmax.f32 %v274_v56, 0.0 }
  0xee   :  { %v277_v60 = vpack.c.bf16 %v275_v57, %v275_v57 }
  0xef   :  { %v278_v59 = vpack.c.bf16 %v276_v58, %v276_v58 }
  0xf1   :  { %446 = vmatprep.mubr.bf16.mxu1 %v278_v59 }
  0xf2   :  { %447 = vmatmul.mubr.bf16.vlgmr.msra.gmra.mrb[4].mxu1 %v277_v60 }
 0x103   :  { %v145_v61 = vpop.f32.mrb[0].mxu0 }
 0x104   :  { %v559_v62 = vpop.f32.mrb[1].mxu0  ;;  %v146_v2 = vadd.f32 %v475_v0, %v145_v61 }
 0x105   :  { %v148_v63 = vpop.f32.mrb[2].mxu0 }
 0x106   :  { %v560_v1 = vpop.f32.mrb[3].mxu0  ;;  %151 = vst [vmem:[#allocation3] sm:$0x3] %v146_v2 }
 0x107   :  { %614 = shalt.err (!%p611_p4)
}
 0x108   :  { %s615_s20 = scalar_lea.hbm %s833_s9, 32 }
 0x109   :  { %p616_p5 = scmp.ne.s32.totalorder %s833_s9, %s615_s20  ;;  %p619_p6 = scmp.lt.u32.totalorder %s615_s20, %s833_s9 }
 0x10b   :  { %p621_p7 = pnand %p619_p6, %p616_p5 }
 0x10d   :  { %624 = shalt.err (!%p621_p7)
}
 0x10e   :  { %466 = dma.vmem_to_hbm [thread:$0]  %s464_s6, 32, %s833_s9, [#allocation4]   ;;  %v493_v4 = vld [vmem:[#allocation2] ss:$0 sm:$0xff]  ;;  %vm455_vm2 = vcmask 1024  }
 0x1c5   :  { %v535_v3 = vpop.f32.mrb[4].mxu1 }
 0x1c6   :  { %v536_v5 = vpop.f32.mrb[5].mxu1 }
 0x1c7   :  { %v537_v6 = vadd.f32 %v536_v5, %v535_v3  ;;  %v538_v7 = vpop.f32.mrb[6].mxu1 }
 0x1c8   :  { %v539_v8 = vpop.f32.mrb[7].mxu1 }
 0x1c9   :  { %v449_v9 = vadd.f32 %v537_v6, %v493_v4 }
 0x1cb   :  { %601 = vtanh.f32 %v449_v9 }
 0x1d5   :  { %v602_v10 = vpop.eup %601 }
 0x1d6   :  { %456 = vst.msk [vmem:[%s834_s10] sm:$0x3] %vm455_vm2, %v602_v10 }
 0x1d7   :  { %625 = dma.done.wait [#allocation4], 32  }
 0x1d8   :  { %626 = vsyncadd [#allocation4], 4294967264 }
 0x1d9   :  { %474 = vsyncpa [#allocation4], 1 }

// kernel: chess_model_forward.2
= control target key start
LH: loop header
LB: loop body
LE: loop exit
PB: predicated region body
PF: predicated region fallthrough
CT: control target
= control target key end

     0   :  { %16 = vsyncpa [#allocation5], 0  ;;  %s22794_s0 = inlined_call_operand.hbm [shape: f32[128,20], index: 0, kind: input, shape index: {}]   ;;  %s22795_s1 = inlined_call_operand.vmem [shape: f32[9,128,1], index: 1, kind: input, shape index: {}]   ;;  %s22796_s2 = inlined_call_operand.hbm [shape: bf16[9,20,32], index: 2, kind: input, shape index: {}]   ;;  %s22797_s3 = inlined_call_operand.vmem [shape: f32[1,32], index: 3, kind: input, shape index: {}]   ;;  %s22798_s4 = inlined_call_operand.vmem [shape: f32[1,32], index: 4, kind: input, shape index: {}]   ;;  %s22799_s5 = inlined_call_operand.vmem [shape: bf16[36,32,32], index: 5, kind: input, shape index: {}]   ;;  %s22800_s6 = inlined_call_operand.vmem [shape: f32[4,1,32], index: 6, kind: input, shape index: {}]   ;;  %s22801_s7 = inlined_call_operand.vmem [shape: f32[4,1,32], index: 7, kind: input, shape index: {}]   ;;  %s22802_s8 = inlined_call_operand.vmem [shape: bf16[32,3], index: 8, kind: input, shape index: {}]   ;;  %s22803_s9 = inlined_call_operand.vmem [shape: f32[1,3], index: 9, kind: input, shape index: {}]   ;;  %s22804_s10 = inlined_call_operand.vmem [shape: f32[1,3], index: 10, kind: input, shape index: {}]   ;;  %s22805_s11 = inlined_call_operand.vmem [shape: f32[128,3], index: 11, kind: output, shape index: {}]  }
   0x1   :  { %17 = vsyncpa [#allocation7], 0  ;;  %s16495_s17 = smov [#allocation4]   ;;  %s16447_s21 = scalar_lea.hbm %s22794_s0, 2048 }
   0x2   :  { %s23_s18 = sshll.u32 %s16495_s17, 4  ;;  %p16448_p0 = scmp.ne.s32.totalorder %s22794_s0, %s16447_s21  ;;  %s24_s18 = int_to_ptr.vmem [resolvable:$true] %s23_s18 }
   0x3   :  { %p16451_p1 = scmp.lt.u32.totalorder %s16447_s21, %s22794_s0 }
   0x5   :  { %p16453_p2 = pnand %p16451_p1, %p16448_p0 }
   0x7   :  { %16456 = shalt.err (!%p16453_p2)
}
   0x8   :  { %s16457_s26 = scalar_lea.vmem %s24_s18, 2048  ;;  %p16462_p4 = scmp.lt.s32.totalorder %s24_s18, %s24_s18 }
   0x9   :  { %p16458_p3 = scmp.ne.s32.totalorder %s24_s18, %s16457_s26  ;;  %p16463_p5 = scmp.lt.s32.totalorder %s16457_s26, %s16457_s26 }
   0xb   :  { %p16464_p6 = por %p16463_p5, %p16462_p4 }
   0xd   :  { %p16465_p7 = pnand %p16464_p6, %p16458_p3 }
   0xf   :  { %16468 = shalt.err (!%p16465_p7)
}
  0x10   :  { %s16496_s27 = smov 128   ;;  %s16497_s28 = smov 8  }
  0x11   :  { %29 = dma.hbm_to_vmem [thread:$0]  %s22794_s0, 2048, %s24_s18, [#allocation5], %s16496_s27, %s16496_s27, %s16497_s28  }
  0x12   :  { %s16498_s12 = smov [#allocation6]   ;;  %s16469_s16 = scalar_lea.hbm %s22796_s2, 1728 }
  0x13   :  { %s37_s13 = sshll.u32 %s16498_s12, 4  ;;  %p16470_p8 = scmp.ne.s32.totalorder %s22796_s2, %s16469_s16  ;;  %s38_s13 = int_to_ptr.vmem [resolvable:$true] %s37_s13 }
  0x14   :  { %p16473_p9 = scmp.lt.u32.totalorder %s16469_s16, %s22796_s2 }
  0x16   :  { %p16475_p10 = pnand %p16473_p9, %p16470_p8 }
  0x18   :  { %16478 = shalt.err (!%p16475_p10)
}
  0x19   :  { %s16479_s22 = scalar_lea.vmem %s38_s13, 1728  ;;  %p16484_p12 = scmp.lt.s32.totalorder %s38_s13, %s38_s13 }
  0x1a   :  { %p16480_p11 = scmp.ne.s32.totalorder %s38_s13, %s16479_s22  ;;  %p16485_p13 = scmp.lt.s32.totalorder %s16479_s22, %s16479_s22 }
  0x1c   :  { %p16486_p0 = por %p16485_p13, %p16484_p12 }
  0x1e   :  { %p16487_p1 = pnand %p16486_p0, %p16480_p11 }
  0x20   :  { %16490 = shalt.err (!%p16487_p1)
}
  0x21   :  { %s16499_s0 = smov 64   ;;  %s16500_s18 = smov 4  }
  0x22   :  { %43 = dma.hbm_to_vmem [thread:$0]  %s22796_s2, 1728, %s38_s13, [#allocation7], %s16499_s0, %s16499_s0, %s16500_s18  }
  0x23   :  { %16491 = dma.done.wait [#allocation5], 2048  }
  0x24   :  { %16492 = vsyncadd [#allocation5], 4294965248 }
  0x25   :  { %16493 = dma.done.wait [#allocation7], 1728  }
  0x26   :  { %16494 = vsyncadd [#allocation7], 4294965568  ;;  %vm67_vm0 = vcmask 162816   ;;  %v16501_v0 = vmov 0   ;;  %v16502_v1 = vmov 0.0   ;;  %v13208_v2 = vld [vmem:[%s22795_s1 + $0x280] sm:$0xff] }
  0x27   :  { %16326 = vset.pattern.permute.xlu1 %v16501_v0  ;;  %16325 = vset.pattern.permute.xlu0 %v16501_v0  ;;  %70 = vst.msk [vmem:[#allocation2 + $0x10] sm:$0xff] %vm67_vm0, %v16502_v1  ;;  %71 = vst.msk [vmem:[#allocation2 + $0x18] sm:$0xff] %vm67_vm0, %v16502_v1  ;;  %v13110_v3 = vld [vmem:[%s22795_s1 + $0x80] sm:$0xff]  ;;  %v13209_v4 = vld [vmem:[%s22795_s1 + $0x288] sm:$0xff]  ;;  %vm454_vm1 = vcmask 1041408   ;;  %vm88_vm2 = vcmask 261120  }
  0x28   :  { %68 = vst.msk [vmem:[#allocation2] sm:$0xff] %vm67_vm0, %v16502_v1  ;;  %69 = vst.msk [vmem:[#allocation2 + $0x8] sm:$0xff] %vm67_vm0, %v16502_v1  ;;  %1480 = vperm.xlu1 %16326, %v13208_v2   ;;  %315 = vperm.xlu0 %16325, %v13110_v3   ;;  %v13111_v5 = vld [vmem:[%s22795_s1 + $0x88] sm:$0xff]  ;;  %v13113_v6 = vld [vmem:[%s22795_s1 + $0x98] sm:$0xff]  ;;  %vm13087_vm3 = vcmask 23552  }
  0x29   :  { %72 = vst.msk [vmem:[#allocation2 + $0x20] sm:$0xff] %vm67_vm0, %v16502_v1  ;;  %73 = vst.msk [vmem:[#allocation2 + $0x28] sm:$0xff] %vm67_vm0, %v16502_v1  ;;  %v13112_v7 = vld [vmem:[%s22795_s1 + $0x90] sm:$0xff]  ;;  %v13211_v8 = vld [vmem:[%s22795_s1 + $0x298] sm:$0xff] }
  0x2a   :  { %74 = vst.msk [vmem:[#allocation2 + $0x30] sm:$0xff] %vm67_vm0, %v16502_v1  ;;  %75 = vst.msk [vmem:[#allocation2 + $0x38] sm:$0xff] %vm67_vm0, %v16502_v1  ;;  %v13210_v9 = vld [vmem:[%s22795_s1 + $0x290] sm:$0xff]  ;;  %v13115_v10 = vld [vmem:[%s22795_s1 + $0xa8] sm:$0xff] }
  0x2b   :  { %76 = vst.msk [vmem:[#allocation2 + $0x40] sm:$0xff] %vm67_vm0, %v16502_v1  ;;  %77 = vst.msk [vmem:[#allocation2 + $0x48] sm:$0xff] %vm67_vm0, %v16502_v1  ;;  %v13114_v11 = vld [vmem:[%s22795_s1 + $0xa0] sm:$0xff]  ;;  %v13213_v12 = vld [vmem:[%s22795_s1 + $0x2a8] sm:$0xff] }
  0x2c   :  { %78 = vst.msk [vmem:[#allocation2 + $0x50] sm:$0xff] %vm67_vm0, %v16502_v1  ;;  %79 = vst.msk [vmem:[#allocation2 + $0x58] sm:$0xff] %vm67_vm0, %v16502_v1  ;;  %1485 = vperm.xlu1 %16326, %v13209_v4   ;;  %320 = vperm.xlu0 %16325, %v13111_v5   ;;  %v13212_v13 = vld [vmem:[%s22795_s1 + $0x2a0] sm:$0xff]  ;;  %v16327_v14 = vld [vmem:[#allocation6 + $0x30] sm:$0xff]  }
  0x2d   :  { %80 = vst.msk [vmem:[#allocation2 + $0x60] sm:$0xff] %vm67_vm0, %v16502_v1  ;;  %81 = vst.msk [vmem:[#allocation2 + $0x68] sm:$0xff] %vm67_vm0, %v16502_v1  ;;  %v16328_v15 = vld [vmem:[#allocation6 + $0x38] ss:$0 sps:$4 sm:$0x33]   ;;  %14828 = vmatprep.subr.bf16.mxu0 %v16327_v14  ;;  %v109_v16 = vld [vmem:[#allocation4] sm:$0xff] }
  0x2e   :  { %82 = vst.msk [vmem:[#allocation2 + $0x70] sm:$0xff] %vm67_vm0, %v16502_v1  ;;  %83 = vst.msk [vmem:[#allocation2 + $0x78] sm:$0xff] %vm67_vm0, %v16502_v1  ;;  %v110_v17 = vld [vmem:[#allocation4 + $0x8] sm:$0xff]  ;;  %v111_v18 = vld [vmem:[#allocation4 + $0x10] sm:$0xff]  ;;  %14829 = vmatpush3.bf16.msra.mxu0 %v16327_v14  ;;  %v1330_v22 = vsel %vm454_vm1, %v16328_v15, 0 }
  0x2f   :  { %84 = vst.msk [vmem:[#allocation2 + $0x80] sm:$0xff] %vm67_vm0, %v16502_v1  ;;  %85 = vst.msk [vmem:[#allocation2 + $0x88] sm:$0xff] %vm67_vm0, %v16502_v1  ;;  %v112_v19 = vld [vmem:[#allocation4 + $0x18] sm:$0xff]  ;;  %v13116_v21 = vld [vmem:[%s22795_s1 + $0xb0] sm:$0xff]  ;;  %16312 = vmatprep.subr.msk.bf16.mxu0 %vm454_vm1, %v16328_v15 }
  0x30   :  { %86 = vst.msk [vmem:[#allocation2 + $0x90] sm:$0xff] %vm67_vm0, %v16502_v1  ;;  %87 = vst.msk [vmem:[#allocation2 + $0x98] sm:$0xff] %vm67_vm0, %v16502_v1  ;;  %330 = vperm.xlu1 %16326, %v13113_v6   ;;  %325 = vperm.xlu0 %16325, %v13112_v7   ;;  %v13117_v20 = vld [vmem:[%s22795_s1 + $0xb8] sm:$0xff]  ;;  %v113_v23 = vld [vmem:[#allocation4 + $0x20] sm:$0xff] }
  0x31   :  { %125 = vst.msk [vmem:[#allocation2 + $0x10] sm:$0xff] %vm67_vm0, %v109_v16  ;;  %126 = vst.msk [vmem:[#allocation2 + $0x18] sm:$0xff] %vm67_vm0, %v110_v17  ;;  %v114_v24 = vld [vmem:[#allocation4 + $0x28] sm:$0xff]  ;;  %v115_v25 = vld [vmem:[#allocation4 + $0x30] sm:$0xff] }
  0x32   :  { %127 = vst.msk [vmem:[#allocation2 + $0x20] sm:$0xff] %vm67_vm0, %v111_v18  ;;  %128 = vst.msk [vmem:[#allocation2 + $0x28] sm:$0xff] %vm67_vm0, %v112_v19  ;;  %v116_v26 = vld [vmem:[#allocation4 + $0x38] sm:$0xff]  ;;  %v117_v28 = vld [vmem:[#allocation4 + $0x40] sm:$0xff]  ;;  %14831 = vmatpush3.bf16.msra.mxu0 %v1330_v22 }
  0x33   :  { %129 = vst.msk [vmem:[#allocation2 + $0x30] sm:$0xff] %vm67_vm0, %v113_v23  ;;  %130 = vst.msk [vmem:[#allocation2 + $0x38] sm:$0xff] %vm67_vm0, %v114_v24  ;;  %v13215_v27 = vld [vmem:[%s22795_s1 + $0x2b8] sm:$0xff]  ;;  %v13214_v29 = vld [vmem:[%s22795_s1 + $0x2b0] sm:$0xff] }
  0x34   :  { %1495 = vperm.xlu1 %16326, %v13211_v8   ;;  %1490 = vperm.xlu0 %16325, %v13210_v9   ;;  %131 = vst.msk [vmem:[#allocation2 + $0x40] sm:$0xff] %vm67_vm0, %v115_v25  ;;  %132 = vst.msk [vmem:[#allocation2 + $0x48] sm:$0xff] %vm67_vm0, %v116_v26  ;;  %v118_v30 = vld [vmem:[#allocation4 + $0x48] sm:$0xff]  ;;  %v119_v31 = vld [vmem:[#allocation4 + $0x50] sm:$0xff] }
  0x35   :  { %133 = vst.msk [vmem:[#allocation2 + $0x50] sm:$0xff] %vm67_vm0, %v117_v28  ;;  %134 = vst.msk [vmem:[#allocation2 + $0x58] sm:$0xff] %vm67_vm0, %v118_v30  ;;  %v120_v32 = vld [vmem:[#allocation4 + $0x58] sm:$0xff]  ;;  %v13119_v33 = vld [vmem:[%s22795_s1 + $0xc8] sm:$0xff] }
  0x36   :  { %135 = vst.msk [vmem:[#allocation2 + $0x60] sm:$0xff] %vm67_vm0, %v119_v31  ;;  %136 = vst.msk [vmem:[#allocation2 + $0x68] sm:$0xff] %vm67_vm0, %v120_v32  ;;  %v13118_v36 = vld [vmem:[%s22795_s1 + $0xc0] sm:$0xff]  ;;  %v16329_v41 = vld [vmem:[#allocation6 + $0xc] sm:$0xff]  }
  0x37   :  { %v13217_v44 = vld [vmem:[%s22795_s1 + $0x2c8] sm:$0xff]  ;;  %14748 = vmatprep.subr.bf16.mxu1 %v16329_v41  ;;  %v121_v48 = vld [vmem:[#allocation4 + $0x60] sm:$0xff]  ;;  %v123_v52 = vld [vmem:[#allocation4 + $0x70] sm:$0xff]  ;;  %90 = vst.msk [vmem:[#allocation3 + $0x8] sm:$0xff] %vm88_vm2, %v16502_v1 }
  0x38   :  { %340 = vperm.xlu1 %16326, %v13115_v10   ;;  %335 = vperm.xlu0 %16325, %v13114_v11   ;;  %v16691_v34 = vld [vmem:[#allocation2 + $0x10] sm:$0xff]  ;;  %v16693_v35 = vld [vmem:[#allocation2 + $0x18] sm:$0xff]  ;;  %v122_v49 = vld [vmem:[#allocation4 + $0x68] sm:$0xff]  ;;  %137 = vst.msk [vmem:[#allocation2 + $0x70] sm:$0xff] %vm67_vm0, %v121_v48 }
  0x39   :  { %v1284_v37 = vpack.c.bf16 %v16693_v35, %v16691_v34  ;;  %v16701_v38 = vld [vmem:[#allocation2 + $0x20] sm:$0xff]  ;;  %v16703_v39 = vld [vmem:[#allocation2 + $0x28] sm:$0xff]  ;;  %14749 = vmatpush3.bf16.msra.mxu1 %v16329_v41  ;;  %138 = vst.msk [vmem:[#allocation2 + $0x78] sm:$0xff] %vm67_vm0, %v122_v49  ;;  %v124_v54 = vld [vmem:[#allocation4 + $0x78] sm:$0xff] }
  0x3a   :  { %v1285_v40 = vpack.c.bf16 %v16703_v39, %v16701_v38  ;;  %v16708_v42 = vld [vmem:[#allocation2 + $0x30] sm:$0xff]  ;;  %v16710_v43 = vld [vmem:[#allocation2 + $0x38] sm:$0xff]  ;;  %v13216_v50 = vld [vmem:[%s22795_s1 + $0x2c0] sm:$0xff]  ;;  %139 = vst.msk [vmem:[#allocation2 + $0x80] sm:$0xff] %vm67_vm0, %v123_v52 }
  0x3b   :  { %14832 = vmatprep.mubr.msk.bf16.mxu0 %vm67_vm0, %v1284_v37  ;;  %v1286_v45 = vpack.c.bf16 %v16710_v43, %v16708_v42  ;;  %v16718_v46 = vld [vmem:[#allocation2 + $0x40] sm:$0xff]  ;;  %v16720_v47 = vld [vmem:[#allocation2 + $0x48] sm:$0xff]  ;;  %140 = vst.msk [vmem:[#allocation2 + $0x88] sm:$0xff] %vm67_vm0, %v124_v54  ;;  %v16330_v56 = vld [vmem:[#allocation6 + $0x14] ss:$0 sps:$4 sm:$0x33]  }
  0x3c   :  { %1505 = vperm.xlu1 %16326, %v13213_v12   ;;  %1500 = vperm.xlu0 %16325, %v13212_v13   ;;  %v16726_v51 = vld [vmem:[#allocation2 + $0x50] sm:$0xff]  ;;  %v16730_v53 = vld [vmem:[#allocation2 + $0x58] sm:$0xff]  ;;  %v1287_v55 = vpack.c.bf16 %v16720_v47, %v16718_v46  ;;  %v456_v61 = vsel %vm454_vm1, %v16330_v56, 0  ;;  %v16332_v62 = vld [vmem:[#allocation6 + $0x44] ss:$0 sps:$4 sm:$0x33]  }
  0x3d   :  { %14833 = vmatmul.mubr.msk.bf16.vlgmr.msra.gmra.mrb[0].mxu0 %vm67_vm0, %v1285_v40  ;;  %v16331_v57 = vld [vmem:[#allocation6 + $0x3c] sm:$0xff]   ;;  %v13120_v59 = vld [vmem:[%s22795_s1 + $0xd0] sm:$0xff]  ;;  %v1288_v60 = vpack.c.bf16 %v16730_v53, %v16726_v51  ;;  %16308 = vmatprep.subr.msk.bf16.mxu1 %vm454_vm1, %v16330_v56  ;;  %v16749_v0 = vld [vmem:[#allocation2 + $0x68] sm:$0xff]  ;;  %v1620_v2 = vsel %vm454_vm1, %v16332_v62, 0  ;;  %89 = vst.msk [vmem:[#allocation3] sm:$0xff] %vm88_vm2, %v16502_v1 }
  0x3e   :  { %14836 = vmatprep.mubr.msk.bf16.mxu0 %vm67_vm0, %v1286_v45  ;;  %v13121_v58 = vld [vmem:[%s22795_s1 + $0xd8] sm:$0xff]  ;;  %14848 = vmatprep.subr.bf16.mxu0 %v16331_v57  ;;  %v16747_v63 = vld [vmem:[#allocation2 + $0x60] sm:$0xff]  ;;  %v13218_v4 = vld [vmem:[%s22795_s1 + $0x2d0] sm:$0xff]  ;;  %91 = vst.msk [vmem:[#allocation3 + $0x10] sm:$0xff] %vm88_vm2, %v16502_v1 }
  0x3f   :  { %14751 = vmatpush3.bf16.msra.mxu1 %v456_v61  ;;  %14849 = vmatpush3.bf16.msra.mxu0 %v16331_v57  ;;  %v13219_v3 = vld [vmem:[%s22795_s1 + $0x2d8] sm:$0xff]  ;;  %v16760_v5 = vld [vmem:[#allocation2 + $0x70] sm:$0xff]  ;;  %v1289_v7 = vpack.c.bf16 %v16749_v0, %v16747_v63  ;;  %v13123_v8 = vld [vmem:[%s22795_s1 + $0xe8] sm:$0xff]  ;;  %92 = vst.msk [vmem:[#allocation3 + $0x18] sm:$0xff] %vm88_vm2, %v16502_v1 }
  0x40   :  { %350 = vperm.xlu1 %16326, %v13117_v20   ;;  %345 = vperm.xlu0 %16325, %v13116_v21   ;;  %v16762_v6 = vld [vmem:[#allocation2 + $0x78] sm:$0xff]  ;;  %v13122_v9 = vld [vmem:[%s22795_s1 + $0xe0] sm:$0xff]  ;;  %v13221_v11 = vld [vmem:[%s22795_s1 + $0x2e8] sm:$0xff]  ;;  %93 = vst.msk [vmem:[#allocation3 + $0x20] sm:$0xff] %vm88_vm2, %v16502_v1 }
  0x41   :  { %16313 = vmatprep.subr.msk.bf16.mxu0 %vm454_vm1, %v16332_v62  ;;  %v1290_v10 = vpack.c.bf16 %v16762_v6, %v16760_v5  ;;  %v13220_v12 = vld [vmem:[%s22795_s1 + $0x2e0] sm:$0xff]  ;;  %v13125_v16 = vld [vmem:[%s22795_s1 + $0xf8] sm:$0xff]  ;;  %v13124_v17 = vld [vmem:[%s22795_s1 + $0xf0] sm:$0xff]  ;;  %94 = vst.msk [vmem:[#allocation3 + $0x28] sm:$0xff] %vm88_vm2, %v16502_v1 }
  0x42   :  { %v16781_v13 = vld [vmem:[#allocation2 + $0x80] sm:$0xff]  ;;  %v1283_v14 = vld [vmem:[#allocation2 + $0x88] sm:$0xff]  ;;  %v13223_v18 = vld [vmem:[%s22795_s1 + $0x2f8] sm:$0xff]  ;;  %95 = vst.msk [vmem:[#allocation3 + $0x30] sm:$0xff] %vm88_vm2, %v16502_v1 }
  0x43   :  { %14851 = vmatpush3.bf16.msra.mxu0 %v1620_v2  ;;  %v1291_v15 = vpack.c.bf16 %v1283_v14, %v16781_v13  ;;  %v13222_v19 = vld [vmem:[%s22795_s1 + $0x2f0] sm:$0xff]  ;;  %v158_v20 = vld [vmem:[%s22795_s1 + $0x8] sm:$0xff]  ;;  %v157_v21 = vld [vmem:[%s22795_s1] sm:$0xff]  ;;  %96 = vst.msk [vmem:[#allocation3 + $0x38] sm:$0xff] %vm88_vm2, %v16502_v1 }
  0x44   :  { %1515 = vperm.xlu1 %16326, %v13215_v27   ;;  %1510 = vperm.xlu0 %16325, %v13214_v29   ;;  %v13235_v22 = vld [vmem:[%s22795_s1 + $0x308] sm:$0xff]  ;;  %v13234_v23 = vld [vmem:[%s22795_s1 + $0x300] sm:$0xff]  ;;  %v160_v25 = vld [vmem:[%s22795_s1 + $0x18] sm:$0xff]  ;;  %97 = vst.msk [vmem:[#allocation3 + $0x40] sm:$0xff] %vm88_vm2, %v16502_v1 }
  0x45   :  { %14837 = vmatmul.mubr.msk.bf16.gmra.mrb[4].mxu0 %vm67_vm0, %v1287_v55  ;;  %v16810_v24 = vld [vmem:[#allocation6] sm:$0xff]   ;;  %v159_v26 = vld [vmem:[%s22795_s1 + $0x10] sm:$0xff]  ;;  %v16819_v27 = vld [vmem:[#allocation6 + $0x48] sm:$0xff]   ;;  %98 = vst.msk [vmem:[#allocation3 + $0x48] sm:$0xff] %vm88_vm2, %v16502_v1 }
  0x46   :  { %14840 = vmatprep.mubr.msk.bf16.mxu0 %vm67_vm0, %v1288_v60  ;;  %14768 = vmatprep.subr.bf16.mxu1 %v16810_v24  ;;  %v13237_v28 = vld [vmem:[%s22795_s1 + $0x318] sm:$0xff]  ;;  %v13236_v29 = vld [vmem:[%s22795_s1 + $0x310] sm:$0xff]  ;;  %v162_v30 = vld [vmem:[%s22795_s1 + $0x28] sm:$0xff]  ;;  %99 = vst.msk [vmem:[#allocation3 + $0x50] sm:$0xff] %vm88_vm2, %v16502_v1 }
  0x47   :  { %14868 = vmatprep.subr.bf16.mxu0 %v16819_v27  ;;  %v161_v31 = vld [vmem:[%s22795_s1 + $0x20] sm:$0xff]  ;;  %v13239_v32 = vld [vmem:[%s22795_s1 + $0x328] sm:$0xff]  ;;  %v163_v37 = vld [vmem:[%s22795_s1 + $0x30] sm:$0xff]  ;;  %100 = vst.msk [vmem:[#allocation3 + $0x58] sm:$0xff] %vm88_vm2, %v16502_v1 }
  0x48   :  { %360 = vperm.xlu1 %16326, %v13119_v33   ;;  %355 = vperm.xlu0 %16325, %v13118_v36   ;;  %v13238_v33 = vld [vmem:[%s22795_s1 + $0x320] sm:$0xff]  ;;  %v164_v36 = vld [vmem:[%s22795_s1 + $0x38] sm:$0xff]  ;;  %v13240_v41 = vld [vmem:[%s22795_s1 + $0x330] sm:$0xff]  ;;  %101 = vst.msk [vmem:[#allocation3 + $0x60] sm:$0xff] %vm88_vm2, %v16502_v1 }
  0x49   :  { %v13241_v40 = vld [vmem:[%s22795_s1 + $0x338] sm:$0xff]  ;;  %v165_v45 = vld [vmem:[%s22795_s1 + $0x40] sm:$0xff]  ;;  %v13243_v48 = vld [vmem:[%s22795_s1 + $0x348] sm:$0xff]  ;;  %102 = vst.msk [vmem:[#allocation3 + $0x68] sm:$0xff] %vm88_vm2, %v16502_v1 }
  0x4a   :  { %v13242_v49 = vld [vmem:[%s22795_s1 + $0x340] sm:$0xff]  ;;  %v167_v52 = vld [vmem:[%s22795_s1 + $0x50] sm:$0xff]  ;;  %v13245_v54 = vld [vmem:[%s22795_s1 + $0x358] sm:$0xff]  ;;  %103 = vst.msk [vmem:[#allocation3 + $0x70] sm:$0xff] %vm88_vm2, %v16502_v1 }
  0x4b   :  { %v13244_v55 = vld [vmem:[%s22795_s1 + $0x350] sm:$0xff]  ;;  %v170_v56 = vld [vmem:[%s22795_s1 + $0x68] sm:$0xff]  ;;  %v169_v57 = vld [vmem:[%s22795_s1 + $0x60] sm:$0xff]  ;;  %104 = vst.msk [vmem:[#allocation3 + $0x78] sm:$0xff] %vm88_vm2, %v16502_v1 }
  0x4c   :  { %1525 = vperm.xlu1 %16326, %v13217_v44   ;;  %1520 = vperm.xlu0 %16325, %v13216_v50   ;;  %v166_v44 = vld [vmem:[%s22795_s1 + $0x48] sm:$0xff]  ;;  %v168_v50 = vld [vmem:[%s22795_s1 + $0x58] sm:$0xff]  ;;  %v171_v61 = vld [vmem:[%s22795_s1 + $0x70] sm:$0xff]  ;;  %105 = vst.msk [vmem:[#allocation3 + $0x80] sm:$0xff] %vm88_vm2, %v16502_v1 }
  0x4d   :  { %14841 = vmatmul.mubr.msk.bf16.gmra.mrb[8].mxu0 %vm67_vm0, %v1289_v7  ;;  %v172_v60 = vld [vmem:[%s22795_s1 + $0x78] sm:$0xff]  ;;  %v13248_v2 = vld [vmem:[%s22795_s1 + $0x370] sm:$0xff]  ;;  %v13260_v14 = vld [vmem:[%s22795_s1 + $0x380] sm:$0xff]  ;;  %106 = vst.msk [vmem:[#allocation3 + $0x88] sm:$0xff] %vm88_vm2, %v16502_v1 }
  0x4e   :  { %14844 = vmatprep.mubr.msk.bf16.mxu0 %vm67_vm0, %v1290_v10  ;;  %v13249_v62 = vld [vmem:[%s22795_s1 + $0x378] sm:$0xff]  ;;  %v280_v10 = vld [vmem:[#allocation2 + $0x8] sm:$0xff]  ;;  %107 = vst.msk [vmem:[#allocation3 + $0x90] sm:$0xff] %vm88_vm2, %v16502_v1  ;;  %108 = vst.msk [vmem:[#allocation3 + $0x98] sm:$0xff] %vm88_vm2, %v16502_v1 }
  0x50   :  { %370 = vperm.xlu1 %16326, %v13121_v58   ;;  %365 = vperm.xlu0 %16325, %v13120_v59   ;;  %v13247_v58 = vld [vmem:[%s22795_s1 + $0x368] sm:$0xff]  ;;  %v13246_v59 = vld [vmem:[%s22795_s1 + $0x360] sm:$0xff] }
  0x54   :  { %1535 = vperm.xlu1 %16326, %v13219_v3   ;;  %1530 = vperm.xlu0 %16325, %v13218_v4   ;;  %v13147_v3 = vld [vmem:[%s22795_s1 + $0x108] sm:$0xff]  ;;  %v13146_v4 = vld [vmem:[%s22795_s1 + $0x100] sm:$0xff] }
  0x55   :  { %14845 = vmatmul.mubr.msk.bf16.gmra.mrb[12].mxu0 %vm67_vm0, %v1291_v15 }
  0x58   :  { %380 = vperm.xlu1 %16326, %v13123_v8   ;;  %375 = vperm.xlu0 %16325, %v13122_v9   ;;  %v16906_v9 = vld [vmem:[#allocation2 + $0x11] sm:$0xff] }
  0x5c   :  { %1545 = vperm.xlu1 %16326, %v13221_v11   ;;  %1540 = vperm.xlu0 %16325, %v13220_v12   ;;  %v16908_v11 = vld [vmem:[#allocation2 + $0x19] sm:$0xff]  ;;  %v13261_v12 = vld [vmem:[%s22795_s1 + $0x388] sm:$0xff] }
  0x60   :  { %390 = vperm.xlu1 %16326, %v13125_v16   ;;  %385 = vperm.xlu0 %16325, %v13124_v17  }
  0x64   :  { %1555 = vperm.xlu1 %16326, %v13223_v18   ;;  %1550 = vperm.xlu0 %16325, %v13222_v19  }
  0x68   :  { %180 = vperm.xlu1 %16326, %v158_v20   ;;  %175 = vperm.xlu0 %16325, %v157_v21   ;;  %v13149_v21 = vld [vmem:[%s22795_s1 + $0x118] sm:$0xff] }
  0x6c   :  { %1775 = vperm.xlu1 %16326, %v13235_v22   ;;  %1770 = vperm.xlu0 %16325, %v13234_v23   ;;  %v13148_v22 = vld [vmem:[%s22795_s1 + $0x110] sm:$0xff] }
  0x70   :  { %190 = vperm.xlu1 %16326, %v160_v25   ;;  %185 = vperm.xlu0 %16325, %v159_v26  }
  0x74   :  { %1785 = vperm.xlu1 %16326, %v13237_v28   ;;  %1780 = vperm.xlu0 %16325, %v13236_v29  }
  0x78   :  { %200 = vperm.xlu1 %16326, %v162_v30   ;;  %195 = vperm.xlu0 %16325, %v161_v31   ;;  %v16931_v31 = vld [vmem:[#allocation2 + $0x21] sm:$0xff] }
  0x7c   :  { %1795 = vperm.xlu1 %16326, %v13239_v32   ;;  %1790 = vperm.xlu0 %16325, %v13238_v33   ;;  %v13263_v32 = vld [vmem:[%s22795_s1 + $0x398] sm:$0xff] }
  0x80   :  { %210 = vperm.xlu1 %16326, %v164_v36   ;;  %205 = vperm.xlu0 %16325, %v163_v37   ;;  %v16334_v37 = vld [vmem:[#allocation6 + $0x8] ss:$0 sps:$4 sm:$0x33]  }
  0x84   :  { %1805 = vperm.xlu1 %16326, %v13241_v40   ;;  %1800 = vperm.xlu0 %16325, %v13240_v41  }
  0x88   :  { %220 = vperm.xlu1 %16326, %v166_v44   ;;  %215 = vperm.xlu0 %16325, %v165_v45   ;;  %v13151_v44 = vld [vmem:[%s22795_s1 + $0x128] sm:$0xff]  ;;  %v13150_v45 = vld [vmem:[%s22795_s1 + $0x120] sm:$0xff] }
  0x8c   :  { %1815 = vperm.xlu1 %16326, %v13243_v48   ;;  %1810 = vperm.xlu0 %16325, %v13242_v49  }
  0x90   :  { %230 = vperm.xlu1 %16326, %v168_v50   ;;  %225 = vperm.xlu0 %16325, %v167_v52   ;;  %v589_v52 = vsel %vm454_vm1, %v16334_v37, 0 }
  0x94   :  { %1825 = vperm.xlu1 %16326, %v13245_v54   ;;  %1820 = vperm.xlu0 %16325, %v13244_v55   ;;  %v16336_v54 = vld [vmem:[#allocation6 + $0x50] ss:$0 sps:$4 sm:$0x33]   ;;  %v16951_v55 = vld [vmem:[#allocation6 + $0x18] sm:$0xff]  }
  0x98   :  { %240 = vperm.xlu1 %16326, %v170_v56   ;;  %235 = vperm.xlu0 %16325, %v169_v57  }
  0x9c   :  { %1835 = vperm.xlu1 %16326, %v13247_v58   ;;  %1830 = vperm.xlu0 %16325, %v13246_v59   ;;  %v16955_v58 = vld [vmem:[#allocation2 + $0x39] sm:$0xff]  ;;  %v13265_v59 = vld [vmem:[%s22795_s1 + $0x3a8] sm:$0xff] }
  0xa0   :  { %250 = vperm.xlu1 %16326, %v172_v60   ;;  %245 = vperm.xlu0 %16325, %v171_v61   ;;  %v13264_v60 = vld [vmem:[%s22795_s1 + $0x3a0] sm:$0xff] }
  0xa4   :  { %1845 = vperm.xlu1 %16326, %v13249_v62   ;;  %1840 = vperm.xlu0 %16325, %v13248_v2   ;;  %v1910_v62 = vsel %vm454_vm1, %v16336_v54, 0  ;;  %v16970_v2 = vld [vmem:[#allocation6 + $0x54] sm:$0xff]  }
  0xa7   :  { %v1481_v7 = vpop.permute.xlu1 %1480  ;;  %v316_v8 = vpop.permute.xlu0 %315 }
  0xa8   :  { %728 = vperm.xlu1 %16326, %v13147_v3   ;;  %723 = vperm.xlu0 %16325, %v13146_v4   ;;  %v1558_v15 = vmul.f32 %v1481_v7, %v16906_v9  ;;  %v393_v18 = vmul.f32 %v316_v8, %v280_v10  ;;  %v13152_v7 = vld [vmem:[%s22795_s1 + $0x130] sm:$0xff] }
  0xab   :  { %v1486_v16 = vpop.permute.xlu1 %1485  ;;  %v321_v17 = vpop.permute.xlu0 %320 }
  0xac   :  { %v1559_v19 = vmul.f32 %v1486_v16, %v16908_v11  ;;  %v394_v20 = vmul.f32 %v16691_v34, %v321_v17  ;;  %2065 = vperm.xlu1 %16326, %v13261_v12   ;;  %2060 = vperm.xlu0 %16325, %v13260_v14   ;;  %v16927_v34 = vld [vmem:[#allocation2 + $0x29] sm:$0xff]  ;;  %v16987_v17 = vld [vmem:[#allocation2 + $0x41] sm:$0xff] }
  0xad   :  { %v16984_v16 = vld [vmem:[#allocation2 + $0x49] sm:$0xff] }
  0xae   :  { %v1574_v23 = vpack.c.bf16 %v1559_v19, %v1558_v15  ;;  %v409_v25 = vpack.c.bf16 %v394_v20, %v393_v18  ;;  %v13267_v18 = vld [vmem:[%s22795_s1 + $0x3b8] sm:$0xff]  ;;  %v13266_v19 = vld [vmem:[%s22795_s1 + $0x3b0] sm:$0xff] }
  0xaf   :  { %v331_v26 = vpop.permute.xlu1 %330  ;;  %v326_v28 = vpop.permute.xlu0 %325 }
  0xb0   :  { %v396_v29 = vmul.f32 %v16701_v38, %v331_v26  ;;  %v395_v30 = vmul.f32 %v16693_v35, %v326_v28  ;;  %738 = vperm.xlu1 %16326, %v13149_v21   ;;  %733 = vperm.xlu0 %16325, %v13148_v22   ;;  %v13262_v38 = vld [vmem:[%s22795_s1 + $0x390] sm:$0xff] }
  0xb1   :  { %14752 = vmatprep.mubr.msk.bf16.mxu1 %vm67_vm0, %v409_v25  ;;  %14852 = vmatprep.mubr.msk.bf16.mxu0 %vm67_vm0, %v1574_v23  ;;  %v13155_v23 = vld [vmem:[%s22795_s1 + $0x148] sm:$0xff]  ;;  %v13154_v25 = vld [vmem:[%s22795_s1 + $0x140] sm:$0xff] }
  0xb2   :  { %v410_v33 = vpack.c.bf16 %v396_v29, %v395_v30 }
  0xb3   :  { %v1496_v35 = vpop.permute.xlu1 %1495  ;;  %v1491_v36 = vpop.permute.xlu0 %1490 }
  0xb4   :  { %v1561_v40 = vmul.f32 %v1496_v35, %v16927_v34  ;;  %v1560_v41 = vmul.f32 %v1491_v36, %v16931_v31  ;;  %2075 = vperm.xlu1 %16326, %v13263_v32   ;;  %2070 = vperm.xlu0 %16325, %v13262_v38   ;;  %v17006_v38 = vld [vmem:[#allocation2 + $0x59] sm:$0xff]  ;;  %v13269_v35 = vld [vmem:[%s22795_s1 + $0x3c8] sm:$0xff] }
  0xb5   :  { %14753 = vmatmul.mubr.msk.bf16.vlgmr.msra.gmra.mrb[0].mxu1 %vm67_vm0, %v410_v33  ;;  %v17009_v33 = vld [vmem:[#allocation2 + $0x51] sm:$0xff]  ;;  %v13268_v36 = vld [vmem:[%s22795_s1 + $0x3c0] sm:$0xff] }
  0xb6   :  { %v1575_v48 = vpack.c.bf16 %v1561_v40, %v1560_v41  ;;  %14769 = vmatpush3.bf16.msra.mxu1 %v16810_v24  ;;  %v16958_v24 = vld [vmem:[#allocation2 + $0x31] sm:$0xff] }
  0xb7   :  { %v341_v49 = vpop.permute.xlu1 %340  ;;  %v336_v50 = vpop.permute.xlu0 %335  ;;  %16309 = vmatprep.subr.msk.bf16.mxu1 %vm454_vm1, %v16334_v37 }
  0xb8   :  { %v398_v56 = vmul.f32 %v16708_v42, %v341_v49  ;;  %v397_v57 = vmul.f32 %v16703_v39, %v336_v50  ;;  %748 = vperm.xlu1 %16326, %v13151_v44   ;;  %743 = vperm.xlu0 %16325, %v13150_v45   ;;  %v13157_v44 = vld [vmem:[%s22795_s1 + $0x158] sm:$0xff]  ;;  %v13156_v45 = vld [vmem:[%s22795_s1 + $0x150] sm:$0xff] }
  0xb9   :  { %14853 = vmatmul.mubr.msk.bf16.vlgmr.msra.gmra.mrb[0].mxu0 %vm67_vm0, %v1575_v48 }
  0xba   :  { %v411_v61 = vpack.c.bf16 %v398_v56, %v397_v57  ;;  %14771 = vmatpush3.bf16.msra.mxu1 %v589_v52  ;;  %14869 = vmatpush3.bf16.msra.mxu0 %v16819_v27  ;;  %v13153_v27 = vld [vmem:[%s22795_s1 + $0x138] sm:$0xff]  ;;  %v17028_v56 = vld [vmem:[#allocation2 + $0x69] sm:$0xff]  ;;  %v17031_v57 = vld [vmem:[#allocation2 + $0x61] sm:$0xff] }
  0xbb   :  { %v1506_v39 = vpop.permute.xlu1 %1505  ;;  %v1501_v42 = vpop.permute.xlu0 %1500  ;;  %16314 = vmatprep.subr.msk.bf16.mxu0 %vm454_vm1, %v16336_v54  ;;  %14788 = vmatprep.subr.bf16.mxu1 %v16951_v55 }
  0xbc   :  { %v1563_v3 = vmul.f32 %v1506_v39, %v16955_v58  ;;  %v1562_v4 = vmul.f32 %v1501_v42, %v16958_v24  ;;  %2085 = vperm.xlu1 %16326, %v13265_v59   ;;  %2080 = vperm.xlu0 %16325, %v13264_v60   ;;  %v13271_v59 = vld [vmem:[%s22795_s1 + $0x3d8] sm:$0xff]  ;;  %v13270_v60 = vld [vmem:[%s22795_s1 + $0x3d0] sm:$0xff] }
  0xbd   :  { %14756 = vmatprep.mubr.msk.bf16.mxu1 %vm67_vm0, %v411_v61 }
  0xbe   :  { %v1576_v8 = vpack.c.bf16 %v1563_v3, %v1562_v4  ;;  %14871 = vmatpush3.bf16.msra.mxu0 %v1910_v62  ;;  %v13159_v62 = vld [vmem:[%s22795_s1 + $0x168] sm:$0xff]  ;;  %v13158_v3 = vld [vmem:[%s22795_s1 + $0x160] sm:$0xff] }
  0xbf   :  { %v351_v10 = vpop.permute.xlu1 %350  ;;  %v346_v12 = vpop.permute.xlu0 %345  ;;  %14888 = vmatprep.subr.bf16.mxu0 %v16970_v2 }
  0xc0   :  { %v400_v14 = vmul.f32 %v16718_v46, %v351_v10  ;;  %v399_v15 = vmul.f32 %v16710_v43, %v346_v12  ;;  %758 = vperm.xlu1 %16326, %v13153_v27   ;;  %753 = vperm.xlu0 %16325, %v13152_v7   ;;  %v17050_v12 = vld [vmem:[#allocation2 + $0x79] sm:$0xff] }
  0xc1   :  { %14856 = vmatprep.mubr.msk.bf16.mxu0 %vm67_vm0, %v1576_v8 }
  0xc2   :  { %v412_v20 = vpack.c.bf16 %v400_v14, %v399_v15  ;;  %v17053_v14 = vld [vmem:[#allocation2 + $0x71] sm:$0xff]  ;;  %v13273_v15 = vld [vmem:[%s22795_s1 + $0x3e8] sm:$0xff] }
  0xc3   :  { %v1516_v46 = vpop.permute.xlu1 %1515  ;;  %v1511_v21 = vpop.permute.xlu0 %1510 }
  0xc4   :  { %v1565_v43 = vmul.f32 %v1516_v46, %v16984_v16  ;;  %v1564_v22 = vmul.f32 %v1511_v21, %v16987_v17  ;;  %2095 = vperm.xlu1 %16326, %v13267_v18   ;;  %2090 = vperm.xlu0 %16325, %v13266_v19   ;;  %v13272_v18 = vld [vmem:[%s22795_s1 + $0x3e0] sm:$0xff]  ;;  %v13161_v21 = vld [vmem:[%s22795_s1 + $0x178] sm:$0xff] }
  0xc5   :  { %14757 = vmatmul.mubr.msk.bf16.gmra.mrb[4].mxu1 %vm67_vm0, %v412_v20 }
  0xc6   :  { %v1577_v26 = vpack.c.bf16 %v1565_v43, %v1564_v22  ;;  %v13160_v43 = vld [vmem:[%s22795_s1 + $0x170] sm:$0xff] }
  0xc7   :  { %v361_v28 = vpop.permute.xlu1 %360  ;;  %v356_v29 = vpop.permute.xlu0 %355 }
  0xc8   :  { %v402_v30 = vmul.f32 %v16726_v51, %v361_v28  ;;  %v401_v32 = vmul.f32 %v16720_v47, %v356_v29  ;;  %768 = vperm.xlu1 %16326, %v13155_v23   ;;  %763 = vperm.xlu0 %16325, %v13154_v25   ;;  %v1460_v29 = vld [vmem:[#allocation2 + $0x89] sm:$0xff] }
  0xc9   :  { %14857 = vmatmul.mubr.msk.bf16.gmra.mrb[4].mxu0 %vm67_vm0, %v1577_v26 }
  0xca   :  { %v413_v37 = vpack.c.bf16 %v402_v30, %v401_v32  ;;  %v17073_v30 = vld [vmem:[#allocation2 + $0x81] sm:$0xff]  ;;  %v13275_v32 = vld [vmem:[%s22795_s1 + $0x3f8] sm:$0xff] }
  0xcb   :  { %v1526_v51 = vpop.permute.xlu1 %1525  ;;  %v1521_v40 = vpop.permute.xlu0 %1520 }
  0xcc   :  { %v1567_v47 = vmul.f32 %v1526_v51, %v17006_v38  ;;  %v1566_v41 = vmul.f32 %v1521_v40, %v17009_v33  ;;  %2105 = vperm.xlu1 %16326, %v13269_v35   ;;  %2100 = vperm.xlu0 %16325, %v13268_v36   ;;  %v13274_v35 = vld [vmem:[%s22795_s1 + $0x3f0] sm:$0xff] }
  0xcd   :  { %14760 = vmatprep.mubr.msk.bf16.mxu1 %vm67_vm0, %v413_v37  ;;  %v17082_v40 = vld [vmem:[#allocation2 + $0xf] sm:$0xff] }
  0xce   :  { %v1578_v48 = vpack.c.bf16 %v1567_v47, %v1566_v41  ;;  %v141_v47 = vld [vmem:[#allocation2 + $0x7] sm:$0xff] }
  0xcf   :  { %v371_v49 = vpop.permute.xlu1 %370  ;;  %v366_v50 = vpop.permute.xlu0 %365  ;;  %v13173_v41 = vld [vmem:[%s22795_s1 + $0x188] sm:$0xff] }
  0xd0   :  { %v404_v52 = vmul.f32 %v16747_v63, %v371_v49  ;;  %v403_v54 = vmul.f32 %v16730_v53, %v366_v50  ;;  %778 = vperm.xlu1 %16326, %v13157_v44   ;;  %773 = vperm.xlu0 %16325, %v13156_v45   ;;  %v13172_v44 = vld [vmem:[%s22795_s1 + $0x180] sm:$0xff] }
  0xd1   :  { %14860 = vmatprep.mubr.msk.bf16.mxu0 %vm67_vm0, %v1578_v48 }
  0xd2   :  { %v414_v61 = vpack.c.bf16 %v404_v52, %v403_v54  ;;  %v17092_v54 = vld [vmem:[#allocation2 + $0x1f] sm:$0xff] }
  0xd3   :  { %v1536_v63 = vpop.permute.xlu1 %1535  ;;  %v1531_v39 = vpop.permute.xlu0 %1530 }
  0xd4   :  { %v1569_v53 = vmul.f32 %v1536_v63, %v17028_v56  ;;  %v1568_v42 = vmul.f32 %v1531_v39, %v17031_v57  ;;  %2115 = vperm.xlu1 %16326, %v13271_v59   ;;  %2110 = vperm.xlu0 %16325, %v13270_v60   ;;  %v17095_v59 = vld [vmem:[#allocation2 + $0x17] sm:$0xff]  ;;  %v13287_v60 = vld [vmem:[%s22795_s1 + $0x408] sm:$0xff] }
  0xd5   :  { %14761 = vmatmul.mubr.msk.bf16.gmra.mrb[8].mxu1 %vm67_vm0, %v414_v61  ;;  %v13286_v61 = vld [vmem:[%s22795_s1 + $0x400] sm:$0xff] }
  0xd6   :  { %v1579_v4 = vpack.c.bf16 %v1569_v53, %v1568_v42 }
  0xd7   :  { %v381_v27 = vpop.permute.xlu1 %380  ;;  %v376_v7 = vpop.permute.xlu0 %375 }
  0xd8   :  { %v406_v8 = vmul.f32 %v16760_v5, %v381_v27  ;;  %v405_v10 = vmul.f32 %v16749_v0, %v376_v7  ;;  %788 = vperm.xlu1 %16326, %v13159_v62   ;;  %783 = vperm.xlu0 %16325, %v13158_v3   ;;  %v13175_v3 = vld [vmem:[%s22795_s1 + $0x198] sm:$0xff] }
  0xd9   :  { %14861 = vmatmul.mubr.msk.bf16.gmra.mrb[8].mxu0 %vm67_vm0, %v1579_v4  ;;  %v13174_v4 = vld [vmem:[%s22795_s1 + $0x190] sm:$0xff] }
  0xda   :  { %v415_v19 = vpack.c.bf16 %v406_v8, %v405_v10 }
  0xdb   :  { %v1546_v5 = vpop.permute.xlu1 %1545  ;;  %v1541_v20 = vpop.permute.xlu0 %1540 }
  0xdc   :  { %v1571_v0 = vmul.f32 %v1546_v5, %v17050_v12  ;;  %v1570_v46 = vmul.f32 %v1541_v20, %v17053_v14  ;;  %2125 = vperm.xlu1 %16326, %v13273_v15   ;;  %2120 = vperm.xlu0 %16325, %v13272_v18   ;;  %v17114_v18 = vld [vmem:[#allocation2 + $0x2f] sm:$0xff]  ;;  %v13289_v5 = vld [vmem:[%s22795_s1 + $0x418] sm:$0xff] }
  0xdd   :  { %14764 = vmatprep.mubr.msk.bf16.mxu1 %vm67_vm0, %v415_v19  ;;  %v17117_v19 = vld [vmem:[#allocation2 + $0x27] sm:$0xff]  ;;  %v13288_v20 = vld [vmem:[%s22795_s1 + $0x410] sm:$0xff] }
  0xde   :  { %v1580_v22 = vpack.c.bf16 %v1571_v0, %v1570_v46 }
  0xdf   :  { %v391_v23 = vpop.permute.xlu1 %390  ;;  %v386_v25 = vpop.permute.xlu0 %385 }
  0xe0   :  { %v408_v26 = vmul.f32 %v16781_v13, %v391_v23  ;;  %v407_v28 = vmul.f32 %v16762_v6, %v386_v25  ;;  %798 = vperm.xlu1 %16326, %v13161_v21   ;;  %793 = vperm.xlu0 %16325, %v13160_v43   ;;  %v16338_v43 = vld [vmem:[#allocation6 + $0x20] ss:$0 sps:$4 sm:$0x33]   ;;  %v17131_v25 = vld [vmem:[%s22795_s1 + $0x1a8] sm:$0xff] }
  0xe1   :  { %14864 = vmatprep.mubr.msk.bf16.mxu0 %vm67_vm0, %v1580_v22 }
  0xe2   :  { %v416_v36 = vpack.c.bf16 %v408_v26, %v407_v28  ;;  %v17136_v26 = vld [vmem:[%s22795_s1 + $0x1a0] sm:$0xff] }
  0xe3   :  { %v1556_v37 = vpop.permute.xlu1 %1555  ;;  %v1551_v13 = vpop.permute.xlu0 %1550 }
  0xe4   :  { %v1573_v51 = vmul.f32 %v1556_v37, %v1460_v29  ;;  %v1572_v6 = vmul.f32 %v1551_v13, %v17073_v30  ;;  %2135 = vperm.xlu1 %16326, %v13275_v32   ;;  %2130 = vperm.xlu0 %16325, %v13274_v35   ;;  %v863_v35 = vsel %vm454_vm1, %v16338_v43, 0  ;;  %v17141_v37 = vld [vmem:[#allocation6 + $0x24] sm:$0xff]  }
  0xe5   :  { %14765 = vmatmul.mubr.msk.bf16.gmra.mrb[12].mxu1 %vm67_vm0, %v416_v36  ;;  %v16340_v36 = vld [vmem:[#allocation6 + $0x5c] ss:$0 sps:$4 sm:$0x33]  }
  0xe6   :  { %v1581_v45 = vpack.c.bf16 %v1573_v51, %v1572_v6  ;;  %v17147_v6 = vld [vmem:[#allocation2 + $0x3f] sm:$0xff] }
  0xe7   :  { %v181_v48 = vpop.permute.xlu1 %180  ;;  %v176_v49 = vpop.permute.xlu0 %175 }
  0xe8   :  { %v254_v50 = vmul.f32 %v181_v48, %v17082_v40  ;;  %v253_v52 = vmul.f32 %v176_v49, %v141_v47  ;;  %1018 = vperm.xlu1 %16326, %v13173_v41   ;;  %1013 = vperm.xlu0 %16325, %v13172_v44   ;;  %v13291_v47 = vld [vmem:[%s22795_s1 + $0x428] sm:$0xff]  ;;  %v13290_v41 = vld [vmem:[%s22795_s1 + $0x420] sm:$0xff]  ;;  %v2200_v49 = vsel %vm454_vm1, %v16340_v36, 0 }
  0xe9   :  { %14865 = vmatmul.mubr.msk.bf16.gmra.mrb[12].mxu0 %vm67_vm0, %v1581_v45 }
  0xea   :  { %v269_v63 = vpack.c.bf16 %v254_v50, %v253_v52  ;;  %v17162_v50 = vld [vmem:[#allocation6 + $0x60] sm:$0xff]  }
  0xeb   :  { %v1776_v39 = vpop.permute.xlu1 %1775  ;;  %v1771_v53 = vpop.permute.xlu0 %1770 }
  0xec   :  { %v1849_v42 = vmul.f32 %v1776_v39, %v17092_v54  ;;  %v1848_v62 = vmul.f32 %v1771_v53, %v17095_v59  ;;  %2355 = vperm.xlu1 %16326, %v13287_v60   ;;  %2350 = vperm.xlu0 %16325, %v13286_v61   ;;  %v17175_v61 = vld [vmem:[%s22795_s1 + $0x1b0] sm:$0xff] }
  0xed   :  { %14772 = vmatprep.mubr.msk.bf16.mxu1 %vm67_vm0, %v269_v63 }
  0xee   :  { %v1864_v27 = vpack.c.bf16 %v1849_v42, %v1848_v62 }
  0xef   :  { %v191_v7 = vpop.permute.xlu1 %190  ;;  %v186_v8 = vpop.permute.xlu0 %185 }
  0xf0   :  { %v256_v10 = vmul.f32 %v17092_v54, %v191_v7  ;;  %v255_v15 = vmul.f32 %v17095_v59, %v186_v8  ;;  %1028 = vperm.xlu1 %16326, %v13175_v3   ;;  %1023 = vperm.xlu0 %16325, %v13174_v4   ;;  %v17182_v3 = vld [vmem:[#allocation2 + $0x4f] sm:$0xff]  ;;  %v17185_v4 = vld [vmem:[#allocation2 + $0x47] sm:$0xff] }
  0xf1   :  { %14872 = vmatprep.mubr.msk.bf16.mxu0 %vm67_vm0, %v1864_v27  ;;  %v13293_v27 = vld [vmem:[%s22795_s1 + $0x438] sm:$0xff]  ;;  %v13292_v7 = vld [vmem:[%s22795_s1 + $0x430] sm:$0xff] }
  0xf2   :  { %v270_v0 = vpack.c.bf16 %v256_v10, %v255_v15 }
  0xf3   :  { %v1786_v46 = vpop.permute.xlu1 %1785  ;;  %v1781_v21 = vpop.permute.xlu0 %1780 }
  0xf4   :  { %v1851_v22 = vmul.f32 %v1786_v46, %v17114_v18  ;;  %v1850_v23 = vmul.f32 %v1781_v21, %v17117_v19  ;;  %2365 = vperm.xlu1 %16326, %v13289_v5   ;;  %2360 = vperm.xlu0 %16325, %v13288_v20   ;;  %v17204_v46 = vld [vmem:[%s22795_s1 + $0x1c0] sm:$0xff] }
  0xf5   :  { %14773 = vmatmul.mubr.msk.bf16.vlgmr.msra.gmra.mrb[0].mxu1 %vm67_vm0, %v270_v0  ;;  %v17199_v0 = vld [vmem:[%s22795_s1 + $0x1c8] sm:$0xff] }
  0xf6   :  { %v1865_v28 = vpack.c.bf16 %v1851_v22, %v1850_v23  ;;  %14789 = vmatpush3.bf16.msra.mxu1 %v16951_v55  ;;  %v17150_v55 = vld [vmem:[#allocation2 + $0x37] sm:$0xff] }
  0xf7   :  { %v201_v29 = vpop.permute.xlu1 %200  ;;  %v196_v32 = vpop.permute.xlu0 %195  ;;  %16310 = vmatprep.subr.msk.bf16.mxu1 %vm454_vm1, %v16338_v43 }
  0xf8   :  { %v258_v13 = vmul.f32 %v17114_v18, %v201_v29  ;;  %v257_v51 = vmul.f32 %v17117_v19, %v196_v32  ;;  %1038 = vperm.xlu1 %16326, %v17131_v25   ;;  %1033 = vperm.xlu0 %16325, %v17136_v26   ;;  %v17210_v29 = vld [vmem:[#allocation2 + $0x5f] sm:$0xff]  ;;  %v17213_v32 = vld [vmem:[#allocation2 + $0x57] sm:$0xff] }
  0xf9   :  { %14873 = vmatmul.mubr.msk.bf16.vlgmr.msra.gmra.mrb[0].mxu0 %vm67_vm0, %v1865_v28 }
  0xfa   :  { %v271_v44 = vpack.c.bf16 %v258_v13, %v257_v51  ;;  %14791 = vmatpush3.bf16.msra.mxu1 %v863_v35  ;;  %14889 = vmatpush3.bf16.msra.mxu0 %v16970_v2  ;;  %v17170_v2 = vld [vmem:[%s22795_s1 + $0x1b8] sm:$0xff]  ;;  %v13295_v35 = vld [vmem:[%s22795_s1 + $0x448] sm:$0xff] }
  0xfb   :  { %v1796_v45 = vpop.permute.xlu1 %1795  ;;  %v1791_v48 = vpop.permute.xlu0 %1790  ;;  %16315 = vmatprep.subr.msk.bf16.mxu0 %vm454_vm1, %v16340_v36  ;;  %14808 = vmatprep.subr.bf16.mxu1 %v17141_v37  ;;  %v13294_v36 = vld [vmem:[%s22795_s1 + $0x440] sm:$0xff] }
  0xfc   :  { %v1853_v52 = vmul.f32 %v1796_v45, %v17147_v6  ;;  %v1852_v60 = vmul.f32 %v1791_v48, %v17150_v55  ;;  %2375 = vperm.xlu1 %16326, %v13291_v47   ;;  %2370 = vperm.xlu0 %16325, %v13290_v41   ;;  %v17227_v45 = vld [vmem:[%s22795_s1 + $0x1d8] sm:$0xff]  ;;  %v17232_v48 = vld [vmem:[%s22795_s1 + $0x1d0] sm:$0xff] }
  0xfd   :  { %14776 = vmatprep.mubr.msk.bf16.mxu1 %vm67_vm0, %v271_v44 }
  0xfe   :  { %v1866_v63 = vpack.c.bf16 %v1853_v52, %v1852_v60  ;;  %14891 = vmatpush3.bf16.msra.mxu0 %v2200_v49 }
  0xff   :  { %v211_v39 = vpop.permute.xlu1 %210  ;;  %v206_v53 = vpop.permute.xlu0 %205  ;;  %14908 = vmatprep.subr.bf16.mxu0 %v17162_v50 }
 0x100   :  { %v260_v42 = vmul.f32 %v17147_v6, %v211_v39  ;;  %v259_v62 = vmul.f32 %v17150_v55, %v206_v53  ;;  %1048 = vperm.xlu1 %16326, %v17170_v2   ;;  %1043 = vperm.xlu0 %16325, %v17175_v61   ;;  %v17238_v53 = vld [vmem:[#allocation2 + $0x6f] sm:$0xff] }
 0x101   :  { %14876 = vmatprep.mubr.msk.bf16.mxu0 %vm67_vm0, %v1866_v63 }
 0x102   :  { %v272_v8 = vpack.c.bf16 %v260_v42, %v259_v62  ;;  %v17241_v42 = vld [vmem:[#allocation2 + $0x67] sm:$0xff]  ;;  %v13297_v62 = vld [vmem:[%s22795_s1 + $0x458] sm:$0xff] }
 0x103   :  { %v1806_v10 = vpop.permute.xlu1 %1805  ;;  %v1801_v15 = vpop.permute.xlu0 %1800 }
 0x104   :  { %v1855_v5 = vmul.f32 %v1806_v10, %v17182_v3  ;;  %v1854_v20 = vmul.f32 %v1801_v15, %v17185_v4  ;;  %2385 = vperm.xlu1 %16326, %v13293_v27   ;;  %2380 = vperm.xlu0 %16325, %v13292_v7   ;;  %v13296_v27 = vld [vmem:[%s22795_s1 + $0x450] sm:$0xff] }
 0x105   :  { %14777 = vmatmul.mubr.msk.bf16.gmra.mrb[4].mxu1 %vm67_vm0, %v272_v8 }
 0x106   :  { %v1867_v21 = vpack.c.bf16 %v1855_v5, %v1854_v20  ;;  %v17255_v20 = vld [vmem:[%s22795_s1 + $0x1e8] sm:$0xff] }
 0x107   :  { %v221_v43 = vpop.permute.xlu1 %220  ;;  %v216_v22 = vpop.permute.xlu0 %215 }
 0x108   :  { %v262_v23 = vmul.f32 %v17182_v3, %v221_v43  ;;  %v261_v28 = vmul.f32 %v17185_v4, %v216_v22  ;;  %1058 = vperm.xlu1 %16326, %v17199_v0   ;;  %1053 = vperm.xlu0 %16325, %v17204_v46  }
 0x109   :  { %14877 = vmatmul.mubr.msk.bf16.gmra.mrb[4].mxu0 %vm67_vm0, %v1867_v21  ;;  %v17260_v21 = vld [vmem:[%s22795_s1 + $0x1e0] sm:$0xff] }
 0x10a   :  { %v273_v13 = vpack.c.bf16 %v262_v23, %v261_v28 }
 0x10b   :  { %v1816_v51 = vpop.permute.xlu1 %1815  ;;  %v1811_v47 = vpop.permute.xlu0 %1810 }
 0x10c   :  { %v1857_v41 = vmul.f32 %v1816_v51, %v17210_v29  ;;  %v1856_v44 = vmul.f32 %v1811_v47, %v17213_v32  ;;  %2395 = vperm.xlu1 %16326, %v13295_v35   ;;  %2390 = vperm.xlu0 %16325, %v13294_v36   ;;  %v17266_v36 = vld [vmem:[#allocation2 + $0x7f] sm:$0xff]  ;;  %v13299_v51 = vld [vmem:[%s22795_s1 + $0x468] sm:$0xff] }
 0x10d   :  { %14780 = vmatprep.mubr.msk.bf16.mxu1 %vm67_vm0, %v273_v13  ;;  %v17269_v13 = vld [vmem:[#allocation2 + $0x77] sm:$0xff]  ;;  %v13298_v47 = vld [vmem:[%s22795_s1 + $0x460] sm:$0xff] }
 0x10e   :  { %v1868_v49 = vpack.c.bf16 %v1857_v41, %v1856_v44 }
 0x10f   :  { %v231_v52 = vpop.permute.xlu1 %230  ;;  %v226_v60 = vpop.permute.xlu0 %225 }
 0x110   :  { %v264_v63 = vmul.f32 %v17210_v29, %v231_v52  ;;  %v263_v39 = vmul.f32 %v17213_v32, %v226_v60  ;;  %1068 = vperm.xlu1 %16326, %v17227_v45   ;;  %1063 = vperm.xlu0 %16325, %v17232_v48  }
 0x111   :  { %14880 = vmatprep.mubr.msk.bf16.mxu0 %vm67_vm0, %v1868_v49 }
 0x112   :  { %v274_v7 = vpack.c.bf16 %v264_v63, %v263_v39  ;;  %v17283_v63 = vld [vmem:[%s22795_s1 + $0x1f8] sm:$0xff]  ;;  %v17288_v39 = vld [vmem:[%s22795_s1 + $0x1f0] sm:$0xff] }
 0x113   :  { %v1826_v8 = vpop.permute.xlu1 %1825  ;;  %v1821_v10 = vpop.permute.xlu0 %1820 }
 0x114   :  { %v1859_v15 = vmul.f32 %v1826_v8, %v17238_v53  ;;  %v1858_v5 = vmul.f32 %v1821_v10, %v17241_v42  ;;  %2405 = vperm.xlu1 %16326, %v13297_v62   ;;  %2400 = vperm.xlu0 %16325, %v13296_v27  }
 0x115   :  { %14781 = vmatmul.mubr.msk.bf16.gmra.mrb[8].mxu1 %vm67_vm0, %v274_v7 }
 0x116   :  { %v1869_v43 = vpack.c.bf16 %v1859_v15, %v1858_v5  ;;  %v1750_v15 = vld [vmem:[#allocation2 + $0x8f] sm:$0xff]  ;;  %v17295_v5 = vld [vmem:[#allocation2 + $0x87] sm:$0xff] }
 0x117   :  { %v241_v22 = vpop.permute.xlu1 %240  ;;  %v236_v23 = vpop.permute.xlu0 %235 }
 0x118   :  { %v266_v28 = vmul.f32 %v17238_v53, %v241_v22  ;;  %v265_v35 = vmul.f32 %v17241_v42, %v236_v23  ;;  %1078 = vperm.xlu1 %16326, %v17255_v20   ;;  %1073 = vperm.xlu0 %16325, %v17260_v21   ;;  %v13300_v22 = vld [vmem:[%s22795_s1 + $0x470] sm:$0xff] }
 0x119   :  { %14881 = vmatmul.mubr.msk.bf16.gmra.mrb[8].mxu0 %vm67_vm0, %v1869_v43  ;;  %v13301_v43 = vld [vmem:[%s22795_s1 + $0x478] sm:$0xff] }
 0x11a   :  { %v275_v41 = vpack.c.bf16 %v266_v28, %v265_v35 }
 0x11b   :  { %v1836_v44 = vpop.permute.xlu1 %1835  ;;  %v1831_v49 = vpop.permute.xlu0 %1830 }
 0x11c   :  { %v1861_v52 = vmul.f32 %v1836_v44, %v17266_v36  ;;  %v1860_v60 = vmul.f32 %v1831_v49, %v17269_v13  ;;  %2415 = vperm.xlu1 %16326, %v13299_v51   ;;  %2410 = vperm.xlu0 %16325, %v13298_v47   ;;  %v13315_v44 = vld [vmem:[%s22795_s1 + $0x88] sm:$0xff]  ;;  %v13314_v49 = vld [vmem:[%s22795_s1 + $0x80] sm:$0xff] }
 0x11d   :  { %14784 = vmatprep.mubr.msk.bf16.mxu1 %vm67_vm0, %v275_v41  ;;  %v688_v41 = vld [vmem:[#allocation2 + $0x9] sm:$0xff] }
 0x11e   :  { %v1870_v62 = vpack.c.bf16 %v1861_v52, %v1860_v60 }
 0x11f   :  { %v251_v27 = vpop.permute.xlu1 %250  ;;  %v246_v7 = vpop.permute.xlu0 %245 }
 0x120   :  { %v268_v8 = vmul.f32 %v17266_v36, %v251_v27  ;;  %v267_v10 = vmul.f32 %v17269_v13, %v246_v7  ;;  %1088 = vperm.xlu1 %16326, %v17283_v63   ;;  %1083 = vperm.xlu0 %16325, %v17288_v39   ;;  %v2025_v7 = vld [vmem:[#allocation2 + $0x18] sm:$0xff] }
 0x121   :  { %14884 = vmatprep.mubr.msk.bf16.mxu0 %vm67_vm0, %v1870_v62 }
 0x122   :  { %v276_v23 = vpack.c.bf16 %v268_v8, %v267_v10  ;;  %v13317_v8 = vld [vmem:[%s22795_s1 + $0x98] sm:$0xff]  ;;  %v13316_v10 = vld [vmem:[%s22795_s1 + $0x90] sm:$0xff] }
 0x123   :  { %v1846_v28 = vpop.permute.xlu1 %1845  ;;  %v1841_v35 = vpop.permute.xlu0 %1840 }
 0x124   :  { %v1863_v51 = vmul.f32 %v1846_v28, %v1750_v15  ;;  %v1862_v47 = vmul.f32 %v1841_v35, %v17295_v5  ;;  %2425 = vperm.xlu1 %16326, %v13301_v43   ;;  %2420 = vperm.xlu0 %16325, %v13300_v22   ;;  %v13319_v35 = vld [vmem:[%s22795_s1 + $0xa8] sm:$0xff] }
 0x125   :  { %14785 = vmatmul.mubr.msk.bf16.gmra.mrb[12].mxu1 %vm67_vm0, %v276_v23  ;;  %v16419_v23 = vld [vmem:[#allocation2 + $0x20] sm:$0xff] }
 0x126   :  { %v1871_v1 = vpack.c.bf16 %v1863_v51, %v1862_v47  ;;  %v13318_v51 = vld [vmem:[%s22795_s1 + $0xa0] sm:$0xff] }
 0x127   :  { %v729_v52 = vpop.permute.xlu1 %728  ;;  %v724_v60 = vpop.permute.xlu0 %723 }
 0x128   :  { %v802_v62 = vmul.f32 %v16906_v9, %v729_v52  ;;  %v801_v27 = vmul.f32 %v724_v60, %v688_v41  ;;  %2862 = vperm.xlu1 %16326, %v13315_v44   ;;  %2857 = vperm.xlu0 %16325, %v13314_v49   ;;  %v2028_v52 = vld [vmem:[#allocation2 + $0x30] sm:$0xff]  ;;  %v2027_v60 = vld [vmem:[#allocation2 + $0x28] sm:$0xff] }
 0x129   :  { %14885 = vmatmul.mubr.msk.bf16.gmra.mrb[12].mxu0 %vm67_vm0, %v1871_v1 }
 0x12a   :  { %v817_v15 = vpack.c.bf16 %v802_v62, %v801_v27  ;;  %v13321_v62 = vld [vmem:[%s22795_s1 + $0xb8] sm:$0xff]  ;;  %v13320_v27 = vld [vmem:[%s22795_s1 + $0xb0] sm:$0xff] }
 0x12b   :  { %v2066_v43 = vpop.permute.xlu1 %2065  ;;  %v2061_v22 = vpop.permute.xlu0 %2060 }
 0x12c   :  { %v2139_v28 = vmul.f32 %v16419_v23, %v2066_v43  ;;  %v2138_v9 = vmul.f32 %v2061_v22, %v2025_v7  ;;  %2872 = vperm.xlu1 %16326, %v13317_v8   ;;  %2867 = vperm.xlu0 %16325, %v13316_v10   ;;  %v13323_v43 = vld [vmem:[%s22795_s1 + $0xc8] sm:$0xff]  ;;  %v13322_v22 = vld [vmem:[%s22795_s1 + $0xc0] sm:$0xff] }
 0x12d   :  { %14792 = vmatprep.mubr.msk.bf16.mxu1 %vm67_vm0, %v817_v15 }
 0x12e   :  { %v2154_v47 = vpack.c.bf16 %v2139_v28, %v2138_v9 }
 0x12f   :  { %v739_v41 = vpop.permute.xlu1 %738  ;;  %v734_v44 = vpop.permute.xlu0 %733 }
 0x130   :  { %v804_v49 = vmul.f32 %v16931_v31, %v739_v41  ;;  %v803_v1 = vmul.f32 %v16908_v11, %v734_v44  ;;  %2882 = vperm.xlu1 %16326, %v13319_v35   ;;  %2877 = vperm.xlu0 %16325, %v13318_v51   ;;  %v16343_v31 = vld [vmem:[#allocation6 + $0x2c] ss:$0 sps:$4 sm:$0x33]   ;;  %v16344_v51 = vld [vmem:[#allocation6 + $0x68] ss:$0 sps:$4 sm:$0x33]  }
 0x131   :  { %14892 = vmatprep.mubr.msk.bf16.mxu0 %vm67_vm0, %v2154_v47  ;;  %v1153_v35 = vsel %vm454_vm1, %v16343_v31, 0  ;;  %v2030_v44 = vld [vmem:[#allocation2 + $0x40] sm:$0xff] }
 0x132   :  { %v818_v7 = vpack.c.bf16 %v804_v49, %v803_v1  ;;  %v2029_v49 = vld [vmem:[#allocation2 + $0x38] sm:$0xff]  ;;  %v13324_v1 = vld [vmem:[%s22795_s1 + $0xd0] sm:$0xff] }
 0x133   :  { %v2076_v8 = vpop.permute.xlu1 %2075  ;;  %v2071_v10 = vpop.permute.xlu0 %2070 }
 0x134   :  { %v2141_v15 = vmul.f32 %v2076_v8, %v2028_v52  ;;  %v2140_v11 = vmul.f32 %v2071_v10, %v2027_v60  ;;  %2892 = vperm.xlu1 %16326, %v13321_v62   ;;  %2887 = vperm.xlu0 %16325, %v13320_v27   ;;  %v2490_v60 = vsel %vm454_vm1, %v16344_v51, 0 }
 0x135   :  { %14793 = vmatmul.mubr.msk.bf16.vlgmr.msra.gmra.mrb[0].mxu1 %vm67_vm0, %v818_v7  ;;  %v13327_v7 = vld [vmem:[%s22795_s1 + $0xe8] sm:$0xff] }
 0x136   :  { %v2155_v23 = vpack.c.bf16 %v2141_v15, %v2140_v11  ;;  %14809 = vmatpush3.bf16.msra.mxu1 %v17141_v37  ;;  %v13325_v37 = vld [vmem:[%s22795_s1 + $0xd8] sm:$0xff] }
 0x137   :  { %v749_v28 = vpop.permute.xlu1 %748  ;;  %v744_v9 = vpop.permute.xlu0 %743  ;;  %16311 = vmatprep.subr.msk.bf16.mxu1 %vm454_vm1, %v16343_v31 }
 0x138   :  { %v806_v47 = vmul.f32 %v16958_v24, %v749_v28  ;;  %v805_v41 = vmul.f32 %v16927_v34, %v744_v9  ;;  %2902 = vperm.xlu1 %16326, %v13323_v43   ;;  %2897 = vperm.xlu0 %16325, %v13322_v22   ;;  %v2032_v43 = vld [vmem:[#allocation2 + $0x50] sm:$0xff]  ;;  %v2031_v22 = vld [vmem:[#allocation2 + $0x48] sm:$0xff] }
 0x139   :  { %14893 = vmatmul.mubr.msk.bf16.vlgmr.msra.gmra.mrb[0].mxu0 %vm67_vm0, %v2155_v23  ;;  %v13329_v23 = vld [vmem:[%s22795_s1 + $0xf8] sm:$0xff]  ;;  %v13328_v28 = vld [vmem:[%s22795_s1 + $0xf0] sm:$0xff] }
 0x13a   :  { %v819_v52 = vpack.c.bf16 %v806_v47, %v805_v41  ;;  %14909 = vmatpush3.bf16.msra.mxu0 %v17162_v50  ;;  %14811 = vmatpush3.bf16.msra.mxu1 %v1153_v35  ;;  %v13326_v50 = vld [vmem:[%s22795_s1 + $0xe0] sm:$0xff] }
 0x13b   :  { %v2086_v24 = vpop.permute.xlu1 %2085  ;;  %v2081_v34 = vpop.permute.xlu0 %2080  ;;  %16316 = vmatprep.subr.msk.bf16.mxu0 %vm454_vm1, %v16344_v51  ;;  %v2699_v41 = vld [vmem:[%s22795_s1] sm:$0xff] }
 0x13c   :  { %v2143_v62 = vmul.f32 %v2086_v24, %v2030_v44  ;;  %v2142_v27 = vmul.f32 %v2081_v34, %v2029_v49  ;;  %2912 = vperm.xlu1 %16326, %v13325_v37   ;;  %2907 = vperm.xlu0 %16325, %v13324_v1   ;;  %v2034_v24 = vld [vmem:[#allocation2 + $0x60] sm:$0xff]  ;;  %v2033_v34 = vld [vmem:[#allocation2 + $0x58] sm:$0xff] }
 0x13d   :  { %14796 = vmatprep.mubr.msk.bf16.mxu1 %vm67_vm0, %v819_v52 }
 0x13e   :  { %v2156_v8 = vpack.c.bf16 %v2143_v62, %v2142_v27  ;;  %14911 = vmatpush3.bf16.msra.mxu0 %v2490_v60  ;;  %v2702_v60 = vld [vmem:[%s22795_s1 + $0x18] sm:$0xff]  ;;  %v2701_v62 = vld [vmem:[%s22795_s1 + $0x10] sm:$0xff] }
 0x13f   :  { %v759_v10 = vpop.permute.xlu1 %758  ;;  %v754_v31 = vpop.permute.xlu0 %753 }
 0x140   :  { %v808_v15 = vmul.f32 %v16987_v17, %v759_v10  ;;  %v807_v11 = vmul.f32 %v16955_v58, %v754_v31  ;;  %2922 = vperm.xlu1 %16326, %v13327_v7   ;;  %2917 = vperm.xlu0 %16325, %v13326_v50   ;;  %v2700_v58 = vld [vmem:[%s22795_s1 + $0x8] sm:$0xff]  ;;  %v2703_v10 = vld [vmem:[%s22795_s1 + $0x20] sm:$0xff] }
 0x141   :  { %14896 = vmatprep.mubr.msk.bf16.mxu0 %vm67_vm0, %v2156_v8 }
 0x142   :  { %v820_v9 = vpack.c.bf16 %v808_v15, %v807_v11 }
 0x143   :  { %v2096_v35 = vpop.permute.xlu1 %2095  ;;  %v2091_v51 = vpop.permute.xlu0 %2090 }
 0x144   :  { %v2145_v17 = vmul.f32 %v2096_v35, %v2032_v43  ;;  %v2144_v47 = vmul.f32 %v2091_v51, %v2031_v22  ;;  %2932 = vperm.xlu1 %16326, %v13329_v23   ;;  %2927 = vperm.xlu0 %16325, %v13328_v28   ;;  %v2036_v23 = vld [vmem:[#allocation2 + $0x70] sm:$0xff]  ;;  %v2035_v28 = vld [vmem:[#allocation2 + $0x68] sm:$0xff] }
 0x145   :  { %14797 = vmatmul.mubr.msk.bf16.gmra.mrb[4].mxu1 %vm67_vm0, %v820_v9  ;;  %v2706_v9 = vld [vmem:[%s22795_s1 + $0x38] sm:$0xff]  ;;  %v2705_v35 = vld [vmem:[%s22795_s1 + $0x30] sm:$0xff] }
 0x146   :  { %v2157_v44 = vpack.c.bf16 %v2145_v17, %v2144_v47 }
 0x147   :  { %v769_v49 = vpop.permute.xlu1 %768  ;;  %v764_v37 = vpop.permute.xlu0 %763 }
 0x148   :  { %v810_v1 = vmul.f32 %v17009_v33, %v769_v49  ;;  %v809_v52 = vmul.f32 %v16984_v16, %v764_v37  ;;  %2722 = vperm.xlu1 %16326, %v2700_v58   ;;  %2717 = vperm.xlu0 %16325, %v2699_v41   ;;  %v2704_v16 = vld [vmem:[%s22795_s1 + $0x28] sm:$0xff]  ;;  %v2707_v41 = vld [vmem:[%s22795_s1 + $0x40] sm:$0xff] }
 0x149   :  { %14897 = vmatmul.mubr.msk.bf16.gmra.mrb[4].mxu0 %vm67_vm0, %v2157_v44 }
 0x14a   :  { %v821_v27 = vpack.c.bf16 %v810_v1, %v809_v52 }
 0x14b   :  { %v2106_v7 = vpop.permute.xlu1 %2105  ;;  %v2101_v50 = vpop.permute.xlu0 %2100 }
 0x14c   :  { %v2147_v33 = vmul.f32 %v2106_v7, %v2034_v24  ;;  %v2146_v8 = vmul.f32 %v2101_v50, %v2033_v34  ;;  %2732 = vperm.xlu1 %16326, %v2702_v60   ;;  %2727 = vperm.xlu0 %16325, %v2701_v62   ;;  %v2038_v24 = vld [vmem:[#allocation2 + $0x80] sm:$0xff]  ;;  %v2037_v34 = vld [vmem:[#allocation2 + $0x78] sm:$0xff]  ;;  %v2709_v62 = vld [vmem:[%s22795_s1 + $0x50] sm:$0xff] }
 0x14d   :  { %14800 = vmatprep.mubr.msk.bf16.mxu1 %vm67_vm0, %v821_v27  ;;  %v2710_v60 = vld [vmem:[%s22795_s1 + $0x58] sm:$0xff] }
 0x14e   :  { %v2158_v31 = vpack.c.bf16 %v2147_v33, %v2146_v8  ;;  %v2711_v8 = vld [vmem:[%s22795_s1 + $0x60] sm:$0xff] }
 0x14f   :  { %v779_v15 = vpop.permute.xlu1 %778  ;;  %v774_v11 = vpop.permute.xlu0 %773 }
 0x150   :  { %v812_v43 = vmul.f32 %v17031_v57, %v779_v15  ;;  %v811_v22 = vmul.f32 %v17006_v38, %v774_v11  ;;  %2742 = vperm.xlu1 %16326, %v2704_v16   ;;  %2737 = vperm.xlu0 %16325, %v2703_v10   ;;  %v2708_v38 = vld [vmem:[%s22795_s1 + $0x48] sm:$0xff] }
 0x151   :  { %14900 = vmatprep.mubr.msk.bf16.mxu0 %vm67_vm0, %v2158_v31 }
 0x152   :  { %v822_v51 = vpack.c.bf16 %v812_v43, %v811_v22  ;;  %v2040_v43 = vld [vmem:[#allocation2 + $0x90] sm:$0xff]  ;;  %v2039_v22 = vld [vmem:[#allocation2 + $0x88] sm:$0xff] }
 0x153   :  { %v2116_v17 = vpop.permute.xlu1 %2115  ;;  %v2111_v47 = vpop.permute.xlu0 %2110 }
 0x154   :  { %v2149_v57 = vmul.f32 %v2116_v17, %v2036_v23  ;;  %v2148_v58 = vmul.f32 %v2111_v47, %v2035_v28  ;;  %2752 = vperm.xlu1 %16326, %v2706_v9   ;;  %2747 = vperm.xlu0 %16325, %v2705_v35   ;;  %v2714_v23 = vld [vmem:[%s22795_s1 + $0x78] sm:$0xff]  ;;  %v2713_v28 = vld [vmem:[%s22795_s1 + $0x70] sm:$0xff]  ;;  %v13354_v47 = vld [vmem:[%s22795_s1 + $0x100] sm:$0xff] }
 0x155   :  { %14801 = vmatmul.mubr.msk.bf16.gmra.mrb[8].mxu1 %vm67_vm0, %v822_v51 }
 0x156   :  { %v2159_v44 = vpack.c.bf16 %v2149_v57, %v2148_v58 }
 0x157   :  { %v789_v49 = vpop.permute.xlu1 %788  ;;  %v784_v37 = vpop.permute.xlu0 %783 }
 0x158   :  { %v814_v1 = vmul.f32 %v17053_v14, %v789_v49  ;;  %v813_v52 = vmul.f32 %v17028_v56, %v784_v37  ;;  %2762 = vperm.xlu1 %16326, %v2708_v38   ;;  %2757 = vperm.xlu0 %16325, %v2707_v41   ;;  %v2712_v56 = vld [vmem:[%s22795_s1 + $0x68] sm:$0xff]  ;;  %v2315_v37 = vld [vmem:[#allocation2 + $0x19] sm:$0xff] }
 0x159   :  { %14901 = vmatmul.mubr.msk.bf16.gmra.mrb[8].mxu0 %vm67_vm0, %v2159_v44  ;;  %v2316_v49 = vld [vmem:[#allocation2 + $0x21] sm:$0xff] }
 0x15a   :  { %v823_v27 = vpack.c.bf16 %v814_v1, %v813_v52  ;;  %v13357_v1 = vld [vmem:[%s22795_s1 + $0x118] sm:$0xff]  ;;  %v13356_v52 = vld [vmem:[%s22795_s1 + $0x110] sm:$0xff] }
 0x15b   :  { %v2126_v7 = vpop.permute.xlu1 %2125  ;;  %v2121_v50 = vpop.permute.xlu0 %2120 }
 0x15c   :  { %v2151_v14 = vmul.f32 %v2126_v7, %v2038_v24  ;;  %v2150_v33 = vmul.f32 %v2121_v50, %v2037_v34  ;;  %2772 = vperm.xlu1 %16326, %v2710_v60   ;;  %2767 = vperm.xlu0 %16325, %v2709_v62  }
 0x15d   :  { %14804 = vmatprep.mubr.msk.bf16.mxu1 %vm67_vm0, %v823_v27  ;;  %v13358_v27 = vld [vmem:[%s22795_s1 + $0x120] sm:$0xff] }
 0x15e   :  { %v2160_v16 = vpack.c.bf16 %v2151_v14, %v2150_v33 }
 0x15f   :  { %v799_v10 = vpop.permute.xlu1 %798  ;;  %v794_v31 = vpop.permute.xlu0 %793 }
 0x160   :  { %v816_v15 = vmul.f32 %v17073_v30, %v799_v10  ;;  %v815_v11 = vmul.f32 %v17050_v12, %v794_v31  ;;  %2782 = vperm.xlu1 %16326, %v2712_v56   ;;  %2777 = vperm.xlu0 %16325, %v2711_v8   ;;  %v13355_v12 = vld [vmem:[%s22795_s1 + $0x108] sm:$0xff]  ;;  %v2318_v8 = vld [vmem:[#allocation2 + $0x31] sm:$0xff] }
 0x161   :  { %14904 = vmatprep.mubr.msk.bf16.mxu0 %vm67_vm0, %v2160_v16  ;;  %v2317_v16 = vld [vmem:[#allocation2 + $0x29] sm:$0xff]  ;;  %v13361_v10 = vld [vmem:[%s22795_s1 + $0x138] sm:$0xff] }
 0x162   :  { %v824_v9 = vpack.c.bf16 %v816_v15, %v815_v11  ;;  %v13360_v31 = vld [vmem:[%s22795_s1 + $0x130] sm:$0xff] }
 0x163   :  { %v2136_v35 = vpop.permute.xlu1 %2135  ;;  %v2131_v51 = vpop.permute.xlu0 %2130 }
 0x164   :  { %v2153_v30 = vmul.f32 %v2136_v35, %v2040_v43  ;;  %v2152_v17 = vmul.f32 %v2131_v51, %v2039_v22  ;;  %2792 = vperm.xlu1 %16326, %v2714_v23   ;;  %2787 = vperm.xlu0 %16325, %v2713_v28   ;;  %v13362_v23 = vld [vmem:[%s22795_s1 + $0x140] sm:$0xff] }
 0x165   :  { %14805 = vmatmul.mubr.msk.bf16.gmra.mrb[12].mxu1 %vm67_vm0, %v824_v9 }
 0x166   :  { %v2161_v57 = vpack.c.bf16 %v2153_v30, %v2152_v17  ;;  %v2320_v17 = vld [vmem:[#allocation2 + $0x41] sm:$0xff] }
 0x167   :  { %v1019_v58 = vpop.permute.xlu1 %1018  ;;  %v1014_v38 = vpop.permute.xlu0 %1013 }
 0x168   :  { %v1092_v41 = vmul.f32 %v17095_v59, %v1019_v58  ;;  %v1091_v44 = vmul.f32 %v1014_v38, %v17082_v40  ;;  %3269 = vperm.xlu1 %16326, %v13355_v12   ;;  %3264 = vperm.xlu0 %16325, %v13354_v47   ;;  %v13359_v40 = vld [vmem:[%s22795_s1 + $0x128] sm:$0xff]  ;;  %v2319_v12 = vld [vmem:[#allocation2 + $0x39] sm:$0xff] }
 0x169   :  { %14905 = vmatmul.mubr.msk.bf16.gmra.mrb[12].mxu0 %vm67_vm0, %v2161_v57  ;;  %v13365_v47 = vld [vmem:[%s22795_s1 + $0x158] sm:$0xff]  ;;  %v13364_v57 = vld [vmem:[%s22795_s1 + $0x150] sm:$0xff] }
 0x16a   :  { %v1107_v24 = vpack.c.bf16 %v1092_v41, %v1091_v44 }
 0x16b   :  { %v2356_v34 = vpop.permute.xlu1 %2355  ;;  %v2351_v60 = vpop.permute.xlu0 %2350 }
 0x16c   :  { %v2429_v59 = vmul.f32 %v2356_v34, %v2316_v49  ;;  %v2428_v62 = vmul.f32 %v2351_v60, %v2315_v37  ;;  %3279 = vperm.xlu1 %16326, %v13357_v1   ;;  %3274 = vperm.xlu0 %16325, %v13356_v52   ;;  %v13366_v49 = vld [vmem:[%s22795_s1 + $0x160] sm:$0xff]  ;;  %v2322_v60 = vld [vmem:[#allocation2 + $0x51] sm:$0xff] }
 0x16d   :  { %14812 = vmatprep.mubr.msk.bf16.mxu1 %vm67_vm0, %v1107_v24 }
 0x16e   :  { %v2444_v7 = vpack.c.bf16 %v2429_v59, %v2428_v62  ;;  %v2321_v59 = vld [vmem:[#allocation2 + $0x49] sm:$0xff]  ;;  %v13369_v62 = vld [vmem:[%s22795_s1 + $0x178] sm:$0xff] }
 0x16f   :  { %v1029_v50 = vpop.permute.xlu1 %1028  ;;  %v1024_v14 = vpop.permute.xlu0 %1023 }
 0x170   :  { %v1094_v33 = vmul.f32 %v17117_v19, %v1029_v50  ;;  %v1093_v56 = vmul.f32 %v17092_v54, %v1024_v14  ;;  %3289 = vperm.xlu1 %16326, %v13359_v40   ;;  %3284 = vperm.xlu0 %16325, %v13358_v27   ;;  %v13363_v54 = vld [vmem:[%s22795_s1 + $0x148] sm:$0xff]  ;;  %v13368_v40 = vld [vmem:[%s22795_s1 + $0x170] sm:$0xff] }
 0x171   :  { %14912 = vmatprep.mubr.msk.bf16.mxu0 %vm67_vm0, %v2444_v7 }
 0x172   :  { %v1108_v15 = vpack.c.bf16 %v1094_v33, %v1093_v56  ;;  %v13384_v33 = vld [vmem:[%s22795_s1 + $0x180] sm:$0xff] }
 0x173   :  { %v2366_v11 = vpop.permute.xlu1 %2365  ;;  %v2361_v43 = vpop.permute.xlu0 %2360 }
 0x174   :  { %v2431_v19 = vmul.f32 %v2366_v11, %v2318_v8  ;;  %v2430_v22 = vmul.f32 %v2361_v43, %v2317_v16  ;;  %3299 = vperm.xlu1 %16326, %v13361_v10   ;;  %3294 = vperm.xlu0 %16325, %v13360_v31   ;;  %v2323_v11 = vld [vmem:[#allocation2 + $0x59] sm:$0xff] }
 0x175   :  { %14813 = vmatmul.mubr.msk.bf16.vlgmr.msra.gmra.mrb[0].mxu1 %vm67_vm0, %v1108_v15  ;;  %v2324_v15 = vld [vmem:[#allocation2 + $0x61] sm:$0xff]  ;;  %v13387_v43 = vld [vmem:[%s22795_s1 + $0x198] sm:$0xff] }
 0x176   :  { %v2445_v28 = vpack.c.bf16 %v2431_v19, %v2430_v22  ;;  %v13386_v19 = vld [vmem:[%s22795_s1 + $0x190] sm:$0xff] }
 0x177   :  { %v1039_v9 = vpop.permute.xlu1 %1038  ;;  %v1034_v35 = vpop.permute.xlu0 %1033 }
 0x178   :  { %v1096_v51 = vmul.f32 %v17150_v55, %v1039_v9  ;;  %v1095_v30 = vmul.f32 %v17114_v18, %v1034_v35  ;;  %3309 = vperm.xlu1 %16326, %v13363_v54   ;;  %3304 = vperm.xlu0 %16325, %v13362_v23   ;;  %v13367_v18 = vld [vmem:[%s22795_s1 + $0x168] sm:$0xff] }
 0x179   :  { %14913 = vmatmul.mubr.msk.bf16.vlgmr.msra.gmra.mrb[0].mxu0 %vm67_vm0, %v2445_v28 }
 0x17a   :  { %v1109_v58 = vpack.c.bf16 %v1096_v51, %v1095_v30 }
 0x17b   :  { %v2376_v38 = vpop.permute.xlu1 %2375  ;;  %v2371_v41 = vpop.permute.xlu0 %2370 }
 0x17c   :  { %v2433_v55 = vmul.f32 %v2376_v38, %v2320_v17  ;;  %v2432_v44 = vmul.f32 %v2371_v41, %v2319_v12  ;;  %3319 = vperm.xlu1 %16326, %v13365_v47   ;;  %3314 = vperm.xlu0 %16325, %v13364_v57   ;;  %v2326_v17 = vld [vmem:[#allocation2 + $0x71] sm:$0xff]  ;;  %v2325_v12 = vld [vmem:[#allocation2 + $0x69] sm:$0xff] }
 0x17d   :  { %14816 = vmatprep.mubr.msk.bf16.mxu1 %vm67_vm0, %v1109_v58 }
 0x17e   :  { %v2446_v37 = vpack.c.bf16 %v2433_v55, %v2432_v44  ;;  %v2328_v44 = vld [vmem:[#allocation2 + $0x81] sm:$0xff] }
 0x17f   :  { %v1049_v1 = vpop.permute.xlu1 %1048  ;;  %v1044_v52 = vpop.permute.xlu0 %1043 }
 0x180   :  { %v1098_v24 = vmul.f32 %v17185_v4, %v1049_v1  ;;  %v1097_v34 = vmul.f32 %v17147_v6, %v1044_v52  ;;  %3329 = vperm.xlu1 %16326, %v13367_v18   ;;  %3324 = vperm.xlu0 %16325, %v13366_v49   ;;  %v13385_v6 = vld [vmem:[%s22795_s1 + $0x188] sm:$0xff]  ;;  %v2327_v18 = vld [vmem:[#allocation2 + $0x79] sm:$0xff] }
 0x181   :  { %14916 = vmatprep.mubr.msk.bf16.mxu0 %vm67_vm0, %v2446_v37 }
 0x182   :  { %v1110_v27 = vpack.c.bf16 %v1098_v24, %v1097_v34  ;;  %v2330_v24 = vld [vmem:[#allocation2 + $0x91] sm:$0xff]  ;;  %v2329_v34 = vld [vmem:[#allocation2 + $0x89] sm:$0xff] }
 0x183   :  { %v2386_v7 = vpop.permute.xlu1 %2385  ;;  %v2381_v50 = vpop.permute.xlu0 %2380 }
 0x184   :  { %v2435_v4 = vmul.f32 %v2386_v7, %v2322_v60  ;;  %v2434_v14 = vmul.f32 %v2381_v50, %v2321_v59  ;;  %3339 = vperm.xlu1 %16326, %v13369_v62   ;;  %3334 = vperm.xlu0 %16325, %v13368_v40   ;;  %v13433_v50 = vld [vmem:[%s22795_s1 + $0x2a8] sm:$0xff] }
 0x185   :  { %14817 = vmatmul.mubr.msk.bf16.gmra.mrb[4].mxu1 %vm67_vm0, %v1110_v27 }
 0x186   :  { %v2447_v56 = vpack.c.bf16 %v2435_v4, %v2434_v14  ;;  %v13432_v4 = vld [vmem:[%s22795_s1 + $0x2a0] sm:$0xff] }
 0x187   :  { %v1059_v8 = vpop.permute.xlu1 %1058  ;;  %v1054_v16 = vpop.permute.xlu0 %1053 }
 0x188   :  { %v1100_v10 = vmul.f32 %v17213_v32, %v1059_v8  ;;  %v1099_v31 = vmul.f32 %v17182_v3, %v1054_v16  ;;  %3559 = vperm.xlu1 %16326, %v13385_v6   ;;  %3554 = vperm.xlu0 %16325, %v13384_v33   ;;  %v13435_v33 = vld [vmem:[%s22795_s1 + $0x2b8] sm:$0xff] }
 0x189   :  { %14917 = vmatmul.mubr.msk.bf16.gmra.mrb[4].mxu0 %vm67_vm0, %v2447_v56  ;;  %v13434_v56 = vld [vmem:[%s22795_s1 + $0x2b0] sm:$0xff] }
 0x18a   :  { %v1111_v22 = vpack.c.bf16 %v1100_v10, %v1099_v31  ;;  %v13437_v10 = vld [vmem:[%s22795_s1 + $0x2c8] sm:$0xff]  ;;  %v13436_v31 = vld [vmem:[%s22795_s1 + $0x2c0] sm:$0xff] }
 0x18b   :  { %v2396_v54 = vpop.permute.xlu1 %2395  ;;  %v2391_v23 = vpop.permute.xlu0 %2390 }
 0x18c   :  { %v2437_v32 = vmul.f32 %v2396_v54, %v2324_v15  ;;  %v2436_v28 = vmul.f32 %v2391_v23, %v2323_v11  ;;  %3569 = vperm.xlu1 %16326, %v13387_v43   ;;  %3564 = vperm.xlu0 %16325, %v13386_v19   ;;  %v13439_v43 = vld [vmem:[%s22795_s1 + $0x2d8] sm:$0xff]  ;;  %v13438_v19 = vld [vmem:[%s22795_s1 + $0x2d0] sm:$0xff]  ;;  %v13441_v23 = vld [vmem:[%s22795_s1 + $0x2e8] sm:$0xff] }
 0x18d   :  { %14820 = vmatprep.mubr.msk.bf16.mxu1 %vm67_vm0, %v1111_v22 }
 0x18e   :  { %v2448_v3 = vpack.c.bf16 %v2437_v32, %v2436_v28  ;;  %v13440_v32 = vld [vmem:[%s22795_s1 + $0x2e0] sm:$0xff] }
 0x18f   :  { %v1069_v9 = vpop.permute.xlu1 %1068  ;;  %v1064_v35 = vpop.permute.xlu0 %1063 }
 0x190   :  { %v1102_v51 = vmul.f32 %v17241_v42, %v1069_v9  ;;  %v1101_v30 = vmul.f32 %v17210_v29, %v1064_v35  ;;  %3579 = vperm.xlu1 %16326, %v17131_v25   ;;  %3574 = vperm.xlu0 %16325, %v17136_v26   ;;  %v13443_v9 = vld [vmem:[%s22795_s1 + $0x2f8] sm:$0xff]  ;;  %v13442_v35 = vld [vmem:[%s22795_s1 + $0x2f0] sm:$0xff] }
 0x191   :  { %14920 = vmatprep.mubr.msk.bf16.mxu0 %vm67_vm0, %v2448_v3 }
 0x192   :  { %v1112_v47 = vpack.c.bf16 %v1102_v51, %v1101_v30 }
 0x193   :  { %v2406_v57 = vpop.permute.xlu1 %2405  ;;  %v2401_v58 = vpop.permute.xlu0 %2400 }
 0x194   :  { %v2439_v38 = vmul.f32 %v2406_v57, %v2326_v17  ;;  %v2438_v41 = vmul.f32 %v2401_v58, %v2325_v12  ;;  %3589 = vperm.xlu1 %16326, %v17170_v2   ;;  %3584 = vperm.xlu0 %16325, %v17175_v61   ;;  %v13459_v17 = vld [vmem:[%s22795_s1 + $0x308] sm:$0xff]  ;;  %v13458_v12 = vld [vmem:[%s22795_s1 + $0x300] sm:$0xff]  ;;  %v13461_v58 = vld [vmem:[%s22795_s1 + $0x318] sm:$0xff] }
 0x195   :  { %14821 = vmatmul.mubr.msk.bf16.gmra.mrb[8].mxu1 %vm67_vm0, %v1112_v47 }
 0x196   :  { %v2449_v29 = vpack.c.bf16 %v2439_v38, %v2438_v41  ;;  %v13460_v38 = vld [vmem:[%s22795_s1 + $0x310] sm:$0xff] }
 0x197   :  { %v1079_v42 = vpop.permute.xlu1 %1078  ;;  %v1074_v25 = vpop.permute.xlu0 %1073 }
 0x198   :  { %v1104_v26 = vmul.f32 %v17269_v13, %v1079_v42  ;;  %v1103_v55 = vmul.f32 %v17238_v53, %v1074_v25  ;;  %3599 = vperm.xlu1 %16326, %v17199_v0   ;;  %3594 = vperm.xlu0 %16325, %v17204_v46   ;;  %v13463_v42 = vld [vmem:[%s22795_s1 + $0x328] sm:$0xff]  ;;  %v13462_v25 = vld [vmem:[%s22795_s1 + $0x320] sm:$0xff] }
 0x199   :  { %14921 = vmatmul.mubr.msk.bf16.gmra.mrb[8].mxu0 %vm67_vm0, %v2449_v29 }
 0x19a   :  { %v1113_v2 = vpack.c.bf16 %v1104_v26, %v1103_v55 }
 0x19b   :  { %v2416_v49 = vpop.permute.xlu1 %2415  ;;  %v2411_v61 = vpop.permute.xlu0 %2410 }
 0x19c   :  { %v2441_v37 = vmul.f32 %v2416_v49, %v2328_v44  ;;  %v2440_v1 = vmul.f32 %v2411_v61, %v2327_v18  ;;  %3609 = vperm.xlu1 %16326, %v17227_v45   ;;  %3604 = vperm.xlu0 %16325, %v17232_v48   ;;  %v13465_v44 = vld [vmem:[%s22795_s1 + $0x338] sm:$0xff]  ;;  %v13464_v18 = vld [vmem:[%s22795_s1 + $0x330] sm:$0xff]  ;;  %v13467_v61 = vld [vmem:[%s22795_s1 + $0x348] sm:$0xff] }
 0x19d   :  { %14824 = vmatprep.mubr.msk.bf16.mxu1 %vm67_vm0, %v1113_v2 }
 0x19e   :  { %v2450_v53 = vpack.c.bf16 %v2441_v37, %v2440_v1  ;;  %v13466_v37 = vld [vmem:[%s22795_s1 + $0x340] sm:$0xff] }
 0x19f   :  { %v1089_v13 = vpop.permute.xlu1 %1088  ;;  %v1084_v0 = vpop.permute.xlu0 %1083 }
 0x1a0   :  { %v1106_v46 = vmul.f32 %v17295_v5, %v1089_v13  ;;  %v1105_v52 = vmul.f32 %v17266_v36, %v1084_v0  ;;  %3619 = vperm.xlu1 %16326, %v17255_v20   ;;  %3614 = vperm.xlu0 %16325, %v17260_v21   ;;  %v13429_v20 = vld [vmem:[%s22795_s1 + $0x288] sm:$0xff]  ;;  %v13428_v21 = vld [vmem:[%s22795_s1 + $0x280] sm:$0xff]  ;;  %v13469_v13 = vld [vmem:[%s22795_s1 + $0x358] sm:$0xff] }
 0x1a1   :  { %14924 = vmatprep.mubr.msk.bf16.mxu0 %vm67_vm0, %v2450_v53  ;;  %v13468_v0 = vld [vmem:[%s22795_s1 + $0x350] sm:$0xff] }
 0x1a2   :  { %v1114_v45 = vpack.c.bf16 %v1106_v46, %v1105_v52  ;;  %v16345_v46 = vld [vmem:[%s22799_s5 + $0x10] sm:$0xff]  }
 0x1a3   :  { %v2426_v60 = vpop.permute.xlu1 %2425  ;;  %v2421_v48 = vpop.permute.xlu0 %2420  ;;  %14928 = vmatprep.subr.bf16.mxu1 %v16345_v46 }
 0x1a4   :  { %v2443_v59 = vmul.f32 %v2426_v60, %v2330_v24  ;;  %v2442_v62 = vmul.f32 %v2421_v48, %v2329_v34  ;;  %3629 = vperm.xlu1 %16326, %v17283_v63   ;;  %3624 = vperm.xlu0 %16325, %v17288_v39   ;;  %v13431_v63 = vld [vmem:[%s22795_s1 + $0x298] sm:$0xff]  ;;  %v13430_v39 = vld [vmem:[%s22795_s1 + $0x290] sm:$0xff]  ;;  %v13471_v34 = vld [vmem:[%s22795_s1 + $0x368] sm:$0xff] }
 0x1a5   :  { %14825 = vmatmul.mubr.msk.bf16.gmra.mrb[12].mxu1 %vm67_vm0, %v1114_v45  ;;  %v13470_v45 = vld [vmem:[%s22795_s1 + $0x360] sm:$0xff]  ;;  %v16346_v60 = vld [vmem:[%s22799_s5 + $0x18] sm:$0xff]  }
 0x1a6   :  { %v2451_v36 = vpack.c.bf16 %v2443_v59, %v2442_v62  ;;  %14929 = vmatpush3.bf16.msra.mxu1 %v16345_v46  ;;  %v13473_v62 = vld [vmem:[%s22795_s1 + $0x378] sm:$0xff] }
 0x1a7   :  { %v17588_v5 = vpop.permute.xlu1 %2862  ;;  %v17590_v40 = vpop.permute.xlu0 %2857  ;;  %14930 = vmatprep.subr.bf16.mxu1 %v16346_v60 }
 0x1a8   :  { %4027 = vperm.xlu1 %16326, %v13429_v20   ;;  %4022 = vperm.xlu0 %16325, %v13428_v21   ;;  %v13472_v20 = vld [vmem:[%s22795_s1 + $0x370] sm:$0xff] }
 0x1a9   :  { %14925 = vmatmul.mubr.msk.bf16.gmra.mrb[12].mxu0 %vm67_vm0, %v2451_v36 }
 0x1aa   :  { %14931 = vmatpush3.bf16.msra.mxu1 %v16346_v60  ;;  %v13502_v60 = vld [vmem:[%s22795_s1 + $0x3f0] sm:$0xff] }
 0x1ab   :  { %v17599_v27 = vpop.permute.xlu1 %2872  ;;  %v17601_v7 = vpop.permute.xlu0 %2867 }
 0x1ac   :  { %4037 = vperm.xlu1 %16326, %v13431_v63   ;;  %4032 = vperm.xlu0 %16325, %v13430_v39   ;;  %v13489_v63 = vld [vmem:[%s22795_s1 + $0x388] sm:$0xff]  ;;  %v13488_v39 = vld [vmem:[%s22795_s1 + $0x380] sm:$0xff] }
 0x1af   :  { %v17609_v14 = vpop.permute.xlu1 %2882  ;;  %v17611_v6 = vpop.permute.xlu0 %2877 }
 0x1b0   :  { %4047 = vperm.xlu1 %16326, %v13433_v50   ;;  %4042 = vperm.xlu0 %16325, %v13432_v4  }
 0x1b3   :  { %v17619_v8 = vpop.permute.xlu1 %2892  ;;  %v17621_v16 = vpop.permute.xlu0 %2887 }
 0x1b4   :  { %4057 = vperm.xlu1 %16326, %v13435_v33   ;;  %4052 = vperm.xlu0 %16325, %v13434_v56   ;;  %v13491_v33 = vld [vmem:[%s22795_s1 + $0x398] sm:$0xff]  ;;  %v13490_v56 = vld [vmem:[%s22795_s1 + $0x390] sm:$0xff] }
 0x1b7   :  { %v17629_v15 = vpop.permute.xlu1 %2902  ;;  %v17631_v11 = vpop.permute.xlu0 %2897 }
 0x1b8   :  { %4067 = vperm.xlu1 %16326, %v13437_v10   ;;  %4062 = vperm.xlu0 %16325, %v13436_v31  }
 0x1bb   :  { %v17639_v22 = vpop.permute.xlu1 %2912  ;;  %v17641_v54 = vpop.permute.xlu0 %2907 }
 0x1bc   :  { %4077 = vperm.xlu1 %16326, %v13439_v43   ;;  %4072 = vperm.xlu0 %16325, %v13438_v19   ;;  %v13493_v43 = vld [vmem:[%s22795_s1 + $0x3a8] sm:$0xff]  ;;  %v13492_v19 = vld [vmem:[%s22795_s1 + $0x3a0] sm:$0xff] }
 0x1bf   :  { %v17649_v28 = vpop.permute.xlu1 %2922  ;;  %v17651_v3 = vpop.permute.xlu0 %2917 }
 0x1c0   :  { %4087 = vperm.xlu1 %16326, %v13441_v23   ;;  %4082 = vperm.xlu0 %16325, %v13440_v32  }
 0x1c3   :  { %v17659_v51 = vpop.permute.xlu1 %2932  ;;  %v17661_v30 = vpop.permute.xlu0 %2927 }
 0x1c4   :  { %4097 = vperm.xlu1 %16326, %v13443_v9   ;;  %4092 = vperm.xlu0 %16325, %v13442_v35   ;;  %v13495_v9 = vld [vmem:[%s22795_s1 + $0x3b8] sm:$0xff]  ;;  %v13494_v35 = vld [vmem:[%s22795_s1 + $0x3b0] sm:$0xff] }
 0x1c7   :  { %v17669_v47 = vpop.permute.xlu1 %2722  ;;  %v17671_v57 = vpop.permute.xlu0 %2717 }
 0x1c8   :  { %4317 = vperm.xlu1 %16326, %v13459_v17   ;;  %4312 = vperm.xlu0 %16325, %v13458_v12  }
 0x1cb   :  { %v17679_v41 = vpop.permute.xlu1 %2732  ;;  %v17681_v29 = vpop.permute.xlu0 %2727 }
 0x1cc   :  { %4327 = vperm.xlu1 %16326, %v13461_v58   ;;  %4322 = vperm.xlu0 %16325, %v13460_v38   ;;  %v13497_v58 = vld [vmem:[%s22795_s1 + $0x3c8] sm:$0xff]  ;;  %v13496_v38 = vld [vmem:[%s22795_s1 + $0x3c0] sm:$0xff] }
 0x1cf   :  { %v17689_v26 = vpop.permute.xlu1 %2742  ;;  %v17691_v55 = vpop.permute.xlu0 %2737 }
 0x1d0   :  { %4337 = vperm.xlu1 %16326, %v13463_v42   ;;  %4332 = vperm.xlu0 %16325, %v13462_v25  }
 0x1d3   :  { %v17699_v2 = vpop.permute.xlu1 %2752  ;;  %v17701_v49 = vpop.permute.xlu0 %2747 }
 0x1d4   :  { %4347 = vperm.xlu1 %16326, %v13465_v44   ;;  %4342 = vperm.xlu0 %16325, %v13464_v18   ;;  %v13499_v44 = vld [vmem:[%s22795_s1 + $0x3d8] sm:$0xff]  ;;  %v13498_v18 = vld [vmem:[%s22795_s1 + $0x3d0] sm:$0xff] }
 0x1d7   :  { %v17709_v1 = vpop.permute.xlu1 %2762  ;;  %v17711_v53 = vpop.permute.xlu0 %2757 }
 0x1d8   :  { %4357 = vperm.xlu1 %16326, %v13467_v61   ;;  %4352 = vperm.xlu0 %16325, %v13466_v37  }
 0x1db   :  { %v17722_v52 = vpop.permute.xlu1 %2772  ;;  %v17724_v24 = vpop.permute.xlu0 %2767 }
 0x1dc   :  { %4367 = vperm.xlu1 %16326, %v13469_v13   ;;  %4362 = vperm.xlu0 %16325, %v13468_v0   ;;  %v13501_v13 = vld [vmem:[%s22795_s1 + $0x3e8] sm:$0xff]  ;;  %v13500_v0 = vld [vmem:[%s22795_s1 + $0x3e0] sm:$0xff] }
 0x1df   :  { %v17735_v48 = vpop.permute.xlu1 %2782  ;;  %v17737_v59 = vpop.permute.xlu0 %2777 }
 0x1e0   :  { %4377 = vperm.xlu1 %16326, %v13471_v34   ;;  %4372 = vperm.xlu0 %16325, %v13470_v45   ;;  %v13503_v45 = vld [vmem:[%s22795_s1 + $0x3f8] sm:$0xff] }
 0x1e3   :  { %v17745_v21 = vpop.permute.xlu1 %2792  ;;  %v17747_v36 = vpop.permute.xlu0 %2787 }
 0x1e4   :  { %4387 = vperm.xlu1 %16326, %v13473_v62   ;;  %4382 = vperm.xlu0 %16325, %v13472_v20   ;;  %v17828_v62 = vld [vmem:[%s22799_s5] sm:$0xff]  }
 0x1e5   :  { %14948 = vmatprep.subr.bf16.mxu1 %v17828_v62 }
 0x1e7   :  { %v17755_v50 = vpop.permute.xlu1 %3269  ;;  %v17757_v4 = vpop.permute.xlu0 %3264 }
 0x1e8   :  { %4607 = vperm.xlu1 %16326, %v13489_v63   ;;  %4602 = vperm.xlu0 %16325, %v13488_v39   ;;  %v13519_v39 = vld [vmem:[%s22795_s1 + $0x408] sm:$0xff] }
 0x1eb   :  { %v17765_v10 = vpop.permute.xlu1 %3279  ;;  %v17767_v31 = vpop.permute.xlu0 %3274 }
 0x1ec   :  { %4617 = vperm.xlu1 %16326, %v13491_v33   ;;  %4612 = vperm.xlu0 %16325, %v13490_v56   ;;  %v13518_v33 = vld [vmem:[%s22795_s1 + $0x400] sm:$0xff] }
 0x1ef   :  { %v17775_v23 = vpop.permute.xlu1 %3289  ;;  %v17777_v32 = vpop.permute.xlu0 %3284 }
 0x1f0   :  { %4627 = vperm.xlu1 %16326, %v13493_v43   ;;  %4622 = vperm.xlu0 %16325, %v13492_v19   ;;  %v13521_v19 = vld [vmem:[%s22795_s1 + $0x418] sm:$0xff] }
 0x1f3   :  { %v17785_v17 = vpop.permute.xlu1 %3299  ;;  %v17787_v12 = vpop.permute.xlu0 %3294 }
 0x1f4   :  { %22938 = vst [vmem:[#allocation10_spill] sm:$0xff] %v17785_v17  ;;  %4637 = vperm.xlu1 %16326, %v13495_v9   ;;  %4632 = vperm.xlu0 %16325, %v13494_v35   ;;  %v13520_v9 = vld [vmem:[%s22795_s1 + $0x410] sm:$0xff] }
 0x1f7   :  { %v17795_v42 = vpop.permute.xlu1 %3309  ;;  %v17797_v25 = vpop.permute.xlu0 %3304 }
 0x1f8   :  { %22939 = vst [vmem:[#allocation11_spill] sm:$0xff] %v17795_v42  ;;  %22940 = vst [vmem:[#allocation12_spill] sm:$0xff] %v17797_v25  ;;  %4647 = vperm.xlu1 %16326, %v13497_v58   ;;  %4642 = vperm.xlu0 %16325, %v13496_v38   ;;  %v13523_v38 = vld [vmem:[%s22795_s1 + $0x428] sm:$0xff] }
 0x1fb   :  { %v17805_v61 = vpop.permute.xlu1 %3319  ;;  %v17807_v37 = vpop.permute.xlu0 %3314 }
 0x1fc   :  { %22941 = vst [vmem:[#allocation13_spill] sm:$0xff] %v17805_v61  ;;  %22942 = vst [vmem:[#allocation14_spill] sm:$0xff] %v17807_v37  ;;  %4657 = vperm.xlu1 %16326, %v13499_v44   ;;  %4652 = vperm.xlu0 %16325, %v13498_v18   ;;  %v13522_v44 = vld [vmem:[%s22795_s1 + $0x420] sm:$0xff] }
 0x1ff   :  { %v17815_v46 = vpop.permute.xlu1 %3329  ;;  %v17817_v34 = vpop.permute.xlu0 %3324 }
 0x200   :  { %22943 = vst [vmem:[#allocation15_spill] sm:$0xff] %v17815_v46  ;;  %22944 = vst [vmem:[#allocation16_spill] sm:$0xff] %v17817_v34  ;;  %4667 = vperm.xlu1 %16326, %v13501_v13   ;;  %4662 = vperm.xlu0 %16325, %v13500_v0   ;;  %v13525_v0 = vld [vmem:[%s22795_s1 + $0x438] sm:$0xff] }
 0x203   :  { %v17830_v20 = vpop.permute.xlu1 %3339  ;;  %v17832_v63 = vpop.permute.xlu0 %3334 }
 0x204   :  { %22945 = vst [vmem:[#allocation17_spill] sm:$0xff] %v17830_v20  ;;  %22946 = vst [vmem:[#allocation18_spill] sm:$0xff] %v17832_v63  ;;  %4677 = vperm.xlu1 %16326, %v13503_v45   ;;  %4672 = vperm.xlu0 %16325, %v13502_v60   ;;  %v13524_v45 = vld [vmem:[%s22795_s1 + $0x430] sm:$0xff] }
 0x207   :  { %v17841_v56 = vpop.permute.xlu1 %3559  ;;  %v17843_v43 = vpop.permute.xlu0 %3554 }
 0x208   :  { %22947 = vst [vmem:[#allocation19_spill] sm:$0xff] %v17841_v56  ;;  %22948 = vst [vmem:[#allocation20_spill] sm:$0xff] %v17843_v43  ;;  %4897 = vperm.xlu1 %16326, %v13519_v39   ;;  %4892 = vperm.xlu0 %16325, %v13518_v33   ;;  %v13527_v33 = vld [vmem:[%s22795_s1 + $0x448] sm:$0xff] }
 0x20b   :  { %v17851_v35 = vpop.permute.xlu1 %3569  ;;  %v17853_v58 = vpop.permute.xlu0 %3564 }
 0x20c   :  { %22949 = vst [vmem:[#allocation21_spill] sm:$0xff] %v17851_v35  ;;  %22950 = vst [vmem:[#allocation22_spill] sm:$0xff] %v17853_v58  ;;  %4907 = vperm.xlu1 %16326, %v13521_v19   ;;  %4902 = vperm.xlu0 %16325, %v13520_v9   ;;  %v13526_v19 = vld [vmem:[%s22795_s1 + $0x440] sm:$0xff]  ;;  %v5247_v58 = vld [vmem:[%s22795_s1 + $0x28] sm:$0xff] }
 0x20f   :  { %v17861_v18 = vpop.permute.xlu1 %3579  ;;  %v17863_v13 = vpop.permute.xlu0 %3574 }
 0x210   :  { %22951 = vst [vmem:[#allocation23_spill] sm:$0xff] %v17861_v18  ;;  %22952 = vst [vmem:[#allocation24_spill] sm:$0xff] %v17863_v13  ;;  %4917 = vperm.xlu1 %16326, %v13523_v38   ;;  %4912 = vperm.xlu0 %16325, %v13522_v44   ;;  %v13529_v44 = vld [vmem:[%s22795_s1 + $0x458] sm:$0xff] }
 0x213   :  { %v17871_v60 = vpop.permute.xlu1 %3589  ;;  %v17873_v39 = vpop.permute.xlu0 %3584 }
 0x214   :  { %22953 = vst [vmem:[#allocation25_spill] sm:$0xff] %v17871_v60  ;;  %22954 = vst [vmem:[#allocation26_spill] sm:$0xff] %v17873_v39  ;;  %4927 = vperm.xlu1 %16326, %v13525_v0   ;;  %4922 = vperm.xlu0 %16325, %v13524_v45   ;;  %v13528_v0 = vld [vmem:[%s22795_s1 + $0x450] sm:$0xff] }
 0x217   :  { %v17881_v9 = vpop.permute.xlu1 %3599  ;;  %v17883_v38 = vpop.permute.xlu0 %3594 }
 0x218   :  { %22955 = vst [vmem:[#allocation27_spill] sm:$0xff] %v17881_v9  ;;  %22956 = vst [vmem:[#allocation28_spill] sm:$0xff] %v17883_v38  ;;  %4937 = vperm.xlu1 %16326, %v13527_v33   ;;  %4932 = vperm.xlu0 %16325, %v13526_v19   ;;  %v13531_v38 = vld [vmem:[%s22795_s1 + $0x468] sm:$0xff]  ;;  %v13530_v33 = vld [vmem:[%s22795_s1 + $0x460] sm:$0xff] }
 0x21b   :  { %v17891_v45 = vpop.permute.xlu1 %3609  ;;  %v17893_v60 = vpop.permute.xlu0 %3604 }
 0x21c   :  { %22957 = vst [vmem:[#allocation29_spill] sm:$0xff] %v17891_v45  ;;  %22958 = vst [vmem:[#allocation30_spill] sm:$0xff] %v17893_v60  ;;  %4947 = vperm.xlu1 %16326, %v13529_v44   ;;  %4942 = vperm.xlu0 %16325, %v13528_v0   ;;  %v13533_v45 = vld [vmem:[%s22795_s1 + $0x478] sm:$0xff]  ;;  %v13532_v44 = vld [vmem:[%s22795_s1 + $0x470] sm:$0xff] }
 0x21f   :  { %v17901_v19 = vpop.permute.xlu1 %3619  ;;  %v17903_v9 = vpop.permute.xlu0 %3614 }
 0x220   :  { %22959 = vst [vmem:[#allocation31_spill] sm:$0xff] %v17901_v19  ;;  %22960 = vst [vmem:[#allocation32_spill] sm:$0xff] %v17903_v9  ;;  %4957 = vperm.xlu1 %16326, %v13531_v38   ;;  %4952 = vperm.xlu0 %16325, %v13530_v33   ;;  %v13555_v9 = vld [vmem:[%s22795_s1 + $0x88] sm:$0xff]  ;;  %v13554_v38 = vld [vmem:[%s22795_s1 + $0x80] sm:$0xff] }
 0x223   :  { %v17911_v0 = vpop.permute.xlu1 %3629  ;;  %v17913_v60 = vpop.permute.xlu0 %3624 }
 0x224   :  { %22961 = vst [vmem:[#allocation33_spill] sm:$0xff] %v17911_v0  ;;  %22962 = vst [vmem:[#allocation34_spill] sm:$0xff] %v17913_v60  ;;  %4967 = vperm.xlu1 %16326, %v13533_v45   ;;  %4962 = vperm.xlu0 %16325, %v13532_v44   ;;  %v13557_v0 = vld [vmem:[%s22795_s1 + $0x98] sm:$0xff]  ;;  %v13556_v45 = vld [vmem:[%s22795_s1 + $0x90] sm:$0xff] }
 0x227   :  { %v17921_v33 = vpop.permute.xlu1 %4027  ;;  %v17923_v19 = vpop.permute.xlu0 %4022 }
 0x228   :  { %22963 = vst [vmem:[#allocation35_spill] sm:$0xff] %v17921_v33  ;;  %22964 = vst [vmem:[#allocation36_spill] sm:$0xff] %v17923_v19  ;;  %5406 = vperm.xlu1 %16326, %v13555_v9   ;;  %5401 = vperm.xlu0 %16325, %v13554_v38   ;;  %v13559_v33 = vld [vmem:[%s22795_s1 + $0xa8] sm:$0xff]  ;;  %v13558_v9 = vld [vmem:[%s22795_s1 + $0xa0] sm:$0xff] }
 0x22b   :  { %v17931_v44 = vpop.permute.xlu1 %4037  ;;  %v17933_v60 = vpop.permute.xlu0 %4032 }
 0x22c   :  { %22965 = vst [vmem:[#allocation37_spill] sm:$0xff] %v17931_v44  ;;  %22966 = vst [vmem:[#allocation38_spill] sm:$0xff] %v17933_v60  ;;  %5416 = vperm.xlu1 %16326, %v13557_v0   ;;  %5411 = vperm.xlu0 %16325, %v13556_v45   ;;  %v13561_v60 = vld [vmem:[%s22795_s1 + $0xb8] sm:$0xff]  ;;  %v13560_v0 = vld [vmem:[%s22795_s1 + $0xb0] sm:$0xff] }
 0x22f   :  { %v17941_v38 = vpop.permute.xlu1 %4047  ;;  %v17943_v19 = vpop.permute.xlu0 %4042 }
 0x230   :  { %22967 = vst [vmem:[#allocation39_spill] sm:$0xff] %v17941_v38  ;;  %22968 = vst [vmem:[#allocation40_spill] sm:$0xff] %v17943_v19  ;;  %5426 = vperm.xlu1 %16326, %v13559_v33   ;;  %5421 = vperm.xlu0 %16325, %v13558_v9   ;;  %v13563_v38 = vld [vmem:[%s22795_s1 + $0xc8] sm:$0xff]  ;;  %v13562_v33 = vld [vmem:[%s22795_s1 + $0xc0] sm:$0xff] }
 0x233   :  { %v17951_v45 = vpop.permute.xlu1 %4057  ;;  %v17953_v44 = vpop.permute.xlu0 %4052 }
 0x234   :  { %22969 = vst [vmem:[#allocation41_spill] sm:$0xff] %v17951_v45  ;;  %22970 = vst [vmem:[#allocation42_spill] sm:$0xff] %v17953_v44  ;;  %5436 = vperm.xlu1 %16326, %v13561_v60   ;;  %5431 = vperm.xlu0 %16325, %v13560_v0   ;;  %v13565_v44 = vld [vmem:[%s22795_s1 + $0xd8] sm:$0xff]  ;;  %v13564_v60 = vld [vmem:[%s22795_s1 + $0xd0] sm:$0xff] }
 0x237   :  { %v17961_v9 = vpop.permute.xlu1 %4067  ;;  %v17963_v19 = vpop.permute.xlu0 %4062 }
 0x238   :  { %22971 = vst [vmem:[#allocation43_spill] sm:$0xff] %v17961_v9  ;;  %22972 = vst [vmem:[#allocation44_spill] sm:$0xff] %v17963_v19  ;;  %5446 = vperm.xlu1 %16326, %v13563_v38   ;;  %5441 = vperm.xlu0 %16325, %v13562_v33   ;;  %v13567_v9 = vld [vmem:[%s22795_s1 + $0xe8] sm:$0xff]  ;;  %v13566_v38 = vld [vmem:[%s22795_s1 + $0xe0] sm:$0xff] }
 0x23b   :  { %v17971_v0 = vpop.permute.xlu1 %4077  ;;  %v17973_v45 = vpop.permute.xlu0 %4072 }
 0x23c   :  { %22973 = vst [vmem:[#allocation45_spill] sm:$0xff] %v17971_v0  ;;  %22974 = vst [vmem:[#allocation46_spill] sm:$0xff] %v17973_v45  ;;  %5456 = vperm.xlu1 %16326, %v13565_v44   ;;  %5451 = vperm.xlu0 %16325, %v13564_v60   ;;  %v13569_v45 = vld [vmem:[%s22795_s1 + $0xf8] sm:$0xff]  ;;  %v13568_v44 = vld [vmem:[%s22795_s1 + $0xf0] sm:$0xff] }
 0x23f   :  { %v17981_v33 = vpop.permute.xlu1 %4087  ;;  %v17983_v19 = vpop.permute.xlu0 %4082 }
 0x240   :  { %22975 = vst [vmem:[#allocation47_spill] sm:$0xff] %v17981_v33  ;;  %22976 = vst [vmem:[#allocation48_spill] sm:$0xff] %v17983_v19  ;;  %5466 = vperm.xlu1 %16326, %v13567_v9   ;;  %5461 = vperm.xlu0 %16325, %v13566_v38   ;;  %v5243_v33 = vld [vmem:[%s22795_s1 + $0x8] sm:$0xff]  ;;  %v5242_v9 = vld [vmem:[%s22795_s1] sm:$0xff] }
 0x243   :  { %v17991_v60 = vpop.permute.xlu1 %4097  ;;  %v17993_v0 = vpop.permute.xlu0 %4092 }
 0x244   :  { %22977 = vst [vmem:[#allocation49_spill] sm:$0xff] %v17991_v60  ;;  %22978 = vst [vmem:[#allocation50_spill] sm:$0xff] %v17993_v0  ;;  %5476 = vperm.xlu1 %16326, %v13569_v45   ;;  %5471 = vperm.xlu0 %16325, %v13568_v44   ;;  %v5245_v45 = vld [vmem:[%s22795_s1 + $0x18] sm:$0xff]  ;;  %v5244_v44 = vld [vmem:[%s22795_s1 + $0x10] sm:$0xff] }
 0x247   :  { %v18001_v38 = vpop.permute.xlu1 %4317  ;;  %v18003_v19 = vpop.permute.xlu0 %4312 }
 0x248   :  { %22979 = vst [vmem:[#allocation51_spill] sm:$0xff] %v18001_v38  ;;  %22980 = vst [vmem:[#allocation52_spill] sm:$0xff] %v18003_v19  ;;  %v14814_v39 = vpop.f32.mrb[0].mxu1  ;;  %5265 = vperm.xlu1 %16326, %v5243_v33   ;;  %5260 = vperm.xlu0 %16325, %v5242_v9   ;;  %v18018_v33 = vld [vmem:[%s22797_s3] ss:$0 sm:$0xff] }
 0x249   :  { %v1189_v60 = vpop.f32.mrb[1].mxu1 }
 0x24a   :  { %v14815_v0 = vpop.f32.mrb[2].mxu1 }
 0x24b   :  { %v1192_v13 = vpop.f32.mrb[3].mxu1  ;;  %v18011_v18 = vpop.permute.xlu1 %4327 }
 0x24c   :  { %22981 = vst [vmem:[#allocation53_spill] sm:$0xff] %v18011_v18  ;;  %v18013_v35 = vpop.permute.xlu0 %4322  ;;  %v14914_v38 = vpop.f32.mrb[0].mxu0  ;;  %5275 = vperm.xlu1 %16326, %v5245_v45   ;;  %5270 = vperm.xlu0 %16325, %v5244_v44   ;;  %v5246_v18 = vld [vmem:[%s22795_s1 + $0x20] sm:$0xff] }
 0x24d   :  { %22982 = vst [vmem:[#allocation54_spill] sm:$0xff] %v18013_v35  ;;  %v15668_v9 = vadd.f32 %v14914_v38, %v14814_v39  ;;  %v2526_v19 = vpop.f32.mrb[1].mxu0  ;;  %v18029_v35 = vld [vmem:[%s22798_s4] ss:$0 sm:$0xff] }
 0x24e   :  { %v15669_v43 = vadd.f32 %v2526_v19, %v1189_v60  ;;  %v14915_v56 = vpop.f32.mrb[2].mxu0  ;;  %v5249_v19 = vld [vmem:[%s22795_s1 + $0x38] sm:$0xff] }
 0x24f   :  { %v2614_v45 = vmul.f32 %v15668_v9, %v18018_v33  ;;  %v15670_v44 = vadd.f32 %v14915_v56, %v14815_v0  ;;  %v2529_v39 = vpop.f32.mrb[3].mxu0  ;;  %v18032_v38 = vpop.permute.xlu1 %4337  ;;  %v5248_v56 = vld [vmem:[%s22795_s1 + $0x30] sm:$0xff] }
 0x250   :  { %22983 = vst [vmem:[#allocation55_spill] sm:$0xff] %v18032_v38  ;;  %v2612_v20 = vmul.f32 %v15669_v43, %v18018_v33  ;;  %v15671_v63 = vadd.f32 %v2529_v39, %v1192_v13  ;;  %v18035_v34 = vpop.permute.xlu0 %4332  ;;  %5285 = vperm.xlu1 %16326, %v5247_v58   ;;  %5280 = vperm.xlu0 %16325, %v5246_v18  }
 0x251   :  { %22984 = vst [vmem:[#allocation56_spill] sm:$0xff] %v18035_v34  ;;  %v18038_v46 = vadd.f32 %v18029_v35, %v2614_v45  ;;  %v2615_v61 = vmul.f32 %v15670_v44, %v18018_v33 }
 0x252   :  { %v18048_v43 = vadd.f32 %v18029_v35, %v2612_v20  ;;  %v2613_v13 = vmul.f32 %v15671_v63, %v18018_v33  ;;  %v5250_v63 = vld [vmem:[%s22795_s1 + $0x40] sm:$0xff] }
 0x253   :  { %22985 = vst [vmem:[#allocation57_spill] sm:$0xff] %v18038_v46  ;;  %v22808_v58 = vmax.f32 %v18038_v46, 0.0  ;;  %v18053_v18 = vadd.f32 %v18029_v35, %v2615_v61  ;;  %v18055_v0 = vpop.permute.xlu1 %4347  ;;  %v5251_v61 = vld [vmem:[%s22795_s1 + $0x48] sm:$0xff] }
 0x254   :  { %22986 = vst [vmem:[#allocation58_spill] sm:$0xff] %v18048_v43  ;;  %22988 = vst [vmem:[#allocation60_spill] sm:$0xff] %v18055_v0  ;;  %v22806_v60 = vmax.f32 %v18048_v43, 0.0  ;;  %v18059_v9 = vadd.f32 %v18029_v35, %v2613_v13  ;;  %v18061_v45 = vpop.permute.xlu0 %4342  ;;  %5295 = vperm.xlu1 %16326, %v5249_v19   ;;  %5290 = vperm.xlu0 %16325, %v5248_v56  }
 0x255   :  { %22987 = vst [vmem:[#allocation59_spill] sm:$0xff] %v18053_v18  ;;  %22990 = vst [vmem:[#allocation62_spill] sm:$0xff] %v18061_v45  ;;  %v22807_v20 = vmax.f32 %v18053_v18, 0.0  ;;  %v2823_v18 = vld [vmem:[#allocation3 + $0x8] sm:$0xff] }
 0x256   :  { %22989 = vst [vmem:[#allocation61_spill] sm:$0xff] %v18059_v9  ;;  %2669 = vst.msk [vmem:[#allocation3 + $0x20] sm:$0xff] %vm88_vm2, %v22808_v58  ;;  %v22812_v44 = vmax.f32 %v18059_v9, 0.0  ;;  %v5255_v45 = vld [vmem:[%s22795_s1 + $0x68] sm:$0xff]  ;;  %v2935_v0 = vmul.f32 %v17590_v40, %v2823_v18 }
 0x257   :  { %2667 = vst.msk [vmem:[#allocation3 + $0x10] sm:$0xff] %vm88_vm2, %v22806_v60  ;;  %2670 = vst.msk [vmem:[#allocation3 + $0x28] sm:$0xff] %vm88_vm2, %v22807_v20  ;;  %v18080_v39 = vpop.permute.xlu1 %4357  ;;  %v5253_v60 = vld [vmem:[%s22795_s1 + $0x58] sm:$0xff]  ;;  %v5252_v20 = vld [vmem:[%s22795_s1 + $0x50] sm:$0xff] }
 0x258   :  { %22991 = vst [vmem:[#allocation63_spill] sm:$0xff] %v18080_v39  ;;  %2668 = vst.msk [vmem:[#allocation3 + $0x18] sm:$0xff] %vm88_vm2, %v22812_v44  ;;  %v18085_v19 = vpop.permute.xlu0 %4352  ;;  %v14818_v56 = vpop.f32.mrb[4].mxu1  ;;  %5305 = vperm.xlu1 %16326, %v5251_v61   ;;  %5300 = vperm.xlu0 %16325, %v5250_v63   ;;  %v5254_v39 = vld [vmem:[%s22795_s1 + $0x60] sm:$0xff] }
 0x259   :  { %22992 = vst [vmem:[#allocation64_spill] sm:$0xff] %v18085_v19  ;;  %v1205_v13 = vpop.f32.mrb[5].mxu1 }
 0x25a   :  { %v14819_v58 = vpop.f32.mrb[6].mxu1 }
 0x25b   :  { %v1208_v43 = vpop.f32.mrb[7].mxu1  ;;  %v18093_v9 = vpop.permute.xlu1 %4367 }
 0x25c   :  { %22993 = vst [vmem:[#allocation65_spill] sm:$0xff] %v18093_v9  ;;  %v18095_v44 = vpop.permute.xlu0 %4362  ;;  %v14918_v46 = vpop.f32.mrb[4].mxu0  ;;  %5315 = vperm.xlu1 %16326, %v5253_v60   ;;  %5310 = vperm.xlu0 %16325, %v5252_v20  }
 0x25d   :  { %22994 = vst [vmem:[#allocation66_spill] sm:$0xff] %v18095_v44  ;;  %v15672_v61 = vadd.f32 %v14918_v46, %v14818_v56  ;;  %v2542_v63 = vpop.f32.mrb[5].mxu0  ;;  %v2826_v34 = vld [vmem:[#allocation3 + $0x20] sm:$0xff] }
 0x25e   :  { %v2824_v19 = vld [vmem:[#allocation3 + $0x10] sm:$0xff]  ;;  %v15673_v38 = vadd.f32 %v2542_v63, %v1205_v13  ;;  %v14919_v9 = vpop.f32.mrb[6].mxu0  ;;  %v13595_v13 = vld [vmem:[%s22795_s1 + $0x108] sm:$0xff] }
 0x25f   :  { %v2936_v44 = vmul.f32 %v17588_v5, %v2824_v19  ;;  %v2618_v60 = vmul.f32 %v15672_v61, %v18018_v33  ;;  %v15674_v46 = vadd.f32 %v14919_v9, %v14819_v58  ;;  %v2545_v20 = vpop.f32.mrb[7].mxu0  ;;  %v18106_v56 = vpop.permute.xlu1 %4377  ;;  %v2825_v37 = vld [vmem:[#allocation3 + $0x18] sm:$0xff]  ;;  %v2938_v58 = vmul.f32 %v17599_v27, %v2826_v34  ;;  %v16348_v34 = vld [vmem:[%s22799_s5 + $0x8] sm:$0xff]   ;;  %v13594_v61 = vld [vmem:[%s22795_s1 + $0x100] sm:$0xff] }
 0x260   :  { %v2616_v25 = vmul.f32 %v15673_v38, %v18018_v33  ;;  %v15675_v42 = vadd.f32 %v2545_v20, %v1208_v43  ;;  %v18109_v17 = vpop.permute.xlu0 %4372  ;;  %5325 = vperm.xlu1 %16326, %v5255_v45   ;;  %5320 = vperm.xlu0 %16325, %v5254_v39   ;;  %v2937_v19 = vmul.f32 %v17601_v7, %v2825_v37  ;;  %v5257_v9 = vld [vmem:[%s22795_s1 + $0x78] sm:$0xff]  ;;  %v5256_v38 = vld [vmem:[%s22795_s1 + $0x70] sm:$0xff] }
 0x261   :  { %v2951_v40 = vpack.c.bf16 %v2936_v44, %v2935_v0  ;;  %v18112_v18 = vadd.f32 %v18029_v35, %v2618_v60  ;;  %v2619_v5 = vmul.f32 %v15674_v46, %v18018_v33  ;;  %v18167_v46 = vld [vmem:[%s22799_s5 + $0x20] sm:$0xff]  }
 0x262   :  { %v18124_v43 = vadd.f32 %v18029_v35, %v2616_v25  ;;  %v2617_v0 = vmul.f32 %v15675_v42, %v18018_v33  ;;  %v2952_v37 = vpack.c.bf16 %v2938_v58, %v2937_v19  ;;  %v13596_v19 = vld [vmem:[%s22795_s1 + $0x110] sm:$0xff] }
 0x263   :  { %22995 = vst [vmem:[#allocation67_spill] sm:$0xff] %v18112_v18  ;;  %14932 = vmatprep.mubr.msk.bf16.mxu1 %vm88_vm2, %v2951_v40  ;;  %v22817_v45 = vmax.f32 %v18112_v18, 0.0  ;;  %v18130_v7 = vadd.f32 %v18029_v35, %v2619_v5  ;;  %v18132_v27 = vpop.permute.xlu1 %4387  ;;  %v13597_v5 = vld [vmem:[%s22795_s1 + $0x118] sm:$0xff] }
 0x264   :  { %22996 = vst [vmem:[#allocation68_spill] sm:$0xff] %v18124_v43  ;;  %v22816_v44 = vmax.f32 %v18124_v43, 0.0  ;;  %v18139_v25 = vadd.f32 %v18029_v35, %v2617_v0  ;;  %v18141_v42 = vpop.permute.xlu0 %4382  ;;  %5335 = vperm.xlu1 %16326, %v5257_v9   ;;  %5330 = vperm.xlu0 %16325, %v5256_v38  }
 0x265   :  { %22997 = vst [vmem:[#allocation69_spill] sm:$0xff] %v18130_v7  ;;  %2673 = vst.msk [vmem:[#allocation3 + $0x40] sm:$0xff] %vm88_vm2, %v22817_v45  ;;  %v22815_v39 = vmax.f32 %v18130_v7, 0.0  ;;  %14933 = vmatmul.mubr.msk.bf16.vlgmr.msra.gmra.mrb[16].mxu1 %vm88_vm2, %v2952_v37  ;;  %v4570_v37 = vld [vmem:[#allocation3 + $0x28] sm:$0xff] }
 0x266   :  { %22998 = vst [vmem:[#allocation70_spill] sm:$0xff] %v18139_v25  ;;  %2671 = vst.msk [vmem:[#allocation3 + $0x30] sm:$0xff] %vm88_vm2, %v22816_v44  ;;  %v22814_v63 = vmax.f32 %v18139_v25, 0.0  ;;  %14949 = vmatpush3.bf16.msra.mxu1 %v17828_v62  ;;  %v13599_v44 = vld [vmem:[%s22795_s1 + $0x128] sm:$0xff]  ;;  %v13598_v25 = vld [vmem:[%s22795_s1 + $0x120] sm:$0xff] }
 0x267   :  { %2674 = vst.msk [vmem:[#allocation3 + $0x48] sm:$0xff] %vm88_vm2, %v22815_v39  ;;  %v18162_v60 = vpop.permute.xlu1 %4607  ;;  %14950 = vmatprep.subr.bf16.mxu1 %v16348_v34 }
 0x268   :  { %2672 = vst.msk [vmem:[#allocation3 + $0x38] sm:$0xff] %vm88_vm2, %v22814_v63  ;;  %v18172_v20 = vpop.permute.xlu0 %4602  ;;  %v14822_v40 = vpop.f32.mrb[8].mxu1  ;;  %5813 = vperm.xlu1 %16326, %v13595_v13   ;;  %5808 = vperm.xlu0 %16325, %v13594_v61  }
 0x269   :  { %22999 = vst [vmem:[#allocation71_spill] sm:$0xff] %v18172_v20  ;;  %v1221_v62 = vpop.f32.mrb[9].mxu1 }
 0x26a   :  { %v14823_v58 = vpop.f32.mrb[10].mxu1  ;;  %14951 = vmatpush3.bf16.msra.mxu1 %v16348_v34 }
 0x26b   :  { %v1224_v9 = vpop.f32.mrb[11].mxu1  ;;  %v18180_v38 = vpop.permute.xlu1 %4617  ;;  %14968 = vmatprep.subr.bf16.mxu1 %v18167_v46 }
 0x26c   :  { %23000 = vst [vmem:[#allocation72_spill] sm:$0xff] %v18180_v38  ;;  %v18183_v0 = vpop.permute.xlu0 %4612  ;;  %v14922_v13 = vpop.f32.mrb[8].mxu0  ;;  %5823 = vperm.xlu1 %16326, %v13597_v5   ;;  %5818 = vperm.xlu0 %16325, %v13596_v19  }
 0x26d   :  { %23001 = vst [vmem:[#allocation73_spill] sm:$0xff] %v18183_v0  ;;  %v4571_v61 = vld [vmem:[#allocation3 + $0x30] sm:$0xff]  ;;  %v15676_v63 = vadd.f32 %v14922_v13, %v14822_v40  ;;  %v2558_v39 = vpop.f32.mrb[9].mxu0  ;;  %v4573_v40 = vld [vmem:[#allocation3 + $0x40] sm:$0xff]  ;;  %v2939_v0 = vmul.f32 %v4570_v37, %v17611_v6  ;;  %v13603_v37 = vld [vmem:[%s22795_s1 + $0x148] sm:$0xff] }
 0x26e   :  { %v15677_v45 = vadd.f32 %v2558_v39, %v1221_v62  ;;  %v14923_v34 = vpop.f32.mrb[10].mxu0  ;;  %v2940_v7 = vmul.f32 %v4571_v61, %v17609_v14 }
 0x26f   :  { %v2622_v43 = vmul.f32 %v15676_v63, %v18018_v33  ;;  %v15678_v18 = vadd.f32 %v14923_v34, %v14823_v58  ;;  %v2561_v5 = vpop.f32.mrb[11].mxu0  ;;  %v18193_v19 = vpop.permute.xlu1 %4627  ;;  %v4572_v13 = vld [vmem:[#allocation3 + $0x38] sm:$0xff] }
 0x270   :  { %v2620_v38 = vmul.f32 %v15677_v45, %v18018_v33  ;;  %v15679_v39 = vadd.f32 %v2561_v5, %v1224_v9  ;;  %v18197_v62 = vpop.permute.xlu0 %4622  ;;  %5833 = vperm.xlu1 %16326, %v13599_v44   ;;  %5828 = vperm.xlu0 %16325, %v13598_v25   ;;  %v2953_v63 = vpack.c.bf16 %v2940_v7, %v2939_v0  ;;  %v13601_v58 = vld [vmem:[%s22795_s1 + $0x138] sm:$0xff]  ;;  %v13602_v5 = vld [vmem:[%s22795_s1 + $0x140] sm:$0xff] }
 0x271   :  { %v18200_v20 = vadd.f32 %v18029_v35, %v2622_v43  ;;  %v2623_v14 = vmul.f32 %v15678_v18, %v18018_v33  ;;  %v2941_v45 = vmul.f32 %v4572_v13, %v17621_v16  ;;  %v2942_v44 = vmul.f32 %v4573_v40, %v17619_v8  ;;  %v13600_v43 = vld [vmem:[%s22795_s1 + $0x130] sm:$0xff] }
 0x272   :  { %v18207_v61 = vadd.f32 %v18029_v35, %v2620_v38  ;;  %v2621_v6 = vmul.f32 %v15679_v39, %v18018_v33  ;;  %14936 = vmatprep.mubr.msk.bf16.mxu1 %vm88_vm2, %v2953_v63  ;;  %v13605_v63 = vld [vmem:[%s22795_s1 + $0x158] sm:$0xff] }
 0x273   :  { %23002 = vst [vmem:[#allocation74_spill] sm:$0xff] %v18200_v20  ;;  %v22825_v18 = vmax.f32 %v18200_v20, 0.0  ;;  %v18217_v7 = vadd.f32 %v18029_v35, %v2623_v14  ;;  %v18220_v25 = vpop.permute.xlu1 %4637  ;;  %v2954_v8 = vpack.c.bf16 %v2942_v44, %v2941_v45 }
 0x274   :  { %23003 = vst [vmem:[#allocation75_spill] sm:$0xff] %v18207_v61  ;;  %v22824_v9 = vmax.f32 %v18207_v61, 0.0  ;;  %v18224_v38 = vadd.f32 %v18029_v35, %v2621_v6  ;;  %v18226_v16 = vpop.permute.xlu0 %4632  ;;  %5843 = vperm.xlu1 %16326, %v13601_v58   ;;  %5838 = vperm.xlu0 %16325, %v13600_v43   ;;  %v13604_v6 = vld [vmem:[%s22795_s1 + $0x150] sm:$0xff]  ;;  %v4574_v43 = vld [vmem:[#allocation3 + $0x48] sm:$0xff]  ;;  %v13606_v61 = vld [vmem:[%s22795_s1 + $0x160] sm:$0xff] }
 0x275   :  { %23004 = vst [vmem:[#allocation76_spill] sm:$0xff] %v18217_v7  ;;  %23006 = vst [vmem:[#allocation78_spill] sm:$0xff] %v18226_v16  ;;  %v22823_v0 = vmax.f32 %v18217_v7, 0.0  ;;  %14937 = vmatmul.mubr.msk.bf16.gmra.mrb[20].mxu1 %vm88_vm2, %v2954_v8 }
 0x276   :  { %23005 = vst [vmem:[#allocation77_spill] sm:$0xff] %v18224_v38  ;;  %2677 = vst.msk [vmem:[#allocation3 + $0x60] sm:$0xff] %vm88_vm2, %v22825_v18  ;;  %v22822_v34 = vmax.f32 %v18224_v38, 0.0  ;;  %v13607_v18 = vld [vmem:[%s22795_s1 + $0x168] sm:$0xff] }
 0x277   :  { %2675 = vst.msk [vmem:[#allocation3 + $0x50] sm:$0xff] %vm88_vm2, %v22824_v9  ;;  %2678 = vst.msk [vmem:[#allocation3 + $0x68] sm:$0xff] %vm88_vm2, %v22823_v0  ;;  %v18246_v40 = vpop.permute.xlu1 %4647 }
 0x278   :  { %23007 = vst [vmem:[#allocation79_spill] sm:$0xff] %v18246_v40  ;;  %2676 = vst.msk [vmem:[#allocation3 + $0x58] sm:$0xff] %vm88_vm2, %v22822_v34  ;;  %v18251_v13 = vpop.permute.xlu0 %4642  ;;  %v14826_v39 = vpop.f32.mrb[12].mxu1  ;;  %5853 = vperm.xlu1 %16326, %v13603_v37   ;;  %5848 = vperm.xlu0 %16325, %v13602_v5  }
 0x279   :  { %23008 = vst [vmem:[#allocation80_spill] sm:$0xff] %v18251_v13  ;;  %v1237_v14 = vpop.f32.mrb[13].mxu1 }
 0x27a   :  { %v14827_v58 = vpop.f32.mrb[14].mxu1 }
 0x27b   :  { %v1240_v45 = vpop.f32.mrb[15].mxu1  ;;  %v18259_v44 = vpop.permute.xlu1 %4657 }
 0x27c   :  { %23009 = vst [vmem:[#allocation81_spill] sm:$0xff] %v18259_v44  ;;  %v18261_v8 = vpop.permute.xlu0 %4652  ;;  %v14926_v34 = vpop.f32.mrb[12].mxu0  ;;  %5863 = vperm.xlu1 %16326, %v13605_v63   ;;  %5858 = vperm.xlu0 %16325, %v13604_v6  }
 0x27d   :  { %23010 = vst [vmem:[#allocation82_spill] sm:$0xff] %v18261_v8  ;;  %v4577_v5 = vld [vmem:[#allocation3 + $0x60] sm:$0xff]  ;;  %v15680_v0 = vadd.f32 %v14926_v34, %v14826_v39  ;;  %v2574_v9 = vpop.f32.mrb[13].mxu0  ;;  %v2943_v39 = vmul.f32 %v4574_v43, %v17631_v11  ;;  %v13609_v11 = vld [vmem:[%s22795_s1 + $0x178] sm:$0xff] }
 0x27e   :  { %v4575_v37 = vld [vmem:[#allocation3 + $0x50] sm:$0xff]  ;;  %v15681_v38 = vadd.f32 %v2574_v9, %v1237_v14  ;;  %v14927_v7 = vpop.f32.mrb[14].mxu0  ;;  %v2946_v14 = vmul.f32 %v4577_v5, %v17639_v22  ;;  %v13624_v43 = vld [vmem:[%s22795_s1 + $0x180] sm:$0xff]  ;;  %v13627_v5 = vld [vmem:[%s22795_s1 + $0x198] sm:$0xff] }
 0x27f   :  { %v2944_v20 = vmul.f32 %v4575_v37, %v17629_v15  ;;  %v4576_v8 = vld [vmem:[#allocation3 + $0x58] sm:$0xff]  ;;  %v2626_v63 = vmul.f32 %v15680_v0, %v18018_v33  ;;  %v15682_v44 = vadd.f32 %v14927_v7, %v14827_v58  ;;  %v2577_v40 = vpop.f32.mrb[15].mxu0  ;;  %v18271_v34 = vpop.permute.xlu1 %4667  ;;  %v13608_v22 = vld [vmem:[%s22795_s1 + $0x170] sm:$0xff] }
 0x280   :  { %v2624_v6 = vmul.f32 %v15681_v38, %v18018_v33  ;;  %v15683_v16 = vadd.f32 %v2577_v40, %v1240_v45  ;;  %v18275_v9 = vpop.permute.xlu0 %4662  ;;  %5873 = vperm.xlu1 %16326, %v13607_v18   ;;  %5868 = vperm.xlu0 %16325, %v13606_v61   ;;  %v2945_v0 = vmul.f32 %v4576_v8, %v17641_v54 }
 0x281   :  { %v18279_v13 = vadd.f32 %v18029_v35, %v2626_v63  ;;  %v2627_v15 = vmul.f32 %v15682_v44, %v18018_v33  ;;  %v2955_v7 = vpack.c.bf16 %v2944_v20, %v2943_v39  ;;  %v13625_v44 = vld [vmem:[%s22795_s1 + $0x188] sm:$0xff]  ;;  %v13626_v63 = vld [vmem:[%s22795_s1 + $0x190] sm:$0xff] }
 0x282   :  { %v18287_v38 = vadd.f32 %v18029_v35, %v2624_v6  ;;  %v2625_v18 = vmul.f32 %v15683_v16, %v18018_v33  ;;  %v2956_v20 = vpack.c.bf16 %v2946_v14, %v2945_v0  ;;  %v4578_v39 = vld [vmem:[#allocation3 + $0x68] sm:$0xff] }
 0x283   :  { %23011 = vst [vmem:[#allocation83_spill] sm:$0xff] %v18279_v13  ;;  %v22833_v40 = vmax.f32 %v18279_v13, 0.0  ;;  %v18295_v61 = vadd.f32 %v18029_v35, %v2627_v15  ;;  %14940 = vmatprep.mubr.msk.bf16.mxu1 %vm88_vm2, %v2955_v7  ;;  %v18298_v54 = vpop.permute.xlu1 %4677  ;;  %v18341_v15 = vld [vmem:[#allocation3 + $0xf] sm:$0xff] }
 0x284   :  { %23012 = vst [vmem:[#allocation84_spill] sm:$0xff] %v18287_v38  ;;  %v22832_v58 = vmax.f32 %v18287_v38, 0.0  ;;  %v18302_v45 = vadd.f32 %v18029_v35, %v2625_v18  ;;  %v18304_v33 = vpop.permute.xlu0 %4672  ;;  %5883 = vperm.xlu1 %16326, %v13609_v11   ;;  %14941 = vmatmul.mubr.msk.bf16.gmra.mrb[24].mxu1 %vm88_vm2, %v2956_v20  ;;  %v13629_v0 = vld [vmem:[%s22795_s1 + $0x1a8] sm:$0xff]  ;;  %v2947_v20 = vmul.f32 %v4578_v39, %v17651_v3  ;;  %v13638_v38 = vld [vmem:[%s22795_s1 + $0x1f0] sm:$0xff] }
 0x285   :  { %23013 = vst [vmem:[#allocation85_spill] sm:$0xff] %v18295_v61  ;;  %2681 = vst.msk [vmem:[#allocation3 + $0x80] sm:$0xff] %vm88_vm2, %v22833_v40  ;;  %v22831_v16 = vmax.f32 %v18295_v61, 0.0  ;;  %5878 = vperm.xlu0 %16325, %v13608_v22   ;;  %v2683_v18 = vld [vmem:[#allocation3 + $0x7] sm:$0xff] }
 0x286   :  { %23014 = vst [vmem:[#allocation86_spill] sm:$0xff] %v18302_v45  ;;  %2679 = vst.msk [vmem:[#allocation3 + $0x70] sm:$0xff] %vm88_vm2, %v22832_v58  ;;  %v22830_v35 = vmax.f32 %v18302_v45, 0.0  ;;  %v13628_v22 = vld [vmem:[%s22795_s1 + $0x1a0] sm:$0xff]  ;;  %v2795_v3 = vmul.f32 %v17671_v57, %v2683_v18 }
 0x287   :  { %2682 = vst.msk [vmem:[#allocation3 + $0x88] sm:$0xff] %vm88_vm2, %v22831_v16  ;;  %v18324_v8 = vpop.permute.xlu1 %4897  ;;  %v13636_v45 = vld [vmem:[%s22795_s1 + $0x1e0] sm:$0xff] }
 0x288   :  { %2680 = vst.msk [vmem:[#allocation3 + $0x78] sm:$0xff] %vm88_vm2, %v22830_v35  ;;  %v18329_v37 = vpop.permute.xlu0 %4892  ;;  %6103 = vperm.xlu1 %16326, %v13625_v44  }
 0x289   :  { %6098 = vperm.xlu0 %16325, %v13624_v43  }
 0x28b   :  { %v18337_v6 = vpop.permute.xlu1 %4907 }
 0x28c   :  { %v18339_v14 = vpop.permute.xlu0 %4902  ;;  %6113 = vperm.xlu1 %16326, %v13627_v5   ;;  %v4581_v7 = vld [vmem:[#allocation3 + $0x80] sm:$0xff] }
 0x28d   :  { %6108 = vperm.xlu0 %16325, %v13626_v63   ;;  %v18346_v11 = vld [vmem:[#allocation3 + $0x70] sm:$0xff]  ;;  %v2796_v63 = vmul.f32 %v17669_v47, %v18341_v15  ;;  %v2950_v40 = vmul.f32 %v4581_v7, %v17659_v51  ;;  %v18377_v51 = vld [vmem:[#allocation3 + $0x1f] sm:$0xff] }
 0x28e   :  { %v2948_v44 = vmul.f32 %v17649_v28, %v18346_v11  ;;  %v13631_v28 = vld [vmem:[%s22795_s1 + $0x1b8] sm:$0xff]  ;;  %v13630_v47 = vld [vmem:[%s22795_s1 + $0x1b0] sm:$0xff]  ;;  %v2798_v18 = vmul.f32 %v17679_v41, %v18377_v51 }
 0x28f   :  { %v18354_v43 = vld [vmem:[#allocation3 + $0x78] sm:$0xff]  ;;  %v18356_v5 = vpop.permute.xlu1 %4917  ;;  %v13634_v41 = vld [vmem:[%s22795_s1 + $0x1d0] sm:$0xff] }
 0x290   :  { %v18360_v35 = vpop.permute.xlu0 %4912  ;;  %6123 = vperm.xlu1 %16326, %v13629_v0   ;;  %v2957_v16 = vpack.c.bf16 %v2948_v44, %v2947_v20  ;;  %v2949_v58 = vmul.f32 %v18354_v43, %v17661_v30  ;;  %v2811_v20 = vpack.c.bf16 %v2796_v63, %v2795_v3  ;;  %v18375_v30 = vld [vmem:[#allocation3 + $0x17] sm:$0xff]  ;;  %v18397_v44 = vld [vmem:[#allocation3 + $0x27] sm:$0xff] }
 0x291   :  { %23015 = vst [vmem:[#allocation87_spill] sm:$0xff] %v18360_v35  ;;  %6118 = vperm.xlu0 %16325, %v13628_v22   ;;  %v2797_v7 = vmul.f32 %v17681_v29, %v18375_v30  ;;  %v2799_v29 = vmul.f32 %v17691_v55, %v18397_v44  ;;  %v13637_v55 = vld [vmem:[%s22795_s1 + $0x1e8] sm:$0xff] }
 0x292   :  { %14944 = vmatprep.mubr.msk.bf16.mxu1 %vm88_vm2, %v2957_v16  ;;  %v2958_v39 = vpack.c.bf16 %v2950_v40, %v2949_v58  ;;  %v13633_v40 = vld [vmem:[%s22795_s1 + $0x1c8] sm:$0xff]  ;;  %v13632_v16 = vld [vmem:[%s22795_s1 + $0x1c0] sm:$0xff] }
 0x293   :  { %v18373_v0 = vpop.permute.xlu1 %4927  ;;  %v18386_v58 = vld [vmem:[#allocation3 + $0x2f] sm:$0xff] }
 0x294   :  { %23016 = vst [vmem:[#allocation88_spill] sm:$0xff] %v18373_v0  ;;  %v18379_v57 = vpop.permute.xlu0 %4922  ;;  %14945 = vmatmul.mubr.msk.bf16.gmra.mrb[28].mxu1 %vm88_vm2, %v2958_v39  ;;  %6133 = vperm.xlu1 %16326, %v13631_v28   ;;  %v2800_v3 = vmul.f32 %v17689_v26, %v18386_v58  ;;  %v13635_v28 = vld [vmem:[%s22795_s1 + $0x1d8] sm:$0xff]  ;;  %v2812_v39 = vpack.c.bf16 %v2798_v18, %v2797_v7  ;;  %v18423_v18 = vld [vmem:[#allocation3 + $0x4f] sm:$0xff] }
 0x295   :  { %23017 = vst [vmem:[#allocation89_spill] sm:$0xff] %v18379_v57  ;;  %6128 = vperm.xlu0 %16325, %v13630_v47   ;;  %14952 = vmatprep.mubr.msk.bf16.mxu1 %vm88_vm2, %v2811_v20  ;;  %v16350_v47 = vld [vmem:[%s22799_s5 + $0x28] sm:$0xff]   ;;  %v18416_v26 = vld [vmem:[#allocation3 + $0x37] sm:$0xff] }
 0x296   :  { %v2813_v7 = vpack.c.bf16 %v2800_v3, %v2799_v29  ;;  %v2804_v29 = vmul.f32 %v17709_v1, %v18423_v18  ;;  %v18658_v57 = vld [vmem:[#allocation3 + $0x79] sm:$0xff] }
 0x297   :  { %v18395_v22 = vpop.permute.xlu1 %4937 }
 0x298   :  { %23018 = vst [vmem:[#allocation90_spill] sm:$0xff] %v18395_v22  ;;  %v18399_v63 = vpop.permute.xlu0 %4932  ;;  %6143 = vperm.xlu1 %16326, %v13633_v40   ;;  %v18418_v40 = vld [vmem:[#allocation3 + $0x3f] sm:$0xff] }
 0x299   :  { %23019 = vst [vmem:[#allocation91_spill] sm:$0xff] %v18399_v63  ;;  %6138 = vperm.xlu0 %16325, %v13632_v16   ;;  %v2802_v3 = vmul.f32 %v17699_v2, %v18418_v40  ;;  %v13639_v2 = vld [vmem:[%s22795_s1 + $0x1f8] sm:$0xff] }
 0x29a   :  { %v23050_v63 = vld [vmem:[#allocation16_spill] sm:$0xff] }
 0x29b   :  { %v18414_v20 = vpop.permute.xlu1 %4947 }
 0x29c   :  { %23020 = vst [vmem:[#allocation92_spill] sm:$0xff] %v18414_v20  ;;  %v18420_v16 = vpop.permute.xlu0 %4942  ;;  %14953 = vmatmul.mubr.msk.bf16.vlgmr.msra.gmra.mrb[16].mxu1 %vm88_vm2, %v2812_v39  ;;  %6153 = vperm.xlu1 %16326, %v13635_v28   ;;  %v2801_v39 = vmul.f32 %v17701_v49, %v18416_v26  ;;  %v18437_v28 = vld [vmem:[#allocation3 + $0x47] sm:$0xff] }
 0x29d   :  { %23021 = vst [vmem:[#allocation93_spill] sm:$0xff] %v18420_v16  ;;  %14969 = vmatpush3.bf16.msra.mxu1 %v18167_v46  ;;  %6148 = vperm.xlu0 %16325, %v13634_v41   ;;  %v18442_v46 = vld [vmem:[%s22799_s5 + $0x30] sm:$0xff]   ;;  %v2803_v49 = vmul.f32 %v17711_v53, %v18437_v28 }
 0x29e   :  { %14956 = vmatprep.mubr.msk.bf16.mxu1 %vm88_vm2, %v2813_v7  ;;  %14970 = vmatprep.subr.bf16.mxu1 %v16350_v47  ;;  %v2814_v61 = vpack.c.bf16 %v2802_v3, %v2801_v39  ;;  %v18468_v53 = vld [vmem:[#allocation3 + $0x6f] sm:$0xff]  ;;  %v13668_v39 = vld [vmem:[%s22795_s1 + $0x280] sm:$0xff] }
 0x29f   :  { %v18444_v41 = vpop.permute.xlu1 %4957  ;;  %v2815_v13 = vpack.c.bf16 %v2804_v29, %v2803_v49  ;;  %v18481_v29 = vld [vmem:[#allocation3 + $0x67] sm:$0xff]  ;;  %v13671_v49 = vld [vmem:[%s22795_s1 + $0x298] sm:$0xff] }
 0x2a0   :  { %23022 = vst [vmem:[#allocation94_spill] sm:$0xff] %v18444_v41  ;;  %v18448_v7 = vpop.permute.xlu0 %4952  ;;  %6163 = vperm.xlu1 %16326, %v13637_v55   ;;  %v18461_v55 = vld [vmem:[#allocation3 + $0x57] sm:$0xff] }
 0x2a1   :  { %23023 = vst [vmem:[#allocation95_spill] sm:$0xff] %v18448_v7  ;;  %6158 = vperm.xlu0 %16325, %v13636_v45   ;;  %14971 = vmatpush3.bf16.msra.mxu1 %v16350_v47  ;;  %v18463_v45 = vld [vmem:[#allocation3 + $0x5f] sm:$0xff]  ;;  %v13669_v47 = vld [vmem:[%s22795_s1 + $0x288] sm:$0xff]  ;;  %v2805_v3 = vmul.f32 %v17724_v24, %v18461_v55  ;;  %v2807_v24 = vmul.f32 %v17737_v59, %v18481_v29  ;;  %v18624_v16 = vld [vmem:[#allocation3 + $0x71] sm:$0xff] }
 0x2a2   :  { %14988 = vmatprep.subr.bf16.mxu1 %v18442_v46  ;;  %v13673_v59 = vld [vmem:[%s22795_s1 + $0x2a8] sm:$0xff] }
 0x2a3   :  { %v18459_v1 = vpop.permute.xlu1 %4967 }
 0x2a4   :  { %23024 = vst [vmem:[#allocation96_spill] sm:$0xff] %v18459_v1  ;;  %v18465_v7 = vpop.permute.xlu0 %4962  ;;  %14957 = vmatmul.mubr.msk.bf16.gmra.mrb[20].mxu1 %vm88_vm2, %v2814_v61  ;;  %6173 = vperm.xlu1 %16326, %v13639_v2   ;;  %v2806_v61 = vmul.f32 %v17722_v52, %v18463_v45  ;;  %v13670_v52 = vld [vmem:[%s22795_s1 + $0x290] sm:$0xff] }
 0x2a5   :  { %23025 = vst [vmem:[#allocation97_spill] sm:$0xff] %v18465_v7  ;;  %6168 = vperm.xlu0 %16325, %v13638_v38   ;;  %14960 = vmatprep.mubr.msk.bf16.mxu1 %vm88_vm2, %v2815_v13  ;;  %v2808_v13 = vmul.f32 %v17735_v48, %v18468_v53  ;;  %v18499_v48 = vld [vmem:[#allocation3 + $0x77] sm:$0xff] }
 0x2a6   :  { %v2816_v7 = vpack.c.bf16 %v2806_v61, %v2805_v3  ;;  %v13672_v3 = vld [vmem:[%s22795_s1 + $0x2a0] sm:$0xff]  ;;  %v2809_v61 = vmul.f32 %v17747_v36, %v18499_v48 }
 0x2a7   :  { %v18483_v2 = vpop.permute.xlu1 %5406  ;;  %v2817_v1 = vpack.c.bf16 %v2808_v13, %v2807_v24  ;;  %v3230_v13 = vld [vmem:[#allocation3 + $0x9] sm:$0xff] }
 0x2a8   :  { %23026 = vst [vmem:[#allocation98_spill] sm:$0xff] %v18483_v2  ;;  %v18487_v38 = vpop.permute.xlu0 %5401  ;;  %6571 = vperm.xlu1 %16326, %v13669_v47  }
 0x2a9   :  { %23027 = vst [vmem:[#allocation99_spill] sm:$0xff] %v18487_v38  ;;  %6566 = vperm.xlu0 %16325, %v13668_v39   ;;  %v18501_v38 = vld [vmem:[#allocation3 + $0x7f] sm:$0xff]  ;;  %v18506_v39 = vld [vmem:[#allocation3 + $0x11] sm:$0xff] }
 0x2ab   :  { %v18497_v2 = vpop.permute.xlu1 %5416 }
 0x2ac   :  { %23028 = vst [vmem:[#allocation100_spill] sm:$0xff] %v18497_v2  ;;  %v18503_v47 = vpop.permute.xlu0 %5411  ;;  %14961 = vmatmul.mubr.msk.bf16.gmra.mrb[24].mxu1 %vm88_vm2, %v2816_v7  ;;  %6581 = vperm.xlu1 %16326, %v13671_v49   ;;  %v2810_v7 = vmul.f32 %v17745_v21, %v18501_v38  ;;  %v3342_v2 = vmul.f32 %v17757_v4, %v3230_v13  ;;  %v13674_v21 = vld [vmem:[%s22795_s1 + $0x2b0] sm:$0xff]  ;;  %v13677_v4 = vld [vmem:[%s22795_s1 + $0x2c8] sm:$0xff] }
 0x2ad   :  { %23029 = vst [vmem:[#allocation101_spill] sm:$0xff] %v18503_v47  ;;  %6576 = vperm.xlu0 %16325, %v13670_v52   ;;  %14964 = vmatprep.mubr.msk.bf16.mxu1 %vm88_vm2, %v2817_v1  ;;  %v3343_v1 = vmul.f32 %v17755_v50, %v18506_v39  ;;  %v13675_v52 = vld [vmem:[%s22795_s1 + $0x2b8] sm:$0xff]  ;;  %v18532_v47 = vld [vmem:[#allocation3 + $0x21] sm:$0xff]  ;;  %v18554_v13 = vld [vmem:[#allocation3 + $0x29] sm:$0xff] }
 0x2ae   :  { %v2818_v36 = vpack.c.bf16 %v2810_v7, %v2809_v61  ;;  %v13676_v61 = vld [vmem:[%s22795_s1 + $0x2c0] sm:$0xff]  ;;  %v3345_v7 = vmul.f32 %v18532_v47, %v17765_v10  ;;  %v13678_v10 = vld [vmem:[%s22795_s1 + $0x2d0] sm:$0xff] }
 0x2af   :  { %v18519_v49 = vpop.permute.xlu1 %5426 }
 0x2b0   :  { %23030 = vst [vmem:[#allocation102_spill] sm:$0xff] %v18519_v49  ;;  %v18523_v24 = vpop.permute.xlu0 %5421  ;;  %6591 = vperm.xlu1 %16326, %v13673_v59   ;;  %v18534_v49 = vld [vmem:[#allocation3 + $0x19] sm:$0xff] }
 0x2b1   :  { %23031 = vst [vmem:[#allocation103_spill] sm:$0xff] %v18523_v24  ;;  %6586 = vperm.xlu0 %16325, %v13672_v3   ;;  %v3358_v24 = vpack.c.bf16 %v3343_v1, %v3342_v2  ;;  %v18541_v3 = vld [vmem:[#allocation3 + $0x31] sm:$0xff]  ;;  %v3344_v2 = vmul.f32 %v18534_v49, %v17767_v31  ;;  %v3346_v31 = vmul.f32 %v18554_v13, %v17777_v32  ;;  %v13681_v32 = vld [vmem:[%s22795_s1 + $0x2e8] sm:$0xff] }
 0x2b3   :  { %v18536_v50 = vpop.permute.xlu1 %5436 }
 0x2b4   :  { %23032 = vst [vmem:[#allocation104_spill] sm:$0xff] %v18536_v50  ;;  %v18538_v59 = vpop.permute.xlu0 %5431  ;;  %14965 = vmatmul.mubr.msk.bf16.gmra.mrb[28].mxu1 %vm88_vm2, %v2818_v36  ;;  %6601 = vperm.xlu1 %16326, %v13675_v52   ;;  %v13679_v36 = vld [vmem:[%s22795_s1 + $0x2d8] sm:$0xff]  ;;  %v18588_v50 = vld [vmem:[#allocation3 + $0x49] sm:$0xff] }
 0x2b5   :  { %23033 = vst [vmem:[#allocation105_spill] sm:$0xff] %v18538_v59  ;;  %6596 = vperm.xlu0 %16325, %v13674_v21   ;;  %14972 = vmatprep.mubr.msk.bf16.mxu1 %vm88_vm2, %v3358_v24  ;;  %v3347_v24 = vmul.f32 %v18541_v3, %v17775_v23  ;;  %v3359_v21 = vpack.c.bf16 %v3345_v7, %v3344_v2  ;;  %v18575_v23 = vld [vmem:[#allocation3 + $0x39] sm:$0xff] }
 0x2b7   :  { %v18556_v1 = vpop.permute.xlu1 %5446  ;;  %v3360_v7 = vpack.c.bf16 %v3347_v24, %v3346_v31  ;;  %v23040_v31 = vld [vmem:[#allocation11_spill] sm:$0xff] }
 0x2b8   :  { %23034 = vst [vmem:[#allocation106_spill] sm:$0xff] %v18556_v1  ;;  %v18558_v52 = vpop.permute.xlu0 %5441  ;;  %6611 = vperm.xlu1 %16326, %v13677_v4   ;;  %v16352_v4 = vld [vmem:[%s22799_s5 + $0x38] sm:$0xff]   ;;  %v18573_v1 = vld [vmem:[#allocation3 + $0x41] sm:$0xff] }
 0x2b9   :  { %23035 = vst [vmem:[#allocation107_spill] sm:$0xff] %v18558_v52  ;;  %6606 = vperm.xlu0 %16325, %v13676_v61   ;;  %v18579_v52 = vld [vmem:[#allocation3 + $0x51] sm:$0xff] }
 0x2bb   :  { %v18577_v61 = vpop.permute.xlu1 %5456 }
 0x2bc   :  { %23036 = vst [vmem:[#allocation108_spill] sm:$0xff] %v18577_v61  ;;  %v18581_v2 = vpop.permute.xlu0 %5451  ;;  %14973 = vmatmul.mubr.msk.bf16.vlgmr.msra.gmra.mrb[16].mxu1 %vm88_vm2, %v3359_v21  ;;  %6621 = vperm.xlu1 %16326, %v13679_v36   ;;  %v13680_v61 = vld [vmem:[%s22795_s1 + $0x2e0] sm:$0xff]  ;;  %v3348_v21 = vmul.f32 %v18575_v23, %v17787_v12  ;;  %v23038_v36 = vld [vmem:[#allocation10_spill] sm:$0xff]  ;;  %v13683_v12 = vld [vmem:[%s22795_s1 + $0x2f8] sm:$0xff] }
 0x2bd   :  { %23037 = vst [vmem:[#allocation109_spill] sm:$0xff] %v18581_v2  ;;  %14989 = vmatpush3.bf16.msra.mxu1 %v18442_v46  ;;  %6616 = vperm.xlu0 %16325, %v13678_v10   ;;  %v3349_v24 = vmul.f32 %v18573_v1, %v23038_v36  ;;  %v18601_v46 = vld [vmem:[%s22799_s5 + $0x40] sm:$0xff]  }
 0x2be   :  { %14976 = vmatprep.mubr.msk.bf16.mxu1 %vm88_vm2, %v3360_v7  ;;  %14990 = vmatprep.subr.bf16.mxu1 %v16352_v4  ;;  %v3351_v7 = vmul.f32 %v18579_v52, %v23040_v31  ;;  %v23042_v36 = vld [vmem:[#allocation12_spill] sm:$0xff] }
 0x2bf   :  { %v18603_v10 = vpop.permute.xlu1 %5466  ;;  %v3350_v59 = vmul.f32 %v18588_v50, %v23042_v36  ;;  %v3361_v41 = vpack.c.bf16 %v3349_v24, %v3348_v21  ;;  %v18618_v31 = vld [vmem:[#allocation3 + $0x61] sm:$0xff]  ;;  %v18633_v21 = vld [vmem:[#allocation3 + $0x69] sm:$0xff] }
 0x2c0   :  { %23039 = vst [vmem:[#allocation10_spill] sm:$0xff] %v18603_v10  ;;  %v18607_v2 = vpop.permute.xlu0 %5461  ;;  %6631 = vperm.xlu1 %16326, %v13681_v32   ;;  %v13682_v10 = vld [vmem:[%s22795_s1 + $0x2f0] sm:$0xff]  ;;  %v23046_v36 = vld [vmem:[#allocation13_spill] sm:$0xff]  ;;  %v3354_v22 = vmul.f32 %v18633_v21, %v23050_v63 }
 0x2c1   :  { %23041 = vst [vmem:[#allocation11_spill] sm:$0xff] %v18607_v2  ;;  %6626 = vperm.xlu0 %16325, %v13680_v61   ;;  %14991 = vmatpush3.bf16.msra.mxu1 %v16352_v4  ;;  %v18620_v2 = vld [vmem:[#allocation3 + $0x59] sm:$0xff]  ;;  %v3362_v32 = vpack.c.bf16 %v3351_v7, %v3350_v59  ;;  %v13699_v4 = vld [vmem:[%s22795_s1 + $0x308] sm:$0xff] }
 0x2c2   :  { %15008 = vmatprep.subr.bf16.mxu1 %v18601_v46  ;;  %v13698_v59 = vld [vmem:[%s22795_s1 + $0x300] sm:$0xff]  ;;  %v23045_v24 = vld [vmem:[#allocation14_spill] sm:$0xff] }
 0x2c3   :  { %v18622_v61 = vpop.permute.xlu1 %5476  ;;  %v3352_v7 = vmul.f32 %v18620_v2, %v23045_v24  ;;  %v13703_v63 = vld [vmem:[%s22795_s1 + $0x328] sm:$0xff] }
 0x2c4   :  { %23043 = vst [vmem:[#allocation12_spill] sm:$0xff] %v18622_v61  ;;  %v18626_v20 = vpop.permute.xlu0 %5471  ;;  %14977 = vmatmul.mubr.msk.bf16.gmra.mrb[20].mxu1 %vm88_vm2, %v3361_v41  ;;  %6641 = vperm.xlu1 %16326, %v13683_v12   ;;  %v3353_v41 = vmul.f32 %v18618_v31, %v23046_v36  ;;  %v13700_v36 = vld [vmem:[%s22795_s1 + $0x310] sm:$0xff] }
 0x2c5   :  { %23044 = vst [vmem:[#allocation110_spill] sm:$0xff] %v18626_v20  ;;  %6636 = vperm.xlu0 %16325, %v13682_v10   ;;  %14980 = vmatprep.mubr.msk.bf16.mxu1 %vm88_vm2, %v3362_v32  ;;  %v23048_v10 = vld [vmem:[#allocation15_spill] sm:$0xff] }
 0x2c6   :  { %v3355_v32 = vmul.f32 %v18624_v16, %v23048_v10  ;;  %v13701_v20 = vld [vmem:[%s22795_s1 + $0x318] sm:$0xff]  ;;  %v3363_v24 = vpack.c.bf16 %v3353_v41, %v3352_v7  ;;  %v13702_v7 = vld [vmem:[%s22795_s1 + $0x320] sm:$0xff]  ;;  %v23053_v41 = vld [vmem:[#allocation18_spill] sm:$0xff] }
 0x2c7   :  { %v18642_v12 = vpop.permute.xlu1 %5265 }
 0x2c8   :  { %23047 = vst [vmem:[#allocation14_spill] sm:$0xff] %v18642_v12  ;;  %v18646_v61 = vpop.permute.xlu0 %5260  ;;  %6861 = vperm.xlu1 %16326, %v13699_v4   ;;  %v18656_v12 = vld [vmem:[#allocation3 + $0x81] sm:$0xff]  ;;  %v3364_v4 = vpack.c.bf16 %v3355_v32, %v3354_v22 }
 0x2c9   :  { %23049 = vst [vmem:[#allocation13_spill] sm:$0xff] %v18646_v61  ;;  %6856 = vperm.xlu0 %16325, %v13698_v59   ;;  %v23054_v22 = vld [vmem:[#allocation17_spill] sm:$0xff]  ;;  %v23057_v61 = vld [vmem:[#allocation20_spill] sm:$0xff] }
 0x2ca   :  { %v3357_v32 = vmul.f32 %v18656_v12, %v23054_v22  ;;  %v3632_v0 = vmul.f32 %v23057_v61, %v18341_v15  ;;  %v13704_v22 = vld [vmem:[%s22795_s1 + $0x330] sm:$0xff]  ;;  %v13707_v15 = vld [vmem:[%s22795_s1 + $0x348] sm:$0xff]  ;;  %v13706_v61 = vld [vmem:[%s22795_s1 + $0x340] sm:$0xff] }
 0x2cb   :  { %v18660_v10 = vpop.permute.xlu1 %5275 }
 0x2cc   :  { %23051 = vst [vmem:[#allocation15_spill] sm:$0xff] %v18660_v10  ;;  %v18662_v59 = vpop.permute.xlu0 %5270  ;;  %14981 = vmatmul.mubr.msk.bf16.gmra.mrb[24].mxu1 %vm88_vm2, %v3363_v24  ;;  %6871 = vperm.xlu1 %16326, %v13701_v20   ;;  %v3356_v10 = vmul.f32 %v18658_v57, %v23053_v41  ;;  %v23056_v20 = vld [vmem:[#allocation19_spill] sm:$0xff] }
 0x2cd   :  { %23052 = vst [vmem:[#allocation16_spill] sm:$0xff] %v18662_v59  ;;  %6866 = vperm.xlu0 %16325, %v13700_v36   ;;  %14984 = vmatprep.mubr.msk.bf16.mxu1 %vm88_vm2, %v3364_v4  ;;  %v3633_v24 = vmul.f32 %v23056_v20, %v18375_v30  ;;  %v13705_v4 = vld [vmem:[%s22795_s1 + $0x338] sm:$0xff] }
 0x2ce   :  { %v3365_v41 = vpack.c.bf16 %v3357_v32, %v3356_v10  ;;  %v23059_v10 = vld [vmem:[#allocation22_spill] sm:$0xff] }
 0x2cf   :  { %v18676_v59 = vpop.permute.xlu1 %5285  ;;  %v3648_v35 = vpack.c.bf16 %v3633_v24, %v3632_v0  ;;  %v23060_v0 = vld [vmem:[#allocation21_spill] sm:$0xff] }
 0x2d0   :  { %23055 = vst [vmem:[#allocation18_spill] sm:$0xff] %v18676_v59  ;;  %v18680_v36 = vpop.permute.xlu0 %5280  ;;  %6881 = vperm.xlu1 %16326, %v13703_v63   ;;  %v3634_v63 = vmul.f32 %v23059_v10, %v18377_v51  ;;  %v13708_v10 = vld [vmem:[%s22795_s1 + $0x350] sm:$0xff] }
 0x2d1   :  { %6876 = vperm.xlu0 %16325, %v13702_v7   ;;  %v3635_v7 = vmul.f32 %v23060_v0, %v18397_v44  ;;  %v23064_v44 = vld [vmem:[#allocation24_spill] sm:$0xff] }
 0x2d2   :  { %v3636_v0 = vmul.f32 %v23064_v44, %v18386_v58  ;;  %v13710_v58 = vld [vmem:[%s22795_s1 + $0x360] sm:$0xff] }
 0x2d3   :  { %v18690_v59 = vpop.permute.xlu1 %5295 }
 0x2d4   :  { %23058 = vst [vmem:[#allocation17_spill] sm:$0xff] %v18690_v59  ;;  %v18692_v20 = vpop.permute.xlu0 %5290  ;;  %14985 = vmatmul.mubr.msk.bf16.gmra.mrb[28].mxu1 %vm88_vm2, %v3365_v41  ;;  %6891 = vperm.xlu1 %16326, %v13705_v4   ;;  %v13709_v41 = vld [vmem:[%s22795_s1 + $0x358] sm:$0xff] }
 0x2d5   :  { %6886 = vperm.xlu0 %16325, %v13704_v22   ;;  %14992 = vmatprep.mubr.msk.bf16.mxu1 %vm88_vm2, %v3648_v35  ;;  %v23063_v35 = vld [vmem:[#allocation23_spill] sm:$0xff]  ;;  %v3649_v22 = vpack.c.bf16 %v3635_v7, %v3634_v63  ;;  %v13711_v63 = vld [vmem:[%s22795_s1 + $0x368] sm:$0xff] }
 0x2d6   :  { %v3637_v4 = vmul.f32 %v23063_v35, %v18416_v26  ;;  %v23067_v7 = vld [vmem:[#allocation26_spill] sm:$0xff] }
 0x2d7   :  { %v18706_v32 = vpop.permute.xlu1 %5305  ;;  %v3638_v44 = vmul.f32 %v23067_v7, %v18418_v40  ;;  %v13713_v7 = vld [vmem:[%s22795_s1 + $0x378] sm:$0xff] }
 0x2d8   :  { %23061 = vst [vmem:[#allocation19_spill] sm:$0xff] %v18706_v32  ;;  %v18708_v24 = vpop.permute.xlu0 %5300  ;;  %6901 = vperm.xlu1 %16326, %v13707_v15   ;;  %v16354_v15 = vld [vmem:[%s22799_s5 + $0x48] sm:$0xff]  }
 0x2d9   :  { %23062 = vst [vmem:[#allocation20_spill] sm:$0xff] %v18708_v24  ;;  %6896 = vperm.xlu0 %16325, %v13706_v61   ;;  %v3650_v61 = vpack.c.bf16 %v3637_v4, %v3636_v0 }
 0x2db   :  { %v18723_v24 = vpop.permute.xlu1 %5315 }
 0x2dc   :  { %23065 = vst [vmem:[#allocation22_spill] sm:$0xff] %v18723_v24  ;;  %v18725_v35 = vpop.permute.xlu0 %5310  ;;  %14993 = vmatmul.mubr.msk.bf16.vlgmr.msra.gmra.mrb[16].mxu1 %vm88_vm2, %v3649_v22  ;;  %6911 = vperm.xlu1 %16326, %v13709_v41   ;;  %v23068_v22 = vld [vmem:[#allocation25_spill] sm:$0xff] }
 0x2dd   :  { %23066 = vst [vmem:[#allocation21_spill] sm:$0xff] %v18725_v35  ;;  %15009 = vmatpush3.bf16.msra.mxu1 %v18601_v46  ;;  %6906 = vperm.xlu0 %16325, %v13708_v10   ;;  %v3639_v41 = vmul.f32 %v23068_v22, %v18437_v28  ;;  %v18743_v46 = vld [vmem:[%s22799_s5 + $0x50] sm:$0xff]   ;;  %v23072_v22 = vld [vmem:[#allocation28_spill] sm:$0xff] }
 0x2de   :  { %14996 = vmatprep.mubr.msk.bf16.mxu1 %vm88_vm2, %v3650_v61  ;;  %15010 = vmatprep.subr.bf16.mxu1 %v16354_v15  ;;  %v23070_v10 = vld [vmem:[#allocation27_spill] sm:$0xff]  ;;  %v3640_v24 = vmul.f32 %v23072_v22, %v18423_v18 }
 0x2df   :  { %v18745_v4 = vpop.permute.xlu1 %5325  ;;  %v3641_v0 = vmul.f32 %v23070_v10, %v18461_v55  ;;  %v3651_v35 = vpack.c.bf16 %v3639_v41, %v3638_v44  ;;  %v23075_v44 = vld [vmem:[#allocation30_spill] sm:$0xff] }
 0x2e0   :  { %23069 = vst [vmem:[#allocation23_spill] sm:$0xff] %v18745_v4  ;;  %v18749_v61 = vpop.permute.xlu0 %5320  ;;  %6921 = vperm.xlu1 %16326, %v13711_v63   ;;  %v13712_v4 = vld [vmem:[%s22795_s1 + $0x370] sm:$0xff]  ;;  %v3642_v41 = vmul.f32 %v23075_v44, %v18463_v45 }
 0x2e1   :  { %23071 = vst [vmem:[#allocation24_spill] sm:$0xff] %v18749_v61  ;;  %6916 = vperm.xlu0 %16325, %v13710_v58   ;;  %15011 = vmatpush3.bf16.msra.mxu1 %v16354_v15  ;;  %v3652_v61 = vpack.c.bf16 %v3641_v0, %v3640_v24  ;;  %v13729_v15 = vld [vmem:[%s22795_s1 + $0x388] sm:$0xff]  ;;  %v13728_v58 = vld [vmem:[%s22795_s1 + $0x380] sm:$0xff] }
 0x2e2   :  { %15028 = vmatprep.subr.bf16.mxu1 %v18743_v46  ;;  %v23076_v24 = vld [vmem:[#allocation29_spill] sm:$0xff] }
 0x2e3   :  { %v18760_v10 = vpop.permute.xlu1 %5335  ;;  %v3643_v0 = vmul.f32 %v23076_v24, %v18481_v29  ;;  %v13730_v24 = vld [vmem:[%s22795_s1 + $0x390] sm:$0xff] }
 0x2e4   :  { %23073 = vst [vmem:[#allocation26_spill] sm:$0xff] %v18760_v10  ;;  %v18762_v63 = vpop.permute.xlu0 %5330  ;;  %14997 = vmatmul.mubr.msk.bf16.gmra.mrb[20].mxu1 %vm88_vm2, %v3651_v35  ;;  %6931 = vperm.xlu1 %16326, %v13713_v7   ;;  %v23078_v35 = vld [vmem:[#allocation31_spill] sm:$0xff]  ;;  %v23080_v10 = vld [vmem:[#allocation32_spill] sm:$0xff] }
 0x2e5   :  { %23074 = vst [vmem:[#allocation25_spill] sm:$0xff] %v18762_v63  ;;  %6926 = vperm.xlu0 %16325, %v13712_v4   ;;  %15000 = vmatprep.mubr.msk.bf16.mxu1 %vm88_vm2, %v3652_v61  ;;  %v3645_v4 = vmul.f32 %v23078_v35, %v18499_v48  ;;  %v13731_v7 = vld [vmem:[%s22795_s1 + $0x398] sm:$0xff]  ;;  %v3644_v63 = vmul.f32 %v23080_v10, %v18468_v53  ;;  %v18792_v35 = vld [vmem:[#allocation3 + $0x87] sm:$0xff] }
 0x2e6   :  { %v3653_v44 = vpack.c.bf16 %v3643_v0, %v3642_v41  ;;  %v13733_v10 = vld [vmem:[%s22795_s1 + $0x3a8] sm:$0xff] }
 0x2e7   :  { %v18776_v22 = vpop.permute.xlu1 %5813  ;;  %v3654_v32 = vpack.c.bf16 %v3645_v4, %v3644_v63  ;;  %v23083_v63 = vld [vmem:[#allocation34_spill] sm:$0xff]  ;;  %v23084_v41 = vld [vmem:[#allocation33_spill] sm:$0xff] }
 0x2e8   :  { %23077 = vst [vmem:[#allocation27_spill] sm:$0xff] %v18776_v22  ;;  %v18780_v61 = vpop.permute.xlu0 %5808  ;;  %7151 = vperm.xlu1 %16326, %v13729_v15   ;;  %v13732_v15 = vld [vmem:[%s22795_s1 + $0x3a0] sm:$0xff]  ;;  %v3647_v0 = vmul.f32 %v23084_v41, %v18792_v35 }
 0x2e9   :  { %23079 = vst [vmem:[#allocation28_spill] sm:$0xff] %v18780_v61  ;;  %7146 = vperm.xlu0 %16325, %v13728_v58   ;;  %v3646_v58 = vmul.f32 %v23083_v63, %v18501_v38  ;;  %v3810_v63 = vld [vmem:[#allocation3 + $0x10] sm:$0xff] }
 0x2eb   :  { %v18790_v22 = vpop.permute.xlu1 %5823 }
 0x2ec   :  { %23081 = vst [vmem:[#allocation30_spill] sm:$0xff] %v18790_v22  ;;  %v18794_v61 = vpop.permute.xlu0 %5818  ;;  %15001 = vmatmul.mubr.msk.bf16.gmra.mrb[24].mxu1 %vm88_vm2, %v3653_v44  ;;  %7161 = vperm.xlu1 %16326, %v13731_v7   ;;  %v13735_v44 = vld [vmem:[%s22795_s1 + $0x3b8] sm:$0xff]  ;;  %v13734_v22 = vld [vmem:[%s22795_s1 + $0x3b0] sm:$0xff] }
 0x2ed   :  { %23082 = vst [vmem:[#allocation29_spill] sm:$0xff] %v18794_v61  ;;  %7156 = vperm.xlu0 %16325, %v13730_v24   ;;  %15004 = vmatprep.mubr.msk.bf16.mxu1 %vm88_vm2, %v3654_v32  ;;  %v3811_v32 = vld [vmem:[#allocation3 + $0x18] sm:$0xff]  ;;  %v3655_v24 = vpack.c.bf16 %v3647_v0, %v3646_v58  ;;  %v3813_v0 = vld [vmem:[#allocation3 + $0x28] sm:$0xff] }
 0x2ee   :  { %v3826_v41 = vpack.c.bf16 %v3811_v32, %v3810_v63 }
 0x2ef   :  { %v18808_v4 = vpop.permute.xlu1 %5833 }
 0x2f0   :  { %v18810_v7 = vpop.permute.xlu0 %5828  ;;  %7171 = vperm.xlu1 %16326, %v13733_v10   ;;  %v13737_v10 = vld [vmem:[%s22795_s1 + $0x3c8] sm:$0xff] }
 0x2f1   :  { %7166 = vperm.xlu0 %16325, %v13732_v15   ;;  %v13736_v15 = vld [vmem:[%s22795_s1 + $0x3c0] sm:$0xff] }
 0x2f3   :  { %v18818_v61 = vpop.permute.xlu1 %5843 }
 0x2f4   :  { %23085 = vst [vmem:[#allocation31_spill] sm:$0xff] %v18818_v61  ;;  %v18820_v59 = vpop.permute.xlu0 %5838  ;;  %15005 = vmatmul.mubr.msk.bf16.gmra.mrb[28].mxu1 %vm88_vm2, %v3655_v24  ;;  %7181 = vperm.xlu1 %16326, %v13735_v44   ;;  %v3812_v24 = vld [vmem:[#allocation3 + $0x20] sm:$0xff]  ;;  %v3815_v44 = vld [vmem:[#allocation3 + $0x38] sm:$0xff] }
 0x2f5   :  { %23086 = vst [vmem:[#allocation32_spill] sm:$0xff] %v18820_v59  ;;  %7176 = vperm.xlu0 %16325, %v13734_v22   ;;  %15012 = vmatprep.mubr.msk.bf16.mxu1 %vm88_vm2, %v3826_v41  ;;  %v13739_v22 = vld [vmem:[%s22795_s1 + $0x3d8] sm:$0xff]  ;;  %v3827_v63 = vpack.c.bf16 %v3813_v0, %v3812_v24  ;;  %v13738_v41 = vld [vmem:[%s22795_s1 + $0x3d0] sm:$0xff]  ;;  %v13741_v0 = vld [vmem:[%s22795_s1 + $0x3e8] sm:$0xff] }
 0x2f6   :  { %v13740_v24 = vld [vmem:[%s22795_s1 + $0x3e0] sm:$0xff]  ;;  %v3818_v59 = vld [vmem:[#allocation3 + $0x50] sm:$0xff] }
 0x2f7   :  { %v18830_v58 = vpop.permute.xlu1 %5853 }
 0x2f8   :  { %23087 = vst [vmem:[#allocation34_spill] sm:$0xff] %v18830_v58  ;;  %v18832_v32 = vpop.permute.xlu0 %5848  ;;  %7191 = vperm.xlu1 %16326, %v13737_v10   ;;  %v16356_v58 = vld [vmem:[%s22799_s5 + $0x58] sm:$0xff]  }
 0x2f9   :  { %23088 = vst [vmem:[#allocation33_spill] sm:$0xff] %v18832_v32  ;;  %7186 = vperm.xlu0 %16325, %v13736_v15   ;;  %v3814_v32 = vld [vmem:[#allocation3 + $0x30] sm:$0xff] }
 0x2fa   :  { %v3828_v15 = vpack.c.bf16 %v3815_v44, %v3814_v32  ;;  %v3819_v44 = vld [vmem:[#allocation3 + $0x58] sm:$0xff] }
 0x2fb   :  { %v18843_v61 = vpop.permute.xlu1 %5863 }
 0x2fc   :  { %23089 = vst [vmem:[#allocation111_spill] sm:$0xff] %v18843_v61  ;;  %v18845_v10 = vpop.permute.xlu0 %5858  ;;  %15013 = vmatmul.mubr.msk.bf16.vlgmr.msra.gmra.mrb[16].mxu1 %vm88_vm2, %v3827_v63  ;;  %7201 = vperm.xlu1 %16326, %v13739_v22   ;;  %v18859_v63 = vld [vmem:[%s22799_s5 + $0x60] sm:$0xff]  }
 0x2fd   :  { %23090 = vst [vmem:[#allocation112_spill] sm:$0xff] %v18845_v10  ;;  %15029 = vmatpush3.bf16.msra.mxu1 %v18743_v46  ;;  %7196 = vperm.xlu0 %16325, %v13738_v41   ;;  %v3817_v46 = vld [vmem:[#allocation3 + $0x48] sm:$0xff]  ;;  %v3816_v41 = vld [vmem:[#allocation3 + $0x40] sm:$0xff]  ;;  %v13742_v10 = vld [vmem:[%s22795_s1 + $0x3f0] sm:$0xff] }
 0x2fe   :  { %15016 = vmatprep.mubr.msk.bf16.mxu1 %vm88_vm2, %v3828_v15  ;;  %15030 = vmatprep.subr.bf16.mxu1 %v16356_v58  ;;  %v13743_v15 = vld [vmem:[%s22795_s1 + $0x3f8] sm:$0xff]  ;;  %v3829_v61 = vpack.c.bf16 %v3817_v46, %v3816_v41  ;;  %v3821_v41 = vld [vmem:[#allocation3 + $0x68] sm:$0xff] }
 0x2ff   :  { %v18861_v32 = vpop.permute.xlu1 %5873 }
 0x300   :  { %23091 = vst [vmem:[#allocation113_spill] sm:$0xff] %v18861_v32  ;;  %v18863_v22 = vpop.permute.xlu0 %5868  ;;  %7211 = vperm.xlu1 %16326, %v13741_v0  }
 0x301   :  { %23092 = vst [vmem:[#allocation114_spill] sm:$0xff] %v18863_v22  ;;  %7206 = vperm.xlu0 %16325, %v13740_v24   ;;  %15031 = vmatpush3.bf16.msra.mxu1 %v16356_v58  ;;  %v3830_v22 = vpack.c.bf16 %v3819_v44, %v3818_v59  ;;  %v13759_v58 = vld [vmem:[%s22795_s1 + $0x408] sm:$0xff]  ;;  %v13758_v24 = vld [vmem:[%s22795_s1 + $0x400] sm:$0xff]  ;;  %v13760_v44 = vld [vmem:[%s22795_s1 + $0x410] sm:$0xff] }
 0x302   :  { %15048 = vmatprep.subr.bf16.mxu1 %v18859_v63 }
 0x303   :  { %v18872_v32 = vpop.permute.xlu1 %5883 }
 0x304   :  { %23093 = vst [vmem:[#allocation115_spill] sm:$0xff] %v18872_v32  ;;  %v18874_v0 = vpop.permute.xlu0 %5878  ;;  %15017 = vmatmul.mubr.msk.bf16.gmra.mrb[20].mxu1 %vm88_vm2, %v3829_v61  ;;  %7221 = vperm.xlu1 %16326, %v13743_v15   ;;  %v3820_v61 = vld [vmem:[#allocation3 + $0x60] sm:$0xff] }
 0x305   :  { %7216 = vperm.xlu0 %16325, %v13742_v10   ;;  %15020 = vmatprep.mubr.msk.bf16.mxu1 %vm88_vm2, %v3830_v22  ;;  %v13761_v10 = vld [vmem:[%s22795_s1 + $0x418] sm:$0xff]  ;;  %v3831_v22 = vpack.c.bf16 %v3821_v41, %v3820_v61  ;;  %v18908_v41 = vld [vmem:[#allocation3 + $0x88] sm:$0xff] }
 0x307   :  { %v18884_v46 = vpop.permute.xlu1 %6103 }
 0x308   :  { %23094 = vst [vmem:[#allocation116_spill] sm:$0xff] %v18884_v46  ;;  %v18886_v59 = vpop.permute.xlu0 %6098  ;;  %7441 = vperm.xlu1 %16326, %v13759_v58   ;;  %v3832_v46 = vpack.c.bf16 %v18354_v43, %v18346_v11  ;;  %v13763_v58 = vld [vmem:[%s22795_s1 + $0x428] sm:$0xff]  ;;  %v23099_v11 = vld [vmem:[#allocation36_spill] sm:$0xff] }
 0x309   :  { %23095 = vst [vmem:[#allocation117_spill] sm:$0xff] %v18886_v59  ;;  %7436 = vperm.xlu0 %16325, %v13758_v24   ;;  %v13762_v24 = vld [vmem:[%s22795_s1 + $0x420] sm:$0xff]  ;;  %v4100_v43 = vmul.f32 %v23099_v11, %v18506_v39 }
 0x30b   :  { %v18894_v15 = vpop.permute.xlu1 %6113 }
 0x30c   :  { %23096 = vst [vmem:[#allocation118_spill] sm:$0xff] %v18894_v15  ;;  %v18898_v32 = vpop.permute.xlu0 %6108  ;;  %15021 = vmatmul.mubr.msk.bf16.gmra.mrb[24].mxu1 %vm88_vm2, %v3831_v22  ;;  %7451 = vperm.xlu1 %16326, %v13761_v10   ;;  %v23100_v22 = vld [vmem:[#allocation35_spill] sm:$0xff] }
 0x30d   :  { %23097 = vst [vmem:[#allocation119_spill] sm:$0xff] %v18898_v32  ;;  %7446 = vperm.xlu0 %16325, %v13760_v44   ;;  %15024 = vmatprep.mubr.msk.bf16.mxu1 %vm88_vm2, %v3832_v46  ;;  %v4101_v10 = vmul.f32 %v18534_v49, %v23100_v22  ;;  %v3824_v46 = vld [vmem:[#allocation3 + $0x80] sm:$0xff]  ;;  %v13765_v15 = vld [vmem:[%s22795_s1 + $0x438] sm:$0xff]  ;;  %v13767_v49 = vld [vmem:[%s22795_s1 + $0x448] sm:$0xff] }
 0x30e   :  { %v3833_v32 = vpack.c.bf16 %v18908_v41, %v3824_v46 }
 0x30f   :  { %v18910_v61 = vpop.permute.xlu1 %6123  ;;  %v4116_v39 = vpack.c.bf16 %v4101_v10, %v4100_v43 }
 0x310   :  { %23098 = vst [vmem:[#allocation120_spill] sm:$0xff] %v18910_v61  ;;  %v18916_v44 = vpop.permute.xlu0 %6118  ;;  %7461 = vperm.xlu1 %16326, %v13763_v58   ;;  %v13764_v61 = vld [vmem:[%s22795_s1 + $0x430] sm:$0xff]  ;;  %v13766_v58 = vld [vmem:[%s22795_s1 + $0x440] sm:$0xff] }
 0x311   :  { %23101 = vst [vmem:[#allocation36_spill] sm:$0xff] %v18916_v44  ;;  %7456 = vperm.xlu0 %16325, %v13762_v24   ;;  %v23104_v24 = vld [vmem:[#allocation37_spill] sm:$0xff] }
 0x312   :  { %v4103_v22 = vmul.f32 %v18554_v13, %v23104_v24  ;;  %v13768_v24 = vld [vmem:[%s22795_s1 + $0x450] sm:$0xff] }
 0x313   :  { %v18925_v59 = vpop.permute.xlu1 %6133 }
 0x314   :  { %23102 = vst [vmem:[#allocation35_spill] sm:$0xff] %v18925_v59  ;;  %v18927_v11 = vpop.permute.xlu0 %6128  ;;  %15025 = vmatmul.mubr.msk.bf16.gmra.mrb[28].mxu1 %vm88_vm2, %v3833_v32  ;;  %7471 = vperm.xlu1 %16326, %v13765_v15   ;;  %v23107_v32 = vld [vmem:[#allocation38_spill] sm:$0xff] }
 0x315   :  { %23103 = vst [vmem:[#allocation121_spill] sm:$0xff] %v18927_v11  ;;  %7466 = vperm.xlu0 %16325, %v13764_v61   ;;  %15032 = vmatprep.mubr.msk.bf16.mxu1 %vm88_vm2, %v4116_v39  ;;  %v4102_v15 = vmul.f32 %v18532_v47, %v23107_v32  ;;  %v23108_v61 = vld [vmem:[#allocation40_spill] sm:$0xff]  ;;  %v23109_v39 = vld [vmem:[#allocation39_spill] sm:$0xff]  ;;  %v16358_v47 = vld [vmem:[%s22799_s5 + $0x68] sm:$0xff]  }
 0x316   :  { %v4104_v46 = vmul.f32 %v18541_v3, %v23108_v61  ;;  %v4105_v59 = vmul.f32 %v18575_v23, %v23109_v39  ;;  %v13769_v11 = vld [vmem:[%s22795_s1 + $0x458] sm:$0xff]  ;;  %v23112_v32 = vld [vmem:[#allocation41_spill] sm:$0xff] }
 0x317   :  { %v18939_v43 = vpop.permute.xlu1 %6143  ;;  %v4117_v13 = vpack.c.bf16 %v4103_v22, %v4102_v15  ;;  %v13770_v22 = vld [vmem:[%s22795_s1 + $0x460] sm:$0xff]  ;;  %v4107_v15 = vmul.f32 %v18588_v50, %v23112_v32 }
 0x318   :  { %23105 = vst [vmem:[#allocation37_spill] sm:$0xff] %v18939_v43  ;;  %v18941_v10 = vpop.permute.xlu0 %6138  ;;  %7481 = vperm.xlu1 %16326, %v13767_v49   ;;  %v4118_v23 = vpack.c.bf16 %v4105_v59, %v4104_v46  ;;  %v18976_v59 = vld [vmem:[%s22799_s5 + $0x70] sm:$0xff]   ;;  %v16432_v43 = vld [vmem:[#allocation3 + $0x80] sm:$0xff] }
 0x319   :  { %23106 = vst [vmem:[#allocation122_spill] sm:$0xff] %v18941_v10  ;;  %7476 = vperm.xlu0 %16325, %v13766_v58   ;;  %v13771_v58 = vld [vmem:[%s22795_s1 + $0x468] sm:$0xff]  ;;  %v23115_v46 = vld [vmem:[#allocation43_spill] sm:$0xff]  ;;  %v4693_v44 = vmul.f32 %v16432_v43, %v18271_v34 }
 0x31a   :  { %v4109_v39 = vmul.f32 %v18620_v2, %v23115_v46  ;;  %v19319_v10 = vld [vmem:[%s22795_s1 + $0x78] sm:$0xff]  ;;  %v4583_v34 = vld [vmem:[#allocation3 + $0x90] sm:$0xff]  ;;  %v13841_v43 = vld [vmem:[%s22795_s1 + $0x128] sm:$0xff] }
 0x31b   :  { %v18958_v49 = vpop.permute.xlu1 %6153 }
 0x31c   :  { %23110 = vst [vmem:[#allocation38_spill] sm:$0xff] %v18958_v49  ;;  %v18960_v3 = vpop.permute.xlu0 %6148  ;;  %15033 = vmatmul.mubr.msk.bf16.vlgmr.msra.gmra.mrb[16].mxu1 %vm88_vm2, %v4117_v13  ;;  %7491 = vperm.xlu1 %16326, %v13769_v11   ;;  %v23114_v11 = vld [vmem:[#allocation44_spill] sm:$0xff] }
 0x31d   :  { %23111 = vst [vmem:[#allocation40_spill] sm:$0xff] %v18960_v3  ;;  %15049 = vmatpush3.bf16.msra.mxu1 %v18859_v63  ;;  %7486 = vperm.xlu0 %16325, %v13768_v24   ;;  %v4108_v61 = vmul.f32 %v18579_v52, %v23114_v11  ;;  %v23117_v24 = vld [vmem:[#allocation42_spill] sm:$0xff] }
 0x31e   :  { %15036 = vmatprep.mubr.msk.bf16.mxu1 %vm88_vm2, %v4118_v23  ;;  %15050 = vmatprep.subr.bf16.mxu1 %v16358_v47  ;;  %v4106_v50 = vmul.f32 %v18573_v1, %v23117_v24  ;;  %v13773_v23 = vld [vmem:[%s22795_s1 + $0x478] sm:$0xff]  ;;  %v13772_v52 = vld [vmem:[%s22795_s1 + $0x470] sm:$0xff]  ;;  %v13797_v1 = vld [vmem:[%s22795_s1 + $0x88] sm:$0xff] }
 0x31f   :  { %v18978_v63 = vpop.permute.xlu1 %6163  ;;  %v4120_v46 = vpack.c.bf16 %v4109_v39, %v4108_v61  ;;  %v23122_v39 = vld [vmem:[#allocation48_spill] sm:$0xff] }
 0x320   :  { %23113 = vst [vmem:[#allocation39_spill] sm:$0xff] %v18978_v63  ;;  %v18984_v13 = vpop.permute.xlu0 %6158  ;;  %7501 = vperm.xlu1 %16326, %v13771_v58   ;;  %v4119_v32 = vpack.c.bf16 %v4107_v15, %v4106_v50  ;;  %v4112_v24 = vmul.f32 %v18624_v16, %v23122_v39  ;;  %v23123_v50 = vld [vmem:[#allocation47_spill] sm:$0xff] }
 0x321   :  { %23116 = vst [vmem:[#allocation41_spill] sm:$0xff] %v18984_v13  ;;  %7496 = vperm.xlu0 %16325, %v13770_v22   ;;  %15051 = vmatpush3.bf16.msra.mxu1 %v16358_v47  ;;  %v13796_v47 = vld [vmem:[%s22795_s1 + $0x80] sm:$0xff]  ;;  %v19027_v16 = vld [vmem:[%s22795_s1 + $0x90] sm:$0xff] }
 0x322   :  { %15068 = vmatprep.subr.bf16.mxu1 %v18976_v59  ;;  %v23120_v22 = vld [vmem:[#allocation45_spill] sm:$0xff]  ;;  %v23141_v63 = vld [vmem:[#allocation55_spill] sm:$0xff] }
 0x323   :  { %v18995_v11 = vpop.permute.xlu1 %6173  ;;  %v4111_v15 = vmul.f32 %v18633_v21, %v23120_v22  ;;  %v19029_v22 = vld [vmem:[#allocation3 + $0x89] sm:$0xff]  ;;  %v4395_v49 = vmul.f32 %v23141_v63, %v18418_v40 }
 0x324   :  { %23118 = vst [vmem:[#allocation44_spill] sm:$0xff] %v18995_v11  ;;  %v18997_v58 = vpop.permute.xlu0 %6168  ;;  %15037 = vmatmul.mubr.msk.bf16.gmra.mrb[20].mxu1 %vm88_vm2, %v4119_v32  ;;  %7511 = vperm.xlu1 %16326, %v13773_v23   ;;  %v4113_v23 = vmul.f32 %v18658_v57, %v23123_v50  ;;  %v19022_v11 = vld [vmem:[%s22795_s1 + $0x98] sm:$0xff] }
 0x325   :  { %23119 = vst [vmem:[#allocation43_spill] sm:$0xff] %v18997_v58  ;;  %7506 = vperm.xlu0 %16325, %v13772_v52   ;;  %15040 = vmatprep.mubr.msk.bf16.mxu1 %vm88_vm2, %v4120_v46  ;;  %v23125_v52 = vld [vmem:[#allocation46_spill] sm:$0xff]  ;;  %v23140_v58 = vld [vmem:[#allocation56_spill] sm:$0xff] }
 0x326   :  { %v4110_v46 = vmul.f32 %v18618_v31, %v23125_v52  ;;  %v23129_v52 = vld [vmem:[#allocation49_spill] sm:$0xff]  ;;  %v4394_v13 = vmul.f32 %v23140_v58, %v18416_v26  ;;  %v16360_v26 = vld [vmem:[%s22799_s5 + $0x78] sm:$0xff]  }
 0x327   :  { %v19009_v61 = vpop.permute.xlu1 %6571 }
 0x328   :  { %23121 = vst [vmem:[#allocation42_spill] sm:$0xff] %v19009_v61  ;;  %v19015_v32 = vpop.permute.xlu0 %6566  ;;  %7968 = vperm.xlu1 %16326, %v13797_v1   ;;  %v4121_v21 = vpack.c.bf16 %v4111_v15, %v4110_v46  ;;  %v4122_v1 = vpack.c.bf16 %v4113_v23, %v4112_v24  ;;  %v19047_v15 = vld [vmem:[%s22795_s1 + $0xa0] sm:$0xff]  ;;  %v23128_v24 = vld [vmem:[#allocation50_spill] sm:$0xff]  ;;  %v4115_v46 = vmul.f32 %v19029_v22, %v23129_v52 }
 0x329   :  { %23124 = vst [vmem:[#allocation45_spill] sm:$0xff] %v19015_v32  ;;  %7963 = vperm.xlu0 %16325, %v13796_v47   ;;  %v19042_v47 = vld [vmem:[%s22795_s1 + $0xa8] sm:$0xff]  ;;  %v4114_v23 = vmul.f32 %v18656_v12, %v23128_v24  ;;  %v19066_v24 = vld [vmem:[%s22795_s1 + $0xb8] sm:$0xff]  ;;  %v4408_v63 = vpack.c.bf16 %v4395_v49, %v4394_v13  ;;  %v19140_v49 = vld [vmem:[%s22799_s5 + $0x80] sm:$0xff]  }
 0x32a   :  { %v23146_v13 = vld [vmem:[#allocation64_spill] sm:$0xff] }
 0x32b   :  { %v19031_v39 = vpop.permute.xlu1 %6581  ;;  %v4123_v52 = vpack.c.bf16 %v4115_v46, %v4114_v23  ;;  %v19084_v23 = vld [vmem:[%s22795_s1 + $0xc8] sm:$0xff] }
 0x32c   :  { %23126 = vst [vmem:[#allocation48_spill] sm:$0xff] %v19031_v39  ;;  %v19033_v50 = vpop.permute.xlu0 %6576  ;;  %15041 = vmatmul.mubr.msk.bf16.gmra.mrb[24].mxu1 %vm88_vm2, %v4121_v21  ;;  %7978 = vperm.xlu1 %16326, %v19022_v11   ;;  %v23132_v39 = vld [vmem:[#allocation51_spill] sm:$0xff]  ;;  %v4280_v46 = vld [vmem:[#allocation3 + $0x27] sm:$0xff] }
 0x32d   :  { %23127 = vst [vmem:[#allocation47_spill] sm:$0xff] %v19033_v50  ;;  %7973 = vperm.xlu0 %16325, %v19027_v16   ;;  %15044 = vmatprep.mubr.msk.bf16.mxu1 %vm88_vm2, %v4122_v1  ;;  %v23131_v1 = vld [vmem:[#allocation52_spill] sm:$0xff]  ;;  %v4391_v61 = vmul.f32 %v23132_v39, %v18377_v51  ;;  %v4281_v39 = vld [vmem:[#allocation3 + $0x2f] sm:$0xff] }
 0x32e   :  { %v4390_v50 = vmul.f32 %v23131_v1, %v18375_v30 }
 0x32f   :  { %v19053_v21 = vpop.permute.xlu1 %6591 }
 0x330   :  { %23130 = vst [vmem:[#allocation46_spill] sm:$0xff] %v19053_v21  ;;  %v19059_v32 = vpop.permute.xlu0 %6586  ;;  %7988 = vperm.xlu1 %16326, %v19042_v47   ;;  %v19071_v21 = vld [vmem:[%s22795_s1 + $0xb0] sm:$0xff]  ;;  %v4406_v51 = vpack.c.bf16 %v4391_v61, %v4390_v50  ;;  %v19089_v61 = vld [vmem:[%s22795_s1 + $0xc0] sm:$0xff] }
 0x331   :  { %23133 = vst [vmem:[#allocation50_spill] sm:$0xff] %v19059_v32  ;;  %7983 = vperm.xlu0 %16325, %v19047_v15   ;;  %v23136_v50 = vld [vmem:[#allocation53_spill] sm:$0xff] }
 0x333   :  { %v19073_v30 = vpop.permute.xlu1 %6601 }
 0x334   :  { %23134 = vst [vmem:[#allocation49_spill] sm:$0xff] %v19073_v30  ;;  %v19075_v1 = vpop.permute.xlu0 %6596  ;;  %15045 = vmatmul.mubr.msk.bf16.gmra.mrb[28].mxu1 %vm88_vm2, %v4123_v52  ;;  %7998 = vperm.xlu1 %16326, %v19066_v24  }
 0x335   :  { %23135 = vst [vmem:[#allocation52_spill] sm:$0xff] %v19075_v1  ;;  %7993 = vperm.xlu0 %16325, %v19071_v21   ;;  %15052 = vmatprep.mubr.msk.bf16.mxu1 %vm88_vm2, %v4406_v51  ;;  %v4393_v1 = vmul.f32 %v23136_v50, %v4281_v39  ;;  %v23139_v51 = vld [vmem:[#allocation54_spill] sm:$0xff]  ;;  %v19106_v39 = vld [vmem:[%s22795_s1 + $0xd8] sm:$0xff] }
 0x336   :  { %v4392_v32 = vmul.f32 %v23139_v51, %v4280_v46  ;;  %v23144_v46 = vld [vmem:[#allocation60_spill] sm:$0xff] }
 0x337   :  { %v19092_v52 = vpop.permute.xlu1 %6611  ;;  %v4397_v51 = vmul.f32 %v23144_v46, %v18423_v18  ;;  %v23149_v18 = vld [vmem:[#allocation62_spill] sm:$0xff] }
 0x338   :  { %23137 = vst [vmem:[#allocation51_spill] sm:$0xff] %v19092_v52  ;;  %v19094_v30 = vpop.permute.xlu0 %6606  ;;  %8008 = vperm.xlu1 %16326, %v19084_v23   ;;  %v4407_v50 = vpack.c.bf16 %v4393_v1, %v4392_v32  ;;  %v19111_v52 = vld [vmem:[%s22795_s1 + $0xd0] sm:$0xff]  ;;  %v19127_v32 = vld [vmem:[%s22795_s1 + $0xe8] sm:$0xff]  ;;  %v19133_v1 = vld [vmem:[%s22795_s1 + $0xe0] sm:$0xff]  ;;  %v4396_v46 = vmul.f32 %v23149_v18, %v18437_v28  ;;  %v4403_v18 = vmul.f32 %v18106_v56, %v18501_v38 }
 0x339   :  { %23138 = vst [vmem:[#allocation53_spill] sm:$0xff] %v19094_v30  ;;  %8003 = vperm.xlu0 %16325, %v19089_v61   ;;  %v19157_v30 = vld [vmem:[%s22795_s1 + $0xf8] sm:$0xff] }
 0x33b   :  { %v19116_v58 = vpop.permute.xlu1 %6621 }
 0x33c   :  { %23142 = vst [vmem:[#allocation54_spill] sm:$0xff] %v19116_v58  ;;  %v19118_v40 = vpop.permute.xlu0 %6616  ;;  %15053 = vmatmul.mubr.msk.bf16.vlgmr.msra.gmra.mrb[16].mxu1 %vm88_vm2, %v4407_v50  ;;  %8018 = vperm.xlu1 %16326, %v19106_v39   ;;  %v4398_v50 = vmul.f32 %v23146_v13, %v18461_v55  ;;  %v19162_v55 = vld [vmem:[%s22795_s1 + $0xf0] sm:$0xff] }
 0x33d   :  { %23143 = vst [vmem:[#allocation56_spill] sm:$0xff] %v19118_v40  ;;  %15069 = vmatpush3.bf16.msra.mxu1 %v18976_v59  ;;  %8013 = vperm.xlu0 %16325, %v19111_v52  }
 0x33e   :  { %15056 = vmatprep.mubr.msk.bf16.mxu1 %vm88_vm2, %v4408_v63  ;;  %15070 = vmatprep.subr.bf16.mxu1 %v16360_v26  ;;  %v23147_v63 = vld [vmem:[#allocation63_spill] sm:$0xff] }
 0x33f   :  { %v19142_v59 = vpop.permute.xlu1 %6631  ;;  %v4399_v40 = vmul.f32 %v23147_v63, %v18463_v45  ;;  %v4402_v63 = vmul.f32 %v18109_v17, %v18499_v48  ;;  %v19205_v17 = vld [vmem:[%s22795_s1 + $0x10] sm:$0xff] }
 0x340   :  { %23145 = vst [vmem:[#allocation55_spill] sm:$0xff] %v19142_v59  ;;  %v19148_v58 = vpop.permute.xlu0 %6626  ;;  %8028 = vperm.xlu1 %16326, %v19127_v32   ;;  %v4409_v59 = vpack.c.bf16 %v4397_v51, %v4396_v46  ;;  %v19181_v51 = vld [vmem:[%s22795_s1] sm:$0xff]  ;;  %v4293_v48 = vld [vmem:[#allocation3 + $0x8f] sm:$0xff] }
 0x341   :  { %23148 = vst [vmem:[#allocation60_spill] sm:$0xff] %v19148_v58  ;;  %8023 = vperm.xlu0 %16325, %v19133_v1   ;;  %15071 = vmatpush3.bf16.msra.mxu1 %v16360_v26  ;;  %v4410_v13 = vpack.c.bf16 %v4399_v40, %v4398_v50  ;;  %v19176_v26 = vld [vmem:[%s22795_s1 + $0x8] sm:$0xff]  ;;  %v4412_v38 = vpack.c.bf16 %v4403_v18, %v4402_v63  ;;  %v16420_v18 = vld [vmem:[#allocation3 + $0x20] sm:$0xff] }
 0x342   :  { %15088 = vmatprep.subr.bf16.mxu1 %v19140_v49  ;;  %v23152_v40 = vld [vmem:[#allocation65_spill] sm:$0xff]  ;;  %v4405_v63 = vmul.f32 %v18132_v27, %v4293_v48 }
 0x343   :  { %v19165_v45 = vpop.permute.xlu1 %6641  ;;  %v4401_v50 = vmul.f32 %v23152_v40, %v18468_v53  ;;  %v19200_v53 = vld [vmem:[%s22795_s1 + $0x18] sm:$0xff] }
 0x344   :  { %23150 = vst [vmem:[#allocation64_spill] sm:$0xff] %v19165_v45  ;;  %v19167_v28 = vpop.permute.xlu0 %6636  ;;  %15057 = vmatmul.mubr.msk.bf16.gmra.mrb[20].mxu1 %vm88_vm2, %v4409_v59  ;;  %8038 = vperm.xlu1 %16326, %v19157_v30  }
 0x345   :  { %23151 = vst [vmem:[#allocation63_spill] sm:$0xff] %v19167_v28  ;;  %8033 = vperm.xlu0 %16325, %v19162_v55   ;;  %15060 = vmatprep.mubr.msk.bf16.mxu1 %vm88_vm2, %v4410_v13  ;;  %v23155_v13 = vld [vmem:[#allocation66_spill] sm:$0xff] }
 0x346   :  { %v4400_v45 = vmul.f32 %v23155_v13, %v18481_v29  ;;  %v19218_v29 = vld [vmem:[%s22795_s1 + $0x28] sm:$0xff]  ;;  %v4681_v13 = vmul.f32 %v16420_v18, %v18162_v60  ;;  %v19244_v60 = vld [vmem:[%s22795_s1 + $0x30] sm:$0xff] }
 0x347   :  { %v19185_v59 = vpop.permute.xlu1 %6861 }
 0x348   :  { %23153 = vst [vmem:[#allocation62_spill] sm:$0xff] %v19185_v59  ;;  %v19191_v46 = vpop.permute.xlu0 %6856  ;;  %7827 = vperm.xlu1 %16326, %v19176_v26   ;;  %v4411_v40 = vpack.c.bf16 %v4401_v50, %v4400_v45  ;;  %v19223_v45 = vld [vmem:[%s22795_s1 + $0x20] sm:$0xff]  ;;  %v4404_v50 = vmul.f32 %v18141_v42, %v18792_v35  ;;  %v19239_v42 = vld [vmem:[%s22795_s1 + $0x38] sm:$0xff] }
 0x349   :  { %23154 = vst [vmem:[#allocation65_spill] sm:$0xff] %v19191_v46  ;;  %7822 = vperm.xlu0 %16325, %v19181_v51  }
 0x34a   :  { %v4413_v27 = vpack.c.bf16 %v4405_v63, %v4404_v50  ;;  %v19257_v50 = vld [vmem:[%s22795_s1 + $0x48] sm:$0xff]  ;;  %v16422_v63 = vld [vmem:[#allocation3 + $0x30] sm:$0xff] }
 0x34b   :  { %v19207_v56 = vpop.permute.xlu1 %6871 }
 0x34c   :  { %23156 = vst [vmem:[#allocation66_spill] sm:$0xff] %v19207_v56  ;;  %v19209_v59 = vpop.permute.xlu0 %6866  ;;  %15061 = vmatmul.mubr.msk.bf16.gmra.mrb[24].mxu1 %vm88_vm2, %v4411_v40  ;;  %7837 = vperm.xlu1 %16326, %v19200_v53   ;;  %v16421_v40 = vld [vmem:[#allocation3 + $0x18] sm:$0xff] }
 0x34d   :  { %23157 = vst [vmem:[#allocation123_spill] sm:$0xff] %v19209_v59  ;;  %7832 = vperm.xlu0 %16325, %v19205_v17   ;;  %15064 = vmatprep.mubr.msk.bf16.mxu1 %vm88_vm2, %v4412_v38  ;;  %v23158_v38 = vld [vmem:[#allocation71_spill] sm:$0xff] }
 0x34e   :  { %v4680_v59 = vmul.f32 %v16421_v40, %v23158_v38  ;;  %v23163_v40 = vld [vmem:[#allocation72_spill] sm:$0xff]  ;;  %v23164_v38 = vld [vmem:[#allocation73_spill] sm:$0xff] }
 0x34f   :  { %v19230_v56 = vpop.permute.xlu1 %6881 }
 0x350   :  { %23159 = vst [vmem:[#allocation71_spill] sm:$0xff] %v19230_v56  ;;  %v19232_v46 = vpop.permute.xlu0 %6876  ;;  %7847 = vperm.xlu1 %16326, %v19218_v29   ;;  %v4696_v35 = vpack.c.bf16 %v4681_v13, %v4680_v59  ;;  %v4683_v59 = vmul.f32 %v16422_v63, %v23163_v40  ;;  %v16423_v13 = vld [vmem:[#allocation3 + $0x28] sm:$0xff]  ;;  %v16424_v56 = vld [vmem:[#allocation3 + $0x40] sm:$0xff]  ;;  %v19277_v63 = vld [vmem:[%s22795_s1 + $0x58] sm:$0xff] }
 0x351   :  { %23160 = vst [vmem:[#allocation124_spill] sm:$0xff] %v19232_v46  ;;  %7842 = vperm.xlu0 %16325, %v19223_v45   ;;  %v16425_v46 = vld [vmem:[#allocation3 + $0x38] sm:$0xff] }
 0x352   :  { %v4684_v28 = vmul.f32 %v16425_v46, %v18197_v62 }
 0x353   :  { %v19246_v48 = vpop.permute.xlu1 %6891 }
 0x354   :  { %23161 = vst [vmem:[#allocation125_spill] sm:$0xff] %v19246_v48  ;;  %v19248_v18 = vpop.permute.xlu0 %6886  ;;  %15065 = vmatmul.mubr.msk.bf16.gmra.mrb[28].mxu1 %vm88_vm2, %v4413_v27  ;;  %7857 = vperm.xlu1 %16326, %v19239_v42   ;;  %v4682_v48 = vmul.f32 %v16423_v13, %v23164_v38  ;;  %v19264_v27 = vld [vmem:[%s22795_s1 + $0x40] sm:$0xff]  ;;  %v19282_v13 = vld [vmem:[%s22795_s1 + $0x50] sm:$0xff] }
 0x355   :  { %23162 = vst [vmem:[#allocation126_spill] sm:$0xff] %v19248_v18  ;;  %7852 = vperm.xlu0 %16325, %v19244_v60   ;;  %15072 = vmatprep.mubr.msk.bf16.mxu1 %vm88_vm2, %v4696_v35  ;;  %v4685_v35 = vmul.f32 %v16424_v56, %v18193_v19  ;;  %v16362_v19 = vld [vmem:[%s22799_s5 + $0x88] sm:$0xff]  }
 0x356   :  { %v4697_v40 = vpack.c.bf16 %v4683_v59, %v4682_v48  ;;  %v19298_v48 = vld [vmem:[%s22795_s1 + $0x68] sm:$0xff]  ;;  %v16426_v59 = vld [vmem:[#allocation3 + $0x50] sm:$0xff] }
 0x357   :  { %v19266_v18 = vpop.permute.xlu1 %6901  ;;  %v4698_v46 = vpack.c.bf16 %v4685_v35, %v4684_v28  ;;  %v4687_v38 = vmul.f32 %v16426_v59, %v18220_v25  ;;  %v19305_v28 = vld [vmem:[%s22795_s1 + $0x60] sm:$0xff]  ;;  %v16427_v35 = vld [vmem:[#allocation3 + $0x58] sm:$0xff] }
 0x358   :  { %23165 = vst [vmem:[#allocation72_spill] sm:$0xff] %v19266_v18  ;;  %v19270_v58 = vpop.permute.xlu0 %6896  ;;  %7867 = vperm.xlu1 %16326, %v19257_v50   ;;  %v23171_v18 = vld [vmem:[#allocation78_spill] sm:$0xff]  ;;  %v16429_v25 = vld [vmem:[#allocation3 + $0x60] sm:$0xff] }
 0x359   :  { %23166 = vst [vmem:[#allocation73_spill] sm:$0xff] %v19270_v58  ;;  %7862 = vperm.xlu0 %16325, %v19264_v27  }
 0x35b   :  { %v19287_v62 = vpop.permute.xlu1 %6911 }
 0x35c   :  { %23167 = vst [vmem:[#allocation127_spill] sm:$0xff] %v19287_v62  ;;  %v19289_v56 = vpop.permute.xlu0 %6906  ;;  %15073 = vmatmul.mubr.msk.bf16.vlgmr.msra.gmra.mrb[16].mxu1 %vm88_vm2, %v4697_v40  ;;  %7877 = vperm.xlu1 %16326, %v19277_v63   ;;  %v16428_v62 = vld [vmem:[#allocation3 + $0x48] sm:$0xff] }
 0x35d   :  { %23168 = vst [vmem:[#allocation128_spill] sm:$0xff] %v19289_v56  ;;  %15089 = vmatpush3.bf16.msra.mxu1 %v19140_v49  ;;  %7872 = vperm.xlu0 %16325, %v19282_v13   ;;  %v23169_v49 = vld [vmem:[#allocation80_spill] sm:$0xff]  ;;  %v4686_v58 = vmul.f32 %v16428_v62, %v23171_v18  ;;  %v19324_v18 = vld [vmem:[%s22795_s1 + $0x70] sm:$0xff] }
 0x35e   :  { %15076 = vmatprep.mubr.msk.bf16.mxu1 %vm88_vm2, %v4698_v46  ;;  %15090 = vmatprep.subr.bf16.mxu1 %v16362_v19  ;;  %v4688_v40 = vmul.f32 %v16427_v35, %v23169_v49  ;;  %v23173_v46 = vld [vmem:[#allocation79_spill] sm:$0xff] }
 0x35f   :  { %v19308_v56 = vpop.permute.xlu1 %6921  ;;  %v4689_v59 = vmul.f32 %v16429_v25, %v23173_v46  ;;  %v4699_v35 = vpack.c.bf16 %v4687_v38, %v4686_v58  ;;  %v19337_v58 = vld [vmem:[%s22795_s1 + $0x108] sm:$0xff]  ;;  %v16430_v25 = vld [vmem:[#allocation3 + $0x78] sm:$0xff] }
 0x360   :  { %23170 = vst [vmem:[#allocation80_spill] sm:$0xff] %v19308_v56  ;;  %v19311_v3 = vpop.permute.xlu0 %6916  ;;  %7887 = vperm.xlu1 %16326, %v19298_v48   ;;  %v4579_v56 = vld [vmem:[#allocation3 + $0x70] sm:$0xff]  ;;  %v23176_v38 = vld [vmem:[#allocation81_spill] sm:$0xff]  ;;  %v4692_v46 = vmul.f32 %v16430_v25, %v18275_v9 }
 0x361   :  { %23172 = vst [vmem:[#allocation78_spill] sm:$0xff] %v19311_v3  ;;  %7882 = vperm.xlu0 %16325, %v19305_v28   ;;  %15091 = vmatpush3.bf16.msra.mxu1 %v16362_v19  ;;  %v4700_v62 = vpack.c.bf16 %v4689_v59, %v4688_v40  ;;  %v19342_v19 = vld [vmem:[%s22795_s1 + $0x100] sm:$0xff]  ;;  %v4691_v40 = vmul.f32 %v23176_v38, %v4579_v56  ;;  %v13839_v56 = vld [vmem:[%s22795_s1 + $0x118] sm:$0xff]  ;;  %v13838_v9 = vld [vmem:[%s22795_s1 + $0x110] sm:$0xff] }
 0x362   :  { %v4702_v25 = vpack.c.bf16 %v4693_v44, %v4692_v46  ;;  %v13840_v44 = vld [vmem:[%s22795_s1 + $0x120] sm:$0xff] }
 0x363   :  { %v19326_v49 = vpop.permute.xlu1 %6931  ;;  %v16433_v46 = vld [vmem:[#allocation3 + $0x21] sm:$0xff] }
 0x364   :  { %23174 = vst [vmem:[#allocation79_spill] sm:$0xff] %v19326_v49  ;;  %v19328_v3 = vpop.permute.xlu0 %6926  ;;  %15077 = vmatmul.mubr.msk.bf16.gmra.mrb[20].mxu1 %vm88_vm2, %v4699_v35  ;;  %7897 = vperm.xlu1 %16326, %v19319_v10   ;;  %v16431_v35 = vld [vmem:[#allocation3 + $0x68] sm:$0xff] }
 0x365   :  { %23175 = vst [vmem:[#allocation129_spill] sm:$0xff] %v19328_v3  ;;  %7892 = vperm.xlu0 %16325, %v19324_v18   ;;  %15080 = vmatprep.mubr.msk.bf16.mxu1 %vm88_vm2, %v4700_v62  ;;  %v23177_v49 = vld [vmem:[#allocation82_spill] sm:$0xff] }
 0x366   :  { %v4690_v62 = vmul.f32 %v16431_v35, %v23177_v49 }
 0x367   :  { %v19346_v59 = vpop.permute.xlu1 %7151 }
 0x368   :  { %v19349_v3 = vpop.permute.xlu0 %7146  ;;  %8375 = vperm.xlu1 %16326, %v19337_v58   ;;  %v4701_v38 = vpack.c.bf16 %v4691_v40, %v4690_v62  ;;  %v4694_v40 = vmul.f32 %v18304_v33, %v18908_v41  ;;  %v4971_v62 = vmul.f32 %v16433_v46, %v18324_v8  ;;  %v13843_v33 = vld [vmem:[%s22795_s1 + $0x138] sm:$0xff]  ;;  %v13842_v8 = vld [vmem:[%s22795_s1 + $0x130] sm:$0xff] }
 0x369   :  { %8370 = vperm.xlu0 %16325, %v19342_v19  }
 0x36b   :  { %v19360_v49 = vpop.permute.xlu1 %7161 }
 0x36c   :  { %23178 = vst [vmem:[#allocation81_spill] sm:$0xff] %v19360_v49  ;;  %v19362_v35 = vpop.permute.xlu0 %7156  ;;  %15081 = vmatmul.mubr.msk.bf16.gmra.mrb[24].mxu1 %vm88_vm2, %v4701_v38  ;;  %8385 = vperm.xlu1 %16326, %v13839_v56   ;;  %v16434_v38 = vld [vmem:[#allocation3 + $0x19] sm:$0xff] }
 0x36d   :  { %23179 = vst [vmem:[#allocation82_spill] sm:$0xff] %v19362_v35  ;;  %8380 = vperm.xlu0 %16325, %v13838_v9   ;;  %15084 = vmatprep.mubr.msk.bf16.mxu1 %vm88_vm2, %v4702_v25  ;;  %v4970_v56 = vmul.f32 %v16434_v38, %v18329_v37  ;;  %v4695_v25 = vmul.f32 %v18298_v54, %v4583_v34  ;;  %v13845_v54 = vld [vmem:[%s22795_s1 + $0x148] sm:$0xff]  ;;  %v16435_v34 = vld [vmem:[#allocation3 + $0x31] sm:$0xff] }
 0x36e   :  { %v16437_v38 = vld [vmem:[#allocation3 + $0x41] sm:$0xff] }
 0x36f   :  { %v19376_v9 = vpop.permute.xlu1 %7171  ;;  %v4703_v41 = vpack.c.bf16 %v4695_v25, %v4694_v40  ;;  %v4986_v46 = vpack.c.bf16 %v4971_v62, %v4970_v56  ;;  %v16436_v40 = vld [vmem:[#allocation3 + $0x29] sm:$0xff]  ;;  %v13844_v62 = vld [vmem:[%s22795_s1 + $0x140] sm:$0xff]  ;;  %v4975_v56 = vmul.f32 %v16437_v38, %v18356_v5 }
 0x370   :  { %v19379_v35 = vpop.permute.xlu0 %7166  ;;  %8395 = vperm.xlu1 %16326, %v13841_v43   ;;  %v4973_v43 = vmul.f32 %v16435_v34, %v18337_v6  ;;  %v16438_v25 = vld [vmem:[#allocation3 + $0x39] sm:$0xff]  ;;  %v13846_v34 = vld [vmem:[%s22795_s1 + $0x150] sm:$0xff] }
 0x371   :  { %8390 = vperm.xlu0 %16325, %v13840_v44   ;;  %v4972_v44 = vmul.f32 %v16436_v40, %v18339_v14  ;;  %v13847_v6 = vld [vmem:[%s22795_s1 + $0x158] sm:$0xff] }
 0x373   :  { %v19387_v49 = vpop.permute.xlu1 %7181  ;;  %v4987_v14 = vpack.c.bf16 %v4973_v43, %v4972_v44  ;;  %v16439_v43 = vld [vmem:[#allocation3 + $0x51] sm:$0xff]  ;;  %v23186_v44 = vld [vmem:[#allocation88_spill] sm:$0xff] }
 0x374   :  { %v19389_v37 = vpop.permute.xlu0 %7176  ;;  %15085 = vmatmul.mubr.msk.bf16.gmra.mrb[28].mxu1 %vm88_vm2, %v4703_v41  ;;  %8405 = vperm.xlu1 %16326, %v13843_v33   ;;  %v23181_v33 = vld [vmem:[#allocation87_spill] sm:$0xff] }
 0x375   :  { %23180 = vst [vmem:[#allocation130_spill] sm:$0xff] %v19389_v37  ;;  %8400 = vperm.xlu0 %16325, %v13842_v8   ;;  %15092 = vmatprep.mubr.msk.bf16.mxu1 %vm88_vm2, %v4986_v46  ;;  %v4974_v41 = vmul.f32 %v16438_v25, %v23181_v33  ;;  %v16440_v25 = vld [vmem:[#allocation3 + $0x49] sm:$0xff] }
 0x376   :  { %v23187_v33 = vld [vmem:[#allocation89_spill] sm:$0xff] }
 0x377   :  { %v19403_v8 = vpop.permute.xlu1 %7191  ;;  %v4988_v40 = vpack.c.bf16 %v4975_v56, %v4974_v41  ;;  %v4976_v56 = vmul.f32 %v16440_v25, %v23187_v33  ;;  %v13848_v41 = vld [vmem:[%s22795_s1 + $0x160] sm:$0xff]  ;;  %v13850_v25 = vld [vmem:[%s22795_s1 + $0x170] sm:$0xff] }
 0x378   :  { %23182 = vst [vmem:[#allocation87_spill] sm:$0xff] %v19403_v8  ;;  %v19405_v46 = vpop.permute.xlu0 %7186  ;;  %8415 = vperm.xlu1 %16326, %v13845_v54   ;;  %v13849_v54 = vld [vmem:[%s22795_s1 + $0x168] sm:$0xff] }
 0x379   :  { %23183 = vst [vmem:[#allocation131_spill] sm:$0xff] %v19405_v46  ;;  %8410 = vperm.xlu0 %16325, %v13844_v62   ;;  %v4977_v62 = vmul.f32 %v16439_v43, %v23186_v44  ;;  %v13851_v43 = vld [vmem:[%s22795_s1 + $0x178] sm:$0xff] }
 0x37b   :  { %v19413_v5 = vpop.permute.xlu1 %7201  ;;  %v4989_v44 = vpack.c.bf16 %v4977_v62, %v4976_v56  ;;  %v23194_v62 = vld [vmem:[#allocation92_spill] sm:$0xff] }
 0x37c   :  { %23184 = vst [vmem:[#allocation132_spill] sm:$0xff] %v19413_v5  ;;  %v19415_v38 = vpop.permute.xlu0 %7196  ;;  %15093 = vmatmul.mubr.msk.bf16.vlgmr.msra.gmra.mrb[16].mxu1 %vm88_vm2, %v4987_v14  ;;  %8425 = vperm.xlu1 %16326, %v13847_v6   ;;  %v23188_v14 = vld [vmem:[#allocation90_spill] sm:$0xff] }
 0x37d   :  { %23185 = vst [vmem:[#allocation133_spill] sm:$0xff] %v19415_v38  ;;  %8420 = vperm.xlu0 %16325, %v13846_v34   ;;  %15096 = vmatprep.mubr.msk.bf16.mxu1 %vm88_vm2, %v4988_v40  ;;  %v4979_v6 = vmul.f32 %v23188_v14, %v18618_v31  ;;  %v23189_v34 = vld [vmem:[#allocation91_spill] sm:$0xff] }
 0x37e   :  { %v4978_v40 = vmul.f32 %v23189_v34, %v18620_v2  ;;  %v13867_v2 = vld [vmem:[%s22795_s1 + $0x188] sm:$0xff] }
 0x37f   :  { %v19431_v38 = vpop.permute.xlu1 %7211  ;;  %v23195_v34 = vld [vmem:[#allocation93_spill] sm:$0xff] }
 0x380   :  { %23190 = vst [vmem:[#allocation88_spill] sm:$0xff] %v19431_v38  ;;  %v19433_v5 = vpop.permute.xlu0 %7206  ;;  %8435 = vperm.xlu1 %16326, %v13849_v54   ;;  %v4990_v33 = vpack.c.bf16 %v4979_v6, %v4978_v40  ;;  %v16441_v54 = vld [vmem:[#allocation3 + $0x71] sm:$0xff]  ;;  %v13866_v40 = vld [vmem:[%s22795_s1 + $0x180] sm:$0xff] }
 0x381   :  { %23191 = vst [vmem:[#allocation89_spill] sm:$0xff] %v19433_v5  ;;  %8430 = vperm.xlu0 %16325, %v13848_v41   ;;  %v4981_v56 = vmul.f32 %v16441_v54, %v23194_v62  ;;  %v16442_v41 = vld [vmem:[#allocation3 + $0x69] sm:$0xff]  ;;  %v13869_v54 = vld [vmem:[%s22795_s1 + $0x198] sm:$0xff] }
 0x382   :  { %v4980_v6 = vmul.f32 %v16442_v41, %v23195_v34  ;;  %v13868_v41 = vld [vmem:[%s22795_s1 + $0x190] sm:$0xff] }
 0x383   :  { %v19441_v31 = vpop.permute.xlu1 %7221  ;;  %v23376_v5 = vld [vmem:[#allocation114_spill] sm:$0xff] }
 0x384   :  { %23192 = vst [vmem:[#allocation90_spill] sm:$0xff] %v19441_v31  ;;  %v19443_v14 = vpop.permute.xlu0 %7216  ;;  %15097 = vmatmul.mubr.msk.bf16.gmra.mrb[20].mxu1 %vm88_vm2, %v4989_v44  ;;  %8445 = vperm.xlu1 %16326, %v13851_v43   ;;  %v23196_v44 = vld [vmem:[#allocation94_spill] sm:$0xff]  ;;  %v4991_v62 = vpack.c.bf16 %v4981_v56, %v4980_v6  ;;  %v23202_v56 = vld [vmem:[#allocation96_spill] sm:$0xff] }
 0x385   :  { %23193 = vst [vmem:[#allocation91_spill] sm:$0xff] %v19443_v14  ;;  %8440 = vperm.xlu0 %16325, %v13850_v25   ;;  %15100 = vmatprep.mubr.msk.bf16.mxu1 %vm88_vm2, %v4990_v33  ;;  %v4983_v43 = vmul.f32 %v23196_v44, %v18656_v12  ;;  %v23197_v25 = vld [vmem:[#allocation95_spill] sm:$0xff] }
 0x386   :  { %v4982_v33 = vmul.f32 %v23197_v25, %v18658_v57  ;;  %v4873_v12 = vld [vmem:[#allocation3 + $0x91] sm:$0xff]  ;;  %v13870_v25 = vld [vmem:[%s22795_s1 + $0x1a0] sm:$0xff] }
 0x387   :  { %v19459_v31 = vpop.permute.xlu1 %7441  ;;  %v4985_v6 = vmul.f32 %v23202_v56, %v4873_v12  ;;  %v13874_v56 = vld [vmem:[%s22795_s1 + $0x1c0] sm:$0xff] }
 0x388   :  { %23198 = vst [vmem:[#allocation92_spill] sm:$0xff] %v19459_v31  ;;  %v19461_v14 = vpop.permute.xlu0 %7436  ;;  %8665 = vperm.xlu1 %16326, %v13867_v2   ;;  %v4992_v34 = vpack.c.bf16 %v4983_v43, %v4982_v33  ;;  %v13871_v2 = vld [vmem:[%s22795_s1 + $0x1a8] sm:$0xff] }
 0x389   :  { %23199 = vst [vmem:[#allocation93_spill] sm:$0xff] %v19461_v14  ;;  %8660 = vperm.xlu0 %16325, %v13866_v40   ;;  %v23203_v40 = vld [vmem:[#allocation97_spill] sm:$0xff] }
 0x38a   :  { %v4984_v43 = vmul.f32 %v23203_v40, %v19029_v22 }
 0x38b   :  { %v19469_v44 = vpop.permute.xlu1 %7451 }
 0x38c   :  { %23200 = vst [vmem:[#allocation94_spill] sm:$0xff] %v19469_v44  ;;  %v19471_v57 = vpop.permute.xlu0 %7446  ;;  %15101 = vmatmul.mubr.msk.bf16.gmra.mrb[24].mxu1 %vm88_vm2, %v4991_v62  ;;  %8675 = vperm.xlu1 %16326, %v13869_v54   ;;  %v13873_v54 = vld [vmem:[%s22795_s1 + $0x1b8] sm:$0xff] }
 0x38d   :  { %23201 = vst [vmem:[#allocation95_spill] sm:$0xff] %v19471_v57  ;;  %8670 = vperm.xlu0 %16325, %v13868_v41   ;;  %15104 = vmatprep.mubr.msk.bf16.mxu1 %vm88_vm2, %v4992_v34  ;;  %v4993_v41 = vpack.c.bf16 %v4985_v6, %v4984_v43  ;;  %v13872_v34 = vld [vmem:[%s22795_s1 + $0x1b0] sm:$0xff]  ;;  %v13877_v43 = vld [vmem:[%s22795_s1 + $0x1d8] sm:$0xff] }
 0x38f   :  { %v19484_v33 = vpop.permute.xlu1 %7461 }
 0x390   :  { %23204 = vst [vmem:[#allocation96_spill] sm:$0xff] %v19484_v33  ;;  %v19486_v62 = vpop.permute.xlu0 %7456  ;;  %8685 = vperm.xlu1 %16326, %v13871_v2   ;;  %v13875_v2 = vld [vmem:[%s22795_s1 + $0x1c8] sm:$0xff] }
 0x391   :  { %23205 = vst [vmem:[#allocation97_spill] sm:$0xff] %v19486_v62  ;;  %8680 = vperm.xlu0 %16325, %v13870_v25   ;;  %v13876_v25 = vld [vmem:[%s22795_s1 + $0x1d0] sm:$0xff] }
 0x393   :  { %v19494_v22 = vpop.permute.xlu1 %7471 }
 0x394   :  { %23206 = vst [vmem:[#allocation134_spill] sm:$0xff] %v19494_v22  ;;  %v19496_v12 = vpop.permute.xlu0 %7466  ;;  %15105 = vmatmul.mubr.msk.bf16.gmra.mrb[28].mxu1 %vm88_vm2, %v4993_v41  ;;  %8695 = vperm.xlu1 %16326, %v13873_v54  }
 0x395   :  { %23207 = vst [vmem:[#allocation135_spill] sm:$0xff] %v19496_v12  ;;  %8690 = vperm.xlu0 %16325, %v13872_v34   ;;  %v13879_v34 = vld [vmem:[%s22795_s1 + $0x1e8] sm:$0xff] }
 0x397   :  { %v19505_v6 = vpop.permute.xlu1 %7481 }
 0x398   :  { %23208 = vst [vmem:[#allocation136_spill] sm:$0xff] %v19505_v6  ;;  %v19507_v40 = vpop.permute.xlu0 %7476  ;;  %8705 = vperm.xlu1 %16326, %v13875_v2   ;;  %v13878_v2 = vld [vmem:[%s22795_s1 + $0x1e0] sm:$0xff] }
 0x399   :  { %23209 = vst [vmem:[#allocation137_spill] sm:$0xff] %v19507_v40  ;;  %8700 = vperm.xlu0 %16325, %v13874_v56  }
 0x39b   :  { %v19515_v54 = vpop.permute.xlu1 %7491 }
 0x39c   :  { %23210 = vst [vmem:[#allocation138_spill] sm:$0xff] %v19515_v54  ;;  %v19517_v41 = vpop.permute.xlu0 %7486  ;;  %8715 = vperm.xlu1 %16326, %v13877_v43   ;;  %v13880_v43 = vld [vmem:[%s22795_s1 + $0x1f0] sm:$0xff] }
 0x39d   :  { %23211 = vst [vmem:[#allocation139_spill] sm:$0xff] %v19517_v41  ;;  %8710 = vperm.xlu0 %16325, %v13876_v25   ;;  %v13881_v41 = vld [vmem:[%s22795_s1 + $0x1f8] sm:$0xff] }
 0x39f   :  { %v19525_v56 = vpop.permute.xlu1 %7501 }
 0x3a0   :  { %23212 = vst [vmem:[#allocation140_spill] sm:$0xff] %v19525_v56  ;;  %v19527_v12 = vpop.permute.xlu0 %7496  ;;  %8725 = vperm.xlu1 %16326, %v13879_v34   ;;  %v13911_v56 = vld [vmem:[%s22795_s1 + $0x288] sm:$0xff]  ;;  %v13910_v34 = vld [vmem:[%s22795_s1 + $0x280] sm:$0xff] }
 0x3a1   :  { %23213 = vst [vmem:[#allocation141_spill] sm:$0xff] %v19527_v12  ;;  %8720 = vperm.xlu0 %16325, %v13878_v2  }
 0x3a3   :  { %v19535_v25 = vpop.permute.xlu1 %7511 }
 0x3a4   :  { %23214 = vst [vmem:[#allocation142_spill] sm:$0xff] %v19535_v25  ;;  %v19537_v54 = vpop.permute.xlu0 %7506  ;;  %8735 = vperm.xlu1 %16326, %v13881_v41   ;;  %v13913_v25 = vld [vmem:[%s22795_s1 + $0x298] sm:$0xff]  ;;  %v13912_v41 = vld [vmem:[%s22795_s1 + $0x290] sm:$0xff] }
 0x3a5   :  { %23215 = vst [vmem:[#allocation143_spill] sm:$0xff] %v19537_v54  ;;  %8730 = vperm.xlu0 %16325, %v13880_v43  }
 0x3a7   :  { %v19545_v2 = vpop.permute.xlu1 %7968 }
 0x3a8   :  { %23216 = vst [vmem:[#allocation144_spill] sm:$0xff] %v19545_v2  ;;  %v19547_v12 = vpop.permute.xlu0 %7963  ;;  %9133 = vperm.xlu1 %16326, %v13911_v56   ;;  %v13915_v2 = vld [vmem:[%s22795_s1 + $0x2a8] sm:$0xff]  ;;  %v13914_v56 = vld [vmem:[%s22795_s1 + $0x2a0] sm:$0xff] }
 0x3a9   :  { %23217 = vst [vmem:[#allocation145_spill] sm:$0xff] %v19547_v12  ;;  %9128 = vperm.xlu0 %16325, %v13910_v34  }
 0x3ab   :  { %v19555_v43 = vpop.permute.xlu1 %7978 }
 0x3ac   :  { %23218 = vst [vmem:[#allocation146_spill] sm:$0xff] %v19555_v43  ;;  %v19557_v54 = vpop.permute.xlu0 %7973  ;;  %9143 = vperm.xlu1 %16326, %v13913_v25   ;;  %v13916_v25 = vld [vmem:[%s22795_s1 + $0x2b0] sm:$0xff] }
 0x3ad   :  { %23219 = vst [vmem:[#allocation147_spill] sm:$0xff] %v19557_v54  ;;  %9138 = vperm.xlu0 %16325, %v13912_v41   ;;  %v13917_v54 = vld [vmem:[%s22795_s1 + $0x2b8] sm:$0xff] }
 0x3af   :  { %v19565_v34 = vpop.permute.xlu1 %7988 }
 0x3b0   :  { %23220 = vst [vmem:[#allocation148_spill] sm:$0xff] %v19565_v34  ;;  %v19567_v12 = vpop.permute.xlu0 %7983  ;;  %9153 = vperm.xlu1 %16326, %v13915_v2   ;;  %v13919_v34 = vld [vmem:[%s22795_s1 + $0x2c8] sm:$0xff]  ;;  %v13918_v2 = vld [vmem:[%s22795_s1 + $0x2c0] sm:$0xff] }
 0x3b1   :  { %23221 = vst [vmem:[#allocation149_spill] sm:$0xff] %v19567_v12  ;;  %9148 = vperm.xlu0 %16325, %v13914_v56  }
 0x3b3   :  { %v19575_v41 = vpop.permute.xlu1 %7998 }
 0x3b4   :  { %23222 = vst [vmem:[#allocation150_spill] sm:$0xff] %v19575_v41  ;;  %v19577_v43 = vpop.permute.xlu0 %7993  ;;  %9163 = vperm.xlu1 %16326, %v13917_v54   ;;  %v13920_v54 = vld [vmem:[%s22795_s1 + $0x2d0] sm:$0xff] }
 0x3b5   :  { %23223 = vst [vmem:[#allocation151_spill] sm:$0xff] %v19577_v43  ;;  %9158 = vperm.xlu0 %16325, %v13916_v25   ;;  %v13921_v43 = vld [vmem:[%s22795_s1 + $0x2d8] sm:$0xff] }
 0x3b7   :  { %v19585_v56 = vpop.permute.xlu1 %8008 }
 0x3b8   :  { %23224 = vst [vmem:[#allocation152_spill] sm:$0xff] %v19585_v56  ;;  %v19587_v12 = vpop.permute.xlu0 %8003  ;;  %9173 = vperm.xlu1 %16326, %v13919_v34   ;;  %v13923_v56 = vld [vmem:[%s22795_s1 + $0x2e8] sm:$0xff]  ;;  %v13922_v34 = vld [vmem:[%s22795_s1 + $0x2e0] sm:$0xff] }
 0x3b9   :  { %23225 = vst [vmem:[#allocation153_spill] sm:$0xff] %v19587_v12  ;;  %9168 = vperm.xlu0 %16325, %v13918_v2  }
 0x3bb   :  { %v19595_v25 = vpop.permute.xlu1 %8018 }
 0x3bc   :  { %23226 = vst [vmem:[#allocation154_spill] sm:$0xff] %v19595_v25  ;;  %v19597_v41 = vpop.permute.xlu0 %8013  ;;  %9183 = vperm.xlu1 %16326, %v13921_v43   ;;  %v13925_v25 = vld [vmem:[%s22795_s1 + $0x2f8] sm:$0xff]  ;;  %v13924_v43 = vld [vmem:[%s22795_s1 + $0x2f0] sm:$0xff] }
 0x3bd   :  { %23227 = vst [vmem:[#allocation155_spill] sm:$0xff] %v19597_v41  ;;  %9178 = vperm.xlu0 %16325, %v13920_v54  }
 0x3bf   :  { %v19605_v2 = vpop.permute.xlu1 %8028 }
 0x3c0   :  { %23228 = vst [vmem:[#allocation156_spill] sm:$0xff] %v19605_v2  ;;  %v19607_v12 = vpop.permute.xlu0 %8023  ;;  %9193 = vperm.xlu1 %16326, %v13923_v56   ;;  %v16363_v2 = vld [vmem:[%s22799_s5 + $0xa0] sm:$0xff]   ;;  %v13941_v56 = vld [vmem:[%s22795_s1 + $0x308] sm:$0xff] }
 0x3c1   :  { %23229 = vst [vmem:[#allocation157_spill] sm:$0xff] %v19607_v12  ;;  %9188 = vperm.xlu0 %16325, %v13922_v34   ;;  %v13940_v34 = vld [vmem:[%s22795_s1 + $0x300] sm:$0xff]  ;;  %15108 = vmatprep.subr.bf16.mxu0 %v16363_v2 }
 0x3c2   :  { %15109 = vmatpush3.bf16.msra.mxu0 %v16363_v2  ;;  %v13945_v2 = vld [vmem:[%s22795_s1 + $0x328] sm:$0xff] }
 0x3c3   :  { %v19615_v54 = vpop.permute.xlu1 %8038 }
 0x3c4   :  { %23230 = vst [vmem:[#allocation158_spill] sm:$0xff] %v19615_v54  ;;  %v19617_v41 = vpop.permute.xlu0 %8033  ;;  %9203 = vperm.xlu1 %16326, %v13925_v25   ;;  %v13943_v25 = vld [vmem:[%s22795_s1 + $0x318] sm:$0xff] }
 0x3c5   :  { %23231 = vst [vmem:[#allocation159_spill] sm:$0xff] %v19617_v41  ;;  %9198 = vperm.xlu0 %16325, %v13924_v43   ;;  %v13942_v43 = vld [vmem:[%s22795_s1 + $0x310] sm:$0xff] }
 0x3c7   :  { %v19628_v12 = vpop.permute.xlu1 %7827 }
 0x3c8   :  { %23232 = vst [vmem:[#allocation160_spill] sm:$0xff] %v19628_v12  ;;  %v19630_v54 = vpop.permute.xlu0 %7822  ;;  %9423 = vperm.xlu1 %16326, %v13941_v56   ;;  %v13944_v56 = vld [vmem:[%s22795_s1 + $0x320] sm:$0xff] }
 0x3c9   :  { %23233 = vst [vmem:[#allocation161_spill] sm:$0xff] %v19630_v54  ;;  %9418 = vperm.xlu0 %16325, %v13940_v34  }
 0x3cb   :  { %v19638_v41 = vpop.permute.xlu1 %7837 }
 0x3cc   :  { %23234 = vst [vmem:[#allocation162_spill] sm:$0xff] %v19638_v41  ;;  %v19640_v6 = vpop.permute.xlu0 %7832  ;;  %9433 = vperm.xlu1 %16326, %v13943_v25   ;;  %v13947_v41 = vld [vmem:[%s22795_s1 + $0x338] sm:$0xff]  ;;  %v13946_v25 = vld [vmem:[%s22795_s1 + $0x330] sm:$0xff] }
 0x3cd   :  { %23235 = vst [vmem:[#allocation163_spill] sm:$0xff] %v19640_v6  ;;  %9428 = vperm.xlu0 %16325, %v13942_v43  }
 0x3cf   :  { %v19648_v34 = vpop.permute.xlu1 %7847 }
 0x3d0   :  { %23236 = vst [vmem:[#allocation164_spill] sm:$0xff] %v19648_v34  ;;  %v19650_v54 = vpop.permute.xlu0 %7842  ;;  %9443 = vperm.xlu1 %16326, %v13945_v2   ;;  %v13948_v2 = vld [vmem:[%s22795_s1 + $0x340] sm:$0xff] }
 0x3d1   :  { %23237 = vst [vmem:[#allocation165_spill] sm:$0xff] %v19650_v54  ;;  %9438 = vperm.xlu0 %16325, %v13944_v56   ;;  %v13949_v54 = vld [vmem:[%s22795_s1 + $0x348] sm:$0xff] }
 0x3d3   :  { %v19658_v43 = vpop.permute.xlu1 %7857 }
 0x3d4   :  { %23238 = vst [vmem:[#allocation166_spill] sm:$0xff] %v19658_v43  ;;  %v19660_v6 = vpop.permute.xlu0 %7852  ;;  %9453 = vperm.xlu1 %16326, %v13947_v41   ;;  %v13951_v43 = vld [vmem:[%s22795_s1 + $0x358] sm:$0xff]  ;;  %v16364_v41 = vld [vmem:[%s22799_s5 + $0xa8] sm:$0xff]  }
 0x3d5   :  { %23239 = vst [vmem:[#allocation167_spill] sm:$0xff] %v19660_v6  ;;  %9448 = vperm.xlu0 %16325, %v13946_v25   ;;  %v13950_v25 = vld [vmem:[%s22795_s1 + $0x350] sm:$0xff]  ;;  %15110 = vmatprep.subr.bf16.mxu0 %v16364_v41 }
 0x3d6   :  { %15111 = vmatpush3.bf16.msra.mxu0 %v16364_v41  ;;  %v13954_v41 = vld [vmem:[%s22795_s1 + $0x370] sm:$0xff] }
 0x3d7   :  { %v19668_v56 = vpop.permute.xlu1 %7867 }
 0x3d8   :  { %23240 = vst [vmem:[#allocation168_spill] sm:$0xff] %v19668_v56  ;;  %v19670_v34 = vpop.permute.xlu0 %7862  ;;  %9463 = vperm.xlu1 %16326, %v13949_v54   ;;  %v13953_v54 = vld [vmem:[%s22795_s1 + $0x368] sm:$0xff] }
 0x3d9   :  { %23241 = vst [vmem:[#allocation169_spill] sm:$0xff] %v19670_v34  ;;  %9458 = vperm.xlu0 %16325, %v13948_v2   ;;  %v13952_v2 = vld [vmem:[%s22795_s1 + $0x360] sm:$0xff] }
 0x3db   :  { %v19681_v6 = vpop.permute.xlu1 %7877 }
 0x3dc   :  { %23242 = vst [vmem:[#allocation170_spill] sm:$0xff] %v19681_v6  ;;  %v19683_v56 = vpop.permute.xlu0 %7872  ;;  %9473 = vperm.xlu1 %16326, %v13951_v43   ;;  %v13955_v43 = vld [vmem:[%s22795_s1 + $0x378] sm:$0xff] }
 0x3dd   :  { %23243 = vst [vmem:[#allocation171_spill] sm:$0xff] %v19683_v56  ;;  %9468 = vperm.xlu0 %16325, %v13950_v25  }
 0x3df   :  { %v19691_v34 = vpop.permute.xlu1 %7887 }
 0x3e0   :  { %23244 = vst [vmem:[#allocation172_spill] sm:$0xff] %v19691_v34  ;;  %v19693_v12 = vpop.permute.xlu0 %7882  ;;  %9483 = vperm.xlu1 %16326, %v13953_v54   ;;  %v13970_v54 = vld [vmem:[%s22795_s1 + $0x380] sm:$0xff] }
 0x3e1   :  { %23245 = vst [vmem:[#allocation173_spill] sm:$0xff] %v19693_v12  ;;  %9478 = vperm.xlu0 %16325, %v13952_v2   ;;  %v13971_v12 = vld [vmem:[%s22795_s1 + $0x388] sm:$0xff] }
 0x3e3   :  { %v19701_v25 = vpop.permute.xlu1 %7897 }
 0x3e4   :  { %23246 = vst [vmem:[#allocation174_spill] sm:$0xff] %v19701_v25  ;;  %v19703_v6 = vpop.permute.xlu0 %7892  ;;  %9493 = vperm.xlu1 %16326, %v13955_v43   ;;  %v13973_v25 = vld [vmem:[%s22795_s1 + $0x398] sm:$0xff]  ;;  %v19721_v43 = vld [vmem:[%s22799_s5 + $0x90] sm:$0xff]  }
 0x3e5   :  { %23247 = vst [vmem:[#allocation175_spill] sm:$0xff] %v19703_v6  ;;  %9488 = vperm.xlu0 %16325, %v13954_v41   ;;  %v13972_v41 = vld [vmem:[%s22795_s1 + $0x390] sm:$0xff]  ;;  %15128 = vmatprep.subr.bf16.mxu0 %v19721_v43 }
 0x3e7   :  { %v19711_v2 = vpop.permute.xlu1 %8375 }
 0x3e8   :  { %23248 = vst [vmem:[#allocation176_spill] sm:$0xff] %v19711_v2  ;;  %v19713_v34 = vpop.permute.xlu0 %8370  ;;  %9713 = vperm.xlu1 %16326, %v13971_v12   ;;  %v13975_v12 = vld [vmem:[%s22795_s1 + $0x3a8] sm:$0xff] }
 0x3e9   :  { %23249 = vst [vmem:[#allocation177_spill] sm:$0xff] %v19713_v34  ;;  %9708 = vperm.xlu0 %16325, %v13970_v54   ;;  %v13974_v54 = vld [vmem:[%s22795_s1 + $0x3a0] sm:$0xff] }
 0x3eb   :  { %v19726_v6 = vpop.permute.xlu1 %8385 }
 0x3ec   :  { %23250 = vst [vmem:[#allocation178_spill] sm:$0xff] %v19726_v6  ;;  %v19729_v34 = vpop.permute.xlu0 %8380  ;;  %9723 = vperm.xlu1 %16326, %v13973_v25   ;;  %v13977_v6 = vld [vmem:[%s22795_s1 + $0x3b8] sm:$0xff]  ;;  %v13976_v25 = vld [vmem:[%s22795_s1 + $0x3b0] sm:$0xff] }
 0x3ed   :  { %23251 = vst [vmem:[#allocation179_spill] sm:$0xff] %v19729_v34  ;;  %9718 = vperm.xlu0 %16325, %v13972_v41  }
 0x3ef   :  { %v19737_v2 = vpop.permute.xlu1 %8395 }
 0x3f0   :  { %23252 = vst [vmem:[#allocation180_spill] sm:$0xff] %v19737_v2  ;;  %v19739_v56 = vpop.permute.xlu0 %8390  ;;  %9733 = vperm.xlu1 %16326, %v13975_v12   ;;  %v13978_v12 = vld [vmem:[%s22795_s1 + $0x3c0] sm:$0xff] }
 0x3f1   :  { %23253 = vst [vmem:[#allocation181_spill] sm:$0xff] %v19739_v56  ;;  %9728 = vperm.xlu0 %16325, %v13974_v54   ;;  %v13979_v56 = vld [vmem:[%s22795_s1 + $0x3c8] sm:$0xff] }
 0x3f3   :  { %v19747_v41 = vpop.permute.xlu1 %8405 }
 0x3f4   :  { %23254 = vst [vmem:[#allocation182_spill] sm:$0xff] %v19747_v41  ;;  %v19749_v34 = vpop.permute.xlu0 %8400  ;;  %9743 = vperm.xlu1 %16326, %v13977_v6   ;;  %v13981_v41 = vld [vmem:[%s22795_s1 + $0x3d8] sm:$0xff]  ;;  %v13980_v6 = vld [vmem:[%s22795_s1 + $0x3d0] sm:$0xff] }
 0x3f5   :  { %23255 = vst [vmem:[#allocation183_spill] sm:$0xff] %v19749_v34  ;;  %9738 = vperm.xlu0 %16325, %v13976_v25  }
 0x3f7   :  { %v19757_v54 = vpop.permute.xlu1 %8415 }
 0x3f8   :  { %23256 = vst [vmem:[#allocation184_spill] sm:$0xff] %v19757_v54  ;;  %v19759_v2 = vpop.permute.xlu0 %8410  ;;  %9753 = vperm.xlu1 %16326, %v13979_v56   ;;  %v13982_v56 = vld [vmem:[%s22795_s1 + $0x3e0] sm:$0xff] }
 0x3f9   :  { %23257 = vst [vmem:[#allocation185_spill] sm:$0xff] %v19759_v2  ;;  %9748 = vperm.xlu0 %16325, %v13978_v12   ;;  %v13983_v2 = vld [vmem:[%s22795_s1 + $0x3e8] sm:$0xff] }
 0x3fb   :  { %v19767_v25 = vpop.permute.xlu1 %8425 }
 0x3fc   :  { %23258 = vst [vmem:[#allocation186_spill] sm:$0xff] %v19767_v25  ;;  %v19769_v34 = vpop.permute.xlu0 %8420  ;;  %9763 = vperm.xlu1 %16326, %v13981_v41   ;;  %v13985_v25 = vld [vmem:[%s22795_s1 + $0x3f8] sm:$0xff]  ;;  %v13984_v41 = vld [vmem:[%s22795_s1 + $0x3f0] sm:$0xff] }
 0x3fd   :  { %23259 = vst [vmem:[#allocation187_spill] sm:$0xff] %v19769_v34  ;;  %9758 = vperm.xlu0 %16325, %v13980_v6  }
 0x3ff   :  { %v19777_v12 = vpop.permute.xlu1 %8435 }
 0x400   :  { %23260 = vst [vmem:[#allocation188_spill] sm:$0xff] %v19777_v12  ;;  %v19779_v54 = vpop.permute.xlu0 %8430  ;;  %9773 = vperm.xlu1 %16326, %v13983_v2   ;;  %v14000_v2 = vld [vmem:[%s22795_s1 + $0x400] sm:$0xff] }
 0x401   :  { %23261 = vst [vmem:[#allocation189_spill] sm:$0xff] %v19779_v54  ;;  %9768 = vperm.xlu0 %16325, %v13982_v56   ;;  %v14001_v54 = vld [vmem:[%s22795_s1 + $0x408] sm:$0xff] }
 0x403   :  { %v19787_v6 = vpop.permute.xlu1 %8445 }
 0x404   :  { %23262 = vst [vmem:[#allocation190_spill] sm:$0xff] %v19787_v6  ;;  %v19789_v34 = vpop.permute.xlu0 %8440  ;;  %9783 = vperm.xlu1 %16326, %v13985_v25   ;;  %v14003_v6 = vld [vmem:[%s22795_s1 + $0x418] sm:$0xff]  ;;  %v14002_v25 = vld [vmem:[%s22795_s1 + $0x410] sm:$0xff] }
 0x405   :  { %23263 = vst [vmem:[#allocation191_spill] sm:$0xff] %v19789_v34  ;;  %9778 = vperm.xlu0 %16325, %v13984_v41  }
 0x407   :  { %v19797_v56 = vpop.permute.xlu1 %8665 }
 0x408   :  { %23264 = vst [vmem:[#allocation192_spill] sm:$0xff] %v19797_v56  ;;  %v19799_v12 = vpop.permute.xlu0 %8660  ;;  %10003 = vperm.xlu1 %16326, %v14001_v54   ;;  %v14004_v54 = vld [vmem:[%s22795_s1 + $0x420] sm:$0xff] }
 0x409   :  { %23265 = vst [vmem:[#allocation193_spill] sm:$0xff] %v19799_v12  ;;  %9998 = vperm.xlu0 %16325, %v14000_v2   ;;  %v14005_v12 = vld [vmem:[%s22795_s1 + $0x428] sm:$0xff] }
 0x40b   :  { %v19807_v41 = vpop.permute.xlu1 %8675 }
 0x40c   :  { %23266 = vst [vmem:[#allocation194_spill] sm:$0xff] %v19807_v41  ;;  %v19809_v34 = vpop.permute.xlu0 %8670  ;;  %10013 = vperm.xlu1 %16326, %v14003_v6   ;;  %v14007_v41 = vld [vmem:[%s22795_s1 + $0x438] sm:$0xff]  ;;  %v14006_v6 = vld [vmem:[%s22795_s1 + $0x430] sm:$0xff] }
 0x40d   :  { %23267 = vst [vmem:[#allocation195_spill] sm:$0xff] %v19809_v34  ;;  %10008 = vperm.xlu0 %16325, %v14002_v25  }
 0x40f   :  { %v19817_v2 = vpop.permute.xlu1 %8685 }
 0x410   :  { %23268 = vst [vmem:[#allocation196_spill] sm:$0xff] %v19817_v2  ;;  %v19819_v56 = vpop.permute.xlu0 %8680  ;;  %10023 = vperm.xlu1 %16326, %v14005_v12   ;;  %v14008_v12 = vld [vmem:[%s22795_s1 + $0x440] sm:$0xff] }
 0x411   :  { %23269 = vst [vmem:[#allocation197_spill] sm:$0xff] %v19819_v56  ;;  %10018 = vperm.xlu0 %16325, %v14004_v54   ;;  %v14009_v56 = vld [vmem:[%s22795_s1 + $0x448] sm:$0xff] }
 0x413   :  { %v19827_v25 = vpop.permute.xlu1 %8695 }
 0x414   :  { %23270 = vst [vmem:[#allocation198_spill] sm:$0xff] %v19827_v25  ;;  %v19829_v34 = vpop.permute.xlu0 %8690  ;;  %10033 = vperm.xlu1 %16326, %v14007_v41   ;;  %v14011_v25 = vld [vmem:[%s22795_s1 + $0x458] sm:$0xff]  ;;  %v14010_v41 = vld [vmem:[%s22795_s1 + $0x450] sm:$0xff] }
 0x415   :  { %23271 = vst [vmem:[#allocation199_spill] sm:$0xff] %v19829_v34  ;;  %10028 = vperm.xlu0 %16325, %v14006_v6  }
 0x417   :  { %v19837_v54 = vpop.permute.xlu1 %8705 }
 0x418   :  { %23272 = vst [vmem:[#allocation200_spill] sm:$0xff] %v19837_v54  ;;  %v19839_v2 = vpop.permute.xlu0 %8700  ;;  %10043 = vperm.xlu1 %16326, %v14009_v56   ;;  %v14012_v56 = vld [vmem:[%s22795_s1 + $0x460] sm:$0xff] }
 0x419   :  { %23273 = vst [vmem:[#allocation201_spill] sm:$0xff] %v19839_v2  ;;  %10038 = vperm.xlu0 %16325, %v14008_v12   ;;  %v14013_v2 = vld [vmem:[%s22795_s1 + $0x468] sm:$0xff] }
 0x41b   :  { %v19847_v6 = vpop.permute.xlu1 %8715 }
 0x41c   :  { %23274 = vst [vmem:[#allocation202_spill] sm:$0xff] %v19847_v6  ;;  %v19849_v34 = vpop.permute.xlu0 %8710  ;;  %10053 = vperm.xlu1 %16326, %v14011_v25   ;;  %v16443_v25 = vld [vmem:[%s22795_s1 + $0x478] sm:$0xff] }
 0x41d   :  { %23275 = vst [vmem:[#allocation203_spill] sm:$0xff] %v19849_v34  ;;  %10048 = vperm.xlu0 %16325, %v14010_v41   ;;  %v16444_v41 = vld [vmem:[%s22795_s1 + $0x470] sm:$0xff] }
 0x41f   :  { %v19857_v12 = vpop.permute.xlu1 %8725 }
 0x420   :  { %23276 = vst [vmem:[#allocation204_spill] sm:$0xff] %v19857_v12  ;;  %v19859_v54 = vpop.permute.xlu0 %8720  ;;  %10063 = vperm.xlu1 %16326, %v14013_v2   ;;  %v16445_v2 = vld [vmem:[%s22795_s1 + $0x88] sm:$0xff] }
 0x421   :  { %23277 = vst [vmem:[#allocation205_spill] sm:$0xff] %v19859_v54  ;;  %10058 = vperm.xlu0 %16325, %v14012_v56   ;;  %v16446_v56 = vld [vmem:[%s22795_s1 + $0x80] sm:$0xff] }
 0x423   :  { %v19861_v40 = vpop.permute.xlu1 %8735 }
 0x424   :  { %23278 = vst [vmem:[#allocation206_spill] sm:$0xff] %v19861_v40  ;;  %v19863_v6 = vpop.permute.xlu0 %8730  ;;  %10073 = vperm.xlu1 %16326, %v16443_v25  }
 0x425   :  { %23279 = vst [vmem:[#allocation207_spill] sm:$0xff] %v19863_v6  ;;  %10068 = vperm.xlu0 %16325, %v16444_v41   ;;  %v14117_v6 = vld [vmem:[%s22795_s1 + $0x1c8] sm:$0xff] }
 0x427   :  { %v19871_v34 = vpop.permute.xlu1 %9133 }
 0x428   :  { %23280 = vst [vmem:[#allocation208_spill] sm:$0xff] %v19871_v34  ;;  %v19873_v12 = vpop.permute.xlu0 %9128  ;;  %10514 = vperm.xlu1 %16326, %v16445_v2  }
 0x429   :  { %23281 = vst [vmem:[#allocation209_spill] sm:$0xff] %v19873_v12  ;;  %10509 = vperm.xlu0 %16325, %v16446_v56  }
 0x42b   :  { %v19881_v25 = vpop.permute.xlu1 %9143 }
 0x42c   :  { %23282 = vst [vmem:[#allocation210_spill] sm:$0xff] %v19881_v25  ;;  %v19883_v40 = vpop.permute.xlu0 %9138  ;;  %10524 = vperm.xlu1 %16326, %v19022_v11  }
 0x42d   :  { %23283 = vst [vmem:[#allocation211_spill] sm:$0xff] %v19883_v40  ;;  %10519 = vperm.xlu0 %16325, %v19027_v16  }
 0x42f   :  { %v19887_v41 = vpop.permute.xlu1 %9153 }
 0x430   :  { %23284 = vst [vmem:[#allocation212_spill] sm:$0xff] %v19887_v41  ;;  %v19889_v34 = vpop.permute.xlu0 %9148  ;;  %10534 = vperm.xlu1 %16326, %v19042_v47  }
 0x431   :  { %23285 = vst [vmem:[#allocation213_spill] sm:$0xff] %v19889_v34  ;;  %10529 = vperm.xlu0 %16325, %v19047_v15  }
 0x433   :  { %v19893_v2 = vpop.permute.xlu1 %9163 }
 0x434   :  { %23286 = vst [vmem:[#allocation214_spill] sm:$0xff] %v19893_v2  ;;  %v19895_v12 = vpop.permute.xlu0 %9158  ;;  %10544 = vperm.xlu1 %16326, %v19066_v24  }
 0x435   :  { %23287 = vst [vmem:[#allocation215_spill] sm:$0xff] %v19895_v12  ;;  %10539 = vperm.xlu0 %16325, %v19071_v21  }
 0x437   :  { %v19899_v56 = vpop.permute.xlu1 %9173 }
 0x438   :  { %23288 = vst [vmem:[#allocation216_spill] sm:$0xff] %v19899_v56  ;;  %v19901_v11 = vpop.permute.xlu0 %9168  ;;  %10554 = vperm.xlu1 %16326, %v19084_v23  }
 0x439   :  { %23289 = vst [vmem:[#allocation217_spill] sm:$0xff] %v19901_v11  ;;  %10549 = vperm.xlu0 %16325, %v19089_v61   ;;  %v23345_v11 = vld [vmem:[#allocation20_spill] sm:$0xff] }
 0x43b   :  { %v19905_v16 = vpop.permute.xlu1 %9183 }
 0x43c   :  { %23290 = vst [vmem:[#allocation218_spill] sm:$0xff] %v19905_v16  ;;  %v19907_v47 = vpop.permute.xlu0 %9178  ;;  %10564 = vperm.xlu1 %16326, %v19106_v39   ;;  %v23333_v16 = vld [vmem:[#allocation13_spill] sm:$0xff] }
 0x43d   :  { %23291 = vst [vmem:[#allocation219_spill] sm:$0xff] %v19907_v47  ;;  %10559 = vperm.xlu0 %16325, %v19111_v52  }
 0x43f   :  { %v19911_v15 = vpop.permute.xlu1 %9193 }
 0x440   :  { %23292 = vst [vmem:[#allocation220_spill] sm:$0xff] %v19911_v15  ;;  %v19913_v24 = vpop.permute.xlu0 %9188  ;;  %10574 = vperm.xlu1 %16326, %v19127_v32  }
 0x441   :  { %23293 = vst [vmem:[#allocation221_spill] sm:$0xff] %v19913_v24  ;;  %10569 = vperm.xlu0 %16325, %v19133_v1  }
 0x443   :  { %v19917_v21 = vpop.permute.xlu1 %9203 }
 0x444   :  { %23294 = vst [vmem:[#allocation222_spill] sm:$0xff] %v19917_v21  ;;  %v19919_v23 = vpop.permute.xlu0 %9198  ;;  %10584 = vperm.xlu1 %16326, %v19157_v30   ;;  %v19938_v30 = vld [vmem:[%s22800_s6] ss:$0 sm:$0xff] }
 0x445   :  { %23295 = vst [vmem:[#allocation223_spill] sm:$0xff] %v19919_v23  ;;  %10579 = vperm.xlu0 %16325, %v19162_v55   ;;  %v19943_v55 = vld [vmem:[%s22801_s7] ss:$0 sm:$0xff] }
 0x447   :  { %v19923_v61 = vpop.permute.xlu1 %9423 }
 0x448   :  { %23296 = vst [vmem:[#allocation224_spill] sm:$0xff] %v19923_v61  ;;  %v19925_v39 = vpop.permute.xlu0 %9418  ;;  %10373 = vperm.xlu1 %16326, %v19176_v26  }
 0x449   :  { %23297 = vst [vmem:[#allocation225_spill] sm:$0xff] %v19925_v39  ;;  %10368 = vperm.xlu0 %16325, %v19181_v51  }
 0x44b   :  { %v19929_v52 = vpop.permute.xlu1 %9433 }
 0x44c   :  { %23298 = vst [vmem:[#allocation226_spill] sm:$0xff] %v19929_v52  ;;  %v19931_v32 = vpop.permute.xlu0 %9428  ;;  %10383 = vperm.xlu1 %16326, %v19200_v53  }
 0x44d   :  { %23299 = vst [vmem:[#allocation227_spill] sm:$0xff] %v19931_v32  ;;  %10378 = vperm.xlu0 %16325, %v19205_v17  }
 0x44f   :  { %v15094_v1 = vpop.f32.mrb[16].mxu1  ;;  %v19945_v26 = vpop.permute.xlu1 %9443 }
 0x450   :  { %23300 = vst [vmem:[#allocation228_spill] sm:$0xff] %v19945_v26  ;;  %v5157_v51 = vmul.f32 %v15094_v1, %v19938_v30  ;;  %v19948_v32 = vpop.permute.xlu0 %9438  ;;  %v5069_v53 = vpop.f32.mrb[17].mxu1  ;;  %10393 = vperm.xlu1 %16326, %v19218_v29  }
 0x451   :  { %23301 = vst [vmem:[#allocation229_spill] sm:$0xff] %v19948_v32  ;;  %v5155_v17 = vmul.f32 %v19938_v30, %v5069_v53  ;;  %10388 = vperm.xlu0 %16325, %v19223_v45   ;;  %v15095_v52 = vpop.f32.mrb[18].mxu1 }
 0x452   :  { %v5180_v61 = vadd.f32 %v19943_v55, %v5157_v51  ;;  %v5158_v39 = vmul.f32 %v15095_v52, %v19938_v30  ;;  %v5072_v21 = vpop.f32.mrb[19].mxu1 }
 0x453   :  { %v5178_v23 = vadd.f32 %v19943_v55, %v5155_v17  ;;  %v5156_v26 = vmul.f32 %v19938_v30, %v5072_v21  ;;  %v19957_v1 = vpop.permute.xlu1 %9453 }
 0x454   :  { %23302 = vst [vmem:[#allocation230_spill] sm:$0xff] %v19957_v1  ;;  %v5196_v32 = vmax.f32 %v5180_v61, 0.0  ;;  %v5181_v47 = vadd.f32 %v19943_v55, %v5158_v39  ;;  %v19960_v29 = vpop.permute.xlu0 %9448  ;;  %10403 = vperm.xlu1 %16326, %v19239_v42   ;;  %v14089_v1 = vld [vmem:[%s22795_s1 + $0x158] sm:$0xff] }
 0x455   :  { %23303 = vst [vmem:[#allocation231_spill] sm:$0xff] %v19960_v29  ;;  %v5194_v45 = vmax.f32 %v5178_v23, 0.0  ;;  %v5179_v53 = vadd.f32 %v19943_v55, %v5156_v26  ;;  %10398 = vperm.xlu0 %16325, %v19244_v60  }
 0x456   :  { %5212 = vst.msk [vmem:[#allocation3 + $0x20] sm:$0xff] %vm88_vm2, %v5196_v32  ;;  %v5197_v52 = vmax.f32 %v5181_v47, 0.0 }
 0x457   :  { %5210 = vst.msk [vmem:[#allocation3 + $0x10] sm:$0xff] %vm88_vm2, %v5194_v45  ;;  %v5195_v21 = vmax.f32 %v5179_v53, 0.0  ;;  %v15098_v51 = vpop.f32.mrb[20].mxu1  ;;  %v19969_v39 = vpop.permute.xlu1 %9463 }
 0x458   :  { %5213 = vst.msk [vmem:[#allocation3 + $0x28] sm:$0xff] %vm88_vm2, %v5197_v52  ;;  %v5161_v61 = vmul.f32 %v15098_v51, %v19938_v30  ;;  %23304 = vst [vmem:[#allocation232_spill] sm:$0xff] %v19969_v39  ;;  %v5085_v17 = vpop.f32.mrb[21].mxu1  ;;  %10413 = vperm.xlu1 %16326, %v19257_v50   ;;  %v19973_v42 = vpop.permute.xlu0 %9458  ;;  %v5367_v52 = vld [vmem:[#allocation3 + $0x8] sm:$0xff] }
 0x459   :  { %5211 = vst.msk [vmem:[#allocation3 + $0x18] sm:$0xff] %vm88_vm2, %v5195_v21  ;;  %23305 = vst [vmem:[#allocation233_spill] sm:$0xff] %v19973_v42  ;;  %v5159_v60 = vmul.f32 %v19938_v30, %v5085_v17  ;;  %10408 = vperm.xlu0 %16325, %v19264_v27   ;;  %v15099_v47 = vpop.f32.mrb[22].mxu1 }
 0x45a   :  { %v5184_v23 = vadd.f32 %v19943_v55, %v5161_v61  ;;  %v5162_v32 = vmul.f32 %v15099_v47, %v19938_v30  ;;  %v5088_v26 = vpop.f32.mrb[23].mxu1 }
 0x45b   :  { %v5182_v45 = vadd.f32 %v19943_v55, %v5159_v60  ;;  %v5160_v53 = vmul.f32 %v19938_v30, %v5088_v26  ;;  %v19986_v61 = vpop.permute.xlu1 %9473  ;;  %v23307_v26 = vld [vmem:[#allocation99_spill] sm:$0xff] }
 0x45c   :  { %v5200_v50 = vmax.f32 %v5184_v23, 0.0  ;;  %v5185_v21 = vadd.f32 %v19943_v55, %v5162_v32  ;;  %10423 = vperm.xlu1 %16326, %v19277_v63   ;;  %23306 = vst [vmem:[#allocation234_spill] sm:$0xff] %v19986_v61  ;;  %v5479_v23 = vmul.f32 %v23307_v26, %v5367_v52  ;;  %v19994_v63 = vpop.permute.xlu0 %9468  ;;  %v23310_v26 = vld [vmem:[#allocation101_spill] sm:$0xff] }
 0x45d   :  { %v5198_v51 = vmax.f32 %v5182_v45, 0.0  ;;  %v5183_v17 = vadd.f32 %v19943_v55, %v5160_v53  ;;  %10418 = vperm.xlu0 %16325, %v19282_v13   ;;  %v19990_v60 = vld [vmem:[#allocation3 + $0x20] sm:$0xff]  ;;  %23308 = vst [vmem:[#allocation99_spill] sm:$0xff] %v19994_v63  ;;  %v23309_v53 = vld [vmem:[#allocation98_spill] sm:$0xff] }
 0x45e   :  { %5216 = vst.msk [vmem:[#allocation3 + $0x40] sm:$0xff] %vm88_vm2, %v5200_v50  ;;  %v5201_v27 = vmax.f32 %v5185_v21, 0.0  ;;  %v19988_v47 = vld [vmem:[#allocation3 + $0x10] sm:$0xff] }
 0x45f   :  { %5214 = vst.msk [vmem:[#allocation3 + $0x30] sm:$0xff] %vm88_vm2, %v5198_v51  ;;  %v5199_v32 = vmax.f32 %v5183_v17, 0.0  ;;  %v15102_v45 = vpop.f32.mrb[24].mxu1  ;;  %v5480_v13 = vmul.f32 %v23309_v53, %v19988_v47 }
 0x460   :  { %5217 = vst.msk [vmem:[#allocation3 + $0x48] sm:$0xff] %vm88_vm2, %v5201_v27  ;;  %v5165_v50 = vmul.f32 %v15102_v45, %v19938_v30  ;;  %v5101_v21 = vpop.f32.mrb[25].mxu1  ;;  %10433 = vperm.xlu1 %16326, %v19298_v48   ;;  %v20001_v61 = vld [vmem:[#allocation3 + $0x18] sm:$0xff] }
 0x461   :  { %5215 = vst.msk [vmem:[#allocation3 + $0x38] sm:$0xff] %vm88_vm2, %v5199_v32  ;;  %v5163_v52 = vmul.f32 %v19938_v30, %v5101_v21  ;;  %10428 = vperm.xlu0 %16325, %v19305_v28   ;;  %v15103_v51 = vpop.f32.mrb[26].mxu1  ;;  %v5495_v17 = vpack.c.bf16 %v5480_v13, %v5479_v23  ;;  %v5481_v53 = vmul.f32 %v23310_v26, %v20001_v61  ;;  %v23311_v27 = vld [vmem:[#allocation100_spill] sm:$0xff]  ;;  %v20018_v21 = vpop.permute.xlu1 %9483  ;;  %v20280_v54 = vld [vmem:[#allocation3 + $0x11] sm:$0xff] }
 0x462   :  { %v5482_v63 = vmul.f32 %v23311_v27, %v19990_v60  ;;  %v5188_v45 = vadd.f32 %v19943_v55, %v5165_v50  ;;  %v5166_v48 = vmul.f32 %v15103_v51, %v19938_v30  ;;  %v5104_v29 = vpop.f32.mrb[27].mxu1  ;;  %v16366_v23 = vld [vmem:[%s22799_s5 + $0x98] sm:$0xff]   ;;  %23312 = vst [vmem:[#allocation98_spill] sm:$0xff] %v20018_v21  ;;  %v20022_v50 = vld [vmem:[#allocation3 + $0x28] sm:$0xff]  ;;  %v20024_v51 = vpop.permute.xlu0 %9478 }
 0x463   :  { %v5186_v39 = vadd.f32 %v19943_v55, %v5163_v52  ;;  %v5164_v32 = vmul.f32 %v19938_v30, %v5104_v29  ;;  %15112 = vmatprep.mubr.msk.bf16.mxu0 %vm88_vm2, %v5495_v17  ;;  %23313 = vst [vmem:[#allocation101_spill] sm:$0xff] %v20024_v51  ;;  %v20156_v12 = vld [vmem:[#allocation3 + $0x1f] sm:$0xff] }
 0x464   :  { %v5496_v28 = vpack.c.bf16 %v5482_v63, %v5481_v53  ;;  %v5204_v13 = vmax.f32 %v5188_v45, 0.0  ;;  %v5189_v26 = vadd.f32 %v19943_v55, %v5166_v48  ;;  %10443 = vperm.xlu1 %16326, %v19319_v10   ;;  %v20303_v33 = vld [vmem:[#allocation3 + $0x19] sm:$0xff] }
 0x465   :  { %v5202_v52 = vmax.f32 %v5186_v39, 0.0  ;;  %v5187_v29 = vadd.f32 %v19943_v55, %v5164_v32  ;;  %10438 = vperm.xlu0 %16325, %v19324_v18   ;;  %v20033_v53 = vld [vmem:[#allocation3 + $0x40] sm:$0xff]  ;;  %v23314_v39 = vld [vmem:[#allocation103_spill] sm:$0xff]  ;;  %v23315_v18 = vld [vmem:[#allocation102_spill] sm:$0xff]  ;;  %v20060_v21 = vpop.permute.xlu1 %9493 }
 0x466   :  { %15113 = vmatmul.mubr.msk.bf16.vlgmr.msra.gmra.mrb[16].mxu0 %vm88_vm2, %v5496_v28  ;;  %5220 = vst.msk [vmem:[#allocation3 + $0x60] sm:$0xff] %vm88_vm2, %v5204_v13  ;;  %v5205_v63 = vmax.f32 %v5189_v26, 0.0  ;;  %v20031_v17 = vld [vmem:[#allocation3 + $0x30] sm:$0xff]  ;;  %v5483_v45 = vmul.f32 %v23314_v39, %v20022_v50  ;;  %v14081_v39 = vld [vmem:[%s22795_s1 + $0x118] sm:$0xff]  ;;  %23318 = vst [vmem:[#allocation100_spill] sm:$0xff] %v20060_v21 }
 0x467   :  { %15129 = vmatpush3.bf16.msra.mxu0 %v19721_v43  ;;  %5218 = vst.msk [vmem:[#allocation3 + $0x50] sm:$0xff] %vm88_vm2, %v5202_v52  ;;  %v5203_v10 = vmax.f32 %v5187_v29, 0.0  ;;  %v15106_v27 = vpop.f32.mrb[28].mxu1  ;;  %v5484_v48 = vmul.f32 %v23315_v18, %v20031_v17  ;;  %v20043_v32 = vld [vmem:[%s22799_s5 + $0xb0] sm:$0xff]   ;;  %v23317_v18 = vld [vmem:[#allocation104_spill] sm:$0xff]  ;;  %v20074_v21 = vld [vmem:[#allocation3 + $0x48] sm:$0xff] }
 0x468   :  { %15130 = vmatprep.subr.bf16.mxu0 %v16366_v23  ;;  %5221 = vst.msk [vmem:[#allocation3 + $0x68] sm:$0xff] %vm88_vm2, %v5205_v63  ;;  %v5169_v43 = vmul.f32 %v15106_v27, %v19938_v30  ;;  %v5117_v28 = vpop.f32.mrb[29].mxu1  ;;  %10921 = vperm.xlu1 %16326, %v19337_v58   ;;  %v20048_v13 = vld [vmem:[#allocation3 + $0x38] sm:$0xff]  ;;  %v23316_v63 = vld [vmem:[#allocation105_spill] sm:$0xff]  ;;  %v5486_v58 = vmul.f32 %v23317_v18, %v20033_v53 }
 0x469   :  { %5219 = vst.msk [vmem:[#allocation3 + $0x58] sm:$0xff] %vm88_vm2, %v5203_v10  ;;  %v5167_v26 = vmul.f32 %v19938_v30, %v5117_v28  ;;  %10916 = vperm.xlu0 %16325, %v19342_v19   ;;  %v15107_v52 = vpop.f32.mrb[30].mxu1  ;;  %v5497_v29 = vpack.c.bf16 %v5484_v48, %v5483_v45  ;;  %v5485_v27 = vmul.f32 %v23316_v63, %v20048_v13  ;;  %v14080_v19 = vld [vmem:[%s22795_s1 + $0x110] sm:$0xff]  ;;  %v20067_v45 = vpop.permute.xlu0 %9488  ;;  %v20195_v56 = vld [vmem:[#allocation3 + $0x3f] sm:$0xff] }
 0x46a   :  { %v5192_v10 = vadd.f32 %v19943_v55, %v5169_v43  ;;  %v5170_v28 = vmul.f32 %v15107_v52, %v19938_v30  ;;  %v5120_v51 = vpop.f32.mrb[31].mxu1  ;;  %23319 = vst [vmem:[#allocation103_spill] sm:$0xff] %v20067_v45 }
 0x46b   :  { %15131 = vmatpush3.bf16.msra.mxu0 %v16366_v23  ;;  %v5190_v48 = vadd.f32 %v19943_v55, %v5167_v26  ;;  %v5168_v63 = vmul.f32 %v19938_v30, %v5120_v51  ;;  %15116 = vmatprep.mubr.msk.bf16.mxu0 %vm88_vm2, %v5497_v29  ;;  %v5498_v18 = vpack.c.bf16 %v5486_v58, %v5485_v27  ;;  %v14083_v30 = vld [vmem:[%s22795_s1 + $0x128] sm:$0xff]  ;;  %v14082_v26 = vld [vmem:[%s22795_s1 + $0x120] sm:$0xff]  ;;  %v23320_v27 = vld [vmem:[#allocation107_spill] sm:$0xff] }
 0x46c   :  { %15148 = vmatprep.subr.bf16.mxu0 %v20043_v32  ;;  %v5208_v43 = vmax.f32 %v5192_v10, 0.0  ;;  %v5193_v52 = vadd.f32 %v19943_v55, %v5170_v28  ;;  %10931 = vperm.xlu1 %16326, %v14081_v39   ;;  %v5487_v58 = vmul.f32 %v23320_v27, %v20074_v21  ;;  %v23321_v10 = vld [vmem:[#allocation106_spill] sm:$0xff] }
 0x46d   :  { %v5206_v42 = vmax.f32 %v5190_v48, 0.0  ;;  %v5191_v23 = vadd.f32 %v19943_v55, %v5168_v63  ;;  %10926 = vperm.xlu0 %16325, %v14080_v19   ;;  %v20087_v39 = vld [vmem:[#allocation3 + $0x60] sm:$0xff]  ;;  %v20094_v19 = vpop.permute.xlu1 %9713  ;;  %v20099_v63 = vpop.permute.xlu0 %9708 }
 0x46e   :  { %15117 = vmatmul.mubr.msk.bf16.gmra.mrb[20].mxu0 %vm88_vm2, %v5498_v18  ;;  %5224 = vst.msk [vmem:[#allocation3 + $0x80] sm:$0xff] %vm88_vm2, %v5208_v43  ;;  %v5209_v51 = vmax.f32 %v5193_v52, 0.0  ;;  %v20085_v29 = vld [vmem:[#allocation3 + $0x50] sm:$0xff]  ;;  %23322 = vst [vmem:[#allocation102_spill] sm:$0xff] %v20094_v19  ;;  %v14085_v18 = vld [vmem:[%s22795_s1 + $0x138] sm:$0xff] }
 0x46f   :  { %5222 = vst.msk [vmem:[#allocation3 + $0x70] sm:$0xff] %vm88_vm2, %v5206_v42  ;;  %v5207_v55 = vmax.f32 %v5191_v23, 0.0  ;;  %v5488_v28 = vmul.f32 %v23321_v10, %v20085_v29  ;;  %23323 = vst [vmem:[#allocation105_spill] sm:$0xff] %v20099_v63  ;;  %v23324_v43 = vld [vmem:[#allocation109_spill] sm:$0xff]  ;;  %v23325_v23 = vld [vmem:[#allocation108_spill] sm:$0xff] }
 0x470   :  { %5225 = vst.msk [vmem:[#allocation3 + $0x88] sm:$0xff] %vm88_vm2, %v5209_v51  ;;  %10941 = vperm.xlu1 %16326, %v14083_v30   ;;  %v20097_v48 = vld [vmem:[#allocation3 + $0x58] sm:$0xff]  ;;  %v5490_v27 = vmul.f32 %v23325_v23, %v20087_v39  ;;  %v14084_v30 = vld [vmem:[%s22795_s1 + $0x130] sm:$0xff]  ;;  %v20385_v14 = vld [vmem:[#allocation3 + $0x61] sm:$0xff] }
 0x471   :  { %5223 = vst.msk [vmem:[#allocation3 + $0x78] sm:$0xff] %vm88_vm2, %v5207_v55  ;;  %10936 = vperm.xlu0 %16325, %v14082_v26   ;;  %v5499_v42 = vpack.c.bf16 %v5488_v28, %v5487_v58  ;;  %v5489_v52 = vmul.f32 %v23324_v43, %v20097_v48  ;;  %v20113_v26 = vld [vmem:[#allocation3 + $0x68] sm:$0xff]  ;;  %v20121_v10 = vpop.permute.xlu1 %9723  ;;  %v14086_v28 = vld [vmem:[%s22795_s1 + $0x140] sm:$0xff]  ;;  %v23328_v23 = vld [vmem:[#allocation11_spill] sm:$0xff] }
 0x472   :  { %v14087_v55 = vld [vmem:[%s22795_s1 + $0x148] sm:$0xff]  ;;  %23326 = vst [vmem:[#allocation104_spill] sm:$0xff] %v20121_v10  ;;  %v20348_v62 = vld [vmem:[#allocation3 + $0x51] sm:$0xff] }
 0x473   :  { %15120 = vmatprep.mubr.msk.bf16.mxu0 %vm88_vm2, %v5499_v42  ;;  %v5500_v51 = vpack.c.bf16 %v5490_v27, %v5489_v52  ;;  %v20119_v58 = vld [vmem:[#allocation3 + $0xf] sm:$0xff]  ;;  %v5226_v43 = vld [vmem:[#allocation3 + $0x7] sm:$0xff]  ;;  %v20130_v52 = vpop.permute.xlu0 %9718  ;;  %v5491_v27 = vmul.f32 %v23328_v23, %v20113_v26  ;;  %v23332_v23 = vld [vmem:[#allocation12_spill] sm:$0xff] }
 0x474   :  { %10951 = vperm.xlu1 %16326, %v14085_v18   ;;  %23327 = vst [vmem:[#allocation107_spill] sm:$0xff] %v20130_v52  ;;  %v23330_v10 = vld [vmem:[#allocation14_spill] sm:$0xff] }
 0x475   :  { %10946 = vperm.xlu0 %16325, %v14084_v30   ;;  %v20128_v18 = vld [vmem:[#allocation3 + $0x80] sm:$0xff]  ;;  %v23329_v30 = vld [vmem:[#allocation10_spill] sm:$0xff]  ;;  %v5339_v63 = vmul.f32 %v23330_v10, %v20119_v58 }
 0x476   :  { %15121 = vmatmul.mubr.msk.bf16.gmra.mrb[24].mxu0 %vm88_vm2, %v5500_v51  ;;  %v20126_v42 = vld [vmem:[#allocation3 + $0x70] sm:$0xff]  ;;  %v5494_v24 = vmul.f32 %v23332_v23, %v20128_v18  ;;  %v20174_v23 = vld [vmem:[#allocation3 + $0x27] sm:$0xff] }
 0x477   :  { %v5492_v51 = vmul.f32 %v23329_v30, %v20126_v42  ;;  %v23331_v52 = vld [vmem:[#allocation110_spill] sm:$0xff]  ;;  %v5338_v30 = vmul.f32 %v23333_v16, %v5226_v43 }
 0x478   :  { %10961 = vperm.xlu1 %16326, %v14087_v55   ;;  %v20136_v19 = vld [vmem:[#allocation3 + $0x78] sm:$0xff]  ;;  %v14088_v55 = vld [vmem:[%s22795_s1 + $0x150] sm:$0xff]  ;;  %v14091_v16 = vld [vmem:[%s22795_s1 + $0x168] sm:$0xff] }
 0x479   :  { %10956 = vperm.xlu0 %16325, %v14086_v28   ;;  %v5501_v45 = vpack.c.bf16 %v5492_v51, %v5491_v27  ;;  %v5493_v15 = vmul.f32 %v23331_v52, %v20136_v19  ;;  %v20152_v28 = vpop.permute.xlu1 %9733  ;;  %v5354_v27 = vpack.c.bf16 %v5339_v63, %v5338_v30  ;;  %v20154_v51 = vld [vmem:[#allocation3 + $0x17] sm:$0xff]  ;;  %v20158_v52 = vpop.permute.xlu0 %9728  ;;  %v20164_v43 = vld [vmem:[#allocation3 + $0x2f] sm:$0xff] }
 0x47a   :  { %23334 = vst [vmem:[#allocation106_spill] sm:$0xff] %v20152_v28  ;;  %23335 = vst [vmem:[#allocation109_spill] sm:$0xff] %v20158_v52  ;;  %v23338_v30 = vld [vmem:[#allocation18_spill] sm:$0xff]  ;;  %v20193_v52 = vld [vmem:[#allocation3 + $0x37] sm:$0xff] }
 0x47b   :  { %15124 = vmatprep.mubr.msk.bf16.mxu0 %vm88_vm2, %v5501_v45  ;;  %v5502_v10 = vpack.c.bf16 %v5494_v24, %v5493_v15  ;;  %v14090_v15 = vld [vmem:[%s22795_s1 + $0x160] sm:$0xff]  ;;  %v23337_v45 = vld [vmem:[#allocation15_spill] sm:$0xff] }
 0x47c   :  { %10971 = vperm.xlu1 %16326, %v14089_v1   ;;  %v23336_v24 = vld [vmem:[#allocation16_spill] sm:$0xff]  ;;  %v5341_v63 = vmul.f32 %v23337_v45, %v20156_v12  ;;  %v5342_v45 = vmul.f32 %v18680_v36, %v20174_v23  ;;  %v14109_v36 = vld [vmem:[%s22795_s1 + $0x188] sm:$0xff] }
 0x47d   :  { %10966 = vperm.xlu0 %16325, %v14088_v55   ;;  %v5340_v1 = vmul.f32 %v23336_v24, %v20154_v51  ;;  %v5343_v55 = vmul.f32 %v23338_v30, %v20164_v43  ;;  %v14092_v24 = vld [vmem:[%s22795_s1 + $0x170] sm:$0xff]  ;;  %v20188_v28 = vpop.permute.xlu0 %9738 }
 0x47e   :  { %15125 = vmatmul.mubr.msk.bf16.gmra.mrb[28].mxu0 %vm88_vm2, %v5502_v10  ;;  %v14093_v10 = vld [vmem:[%s22795_s1 + $0x178] sm:$0xff]  ;;  %23340 = vst [vmem:[#allocation11_spill] sm:$0xff] %v20188_v28  ;;  %v20242_v40 = vld [vmem:[#allocation3 + $0x6f] sm:$0xff] }
 0x47f   :  { %15132 = vmatprep.mubr.msk.bf16.mxu0 %vm88_vm2, %v5354_v27  ;;  %v20181_v27 = vpop.permute.xlu1 %9743  ;;  %v5356_v30 = vpack.c.bf16 %v5343_v55, %v5342_v45  ;;  %v23341_v55 = vld [vmem:[#allocation17_spill] sm:$0xff]  ;;  %v20270_v25 = vld [vmem:[#allocation3 + $0x77] sm:$0xff] }
 0x480   :  { %10981 = vperm.xlu1 %16326, %v14091_v16   ;;  %23339 = vst [vmem:[#allocation108_spill] sm:$0xff] %v20181_v27  ;;  %v5355_v16 = vpack.c.bf16 %v5341_v63, %v5340_v1  ;;  %v20201_v27 = vld [vmem:[#allocation3 + $0x4f] sm:$0xff]  ;;  %v14108_v1 = vld [vmem:[%s22795_s1 + $0x180] sm:$0xff]  ;;  %v5344_v63 = vmul.f32 %v18692_v20, %v20193_v52  ;;  %v14111_v20 = vld [vmem:[%s22795_s1 + $0x198] sm:$0xff] }
 0x481   :  { %10976 = vperm.xlu0 %16325, %v14090_v15   ;;  %v16368_v15 = vld [vmem:[%s22799_s5 + $0xb8] sm:$0xff]   ;;  %v20217_v45 = vld [vmem:[%s22799_s5 + $0xc0] sm:$0xff]   ;;  %v20223_v28 = vpop.permute.xlu0 %9748 }
 0x482   :  { %23344 = vst [vmem:[#allocation14_spill] sm:$0xff] %v20223_v28  ;;  %v14113_v28 = vld [vmem:[%s22795_s1 + $0x1a8] sm:$0xff] }
 0x484   :  { %10991 = vperm.xlu1 %16326, %v14093_v10   ;;  %v5345_v10 = vmul.f32 %v23341_v55, %v20195_v56  ;;  %v14110_v55 = vld [vmem:[%s22795_s1 + $0x190] sm:$0xff] }
 0x485   :  { %10986 = vperm.xlu0 %16325, %v14092_v24   ;;  %v20212_v24 = vld [vmem:[#allocation3 + $0x47] sm:$0xff] }
 0x486   :  { %15133 = vmatmul.mubr.msk.bf16.vlgmr.msra.gmra.mrb[16].mxu0 %vm88_vm2, %v5355_v16  ;;  %v23343_v16 = vld [vmem:[#allocation19_spill] sm:$0xff]  ;;  %v5346_v2 = vmul.f32 %v23345_v11, %v20212_v24 }
 0x487   :  { %15149 = vmatpush3.bf16.msra.mxu0 %v20043_v32  ;;  %15136 = vmatprep.mubr.msk.bf16.mxu0 %vm88_vm2, %v5356_v30  ;;  %v20219_v32 = vpop.permute.xlu1 %9753  ;;  %v5347_v30 = vmul.f32 %v23343_v16, %v20201_v27  ;;  %v20234_v16 = vld [vmem:[#allocation3 + $0x57] sm:$0xff] }
 0x488   :  { %15150 = vmatprep.subr.bf16.mxu0 %v16368_v15  ;;  %23342 = vst [vmem:[#allocation10_spill] sm:$0xff] %v20219_v32  ;;  %11211 = vperm.xlu1 %16326, %v14109_v36   ;;  %v5357_v32 = vpack.c.bf16 %v5345_v10, %v5344_v63  ;;  %v23348_v63 = vld [vmem:[#allocation21_spill] sm:$0xff] }
 0x489   :  { %11206 = vperm.xlu0 %16325, %v14108_v1   ;;  %v5358_v36 = vpack.c.bf16 %v5347_v30, %v5346_v2  ;;  %v20236_v1 = vld [vmem:[#allocation3 + $0x5f] sm:$0xff]  ;;  %v5348_v10 = vmul.f32 %v23348_v63, %v20234_v16 }
 0x48a   :  { %v14112_v2 = vld [vmem:[%s22795_s1 + $0x1a0] sm:$0xff] }
 0x48b   :  { %15151 = vmatpush3.bf16.msra.mxu0 %v16368_v15  ;;  %v20244_v11 = vpop.permute.xlu1 %9763  ;;  %v20250_v15 = vpop.permute.xlu0 %9758  ;;  %v23351_v63 = vld [vmem:[#allocation24_spill] sm:$0xff] }
 0x48c   :  { %15168 = vmatprep.subr.bf16.mxu0 %v20217_v45  ;;  %11221 = vperm.xlu1 %16326, %v14111_v20   ;;  %23346 = vst [vmem:[#allocation110_spill] sm:$0xff] %v20244_v11  ;;  %23347 = vst [vmem:[#allocation12_spill] sm:$0xff] %v20250_v15  ;;  %v20256_v20 = vld [vmem:[#allocation3 + $0x67] sm:$0xff]  ;;  %v14114_v15 = vld [vmem:[%s22795_s1 + $0x1b0] sm:$0xff] }
 0x48d   :  { %11216 = vperm.xlu0 %16325, %v14110_v55   ;;  %v23350_v55 = vld [vmem:[#allocation23_spill] sm:$0xff]  ;;  %v5350_v41 = vmul.f32 %v23351_v63, %v20256_v20 }
 0x48e   :  { %15137 = vmatmul.mubr.msk.bf16.gmra.mrb[20].mxu0 %vm88_vm2, %v5357_v32  ;;  %v23349_v32 = vld [vmem:[#allocation22_spill] sm:$0xff]  ;;  %v5351_v11 = vmul.f32 %v23350_v55, %v20242_v40  ;;  %v20272_v55 = vld [vmem:[#allocation3 + $0x7f] sm:$0xff] }
 0x48f   :  { %15140 = vmatprep.mubr.msk.bf16.mxu0 %vm88_vm2, %v5358_v36  ;;  %v5349_v30 = vmul.f32 %v23349_v32, %v20236_v1  ;;  %v14115_v36 = vld [vmem:[%s22795_s1 + $0x1b8] sm:$0xff]  ;;  %v20268_v32 = vpop.permute.xlu1 %9773 }
 0x490   :  { %11231 = vperm.xlu1 %16326, %v14113_v28   ;;  %23352 = vst [vmem:[#allocation13_spill] sm:$0xff] %v20268_v32  ;;  %v5360_v28 = vpack.c.bf16 %v5351_v11, %v5350_v41  ;;  %v14116_v41 = vld [vmem:[%s22795_s1 + $0x1c0] sm:$0xff] }
 0x491   :  { %11226 = vperm.xlu0 %16325, %v14112_v2   ;;  %v5359_v34 = vpack.c.bf16 %v5349_v30, %v5348_v10  ;;  %v20274_v2 = vpop.permute.xlu0 %9768  ;;  %v23354_v11 = vld [vmem:[#allocation25_spill] sm:$0xff]  ;;  %v23355_v30 = vld [vmem:[#allocation26_spill] sm:$0xff] }
 0x492   :  { %23353 = vst [vmem:[#allocation16_spill] sm:$0xff] %v20274_v2  ;;  %v5352_v10 = vmul.f32 %v23354_v11, %v20270_v25  ;;  %v14118_v2 = vld [vmem:[%s22795_s1 + $0x1d0] sm:$0xff]  ;;  %v23358_v11 = vld [vmem:[#allocation28_spill] sm:$0xff] }
 0x493   :  { %v20295_v32 = vpop.permute.xlu1 %9783 }
 0x494   :  { %11241 = vperm.xlu1 %16326, %v14115_v36   ;;  %v5774_v36 = vld [vmem:[#allocation3 + $0x9] sm:$0xff]  ;;  %23357 = vst [vmem:[#allocation15_spill] sm:$0xff] %v20295_v32  ;;  %v20311_v32 = vld [vmem:[#allocation3 + $0x31] sm:$0xff] }
 0x495   :  { %11236 = vperm.xlu0 %16325, %v14114_v15   ;;  %v5353_v15 = vmul.f32 %v23355_v30, %v20272_v55  ;;  %v5886_v22 = vmul.f32 %v23358_v11, %v5774_v36  ;;  %v20301_v57 = vpop.permute.xlu0 %9778  ;;  %v23361_v36 = vld [vmem:[#allocation30_spill] sm:$0xff]  ;;  %v5891_v11 = vmul.f32 %v18808_v4, %v20311_v32 }
 0x496   :  { %15141 = vmatmul.mubr.msk.bf16.gmra.mrb[24].mxu0 %vm88_vm2, %v5359_v34  ;;  %v23356_v34 = vld [vmem:[#allocation27_spill] sm:$0xff]  ;;  %23359 = vst [vmem:[#allocation18_spill] sm:$0xff] %v20301_v57 }
 0x497   :  { %15144 = vmatprep.mubr.msk.bf16.mxu0 %vm88_vm2, %v5360_v28  ;;  %v5887_v63 = vmul.f32 %v23356_v34, %v20280_v54  ;;  %v14119_v28 = vld [vmem:[%s22795_s1 + $0x1d8] sm:$0xff]  ;;  %v5361_v30 = vpack.c.bf16 %v5353_v15, %v5352_v10  ;;  %v14121_v34 = vld [vmem:[%s22795_s1 + $0x1e8] sm:$0xff]  ;;  %v14120_v10 = vld [vmem:[%s22795_s1 + $0x1e0] sm:$0xff] }
 0x498   :  { %11251 = vperm.xlu1 %16326, %v14117_v6  }
 0x499   :  { %11246 = vperm.xlu0 %16325, %v14116_v41   ;;  %v5902_v6 = vpack.c.bf16 %v5887_v63, %v5886_v22  ;;  %v20305_v41 = vld [vmem:[#allocation3 + $0x21] sm:$0xff]  ;;  %v20321_v63 = vld [vmem:[#allocation3 + $0x29] sm:$0xff] }
 0x49a   :  { %v23360_v22 = vld [vmem:[#allocation29_spill] sm:$0xff] }
 0x49b   :  { %v5888_v15 = vmul.f32 %v23360_v22, %v20303_v33  ;;  %v14122_v22 = vld [vmem:[%s22795_s1 + $0x1f0] sm:$0xff] }
 0x49c   :  { %11261 = vperm.xlu1 %16326, %v14119_v28   ;;  %v20323_v28 = vpop.permute.xlu1 %10003 }
 0x49d   :  { %11256 = vperm.xlu0 %16325, %v14118_v2   ;;  %v5889_v2 = vmul.f32 %v23361_v36, %v20305_v41  ;;  %23362 = vst [vmem:[#allocation17_spill] sm:$0xff] %v20323_v28  ;;  %v5890_v36 = vmul.f32 %v18810_v7, %v20321_v63  ;;  %v20340_v28 = vld [vmem:[#allocation3 + $0x39] sm:$0xff] }
 0x49e   :  { %15145 = vmatmul.mubr.msk.bf16.gmra.mrb[28].mxu0 %vm88_vm2, %v5361_v30  ;;  %v20327_v30 = vpop.permute.xlu0 %9998 }
 0x49f   :  { %15152 = vmatprep.mubr.msk.bf16.mxu0 %vm88_vm2, %v5902_v6  ;;  %23363 = vst [vmem:[#allocation19_spill] sm:$0xff] %v20327_v30  ;;  %v14123_v6 = vld [vmem:[%s22795_s1 + $0x1f8] sm:$0xff]  ;;  %v5903_v57 = vpack.c.bf16 %v5889_v2, %v5888_v15  ;;  %v5904_v4 = vpack.c.bf16 %v5891_v11, %v5890_v36  ;;  %v14153_v30 = vld [vmem:[%s22795_s1 + $0x288] sm:$0xff]  ;;  %v14152_v15 = vld [vmem:[%s22795_s1 + $0x280] sm:$0xff] }
 0x4a0   :  { %11271 = vperm.xlu1 %16326, %v14121_v34   ;;  %v16370_v34 = vld [vmem:[%s22799_s5 + $0xc8] sm:$0xff]   ;;  %v20350_v7 = vpop.permute.xlu1 %10013 }
 0x4a1   :  { %11266 = vperm.xlu0 %16325, %v14120_v10   ;;  %v20342_v10 = vld [vmem:[#allocation3 + $0x41] sm:$0xff]  ;;  %23364 = vst [vmem:[#allocation20_spill] sm:$0xff] %v20350_v7  ;;  %v20363_v36 = vld [vmem:[#allocation3 + $0x49] sm:$0xff] }
 0x4a2   :  { %v20357_v2 = vpop.permute.xlu0 %10008 }
 0x4a3   :  { %23365 = vst [vmem:[#allocation21_spill] sm:$0xff] %v20357_v2  ;;  %v23369_v2 = vld [vmem:[#allocation33_spill] sm:$0xff] }
 0x4a4   :  { %11281 = vperm.xlu1 %16326, %v14123_v6   ;;  %v23367_v6 = vld [vmem:[#allocation31_spill] sm:$0xff]  ;;  %v5894_v44 = vmul.f32 %v23369_v2, %v20363_v36 }
 0x4a5   :  { %11276 = vperm.xlu0 %16325, %v14122_v22   ;;  %v5893_v22 = vmul.f32 %v23367_v6, %v20342_v10  ;;  %v14154_v6 = vld [vmem:[%s22795_s1 + $0x290] sm:$0xff] }
 0x4a6   :  { %15153 = vmatmul.mubr.msk.bf16.vlgmr.msra.gmra.mrb[16].mxu0 %vm88_vm2, %v5903_v57  ;;  %v23366_v57 = vld [vmem:[#allocation32_spill] sm:$0xff]  ;;  %v20387_v38 = vpop.permute.xlu0 %10018  ;;  %v20393_v2 = vld [vmem:[#allocation3 + $0x71] sm:$0xff] }
 0x4a7   :  { %15169 = vmatpush3.bf16.msra.mxu0 %v20217_v45  ;;  %15156 = vmatprep.mubr.msk.bf16.mxu0 %vm88_vm2, %v5904_v4  ;;  %v5892_v11 = vmul.f32 %v23366_v57, %v20340_v28  ;;  %v20368_v45 = vld [vmem:[%s22799_s5 + $0xd0] sm:$0xff]   ;;  %v14155_v57 = vld [vmem:[%s22795_s1 + $0x298] sm:$0xff]  ;;  %23371 = vst [vmem:[#allocation23_spill] sm:$0xff] %v20387_v38 }
 0x4a8   :  { %15170 = vmatprep.subr.bf16.mxu0 %v16370_v34  ;;  %11679 = vperm.xlu1 %16326, %v14153_v30   ;;  %v23368_v4 = vld [vmem:[#allocation34_spill] sm:$0xff]  ;;  %v20381_v30 = vpop.permute.xlu1 %10023 }
 0x4a9   :  { %v5895_v7 = vmul.f32 %v23368_v4, %v20348_v62  ;;  %11674 = vperm.xlu0 %16325, %v14152_v15   ;;  %v5905_v31 = vpack.c.bf16 %v5893_v22, %v5892_v11  ;;  %23370 = vst [vmem:[#allocation22_spill] sm:$0xff] %v20381_v30  ;;  %v20383_v15 = vld [vmem:[#allocation3 + $0x59] sm:$0xff] }
 0x4aa   :  { %v23373_v22 = vld [vmem:[#allocation111_spill] sm:$0xff]  ;;  %v20417_v8 = vpop.permute.xlu0 %10028 }
 0x4ab   :  { %15171 = vmatpush3.bf16.msra.mxu0 %v16370_v34  ;;  %v5906_v4 = vpack.c.bf16 %v5895_v7, %v5894_v44  ;;  %v14157_v34 = vld [vmem:[%s22795_s1 + $0x2a8] sm:$0xff]  ;;  %v14156_v44 = vld [vmem:[%s22795_s1 + $0x2a0] sm:$0xff]  ;;  %23377 = vst [vmem:[#allocation25_spill] sm:$0xff] %v20417_v8 }
 0x4ac   :  { %15188 = vmatprep.subr.bf16.mxu0 %v20368_v45  ;;  %11689 = vperm.xlu1 %16326, %v14155_v57   ;;  %v23372_v7 = vld [vmem:[#allocation112_spill] sm:$0xff]  ;;  %v5897_v57 = vmul.f32 %v23373_v22, %v20385_v14  ;;  %v20410_v38 = vpop.permute.xlu1 %10033  ;;  %v23382_v8 = vld [vmem:[#allocation117_spill] sm:$0xff] }
 0x4ad   :  { %11684 = vperm.xlu0 %16325, %v14154_v6   ;;  %v5896_v11 = vmul.f32 %v23372_v7, %v20383_v15  ;;  %v20403_v6 = vld [vmem:[#allocation3 + $0x69] sm:$0xff]  ;;  %23375 = vst [vmem:[#allocation24_spill] sm:$0xff] %v20410_v38 }
 0x4ae   :  { %15157 = vmatmul.mubr.msk.bf16.gmra.mrb[20].mxu0 %vm88_vm2, %v5905_v31  ;;  %v23374_v31 = vld [vmem:[#allocation113_spill] sm:$0xff]  ;;  %v14158_v7 = vld [vmem:[%s22795_s1 + $0x2b0] sm:$0xff]  ;;  %v5898_v22 = vmul.f32 %v23376_v5, %v20403_v6 }
 0x4af   :  { %15160 = vmatprep.mubr.msk.bf16.mxu0 %vm88_vm2, %v5906_v4  ;;  %v5899_v30 = vmul.f32 %v23374_v31, %v20393_v2  ;;  %v14159_v4 = vld [vmem:[%s22795_s1 + $0x2b8] sm:$0xff]  ;;  %v14161_v38 = vld [vmem:[%s22795_s1 + $0x2c8] sm:$0xff]  ;;  %v14160_v5 = vld [vmem:[%s22795_s1 + $0x2c0] sm:$0xff] }
 0x4b0   :  { %11699 = vperm.xlu1 %16326, %v14157_v34   ;;  %v5907_v34 = vpack.c.bf16 %v5897_v57, %v5896_v11  ;;  %v20419_v31 = vld [vmem:[#allocation3 + $0x79] sm:$0xff] }
 0x4b1   :  { %11694 = vperm.xlu0 %16325, %v14156_v44   ;;  %v5908_v37 = vpack.c.bf16 %v5899_v30, %v5898_v22  ;;  %v20421_v44 = vld [vmem:[#allocation3 + $0x81] sm:$0xff]  ;;  %v5900_v30 = vmul.f32 %v18874_v0, %v20419_v31  ;;  %v23378_v11 = vld [vmem:[#allocation115_spill] sm:$0xff] }
 0x4b2   :  { %v5901_v57 = vmul.f32 %v23378_v11, %v20421_v44  ;;  %v14162_v0 = vld [vmem:[%s22795_s1 + $0x2d0] sm:$0xff]  ;;  %v6176_v11 = vmul.f32 %v23382_v8, %v20119_v58 }
 0x4b3   :  { %v23384_v8 = vld [vmem:[#allocation119_spill] sm:$0xff] }
 0x4b4   :  { %11709 = vperm.xlu1 %16326, %v14159_v4   ;;  %v20435_v4 = vpop.permute.xlu1 %10043  ;;  %v5909_v46 = vpack.c.bf16 %v5901_v57, %v5900_v30  ;;  %v6178_v58 = vmul.f32 %v23384_v8, %v20156_v12  ;;  %v23385_v30 = vld [vmem:[#allocation118_spill] sm:$0xff]  ;;  %v23386_v57 = vld [vmem:[#allocation120_spill] sm:$0xff] }
 0x4b5   :  { %11704 = vperm.xlu0 %16325, %v14158_v7   ;;  %23379 = vst [vmem:[#allocation26_spill] sm:$0xff] %v20435_v4  ;;  %v23380_v7 = vld [vmem:[#allocation116_spill] sm:$0xff] }
 0x4b6   :  { %15161 = vmatmul.mubr.msk.bf16.gmra.mrb[24].mxu0 %vm88_vm2, %v5907_v34  ;;  %v6177_v22 = vmul.f32 %v23380_v7, %v20154_v51  ;;  %v20439_v34 = vpop.permute.xlu0 %10038  ;;  %v14164_v4 = vld [vmem:[%s22795_s1 + $0x2e0] sm:$0xff] }
 0x4b7   :  { %15164 = vmatprep.mubr.msk.bf16.mxu0 %vm88_vm2, %v5908_v37  ;;  %23381 = vst [vmem:[#allocation27_spill] sm:$0xff] %v20439_v34  ;;  %v14163_v37 = vld [vmem:[%s22795_s1 + $0x2d8] sm:$0xff] }
 0x4b8   :  { %11719 = vperm.xlu1 %16326, %v14161_v38   ;;  %v6192_v38 = vpack.c.bf16 %v6177_v22, %v6176_v11  ;;  %v20453_v7 = vpop.permute.xlu1 %10053  ;;  %v6181_v22 = vmul.f32 %v23386_v57, %v20193_v52  ;;  %v23387_v11 = vld [vmem:[#allocation36_spill] sm:$0xff]  ;;  %v14183_v57 = vld [vmem:[%s22795_s1 + $0x308] sm:$0xff] }
 0x4b9   :  { %11714 = vperm.xlu0 %16325, %v14160_v5   ;;  %v14165_v5 = vld [vmem:[%s22795_s1 + $0x2e8] sm:$0xff] }
 0x4ba   :  { %v20459_v34 = vpop.permute.xlu0 %10048 }
 0x4bb   :  { %23383 = vst [vmem:[#allocation28_spill] sm:$0xff] %v20459_v34 }
 0x4bc   :  { %11729 = vperm.xlu1 %16326, %v14163_v37   ;;  %v14167_v37 = vld [vmem:[%s22795_s1 + $0x2f8] sm:$0xff] }
 0x4bd   :  { %11724 = vperm.xlu0 %16325, %v14162_v0   ;;  %v14166_v0 = vld [vmem:[%s22795_s1 + $0x2f0] sm:$0xff] }
 0x4be   :  { %15165 = vmatmul.mubr.msk.bf16.gmra.mrb[28].mxu0 %vm88_vm2, %v5909_v46  ;;  %v6179_v46 = vmul.f32 %v23385_v30, %v20174_v23  ;;  %v16372_v23 = vld [vmem:[%s22799_s5 + $0xd8] sm:$0xff]   ;;  %v20480_v30 = vpop.permute.xlu0 %10058 }
 0x4bf   :  { %15172 = vmatprep.mubr.msk.bf16.mxu0 %vm88_vm2, %v6192_v38  ;;  %v6180_v38 = vmul.f32 %v23387_v11, %v20164_v43  ;;  %v14182_v43 = vld [vmem:[%s22795_s1 + $0x300] sm:$0xff] }
 0x4c0   :  { %11739 = vperm.xlu1 %16326, %v14165_v5   ;;  %v6193_v8 = vpack.c.bf16 %v6179_v46, %v6178_v58  ;;  %v20478_v5 = vpop.permute.xlu1 %10063  ;;  %v23389_v58 = vld [vmem:[#allocation121_spill] sm:$0xff] }
 0x4c1   :  { %11734 = vperm.xlu0 %16325, %v14164_v4   ;;  %23388 = vst [vmem:[#allocation29_spill] sm:$0xff] %v20478_v5  ;;  %v6194_v4 = vpack.c.bf16 %v6181_v22, %v6180_v38  ;;  %v6182_v46 = vmul.f32 %v23389_v58, %v20195_v56  ;;  %v23390_v22 = vld [vmem:[#allocation35_spill] sm:$0xff]  ;;  %v23393_v58 = vld [vmem:[#allocation122_spill] sm:$0xff] }
 0x4c2   :  { %v14185_v38 = vld [vmem:[%s22795_s1 + $0x318] sm:$0xff]  ;;  %v20512_v34 = vpop.permute.xlu0 %10068 }
 0x4c3   :  { %23394 = vst [vmem:[#allocation32_spill] sm:$0xff] %v20512_v34 }
 0x4c4   :  { %11749 = vperm.xlu1 %16326, %v14167_v37   ;;  %v6183_v37 = vmul.f32 %v23390_v22, %v20212_v24  ;;  %v6184_v22 = vmul.f32 %v23393_v58, %v20201_v27  ;;  %v23395_v58 = vld [vmem:[#allocation40_spill] sm:$0xff] }
 0x4c5   :  { %11744 = vperm.xlu0 %16325, %v14166_v0   ;;  %v20498_v0 = vld [vmem:[%s22799_s5 + $0xe0] sm:$0xff]  }
 0x4c6   :  { %15173 = vmatmul.mubr.msk.bf16.vlgmr.msra.gmra.mrb[16].mxu0 %vm88_vm2, %v6193_v8  ;;  %v20505_v8 = vpop.permute.xlu1 %10073 }
 0x4c7   :  { %15189 = vmatpush3.bf16.msra.mxu0 %v20368_v45  ;;  %15176 = vmatprep.mubr.msk.bf16.mxu0 %vm88_vm2, %v6194_v4  ;;  %v23391_v45 = vld [vmem:[#allocation37_spill] sm:$0xff]  ;;  %23392 = vst [vmem:[#allocation30_spill] sm:$0xff] %v20505_v8  ;;  %v14184_v4 = vld [vmem:[%s22795_s1 + $0x310] sm:$0xff] }
 0x4c8   :  { %15190 = vmatprep.subr.bf16.mxu0 %v16372_v23  ;;  %11969 = vperm.xlu1 %16326, %v14183_v57   ;;  %v6185_v11 = vmul.f32 %v23391_v45, %v20234_v16  ;;  %v6195_v57 = vpack.c.bf16 %v6183_v37, %v6182_v46  ;;  %v14187_v45 = vld [vmem:[%s22795_s1 + $0x328] sm:$0xff]  ;;  %v6186_v46 = vmul.f32 %v23395_v58, %v20236_v1  ;;  %v14188_v58 = vld [vmem:[%s22795_s1 + $0x330] sm:$0xff] }
 0x4c9   :  { %11964 = vperm.xlu0 %16325, %v14182_v43   ;;  %v23396_v37 = vld [vmem:[#allocation38_spill] sm:$0xff]  ;;  %v23400_v8 = vld [vmem:[#allocation41_spill] sm:$0xff] }
 0x4ca   :  { %v6196_v43 = vpack.c.bf16 %v6185_v11, %v6184_v22  ;;  %v20527_v11 = vpop.permute.xlu1 %10514 }
 0x4cb   :  { %15191 = vmatpush3.bf16.msra.mxu0 %v16372_v23  ;;  %v14186_v23 = vld [vmem:[%s22795_s1 + $0x320] sm:$0xff]  ;;  %23397 = vst [vmem:[#allocation31_spill] sm:$0xff] %v20527_v11 }
 0x4cc   :  { %15208 = vmatprep.subr.bf16.mxu0 %v20498_v0  ;;  %11979 = vperm.xlu1 %16326, %v14185_v38   ;;  %v6187_v38 = vmul.f32 %v23396_v37, %v20256_v20  ;;  %v6188_v37 = vmul.f32 %v23400_v8, %v20242_v40  ;;  %v20541_v11 = vld [vmem:[#allocation3 + $0x87] sm:$0xff] }
 0x4cd   :  { %11974 = vperm.xlu0 %16325, %v14184_v4   ;;  %v23398_v4 = vld [vmem:[#allocation39_spill] sm:$0xff]  ;;  %v14190_v8 = vld [vmem:[%s22795_s1 + $0x340] sm:$0xff] }
 0x4ce   :  { %15177 = vmatmul.mubr.msk.bf16.gmra.mrb[20].mxu0 %vm88_vm2, %v6195_v57  ;;  %v6189_v22 = vmul.f32 %v23398_v4, %v20270_v25  ;;  %v20531_v57 = vpop.permute.xlu0 %10509  ;;  %v6197_v34 = vpack.c.bf16 %v6187_v38, %v6186_v46  ;;  %v20547_v4 = vpop.permute.xlu1 %10524  ;;  %v23403_v38 = vld [vmem:[#allocation43_spill] sm:$0xff] }
 0x4cf   :  { %15180 = vmatprep.mubr.msk.bf16.mxu0 %vm88_vm2, %v6196_v43  ;;  %23399 = vst [vmem:[#allocation34_spill] sm:$0xff] %v20531_v57  ;;  %v14189_v43 = vld [vmem:[%s22795_s1 + $0x338] sm:$0xff]  ;;  %23401 = vst [vmem:[#allocation33_spill] sm:$0xff] %v20547_v4 }
 0x4d0   :  { %11989 = vperm.xlu1 %16326, %v14187_v45   ;;  %v6198_v45 = vpack.c.bf16 %v6189_v22, %v6188_v37  ;;  %v6190_v22 = vmul.f32 %v23403_v38, %v20272_v55  ;;  %v14192_v37 = vld [vmem:[%s22795_s1 + $0x350] sm:$0xff]  ;;  %v6370_v38 = vpack.c.bf16 %v20001_v61, %v19988_v47  ;;  %v14197_v61 = vld [vmem:[%s22795_s1 + $0x378] sm:$0xff] }
 0x4d1   :  { %11984 = vperm.xlu0 %16325, %v14186_v23   ;;  %v14191_v23 = vld [vmem:[%s22795_s1 + $0x348] sm:$0xff] }
 0x4d2   :  { %v20553_v46 = vpop.permute.xlu0 %10519  ;;  %v20565_v4 = vpop.permute.xlu1 %10534 }
 0x4d3   :  { %23402 = vst [vmem:[#allocation112_spill] sm:$0xff] %v20553_v46  ;;  %23405 = vst [vmem:[#allocation111_spill] sm:$0xff] %v20565_v4 }
 0x4d4   :  { %11999 = vperm.xlu1 %16326, %v14189_v43   ;;  %v23404_v43 = vld [vmem:[#allocation44_spill] sm:$0xff] }
 0x4d5   :  { %11994 = vperm.xlu0 %16325, %v14188_v58   ;;  %v14193_v58 = vld [vmem:[%s22795_s1 + $0x358] sm:$0xff] }
 0x4d6   :  { %15181 = vmatmul.mubr.msk.bf16.gmra.mrb[24].mxu0 %vm88_vm2, %v6197_v34  ;;  %v6191_v34 = vmul.f32 %v23404_v43, %v20541_v11  ;;  %v20569_v46 = vpop.permute.xlu0 %10529  ;;  %v20582_v47 = vpop.permute.xlu1 %10544 }
 0x4d7   :  { %15184 = vmatprep.mubr.msk.bf16.mxu0 %vm88_vm2, %v6198_v45  ;;  %23406 = vst [vmem:[#allocation113_spill] sm:$0xff] %v20569_v46  ;;  %23407 = vst [vmem:[#allocation114_spill] sm:$0xff] %v20582_v47 }
 0x4d8   :  { %12009 = vperm.xlu1 %16326, %v14191_v23   ;;  %v6199_v45 = vpack.c.bf16 %v6191_v34, %v6190_v22  ;;  %v14195_v23 = vld [vmem:[%s22795_s1 + $0x368] sm:$0xff]  ;;  %v14196_v22 = vld [vmem:[%s22795_s1 + $0x370] sm:$0xff]  ;;  %v6371_v34 = vpack.c.bf16 %v20022_v50, %v19990_v60  ;;  %v14212_v60 = vld [vmem:[%s22795_s1 + $0x380] sm:$0xff] }
 0x4d9   :  { %12004 = vperm.xlu0 %16325, %v14190_v8   ;;  %v14194_v8 = vld [vmem:[%s22795_s1 + $0x360] sm:$0xff]  ;;  %v20608_v50 = vld [vmem:[%s22799_s5 + $0xf0] sm:$0xff]  }
 0x4da   :  { %v20587_v43 = vpop.permute.xlu0 %10539 }
 0x4db   :  { %23408 = vst [vmem:[#allocation115_spill] sm:$0xff] %v20587_v43 }
 0x4dc   :  { %12019 = vperm.xlu1 %16326, %v14193_v58   ;;  %v16374_v58 = vld [vmem:[%s22799_s5 + $0xe8] sm:$0xff]  }
 0x4dd   :  { %12014 = vperm.xlu0 %16325, %v14192_v37   ;;  %v6372_v37 = vpack.c.bf16 %v20048_v13, %v20031_v17  ;;  %v20610_v17 = vpop.permute.xlu1 %10554 }
 0x4de   :  { %15185 = vmatmul.mubr.msk.bf16.gmra.mrb[28].mxu0 %vm88_vm2, %v6199_v45  ;;  %v14213_v45 = vld [vmem:[%s22795_s1 + $0x388] sm:$0xff]  ;;  %23409 = vst [vmem:[#allocation116_spill] sm:$0xff] %v20610_v17  ;;  %v20612_v13 = vpop.permute.xlu0 %10549 }
 0x4df   :  { %15192 = vmatprep.mubr.msk.bf16.mxu0 %vm88_vm2, %v6370_v38  ;;  %23410 = vst [vmem:[#allocation117_spill] sm:$0xff] %v20612_v13  ;;  %v14214_v38 = vld [vmem:[%s22795_s1 + $0x390] sm:$0xff] }
 0x4e0   :  { %12029 = vperm.xlu1 %16326, %v14195_v23   ;;  %v6373_v23 = vpack.c.bf16 %v20074_v21, %v20033_v53  ;;  %v14216_v21 = vld [vmem:[%s22795_s1 + $0x3a0] sm:$0xff] }
 0x4e1   :  { %12024 = vperm.xlu0 %16325, %v14194_v8   ;;  %v6374_v8 = vpack.c.bf16 %v20097_v48, %v20085_v29  ;;  %v14219_v29 = vld [vmem:[%s22795_s1 + $0x3b8] sm:$0xff]  ;;  %v14218_v48 = vld [vmem:[%s22795_s1 + $0x3b0] sm:$0xff] }
 0x4e2   :  { %v20635_v53 = vpop.permute.xlu0 %10559 }
 0x4e3   :  { %23412 = vst [vmem:[#allocation118_spill] sm:$0xff] %v20635_v53  ;;  %v23582_v53 = vld [vmem:[#allocation186_spill] sm:$0xff] }
 0x4e4   :  { %12039 = vperm.xlu1 %16326, %v14197_v61   ;;  %v14217_v61 = vld [vmem:[%s22795_s1 + $0x3a8] sm:$0xff] }
 0x4e5   :  { %12034 = vperm.xlu0 %16325, %v14196_v22   ;;  %v20629_v22 = vpop.permute.xlu1 %10564 }
 0x4e6   :  { %15193 = vmatmul.mubr.msk.bf16.vlgmr.msra.gmra.mrb[16].mxu0 %vm88_vm2, %v6371_v34  ;;  %23411 = vst [vmem:[#allocation119_spill] sm:$0xff] %v20629_v22  ;;  %v6375_v34 = vpack.c.bf16 %v20113_v26, %v20087_v39  ;;  %v14220_v39 = vld [vmem:[%s22795_s1 + $0x3c0] sm:$0xff]  ;;  %v20659_v26 = vld [vmem:[#allocation3 + $0x88] sm:$0xff]  ;;  %v23581_v22 = vld [vmem:[#allocation187_spill] sm:$0xff] }
 0x4e7   :  { %15209 = vmatpush3.bf16.msra.mxu0 %v20498_v0  ;;  %15196 = vmatprep.mubr.msk.bf16.mxu0 %vm88_vm2, %v6372_v37  ;;  %v14215_v0 = vld [vmem:[%s22795_s1 + $0x398] sm:$0xff]  ;;  %v6376_v37 = vpack.c.bf16 %v20136_v19, %v20126_v42  ;;  %v23415_v19 = vld [vmem:[#allocation45_spill] sm:$0xff] }
 0x4e8   :  { %15210 = vmatprep.subr.bf16.mxu0 %v16374_v58  ;;  %12259 = vperm.xlu1 %16326, %v14213_v45   ;;  %v20649_v45 = vpop.permute.xlu0 %10569  ;;  %v6644_v42 = vmul.f32 %v23415_v19, %v20280_v54  ;;  %v23422_v19 = vld [vmem:[#allocation46_spill] sm:$0xff] }
 0x4e9   :  { %12254 = vperm.xlu0 %16325, %v14212_v60   ;;  %23414 = vst [vmem:[#allocation36_spill] sm:$0xff] %v20649_v45  ;;  %v14221_v60 = vld [vmem:[%s22795_s1 + $0x3c8] sm:$0xff] }
 0x4eb   :  { %15211 = vmatpush3.bf16.msra.mxu0 %v16374_v58  ;;  %v20645_v58 = vpop.permute.xlu1 %10574 }
 0x4ec   :  { %15228 = vmatprep.subr.bf16.mxu0 %v20608_v50  ;;  %12269 = vperm.xlu1 %16326, %v14215_v0   ;;  %23413 = vst [vmem:[#allocation120_spill] sm:$0xff] %v20645_v58  ;;  %v23416_v0 = vld [vmem:[#allocation42_spill] sm:$0xff] }
 0x4ed   :  { %12264 = vperm.xlu0 %16325, %v14214_v38   ;;  %v6645_v38 = vmul.f32 %v23416_v0, %v20303_v33  ;;  %v14225_v33 = vld [vmem:[%s22795_s1 + $0x3e8] sm:$0xff] }
 0x4ee   :  { %15197 = vmatmul.mubr.msk.bf16.gmra.mrb[20].mxu0 %vm88_vm2, %v6373_v23  ;;  %v14223_v23 = vld [vmem:[%s22795_s1 + $0x3d8] sm:$0xff] }
 0x4ef   :  { %15200 = vmatprep.mubr.msk.bf16.mxu0 %vm88_vm2, %v6374_v8  ;;  %v20668_v8 = vpop.permute.xlu1 %10584  ;;  %v6660_v54 = vpack.c.bf16 %v6645_v38, %v6644_v42  ;;  %v6649_v42 = vmul.f32 %v23422_v19, %v20340_v28  ;;  %v14227_v38 = vld [vmem:[%s22795_s1 + $0x3f8] sm:$0xff] }
 0x4f0   :  { %12279 = vperm.xlu1 %16326, %v14217_v61   ;;  %23417 = vst [vmem:[#allocation121_spill] sm:$0xff] %v20668_v8  ;;  %v14222_v61 = vld [vmem:[%s22795_s1 + $0x3d0] sm:$0xff] }
 0x4f1   :  { %12274 = vperm.xlu0 %16325, %v14216_v21   ;;  %v20673_v21 = vpop.permute.xlu0 %10579  ;;  %v23429_v19 = vld [vmem:[#allocation51_spill] sm:$0xff] }
 0x4f2   :  { %23418 = vst [vmem:[#allocation35_spill] sm:$0xff] %v20673_v21 }
 0x4f4   :  { %12289 = vperm.xlu1 %16326, %v14219_v29   ;;  %v6377_v29 = vpack.c.bf16 %v20659_v26, %v20128_v18  ;;  %v23421_v18 = vld [vmem:[#allocation50_spill] sm:$0xff] }
 0x4f5   :  { %12284 = vperm.xlu0 %16325, %v14218_v48   ;;  %v14224_v48 = vld [vmem:[%s22795_s1 + $0x3e0] sm:$0xff]  ;;  %v20693_v0 = vpop.permute.xlu0 %10368 }
 0x4f6   :  { %15201 = vmatmul.mubr.msk.bf16.gmra.mrb[24].mxu0 %vm88_vm2, %v6375_v34  ;;  %v23419_v34 = vld [vmem:[#allocation48_spill] sm:$0xff]  ;;  %23423 = vst [vmem:[#allocation122_spill] sm:$0xff] %v20693_v0 }
 0x4f7   :  { %15204 = vmatprep.mubr.msk.bf16.mxu0 %vm88_vm2, %v6376_v37  ;;  %v6647_v37 = vmul.f32 %v23419_v34, %v20321_v63  ;;  %v14226_v63 = vld [vmem:[%s22795_s1 + $0x3f0] sm:$0xff]  ;;  %v23427_v34 = vld [vmem:[#allocation49_spill] sm:$0xff] }
 0x4f8   :  { %12299 = vperm.xlu1 %16326, %v14221_v60   ;;  %v20687_v60 = vpop.permute.xlu1 %10373 }
 0x4f9   :  { %12294 = vperm.xlu0 %16325, %v14220_v39   ;;  %23420 = vst [vmem:[#allocation37_spill] sm:$0xff] %v20687_v60  ;;  %v6648_v39 = vmul.f32 %v23421_v18, %v20311_v32  ;;  %v16376_v32 = vld [vmem:[%s22799_s5 + $0xf8] sm:$0xff]   ;;  %v20724_v18 = vld [vmem:[%s22799_s5 + $0x100] sm:$0xff]  }
 0x4fb   :  { %v6662_v28 = vpack.c.bf16 %v6649_v42, %v6648_v39  ;;  %v6653_v42 = vmul.f32 %v23429_v19, %v20383_v15  ;;  %v23436_v19 = vld [vmem:[#allocation56_spill] sm:$0xff] }
 0x4fc   :  { %12309 = vperm.xlu1 %16326, %v14223_v23   ;;  %v23424_v23 = vld [vmem:[#allocation47_spill] sm:$0xff] }
 0x4fd   :  { %12304 = vperm.xlu0 %16325, %v14222_v61   ;;  %v6646_v61 = vmul.f32 %v23424_v23, %v20305_v41  ;;  %v14242_v41 = vld [vmem:[%s22795_s1 + $0x400] sm:$0xff] }
 0x4fe   :  { %15205 = vmatmul.mubr.msk.bf16.gmra.mrb[28].mxu0 %vm88_vm2, %v6377_v29 }
 0x4ff   :  { %15212 = vmatprep.mubr.msk.bf16.mxu0 %vm88_vm2, %v6660_v54  ;;  %v6661_v29 = vpack.c.bf16 %v6647_v37, %v6646_v61  ;;  %v14243_v54 = vld [vmem:[%s22795_s1 + $0x408] sm:$0xff]  ;;  %v6651_v37 = vmul.f32 %v23427_v34, %v20363_v36  ;;  %v23430_v36 = vld [vmem:[#allocation52_spill] sm:$0xff]  ;;  %v14244_v61 = vld [vmem:[%s22795_s1 + $0x410] sm:$0xff] }
 0x500   :  { %12319 = vperm.xlu1 %16326, %v14225_v33   ;;  %v20710_v33 = vpop.permute.xlu1 %10383  ;;  %v6650_v23 = vmul.f32 %v23430_v36, %v20342_v10  ;;  %v14247_v10 = vld [vmem:[%s22795_s1 + $0x428] sm:$0xff] }
 0x501   :  { %12314 = vperm.xlu0 %16325, %v14224_v48   ;;  %23425 = vst [vmem:[#allocation40_spill] sm:$0xff] %v20710_v33  ;;  %v20717_v48 = vpop.permute.xlu0 %10378 }
 0x502   :  { %23426 = vst [vmem:[#allocation38_spill] sm:$0xff] %v20717_v48 }
 0x504   :  { %12329 = vperm.xlu1 %16326, %v14227_v38   ;;  %v14245_v38 = vld [vmem:[%s22795_s1 + $0x418] sm:$0xff] }
 0x505   :  { %12324 = vperm.xlu0 %16325, %v14226_v63   ;;  %v6663_v63 = vpack.c.bf16 %v6651_v37, %v6650_v23  ;;  %v23435_v37 = vld [vmem:[#allocation55_spill] sm:$0xff] }
 0x506   :  { %15213 = vmatmul.mubr.msk.bf16.vlgmr.msra.gmra.mrb[16].mxu0 %vm88_vm2, %v6661_v29  ;;  %v20741_v29 = vpop.permute.xlu0 %10388 }
 0x507   :  { %15229 = vmatpush3.bf16.msra.mxu0 %v20608_v50  ;;  %15216 = vmatprep.mubr.msk.bf16.mxu0 %vm88_vm2, %v6662_v28  ;;  %v23428_v50 = vld [vmem:[#allocation53_spill] sm:$0xff]  ;;  %23432 = vst [vmem:[#allocation41_spill] sm:$0xff] %v20741_v29  ;;  %v23433_v28 = vld [vmem:[#allocation54_spill] sm:$0xff] }
 0x508   :  { %15230 = vmatprep.subr.bf16.mxu0 %v16376_v32  ;;  %12549 = vperm.xlu1 %16326, %v14243_v54   ;;  %v6652_v39 = vmul.f32 %v23428_v50, %v20348_v62  ;;  %v20739_v62 = vpop.permute.xlu1 %10393  ;;  %v6655_v54 = vmul.f32 %v23433_v28, %v20403_v6  ;;  %v6657_v50 = vmul.f32 %v23435_v37, %v20419_v31  ;;  %v14248_v6 = vld [vmem:[%s22795_s1 + $0x430] sm:$0xff] }
 0x509   :  { %12544 = vperm.xlu0 %16325, %v14242_v41   ;;  %23431 = vst [vmem:[#allocation39_spill] sm:$0xff] %v20739_v62  ;;  %v23434_v41 = vld [vmem:[#allocation60_spill] sm:$0xff]  ;;  %v23443_v37 = vld [vmem:[#allocation62_spill] sm:$0xff] }
 0x50a   :  { %v6664_v15 = vpack.c.bf16 %v6653_v42, %v6652_v39  ;;  %v6656_v34 = vmul.f32 %v23434_v41, %v20393_v2  ;;  %v14249_v39 = vld [vmem:[%s22795_s1 + $0x438] sm:$0xff]  ;;  %v6654_v42 = vmul.f32 %v23436_v19, %v20385_v14  ;;  %v20767_v36 = vpop.permute.xlu0 %10398  ;;  %v14251_v14 = vld [vmem:[%s22795_s1 + $0x448] sm:$0xff] }
 0x50b   :  { %15231 = vmatpush3.bf16.msra.mxu0 %v16376_v32  ;;  %v14246_v32 = vld [vmem:[%s22795_s1 + $0x420] sm:$0xff]  ;;  %23438 = vst [vmem:[#allocation44_spill] sm:$0xff] %v20767_v36  ;;  %v14253_v19 = vld [vmem:[%s22795_s1 + $0x458] sm:$0xff]  ;;  %v23574_v62 = vld [vmem:[#allocation178_spill] sm:$0xff] }
 0x50c   :  { %15248 = vmatprep.subr.bf16.mxu0 %v20724_v18  ;;  %12559 = vperm.xlu1 %16326, %v14245_v38   ;;  %v20762_v38 = vpop.permute.xlu1 %10403  ;;  %v6665_v2 = vpack.c.bf16 %v6655_v54, %v6654_v42  ;;  %v6666_v23 = vpack.c.bf16 %v6657_v50, %v6656_v34  ;;  %v23442_v41 = vld [vmem:[#allocation65_spill] sm:$0xff]  ;;  %v6935_v50 = vmul.f32 %v23443_v37, %v20156_v12  ;;  %v14252_v42 = vld [vmem:[%s22795_s1 + $0x450] sm:$0xff] }
 0x50d   :  { %12554 = vperm.xlu0 %16325, %v14244_v61   ;;  %23437 = vst [vmem:[#allocation43_spill] sm:$0xff] %v20762_v38  ;;  %v20769_v61 = vld [vmem:[#allocation3 + $0x89] sm:$0xff]  ;;  %v6934_v34 = vmul.f32 %v23442_v41, %v20154_v51 }
 0x50e   :  { %15217 = vmatmul.mubr.msk.bf16.gmra.mrb[20].mxu0 %vm88_vm2, %v6663_v63  ;;  %v14250_v63 = vld [vmem:[%s22795_s1 + $0x440] sm:$0xff]  ;;  %v14255_v12 = vld [vmem:[%s22795_s1 + $0x468] sm:$0xff] }
 0x50f   :  { %15220 = vmatprep.mubr.msk.bf16.mxu0 %vm88_vm2, %v6664_v15  ;;  %v23439_v15 = vld [vmem:[#allocation63_spill] sm:$0xff] }
 0x510   :  { %12569 = vperm.xlu1 %16326, %v14247_v10   ;;  %v6658_v10 = vmul.f32 %v23439_v15, %v20421_v44  ;;  %v20783_v54 = vpop.permute.xlu1 %10413 }
 0x511   :  { %12564 = vperm.xlu0 %16325, %v14246_v32   ;;  %v23440_v32 = vld [vmem:[#allocation64_spill] sm:$0xff]  ;;  %23441 = vst [vmem:[#allocation45_spill] sm:$0xff] %v20783_v54  ;;  %v23566_v54 = vld [vmem:[#allocation170_spill] sm:$0xff] }
 0x512   :  { %v6659_v28 = vmul.f32 %v23440_v32, %v20769_v61 }
 0x514   :  { %12579 = vperm.xlu1 %16326, %v14249_v39   ;;  %v20789_v39 = vpop.permute.xlu0 %10408  ;;  %v20801_v51 = vpop.permute.xlu1 %10423 }
 0x515   :  { %12574 = vperm.xlu0 %16325, %v14248_v6   ;;  %23444 = vst [vmem:[#allocation42_spill] sm:$0xff] %v20789_v39  ;;  %v6667_v6 = vpack.c.bf16 %v6659_v28, %v6658_v10  ;;  %23445 = vst [vmem:[#allocation48_spill] sm:$0xff] %v20801_v51  ;;  %v23447_v10 = vld [vmem:[#allocation66_spill] sm:$0xff]  ;;  %v23448_v28 = vld [vmem:[#allocation124_spill] sm:$0xff] }
 0x516   :  { %15221 = vmatmul.mubr.msk.bf16.gmra.mrb[24].mxu0 %vm88_vm2, %v6665_v2  ;;  %v6950_v2 = vpack.c.bf16 %v6935_v50, %v6934_v34  ;;  %v6938_v41 = vmul.f32 %v23448_v28, %v20193_v52  ;;  %v23449_v34 = vld [vmem:[#allocation71_spill] sm:$0xff]  ;;  %v23454_v28 = vld [vmem:[#allocation73_spill] sm:$0xff] }
 0x517   :  { %15224 = vmatprep.mubr.msk.bf16.mxu0 %vm88_vm2, %v6666_v23  ;;  %v6825_v23 = vld [vmem:[#allocation3 + $0x2f] sm:$0xff]  ;;  %v6939_v37 = vmul.f32 %v23449_v34, %v20195_v56  ;;  %v14257_v50 = vld [vmem:[%s22795_s1 + $0x478] sm:$0xff] }
 0x518   :  { %12589 = vperm.xlu1 %16326, %v14251_v14   ;;  %v14254_v14 = vld [vmem:[%s22795_s1 + $0x460] sm:$0xff]  ;;  %v20807_v15 = vpop.permute.xlu0 %10418  ;;  %v6937_v32 = vmul.f32 %v23447_v10, %v6825_v23  ;;  %v16378_v23 = vld [vmem:[%s22799_s5 + $0x108] sm:$0xff]   ;;  %v20824_v52 = vpop.permute.xlu1 %10433 }
 0x519   :  { %12584 = vperm.xlu0 %16325, %v14250_v63   ;;  %v6824_v63 = vld [vmem:[#allocation3 + $0x27] sm:$0xff]  ;;  %23446 = vst [vmem:[#allocation50_spill] sm:$0xff] %v20807_v15  ;;  %23451 = vst [vmem:[#allocation46_spill] sm:$0xff] %v20824_v52  ;;  %v6952_v56 = vpack.c.bf16 %v6939_v37, %v6938_v41  ;;  %v6942_v41 = vmul.f32 %v23454_v28, %v20234_v16  ;;  %v23455_v34 = vld [vmem:[#allocation72_spill] sm:$0xff] }
 0x51a   :  { %v6943_v37 = vmul.f32 %v23455_v34, %v20236_v1  ;;  %v23458_v16 = vld [vmem:[#allocation78_spill] sm:$0xff]  ;;  %v23459_v1 = vld [vmem:[#allocation80_spill] sm:$0xff]  ;;  %v23462_v34 = vld [vmem:[#allocation79_spill] sm:$0xff] }
 0x51b   :  { %v7112_v28 = vld [vmem:[#allocation3 + $0x18] sm:$0xff] }
 0x51c   :  { %12599 = vperm.xlu1 %16326, %v14253_v19   ;;  %v23450_v19 = vld [vmem:[#allocation123_spill] sm:$0xff] }
 0x51d   :  { %12594 = vperm.xlu0 %16325, %v14252_v42   ;;  %v6936_v42 = vmul.f32 %v23450_v19, %v6824_v63  ;;  %v23453_v63 = vld [vmem:[#allocation125_spill] sm:$0xff] }
 0x51e   :  { %15225 = vmatmul.mubr.msk.bf16.gmra.mrb[28].mxu0 %vm88_vm2, %v6667_v6  ;;  %v14256_v6 = vld [vmem:[%s22795_s1 + $0x470] sm:$0xff]  ;;  %v6941_v10 = vmul.f32 %v23453_v63, %v20201_v27  ;;  %v6954_v27 = vpack.c.bf16 %v6943_v37, %v6942_v41  ;;  %v23461_v41 = vld [vmem:[#allocation129_spill] sm:$0xff] }
 0x51f   :  { %15232 = vmatprep.mubr.msk.bf16.mxu0 %vm88_vm2, %v6950_v2  ;;  %v6951_v2 = vpack.c.bf16 %v6937_v32, %v6936_v42  ;;  %v16379_v32 = vld [vmem:[%s22799_s5 + $0x110] sm:$0xff]  }
 0x520   :  { %12609 = vperm.xlu1 %16326, %v14255_v12   ;;  %v16381_v12 = vld [vmem:[%s22799_s5 + $0x130] sm:$0xff]  }
 0x521   :  { %12604 = vperm.xlu0 %16325, %v14254_v14   ;;  %v20829_v14 = vpop.permute.xlu0 %10428  ;;  %15288 = vmatprep.subr.bf16.mxu1 %v16381_v12  ;;  %v23457_v42 = vld [vmem:[#allocation127_spill] sm:$0xff] }
 0x522   :  { %23452 = vst [vmem:[#allocation47_spill] sm:$0xff] %v20829_v14  ;;  %15289 = vmatpush3.bf16.msra.mxu1 %v16381_v12  ;;  %v23460_v12 = vld [vmem:[#allocation128_spill] sm:$0xff]  ;;  %v23565_v14 = vld [vmem:[#allocation171_spill] sm:$0xff] }
 0x524   :  { %12619 = vperm.xlu1 %16326, %v14257_v50  }
 0x525   :  { %12614 = vperm.xlu0 %16325, %v14256_v6   ;;  %v6945_v6 = vmul.f32 %v23457_v42, %v20242_v40  ;;  %v6948_v40 = vmul.f32 %v23461_v41, %v20541_v11  ;;  %v7114_v42 = vld [vmem:[#allocation3 + $0x28] sm:$0xff]  ;;  %v23465_v41 = vld [vmem:[#allocation131_spill] sm:$0xff] }
 0x526   :  { %15233 = vmatmul.mubr.msk.bf16.vlgmr.msra.gmra.mrb[16].mxu0 %vm88_vm2, %v6951_v2  ;;  %v6946_v2 = vmul.f32 %v23458_v16, %v20270_v25  ;;  %v7113_v25 = vld [vmem:[#allocation3 + $0x20] sm:$0xff] }
 0x527   :  { %15249 = vmatpush3.bf16.msra.mxu0 %v20724_v18  ;;  %15236 = vmatprep.mubr.msk.bf16.mxu0 %vm88_vm2, %v6952_v56  ;;  %v23456_v18 = vld [vmem:[#allocation126_spill] sm:$0xff]  ;;  %v6947_v56 = vmul.f32 %v23459_v1, %v20272_v55  ;;  %v7225_v55 = vmul.f32 %v19346_v59, %v7113_v25  ;;  %v16380_v59 = vld [vmem:[%s22799_s5 + $0x118] sm:$0xff]  }
 0x528   :  { %15250 = vmatprep.subr.bf16.mxu0 %v16378_v23  ;;  %v6940_v50 = vmul.f32 %v23456_v18, %v20212_v24  ;;  %v6944_v24 = vmul.f32 %v23460_v12, %v20256_v20  ;;  %v7224_v18 = vmul.f32 %v19349_v3, %v7112_v28  ;;  %v23464_v1 = vld [vmem:[#allocation82_spill] sm:$0xff]  ;;  %v7121_v28 = vld [vmem:[#allocation3 + $0x60] sm:$0xff] }
 0x529   :  { %v6956_v63 = vpack.c.bf16 %v6947_v56, %v6946_v2  ;;  %v7117_v2 = vld [vmem:[#allocation3 + $0x40] sm:$0xff]  ;;  %v7226_v56 = vmul.f32 %v23464_v1, %v7114_v42 }
 0x52a   :  { %v6953_v19 = vpack.c.bf16 %v6941_v10, %v6940_v50  ;;  %v6837_v10 = vld [vmem:[#allocation3 + $0x8f] sm:$0xff]  ;;  %v7240_v20 = vpack.c.bf16 %v7225_v55, %v7224_v18  ;;  %v7229_v3 = vmul.f32 %v19376_v9, %v7117_v2  ;;  %v23469_v42 = vld [vmem:[#allocation89_spill] sm:$0xff] }
 0x52b   :  { %15251 = vmatpush3.bf16.msra.mxu0 %v16378_v23  ;;  %v6955_v23 = vpack.c.bf16 %v6945_v6, %v6944_v24  ;;  %v6949_v37 = vmul.f32 %v23462_v34, %v6837_v10  ;;  %v23463_v6 = vld [vmem:[#allocation81_spill] sm:$0xff] }
 0x52c   :  { %15268 = vmatprep.subr.bf16.mxu0 %v16379_v32  ;;  %v7118_v10 = vld [vmem:[#allocation3 + $0x48] sm:$0xff] }
 0x52d   :  { %v6957_v50 = vpack.c.bf16 %v6949_v37, %v6948_v40  ;;  %v23466_v40 = vld [vmem:[#allocation130_spill] sm:$0xff]  ;;  %v23467_v37 = vld [vmem:[#allocation87_spill] sm:$0xff] }
 0x52e   :  { %15237 = vmatmul.mubr.msk.bf16.gmra.mrb[20].mxu0 %vm88_vm2, %v6953_v19  ;;  %v7115_v19 = vld [vmem:[#allocation3 + $0x30] sm:$0xff]  ;;  %v7230_v34 = vmul.f32 %v23466_v40, %v7118_v10  ;;  %v7233_v25 = vmul.f32 %v23467_v37, %v7121_v28  ;;  %v23473_v10 = vld [vmem:[#allocation93_spill] sm:$0xff]  ;;  %v23474_v28 = vld [vmem:[#allocation92_spill] sm:$0xff] }
 0x52f   :  { %15240 = vmatprep.mubr.msk.bf16.mxu0 %vm88_vm2, %v6954_v27  ;;  %v7116_v27 = vld [vmem:[#allocation3 + $0x38] sm:$0xff]  ;;  %v7227_v16 = vmul.f32 %v23463_v6, %v7115_v19 }
 0x530   :  { %v7228_v11 = vmul.f32 %v19379_v35, %v7116_v27  ;;  %v23468_v19 = vld [vmem:[#allocation132_spill] sm:$0xff] }
 0x531   :  { %v7241_v12 = vpack.c.bf16 %v7227_v16, %v7226_v56  ;;  %v7125_v27 = vld [vmem:[#allocation3 + $0x80] sm:$0xff] }
 0x532   :  { %v7242_v24 = vpack.c.bf16 %v7229_v3, %v7228_v11  ;;  %v23470_v16 = vld [vmem:[#allocation133_spill] sm:$0xff]  ;;  %v23471_v11 = vld [vmem:[#allocation88_spill] sm:$0xff] }
 0x533   :  { %v7237_v1 = vmul.f32 %v23471_v11, %v7125_v27  ;;  %v7409_v11 = vld [vmem:[#allocation3 + $0x51] sm:$0xff] }
 0x536   :  { %15241 = vmatmul.mubr.msk.bf16.gmra.mrb[24].mxu0 %vm88_vm2, %v6955_v23  ;;  %v7119_v23 = vld [vmem:[#allocation3 + $0x50] sm:$0xff] }
 0x537   :  { %15244 = vmatprep.mubr.msk.bf16.mxu0 %vm88_vm2, %v6956_v63  ;;  %v7120_v63 = vld [vmem:[#allocation3 + $0x58] sm:$0xff]  ;;  %v7231_v35 = vmul.f32 %v19387_v49, %v7119_v23 }
 0x538   :  { %v7232_v9 = vmul.f32 %v23465_v41, %v7120_v63  ;;  %v23472_v23 = vld [vmem:[#allocation91_spill] sm:$0xff] }
 0x539   :  { %v7243_v18 = vpack.c.bf16 %v7231_v35, %v7230_v34  ;;  %v7238_v63 = vmul.f32 %v23472_v23, %v20659_v26 }
 0x53a   :  { %v7244_v55 = vpack.c.bf16 %v7233_v25, %v7232_v9  ;;  %v23475_v9 = vld [vmem:[#allocation90_spill] sm:$0xff] }
 0x53b   :  { %v7405_v25 = vld [vmem:[#allocation3 + $0x31] sm:$0xff] }
 0x53e   :  { %15245 = vmatmul.mubr.msk.bf16.gmra.mrb[28].mxu0 %vm88_vm2, %v6957_v50  ;;  %v7123_v50 = vld [vmem:[#allocation3 + $0x70] sm:$0xff] }
 0x53f   :  { %15252 = vmatprep.mubr.msk.bf16.mxu0 %vm88_vm2, %v7240_v20  ;;  %v7122_v20 = vld [vmem:[#allocation3 + $0x68] sm:$0xff]  ;;  %v7235_v49 = vmul.f32 %v23468_v19, %v7123_v50 }
 0x540   :  { %v7234_v2 = vmul.f32 %v23470_v16, %v7122_v20  ;;  %v7404_v50 = vld [vmem:[#allocation3 + $0x29] sm:$0xff] }
 0x541   :  { %v23477_v19 = vld [vmem:[#allocation97_spill] sm:$0xff] }
 0x542   :  { %v7245_v56 = vpack.c.bf16 %v7235_v49, %v7234_v2  ;;  %v23478_v49 = vld [vmem:[#allocation96_spill] sm:$0xff] }
 0x546   :  { %15253 = vmatmul.mubr.msk.bf16.vlgmr.msra.gmra.mrb[16].mxu0 %vm88_vm2, %v7241_v12  ;;  %v7402_v12 = vld [vmem:[#allocation3 + $0x19] sm:$0xff] }
 0x547   :  { %15269 = vmatpush3.bf16.msra.mxu0 %v16379_v32  ;;  %15256 = vmatprep.mubr.msk.bf16.mxu0 %vm88_vm2, %v7242_v24  ;;  %v7124_v32 = vld [vmem:[#allocation3 + $0x78] sm:$0xff]  ;;  %v7127_v24 = vld [vmem:[#allocation3 + $0x90] sm:$0xff]  ;;  %v7514_v35 = vmul.f32 %v23473_v10, %v7402_v12 }
 0x548   :  { %15270 = vmatprep.subr.bf16.mxu0 %v16380_v59  ;;  %v7236_v6 = vmul.f32 %v23469_v42, %v7124_v32  ;;  %v7239_v40 = vmul.f32 %v23475_v9, %v7127_v24  ;;  %v23476_v32 = vld [vmem:[#allocation94_spill] sm:$0xff]  ;;  %v23479_v42 = vld [vmem:[#allocation95_spill] sm:$0xff]  ;;  %v23481_v24 = vld [vmem:[#allocation137_spill] sm:$0xff] }
 0x549   :  { %v7517_v20 = vmul.f32 %v23476_v32, %v7405_v25  ;;  %v23480_v12 = vld [vmem:[#allocation134_spill] sm:$0xff] }
 0x54a   :  { %v7246_v3 = vpack.c.bf16 %v7237_v1, %v7236_v6  ;;  %v7247_v34 = vpack.c.bf16 %v7239_v40, %v7238_v63  ;;  %v7516_v6 = vmul.f32 %v23479_v42, %v7404_v50  ;;  %v7410_v1 = vld [vmem:[#allocation3 + $0x59] sm:$0xff]  ;;  %v7413_v40 = vld [vmem:[#allocation3 + $0x71] sm:$0xff] }
 0x54b   :  { %15271 = vmatpush3.bf16.msra.mxu0 %v16380_v59  ;;  %v7403_v59 = vld [vmem:[#allocation3 + $0x21] sm:$0xff]  ;;  %v7522_v23 = vmul.f32 %v23481_v24, %v7410_v1  ;;  %v23488_v42 = vld [vmem:[#allocation143_spill] sm:$0xff] }
 0x54c   :  { %v7515_v41 = vmul.f32 %v23474_v28, %v7403_v59  ;;  %v7531_v16 = vpack.c.bf16 %v7517_v20, %v7516_v6  ;;  %v7521_v59 = vmul.f32 %v23480_v12, %v7409_v11  ;;  %v23482_v63 = vld [vmem:[#allocation136_spill] sm:$0xff]  ;;  %v23487_v20 = vld [vmem:[#allocation139_spill] sm:$0xff]  ;;  %v7528_v6 = vmul.f32 %v23488_v42, %v20769_v61 }
 0x54d   :  { %v23486_v50 = vld [vmem:[#allocation140_spill] sm:$0xff] }
 0x54e   :  { %15257 = vmatmul.mubr.msk.bf16.gmra.mrb[20].mxu0 %vm88_vm2, %v7243_v18  ;;  %v7530_v37 = vpack.c.bf16 %v7515_v41, %v7514_v35  ;;  %v7406_v18 = vld [vmem:[#allocation3 + $0x39] sm:$0xff]  ;;  %v7527_v32 = vmul.f32 %v23486_v50, %v20421_v44  ;;  %v20928_v61 = vld [vmem:[%s22800_s6 + $0x1] ss:$0 sm:$0xff] }
 0x54f   :  { %15260 = vmatprep.mubr.msk.bf16.mxu0 %vm88_vm2, %v7244_v55  ;;  %v7407_v55 = vld [vmem:[#allocation3 + $0x41] sm:$0xff]  ;;  %v7518_v26 = vmul.f32 %v23477_v19, %v7406_v18  ;;  %v23483_v35 = vld [vmem:[#allocation135_spill] sm:$0xff] }
 0x550   :  { %v7519_v27 = vmul.f32 %v23478_v49, %v7407_v55  ;;  %v23485_v18 = vld [vmem:[#allocation141_spill] sm:$0xff] }
 0x551   :  { %v7526_v55 = vmul.f32 %v23485_v18, %v20419_v31  ;;  %v16382_v31 = vld [vmem:[%s22799_s5 + $0x138] sm:$0xff]   ;;  %v20922_v44 = vld [vmem:[%s22799_s5 + $0x120] sm:$0xff]  }
 0x552   :  { %v7532_v2 = vpack.c.bf16 %v7519_v27, %v7518_v26  ;;  %v7417_v27 = vld [vmem:[#allocation3 + $0x91] sm:$0xff]  ;;  %15290 = vmatprep.subr.bf16.mxu1 %v16382_v31 }
 0x553   :  { %v7536_v49 = vpack.c.bf16 %v7527_v32, %v7526_v55  ;;  %15291 = vmatpush3.bf16.msra.mxu1 %v16382_v31  ;;  %v23496_v32 = vld [vmem:[#allocation59_spill] sm:$0xff] }
 0x554   :  { %15308 = vmatprep.subr.bf16.mxu1 %v20922_v44 }
 0x556   :  { %15261 = vmatmul.mubr.msk.bf16.gmra.mrb[24].mxu0 %vm88_vm2, %v7245_v56  ;;  %v7411_v56 = vld [vmem:[#allocation3 + $0x61] sm:$0xff] }
 0x557   :  { %15264 = vmatprep.mubr.msk.bf16.mxu0 %vm88_vm2, %v7246_v3  ;;  %v7408_v3 = vld [vmem:[#allocation3 + $0x49] sm:$0xff]  ;;  %v7523_v10 = vmul.f32 %v23482_v63, %v7411_v56  ;;  %v20933_v56 = vld [vmem:[%s22801_s7 + $0x1] ss:$0 sm:$0xff] }
 0x558   :  { %v7520_v28 = vmul.f32 %v23483_v35, %v7408_v3 }
 0x559   :  { %v7534_v9 = vpack.c.bf16 %v7523_v10, %v7522_v23 }
 0x55a   :  { %v7533_v41 = vpack.c.bf16 %v7521_v59, %v7520_v28 }
 0x55e   :  { %15265 = vmatmul.mubr.msk.bf16.gmra.mrb[28].mxu0 %vm88_vm2, %v7247_v34  ;;  %v7412_v34 = vld [vmem:[#allocation3 + $0x69] sm:$0xff] }
 0x55f   :  { %15272 = vmatprep.mubr.msk.bf16.mxu0 %vm88_vm2, %v7530_v37  ;;  %v23484_v37 = vld [vmem:[#allocation138_spill] sm:$0xff]  ;;  %v7524_v19 = vmul.f32 %v23487_v20, %v7412_v34  ;;  %v23497_v20 = vmax.f32 %v23496_v32, 0.0 }
 0x560   :  { %v7525_v25 = vmul.f32 %v23484_v37, %v7413_v40  ;;  %v23493_v37 = vld [vmem:[#allocation58_spill] sm:$0xff] }
 0x562   :  { %v7535_v26 = vpack.c.bf16 %v7525_v25, %v7524_v19  ;;  %v23494_v25 = vmax.f32 %v23493_v37, 0.0 }
 0x566   :  { %15273 = vmatmul.mubr.msk.bf16.vlgmr.msra.gmra.mrb[16].mxu0 %vm88_vm2, %v7531_v16  ;;  %v23489_v16 = vld [vmem:[#allocation142_spill] sm:$0xff] }
 0x567   :  { %15276 = vmatprep.mubr.msk.bf16.mxu0 %vm88_vm2, %v7532_v2  ;;  %v7529_v2 = vmul.f32 %v23489_v16, %v7417_v27 }
 0x569   :  { %v7537_v11 = vpack.c.bf16 %v7529_v2, %v7528_v6 }
 0x56e   :  { %15277 = vmatmul.mubr.msk.bf16.gmra.mrb[20].mxu0 %vm88_vm2, %v7533_v41  ;;  %v23490_v41 = vld [vmem:[#allocation57_spill] sm:$0xff] }
 0x56f   :  { %15280 = vmatprep.mubr.msk.bf16.mxu0 %vm88_vm2, %v7534_v9  ;;  %v23491_v9 = vmax.f32 %v23490_v41, 0.0 }
 0x576   :  { %15281 = vmatmul.mubr.msk.bf16.gmra.mrb[24].mxu0 %vm88_vm2, %v7535_v26 }
 0x577   :  { %15284 = vmatprep.mubr.msk.bf16.mxu0 %vm88_vm2, %v7536_v49  ;;  %v23499_v49 = vld [vmem:[#allocation61_spill] sm:$0xff] }
 0x578   :  { %v23500_v27 = vmax.f32 %v23499_v49, 0.0 }
 0x57e   :  { %15285 = vmatmul.mubr.msk.bf16.gmra.mrb[28].mxu0 %vm88_vm2, %v7537_v11 }
 0x639   :  { %v15274_v1 = vpop.f32.mrb[16].mxu0 }
 0x63a   :  { %v7702_v3 = vmul.f32 %v15274_v1, %v20928_v61  ;;  %v7613_v12 = vpop.f32.mrb[17].mxu0 }
 0x63b   :  { %v7700_v59 = vmul.f32 %v20928_v61, %v7613_v12  ;;  %v15275_v24 = vpop.f32.mrb[18].mxu0 }
 0x63c   :  { %v7726_v23 = vadd.f32 %v20933_v56, %v7702_v3  ;;  %v7703_v63 = vmul.f32 %v15275_v24, %v20928_v61  ;;  %v7616_v10 = vpop.f32.mrb[19].mxu0 }
 0x63d   :  { %v7724_v35 = vadd.f32 %v20933_v56, %v7700_v59  ;;  %v7701_v28 = vmul.f32 %v20928_v61, %v7616_v10  ;;  %v23502_v10 = vld [vmem:[#allocation67_spill] sm:$0xff] }
 0x63e   :  { %v20943_v40 = vadd.f32 %v7726_v23, %v23491_v9  ;;  %v7727_v34 = vadd.f32 %v20933_v56, %v7703_v63  ;;  %v23505_v9 = vld [vmem:[#allocation68_spill] sm:$0xff] }
 0x63f   :  { %v20948_v18 = vadd.f32 %v7724_v35, %v23494_v25  ;;  %v7725_v55 = vadd.f32 %v20933_v56, %v7701_v28  ;;  %v23503_v35 = vmax.f32 %v23502_v10, 0.0  ;;  %v23514_v10 = vld [vmem:[#allocation145_spill] sm:$0xff] }
 0x640   :  { %23492 = vst [vmem:[#allocation49_spill] sm:$0xff] %v20943_v40  ;;  %v22844_v50 = vmax.f32 %v20943_v40, 0.0  ;;  %v20954_v19 = vadd.f32 %v7727_v34, %v23497_v20  ;;  %v23506_v34 = vmax.f32 %v23505_v9, 0.0  ;;  %v23508_v20 = vld [vmem:[#allocation69_spill] sm:$0xff] }
 0x641   :  { %23495 = vst [vmem:[#allocation53_spill] sm:$0xff] %v20948_v18  ;;  %v22843_v26 = vmax.f32 %v20948_v18, 0.0  ;;  %v20959_v42 = vadd.f32 %v7725_v55, %v23500_v27  ;;  %v15278_v6 = vpop.f32.mrb[20].mxu0  ;;  %v7929_v55 = vld [vmem:[#allocation3 + $0x8] sm:$0xff]  ;;  %v23509_v49 = vmax.f32 %v23508_v20, 0.0 }
 0x642   :  { %23498 = vst [vmem:[#allocation51_spill] sm:$0xff] %v20954_v19  ;;  %7774 = vst.msk [vmem:[#allocation3 + $0x20] sm:$0xff] %vm88_vm2, %v22844_v50  ;;  %v22842_v16 = vmax.f32 %v20954_v19, 0.0  ;;  %v7706_v2 = vmul.f32 %v15278_v6, %v20928_v61  ;;  %v7629_v11 = vpop.f32.mrb[21].mxu0 }
 0x643   :  { %23501 = vst [vmem:[#allocation52_spill] sm:$0xff] %v20959_v42  ;;  %7772 = vst.msk [vmem:[#allocation3 + $0x10] sm:$0xff] %vm88_vm2, %v22843_v26  ;;  %v22841_v31 = vmax.f32 %v20959_v42, 0.0  ;;  %v7704_v1 = vmul.f32 %v20928_v61, %v7629_v11  ;;  %v15279_v3 = vpop.f32.mrb[22].mxu0  ;;  %v23521_v26 = vld [vmem:[#allocation75_spill] sm:$0xff] }
 0x644   :  { %7775 = vst.msk [vmem:[#allocation3 + $0x28] sm:$0xff] %vm88_vm2, %v22842_v16  ;;  %v7730_v12 = vadd.f32 %v20933_v56, %v7706_v2  ;;  %v7707_v59 = vmul.f32 %v15279_v3, %v20928_v61  ;;  %v7632_v24 = vpop.f32.mrb[23].mxu0  ;;  %v23511_v2 = vld [vmem:[#allocation70_spill] sm:$0xff] }
 0x645   :  { %7773 = vst.msk [vmem:[#allocation3 + $0x18] sm:$0xff] %vm88_vm2, %v22841_v31  ;;  %v7728_v23 = vadd.f32 %v20933_v56, %v7704_v1  ;;  %v7705_v63 = vmul.f32 %v20928_v61, %v7632_v24  ;;  %v23512_v11 = vmax.f32 %v23511_v2, 0.0 }
 0x646   :  { %v20983_v28 = vadd.f32 %v7730_v12, %v23503_v35  ;;  %v7731_v41 = vadd.f32 %v20933_v56, %v7707_v59  ;;  %v8041_v35 = vmul.f32 %v23514_v10, %v7929_v55 }
 0x647   :  { %v20988_v37 = vadd.f32 %v7728_v23, %v23506_v34  ;;  %v7729_v25 = vadd.f32 %v20933_v56, %v7705_v63 }
 0x648   :  { %23504 = vst [vmem:[#allocation54_spill] sm:$0xff] %v20983_v28  ;;  %v22840_v32 = vmax.f32 %v20983_v28, 0.0  ;;  %v20994_v27 = vadd.f32 %v7731_v41, %v23509_v49 }
 0x649   :  { %23507 = vst [vmem:[#allocation60_spill] sm:$0xff] %v20988_v37  ;;  %v22838_v6 = vmax.f32 %v20988_v37, 0.0  ;;  %v20999_v1 = vadd.f32 %v7729_v25, %v23512_v11  ;;  %v15282_v3 = vpop.f32.mrb[24].mxu0  ;;  %v21001_v12 = vld [vmem:[#allocation3 + $0x20] sm:$0xff] }
 0x64a   :  { %23510 = vst [vmem:[#allocation55_spill] sm:$0xff] %v20994_v27  ;;  %7778 = vst.msk [vmem:[#allocation3 + $0x40] sm:$0xff] %vm88_vm2, %v22840_v32  ;;  %v22839_v59 = vmax.f32 %v20994_v27, 0.0  ;;  %v7710_v24 = vmul.f32 %v15282_v3, %v20928_v61  ;;  %v7645_v23 = vpop.f32.mrb[25].mxu0  ;;  %v21008_v63 = vld [vmem:[#allocation3 + $0x10] sm:$0xff]  ;;  %v23515_v25 = vld [vmem:[#allocation144_spill] sm:$0xff] }
 0x64b   :  { %23513 = vst [vmem:[#allocation56_spill] sm:$0xff] %v20999_v1  ;;  %7776 = vst.msk [vmem:[#allocation3 + $0x30] sm:$0xff] %vm88_vm2, %v22838_v6  ;;  %v22845_v41 = vmax.f32 %v20999_v1, 0.0  ;;  %v7708_v9 = vmul.f32 %v20928_v61, %v7645_v23  ;;  %v15283_v34 = vpop.f32.mrb[26].mxu0  ;;  %v8042_v20 = vmul.f32 %v23515_v25, %v21008_v63  ;;  %v23516_v3 = vld [vmem:[#allocation146_spill] sm:$0xff]  ;;  %v23535_v27 = vld [vmem:[#allocation83_spill] sm:$0xff] }
 0x64c   :  { %7779 = vst.msk [vmem:[#allocation3 + $0x48] sm:$0xff] %vm88_vm2, %v22839_v59  ;;  %v7734_v49 = vadd.f32 %v20933_v56, %v7710_v24  ;;  %v7711_v55 = vmul.f32 %v15283_v34, %v20928_v61  ;;  %v7648_v2 = vpop.f32.mrb[27].mxu0  ;;  %v21023_v11 = vld [vmem:[#allocation3 + $0x18] sm:$0xff]  ;;  %v8044_v10 = vmul.f32 %v23516_v3, %v21001_v12  ;;  %v23518_v32 = vld [vmem:[#allocation74_spill] sm:$0xff]  ;;  %v23522_v3 = vmax.f32 %v23521_v26, 0.0 }
 0x64d   :  { %7777 = vst.msk [vmem:[#allocation3 + $0x38] sm:$0xff] %vm88_vm2, %v22845_v41  ;;  %v7732_v23 = vadd.f32 %v20933_v56, %v7708_v9  ;;  %v7709_v25 = vmul.f32 %v20928_v61, %v7648_v2  ;;  %v8057_v6 = vpack.c.bf16 %v8042_v20, %v8041_v35  ;;  %v23517_v59 = vld [vmem:[#allocation147_spill] sm:$0xff]  ;;  %v23519_v34 = vmax.f32 %v23518_v32, 0.0  ;;  %v16384_v35 = vld [vmem:[%s22799_s5 + $0x128] sm:$0xff]   ;;  %v23524_v32 = vld [vmem:[#allocation76_spill] sm:$0xff] }
 0x64e   :  { %v8043_v24 = vmul.f32 %v23517_v59, %v21023_v11  ;;  %v7735_v16 = vadd.f32 %v20933_v56, %v7711_v55  ;;  %v23525_v20 = vmax.f32 %v23524_v32, 0.0  ;;  %v21053_v55 = vld [vmem:[#allocation3 + $0x28] sm:$0xff]  ;;  %v21178_v18 = vld [vmem:[#allocation3 + $0x17] sm:$0xff] }
 0x64f   :  { %v21036_v31 = vadd.f32 %v7734_v49, %v23519_v34  ;;  %v21041_v50 = vadd.f32 %v7732_v23, %v23522_v3  ;;  %v7733_v41 = vadd.f32 %v20933_v56, %v7709_v25  ;;  %15292 = vmatprep.mubr.msk.bf16.mxu1 %vm88_vm2, %v8057_v6  ;;  %v23527_v2 = vld [vmem:[#allocation77_spill] sm:$0xff]  ;;  %v21254_v0 = vld [vmem:[#allocation3 + $0x19] sm:$0xff] }
 0x650   :  { %v8058_v9 = vpack.c.bf16 %v8044_v10, %v8043_v24  ;;  %v21051_v49 = vadd.f32 %v7735_v16, %v23525_v20  ;;  %v23528_v23 = vmax.f32 %v23527_v2, 0.0  ;;  %v23530_v20 = vld [vmem:[#allocation149_spill] sm:$0xff] }
 0x651   :  { %23520 = vst [vmem:[#allocation63_spill] sm:$0xff] %v21036_v31  ;;  %23523 = vst [vmem:[#allocation64_spill] sm:$0xff] %v21041_v50  ;;  %v22847_v59 = vmax.f32 %v21036_v31, 0.0  ;;  %v22846_v26 = vmax.f32 %v21041_v50, 0.0  ;;  %v15286_v6 = vpop.f32.mrb[28].mxu0  ;;  %v21061_v10 = vld [vmem:[#allocation3 + $0x40] sm:$0xff]  ;;  %v8045_v2 = vmul.f32 %v23530_v20, %v21053_v55 }
 0x652   :  { %23526 = vst [vmem:[#allocation65_spill] sm:$0xff] %v21051_v49  ;;  %v21058_v25 = vadd.f32 %v7733_v41, %v23528_v23  ;;  %15293 = vmatmul.mubr.msk.bf16.vlgmr.msra.gmra.mrb[32].mxu1 %vm88_vm2, %v8058_v9  ;;  %v22852_v16 = vmax.f32 %v21051_v49, 0.0  ;;  %v7714_v24 = vmul.f32 %v15286_v6, %v20928_v61  ;;  %v7661_v34 = vpop.f32.mrb[29].mxu0  ;;  %v21069_v3 = vld [vmem:[#allocation3 + $0x30] sm:$0xff]  ;;  %v23531_v23 = vld [vmem:[#allocation148_spill] sm:$0xff] }
 0x653   :  { %7782 = vst.msk [vmem:[#allocation3 + $0x60] sm:$0xff] %vm88_vm2, %v22847_v59  ;;  %15309 = vmatpush3.bf16.msra.mxu1 %v20922_v44  ;;  %7780 = vst.msk [vmem:[#allocation3 + $0x50] sm:$0xff] %vm88_vm2, %v22846_v26  ;;  %v7712_v9 = vmul.f32 %v20928_v61, %v7661_v34  ;;  %v15287_v32 = vpop.f32.mrb[30].mxu0  ;;  %v8046_v6 = vmul.f32 %v23531_v23, %v21069_v3  ;;  %v21083_v44 = vld [vmem:[%s22799_s5 + $0x140] sm:$0xff]   ;;  %v23532_v20 = vld [vmem:[#allocation150_spill] sm:$0xff] }
 0x654   :  { %23529 = vst [vmem:[#allocation62_spill] sm:$0xff] %v21058_v25  ;;  %15310 = vmatprep.subr.bf16.mxu1 %v16384_v35  ;;  %7783 = vst.msk [vmem:[#allocation3 + $0x68] sm:$0xff] %vm88_vm2, %v22852_v16  ;;  %v7738_v26 = vadd.f32 %v20933_v56, %v7714_v24  ;;  %v7715_v34 = vmul.f32 %v15287_v32, %v20928_v61  ;;  %v7664_v59 = vpop.f32.mrb[31].mxu0  ;;  %v21090_v41 = vld [vmem:[#allocation3 + $0x38] sm:$0xff]  ;;  %v8048_v23 = vmul.f32 %v23532_v20, %v21061_v10  ;;  %v21212_v40 = vld [vmem:[#allocation3 + $0x47] sm:$0xff] }
 0x655   :  { %v23533_v50 = vmax.f32 %v21058_v25, 0.0  ;;  %v7736_v31 = vadd.f32 %v20933_v56, %v7712_v9  ;;  %v7713_v49 = vmul.f32 %v20928_v61, %v7664_v59  ;;  %v8059_v1 = vpack.c.bf16 %v8046_v6, %v8045_v2  ;;  %v23534_v16 = vld [vmem:[#allocation151_spill] sm:$0xff]  ;;  %v23538_v20 = vld [vmem:[#allocation84_spill] sm:$0xff]  ;;  %v21118_v9 = vld [vmem:[#allocation3 + $0x48] sm:$0xff] }
 0x656   :  { %v8047_v24 = vmul.f32 %v23534_v16, %v21090_v41  ;;  %v23536_v32 = vmax.f32 %v23535_v27, 0.0  ;;  %v7739_v28 = vadd.f32 %v20933_v56, %v7715_v34  ;;  %v23539_v42 = vmax.f32 %v23538_v20, 0.0  ;;  %v23541_v16 = vld [vmem:[#allocation85_spill] sm:$0xff]  ;;  %v23544_v2 = vld [vmem:[#allocation86_spill] sm:$0xff] }
 0x657   :  { %7781 = vst.msk [vmem:[#allocation3 + $0x58] sm:$0xff] %vm88_vm2, %v23533_v50  ;;  %15311 = vmatpush3.bf16.msra.mxu1 %v16384_v35  ;;  %v7737_v50 = vadd.f32 %v20933_v56, %v7713_v49  ;;  %15296 = vmatprep.mubr.msk.bf16.mxu1 %vm88_vm2, %v8059_v1  ;;  %v23542_v27 = vmax.f32 %v23541_v16, 0.0  ;;  %v23547_v6 = vld [vmem:[#allocation153_spill] sm:$0xff]  ;;  %v23550_v16 = vld [vmem:[#allocation154_spill] sm:$0xff] }
 0x658   :  { %v21103_v37 = vadd.f32 %v7738_v26, %v23536_v32  ;;  %v21108_v25 = vadd.f32 %v7736_v31, %v23539_v42  ;;  %v8060_v61 = vpack.c.bf16 %v8048_v23, %v8047_v24  ;;  %15328 = vmatprep.subr.bf16.mxu1 %v21083_v44  ;;  %v23545_v42 = vmax.f32 %v23544_v2, 0.0  ;;  %v23548_v23 = vld [vmem:[#allocation152_spill] sm:$0xff]  ;;  %v8336_v8 = vld [vmem:[#allocation3 + $0x9] sm:$0xff] }
 0x659   :  { %v21116_v26 = vadd.f32 %v7739_v28, %v23542_v27  ;;  %v8049_v34 = vmul.f32 %v23547_v6, %v21118_v9  ;;  %v21158_v6 = vld [vmem:[#allocation3 + $0xf] sm:$0xff] }
 0x65a   :  { %23537 = vst [vmem:[#allocation66_spill] sm:$0xff] %v21103_v37  ;;  %23540 = vst [vmem:[#allocation124_spill] sm:$0xff] %v21108_v25  ;;  %v22861_v59 = vmax.f32 %v21103_v37, 0.0  ;;  %v22860_v35 = vmax.f32 %v21108_v25, 0.0  ;;  %v21123_v31 = vadd.f32 %v7737_v50, %v23545_v42  ;;  %15297 = vmatmul.mubr.msk.bf16.gmra.mrb[36].mxu1 %vm88_vm2, %v8060_v61  ;;  %v21130_v1 = vld [vmem:[#allocation3 + $0x50] sm:$0xff]  ;;  %v21132_v28 = vld [vmem:[#allocation3 + $0x60] sm:$0xff] }
 0x65b   :  { %23543 = vst [vmem:[#allocation71_spill] sm:$0xff] %v21116_v26  ;;  %v22858_v56 = vmax.f32 %v21116_v26, 0.0  ;;  %v8050_v24 = vmul.f32 %v23548_v23, %v21130_v1  ;;  %v23549_v50 = vld [vmem:[#allocation155_spill] sm:$0xff]  ;;  %v8052_v27 = vmul.f32 %v23550_v16, %v21132_v28  ;;  %v21155_v42 = vld [vmem:[#allocation3 + $0x68] sm:$0xff] }
 0x65c   :  { %23546 = vst [vmem:[#allocation123_spill] sm:$0xff] %v21123_v31  ;;  %7786 = vst.msk [vmem:[#allocation3 + $0x80] sm:$0xff] %vm88_vm2, %v22861_v59  ;;  %v22859_v49 = vmax.f32 %v21123_v31, 0.0  ;;  %v23555_v31 = vld [vmem:[#allocation158_spill] sm:$0xff]  ;;  %v23556_v25 = vld [vmem:[#allocation161_spill] sm:$0xff] }
 0x65d   :  { %7784 = vst.msk [vmem:[#allocation3 + $0x70] sm:$0xff] %vm88_vm2, %v22860_v35  ;;  %7787 = vst.msk [vmem:[#allocation3 + $0x88] sm:$0xff] %vm88_vm2, %v22858_v56  ;;  %v8061_v20 = vpack.c.bf16 %v8050_v24, %v8049_v34  ;;  %v7788_v34 = vld [vmem:[#allocation3 + $0x7] sm:$0xff] }
 0x65e   :  { %v21145_v32 = vld [vmem:[#allocation3 + $0x58] sm:$0xff]  ;;  %7785 = vst.msk [vmem:[#allocation3 + $0x78] sm:$0xff] %vm88_vm2, %v22859_v49  ;;  %v23551_v24 = vld [vmem:[#allocation157_spill] sm:$0xff]  ;;  %v7900_v37 = vmul.f32 %v23556_v25, %v7788_v34 }
 0x65f   :  { %v8051_v61 = vmul.f32 %v23549_v50, %v21145_v32  ;;  %15300 = vmatprep.mubr.msk.bf16.mxu1 %vm88_vm2, %v8061_v20  ;;  %v8053_v50 = vmul.f32 %v23551_v24, %v21155_v42  ;;  %v23552_v49 = vld [vmem:[#allocation156_spill] sm:$0xff]  ;;  %v21190_v34 = vld [vmem:[#allocation3 + $0x27] sm:$0xff] }
 0x660   :  { %v23553_v20 = vld [vmem:[#allocation160_spill] sm:$0xff]  ;;  %v21266_v33 = vld [vmem:[#allocation3 + $0x29] sm:$0xff] }
 0x661   :  { %v8062_v2 = vpack.c.bf16 %v8052_v27, %v8051_v61  ;;  %v7901_v61 = vmul.f32 %v23553_v20, %v21158_v6  ;;  %v21183_v20 = vld [vmem:[#allocation3 + $0x2f] sm:$0xff]  ;;  %v21221_v51 = vld [vmem:[#allocation3 + $0x57] sm:$0xff] }
 0x662   :  { %v21287_v48 = vld [vmem:[#allocation3 + $0x49] sm:$0xff]  ;;  %v21296_v58 = vld [vmem:[#allocation3 + $0x59] sm:$0xff] }
 0x663   :  { %15301 = vmatmul.mubr.msk.bf16.gmra.mrb[40].mxu1 %vm88_vm2, %v8062_v2  ;;  %v21162_v56 = vld [vmem:[#allocation3 + $0x80] sm:$0xff]  ;;  %v23554_v2 = vld [vmem:[#allocation159_spill] sm:$0xff]  ;;  %v7916_v19 = vpack.c.bf16 %v7901_v61, %v7900_v37 }
 0x664   :  { %v21160_v23 = vld [vmem:[#allocation3 + $0x70] sm:$0xff]  ;;  %v8056_v26 = vmul.f32 %v23555_v31, %v21162_v56  ;;  %v23559_v37 = vld [vmem:[#allocation164_spill] sm:$0xff] }
 0x665   :  { %v8054_v16 = vmul.f32 %v23552_v49, %v21160_v23  ;;  %v21168_v35 = vld [vmem:[#allocation3 + $0x78] sm:$0xff]  ;;  %v23558_v31 = vld [vmem:[#allocation162_spill] sm:$0xff]  ;;  %v21316_v47 = vld [vmem:[#allocation3 + $0x81] sm:$0xff] }
 0x666   :  { %v8055_v59 = vmul.f32 %v23554_v2, %v21168_v35  ;;  %v21180_v49 = vld [vmem:[#allocation3 + $0x1f] sm:$0xff]  ;;  %v16386_v2 = vld [vmem:[%s22799_s5 + $0x148] sm:$0xff]   ;;  %v21239_v39 = vld [vmem:[#allocation3 + $0x77] sm:$0xff] }
 0x667   :  { %v8063_v27 = vpack.c.bf16 %v8054_v16, %v8053_v50  ;;  %v23557_v50 = vld [vmem:[#allocation163_spill] sm:$0xff]  ;;  %v7903_v25 = vmul.f32 %v23558_v31, %v21180_v49  ;;  %v21241_v36 = vld [vmem:[#allocation3 + $0x7f] sm:$0xff] }
 0x668   :  { %v8064_v24 = vpack.c.bf16 %v8056_v26, %v8055_v59  ;;  %v7902_v16 = vmul.f32 %v23557_v50, %v21178_v18  ;;  %v7905_v59 = vmul.f32 %v23559_v37, %v21183_v20  ;;  %v23560_v26 = vld [vmem:[#allocation165_spill] sm:$0xff]  ;;  %v21204_v31 = vld [vmem:[#allocation3 + $0x4f] sm:$0xff]  ;;  %v21314_v13 = vld [vmem:[#allocation3 + $0x79] sm:$0xff] }
 0x669   :  { %15304 = vmatprep.mubr.msk.bf16.mxu1 %vm88_vm2, %v8063_v27  ;;  %v7904_v61 = vmul.f32 %v23560_v26, %v21190_v34  ;;  %v21201_v50 = vld [vmem:[#allocation3 + $0x3f] sm:$0xff]  ;;  %v23561_v37 = vld [vmem:[#allocation167_spill] sm:$0xff] }
 0x66a   :  { %v7917_v27 = vpack.c.bf16 %v7903_v25, %v7902_v16  ;;  %v23562_v25 = vld [vmem:[#allocation166_spill] sm:$0xff] }
 0x66b   :  { %15305 = vmatmul.mubr.msk.bf16.gmra.mrb[44].mxu1 %vm88_vm2, %v8064_v24  ;;  %v21199_v24 = vld [vmem:[#allocation3 + $0x37] sm:$0xff]  ;;  %v7907_v26 = vmul.f32 %v23562_v25, %v21201_v50  ;;  %v21223_v25 = vld [vmem:[#allocation3 + $0x5f] sm:$0xff]  ;;  %v21226_v15 = vld [vmem:[#allocation3 + $0x6f] sm:$0xff] }
 0x66c   :  { %15312 = vmatprep.mubr.msk.bf16.mxu1 %vm88_vm2, %v7916_v19  ;;  %v7918_v19 = vpack.c.bf16 %v7905_v59, %v7904_v61  ;;  %v7906_v16 = vmul.f32 %v23561_v37, %v21199_v24  ;;  %v16387_v59 = vld [vmem:[%s22799_s5 + $0x150] sm:$0xff]   ;;  %v23563_v61 = vld [vmem:[#allocation168_spill] sm:$0xff] }
 0x66d   :  { %v21301_v45 = vld [vmem:[#allocation3 + $0x71] sm:$0xff] }
 0x673   :  { %15313 = vmatmul.mubr.msk.bf16.vlgmr.msra.gmra.mrb[32].mxu1 %vm88_vm2, %v7917_v27  ;;  %v7909_v27 = vmul.f32 %v23563_v61, %v21204_v31  ;;  %v7910_v61 = vmul.f32 %v23565_v14, %v21221_v51  ;;  %v21244_v14 = vld [vmem:[#allocation3 + $0x11] sm:$0xff] }
 0x674   :  { %15329 = vmatpush3.bf16.msra.mxu1 %v21083_v44  ;;  %15316 = vmatprep.mubr.msk.bf16.mxu1 %vm88_vm2, %v7918_v19  ;;  %v23564_v44 = vld [vmem:[#allocation169_spill] sm:$0xff]  ;;  %v7919_v19 = vpack.c.bf16 %v7907_v26, %v7906_v16 }
 0x675   :  { %15330 = vmatprep.subr.bf16.mxu1 %v16386_v2  ;;  %v7908_v52 = vmul.f32 %v23564_v44, %v21212_v40  ;;  %v7911_v44 = vmul.f32 %v23566_v54, %v21223_v25  ;;  %v23568_v26 = vld [vmem:[#allocation173_spill] sm:$0xff]  ;;  %v23569_v54 = vld [vmem:[#allocation175_spill] sm:$0xff] }
 0x677   :  { %v7920_v37 = vpack.c.bf16 %v7909_v27, %v7908_v52  ;;  %v23567_v52 = vld [vmem:[#allocation172_spill] sm:$0xff]  ;;  %v7921_v38 = vpack.c.bf16 %v7911_v44, %v7910_v61 }
 0x678   :  { %15331 = vmatpush3.bf16.msra.mxu1 %v16386_v2  ;;  %v21233_v2 = vld [vmem:[#allocation3 + $0x67] sm:$0xff]  ;;  %v7913_v16 = vmul.f32 %v23567_v52, %v21226_v15  ;;  %v23571_v61 = vld [vmem:[#allocation176_spill] sm:$0xff] }
 0x679   :  { %15348 = vmatprep.subr.bf16.mxu1 %v16387_v59  ;;  %v7912_v27 = vmul.f32 %v23568_v26, %v21233_v2  ;;  %v23570_v52 = vld [vmem:[#allocation174_spill] sm:$0xff]  ;;  %v8449_v44 = vmul.f32 %v23571_v61, %v21244_v14 }
 0x67a   :  { %v7915_v29 = vmul.f32 %v23570_v52, %v21241_v36 }
 0x67b   :  { %15317 = vmatmul.mubr.msk.bf16.gmra.mrb[36].mxu1 %vm88_vm2, %v7919_v19  ;;  %v7922_v19 = vpack.c.bf16 %v7913_v16, %v7912_v27  ;;  %v23572_v16 = vld [vmem:[#allocation177_spill] sm:$0xff] }
 0x67c   :  { %15320 = vmatprep.mubr.msk.bf16.mxu1 %vm88_vm2, %v7920_v37  ;;  %v7914_v37 = vmul.f32 %v23569_v54, %v21239_v39  ;;  %v8448_v26 = vmul.f32 %v23572_v16, %v8336_v8  ;;  %v23573_v54 = vld [vmem:[#allocation179_spill] sm:$0xff]  ;;  %v23575_v8 = vld [vmem:[#allocation180_spill] sm:$0xff] }
 0x67d   :  { %v8450_v52 = vmul.f32 %v23573_v54, %v21254_v0  ;;  %v21277_v54 = vld [vmem:[#allocation3 + $0x41] sm:$0xff] }
 0x67e   :  { %v7923_v27 = vpack.c.bf16 %v7915_v29, %v7914_v37  ;;  %v8464_v21 = vpack.c.bf16 %v8449_v44, %v8448_v26  ;;  %v23576_v37 = vld [vmem:[#allocation181_spill] sm:$0xff]  ;;  %v16388_v26 = vld [vmem:[%s22799_s5 + $0x158] sm:$0xff]  }
 0x67f   :  { %v8452_v44 = vmul.f32 %v23576_v37, %v21266_v33 }
 0x683   :  { %15321 = vmatmul.mubr.msk.bf16.gmra.mrb[40].mxu1 %vm88_vm2, %v7921_v38  ;;  %v21256_v38 = vld [vmem:[#allocation3 + $0x21] sm:$0xff] }
 0x684   :  { %15324 = vmatprep.mubr.msk.bf16.mxu1 %vm88_vm2, %v7922_v19  ;;  %v21259_v19 = vld [vmem:[#allocation3 + $0x31] sm:$0xff]  ;;  %v8451_v61 = vmul.f32 %v23574_v62, %v21256_v38 }
 0x685   :  { %v8453_v29 = vmul.f32 %v23575_v8, %v21259_v19  ;;  %v21280_v62 = vld [vmem:[#allocation3 + $0x51] sm:$0xff] }
 0x686   :  { %v8465_v16 = vpack.c.bf16 %v8451_v61, %v8450_v52  ;;  %v23577_v8 = vld [vmem:[#allocation183_spill] sm:$0xff]  ;;  %v23578_v52 = vld [vmem:[#allocation182_spill] sm:$0xff] }
 0x687   :  { %v8455_v61 = vmul.f32 %v23578_v52, %v21277_v54  ;;  %v21298_v52 = vld [vmem:[#allocation3 + $0x61] sm:$0xff] }
 0x68b   :  { %15325 = vmatmul.mubr.msk.bf16.gmra.mrb[44].mxu1 %vm88_vm2, %v7923_v27  ;;  %v21275_v27 = vld [vmem:[#allocation3 + $0x39] sm:$0xff] }
 0x68c   :  { %15332 = vmatprep.mubr.msk.bf16.mxu1 %vm88_vm2, %v8464_v21  ;;  %v8466_v21 = vpack.c.bf16 %v8453_v29, %v8452_v44  ;;  %v8454_v37 = vmul.f32 %v23577_v8, %v21275_v27  ;;  %v16389_v29 = vld [vmem:[%s22799_s5 + $0x160] sm:$0xff]  }
 0x68d   :  { %v23579_v44 = vld [vmem:[#allocation184_spill] sm:$0xff] }
 0x693   :  { %15333 = vmatmul.mubr.msk.bf16.vlgmr.msra.gmra.mrb[32].mxu1 %vm88_vm2, %v8465_v16  ;;  %v8457_v16 = vmul.f32 %v23579_v44, %v21280_v62  ;;  %v8458_v44 = vmul.f32 %v23581_v22, %v21296_v58  ;;  %v23585_v22 = vld [vmem:[#allocation191_spill] sm:$0xff] }
 0x694   :  { %15349 = vmatpush3.bf16.msra.mxu1 %v16387_v59  ;;  %15336 = vmatprep.mubr.msk.bf16.mxu1 %vm88_vm2, %v8466_v21  ;;  %v23580_v59 = vld [vmem:[#allocation185_spill] sm:$0xff]  ;;  %v8467_v21 = vpack.c.bf16 %v8455_v61, %v8454_v37 }
 0x695   :  { %15350 = vmatprep.subr.bf16.mxu1 %v16388_v26  ;;  %v8456_v60 = vmul.f32 %v23580_v59, %v21287_v48  ;;  %v8459_v59 = vmul.f32 %v23582_v53, %v21298_v52  ;;  %v23584_v61 = vld [vmem:[#allocation189_spill] sm:$0xff]  ;;  %v8462_v53 = vmul.f32 %v23585_v22, %v21314_v13 }
 0x697   :  { %v8468_v8 = vpack.c.bf16 %v8457_v16, %v8456_v60  ;;  %v23583_v60 = vld [vmem:[#allocation188_spill] sm:$0xff]  ;;  %v8469_v17 = vpack.c.bf16 %v8459_v59, %v8458_v44  ;;  %v23588_v44 = vld [vmem:[#allocation193_spill] sm:$0xff] }
 0x698   :  { %15351 = vmatpush3.bf16.msra.mxu1 %v16388_v26  ;;  %v21308_v26 = vld [vmem:[#allocation3 + $0x69] sm:$0xff]  ;;  %v8461_v37 = vmul.f32 %v23583_v60, %v21301_v45  ;;  %v23587_v60 = vld [vmem:[#allocation192_spill] sm:$0xff]  ;;  %v8738_v59 = vmul.f32 %v23588_v44, %v21158_v6  ;;  %v23593_v6 = vld [vmem:[#allocation199_spill] sm:$0xff] }
 0x699   :  { %15368 = vmatprep.subr.bf16.mxu1 %v16389_v29  ;;  %v8460_v16 = vmul.f32 %v23584_v61, %v21308_v26  ;;  %v8739_v4 = vmul.f32 %v23587_v60, %v21178_v18  ;;  %v23592_v60 = vld [vmem:[#allocation197_spill] sm:$0xff]  ;;  %v23594_v44 = vld [vmem:[#allocation198_spill] sm:$0xff] }
 0x69a   :  { %v8742_v57 = vmul.f32 %v23592_v60, %v21183_v20  ;;  %v23599_v60 = vld [vmem:[#allocation204_spill] sm:$0xff] }
 0x69b   :  { %15337 = vmatmul.mubr.msk.bf16.gmra.mrb[36].mxu1 %vm88_vm2, %v8467_v21  ;;  %v8470_v21 = vpack.c.bf16 %v8461_v37, %v8460_v16  ;;  %v8754_v61 = vpack.c.bf16 %v8739_v4, %v8738_v59  ;;  %v16390_v4 = vld [vmem:[%s22799_s5 + $0x168] sm:$0xff]   ;;  %v8745_v59 = vmul.f32 %v23594_v44, %v21212_v40 }
 0x69c   :  { %15340 = vmatprep.mubr.msk.bf16.mxu1 %vm88_vm2, %v8468_v8  ;;  %v23586_v8 = vld [vmem:[#allocation190_spill] sm:$0xff] }
 0x69d   :  { %v8463_v43 = vmul.f32 %v23586_v8, %v21316_v47  ;;  %v23591_v8 = vld [vmem:[#allocation196_spill] sm:$0xff] }
 0x69e   :  { %v8743_v46 = vmul.f32 %v23591_v8, %v21199_v24 }
 0x69f   :  { %v8471_v37 = vpack.c.bf16 %v8463_v43, %v8462_v53  ;;  %v8744_v53 = vmul.f32 %v23593_v6, %v21201_v50  ;;  %v23600_v6 = vld [vmem:[#allocation205_spill] sm:$0xff] }
 0x6a0   :  { %v8756_v43 = vpack.c.bf16 %v8743_v46, %v8742_v57  ;;  %v23596_v57 = vld [vmem:[#allocation201_spill] sm:$0xff]  ;;  %v8750_v44 = vmul.f32 %v23600_v6, %v21226_v15 }
 0x6a1   :  { %v8757_v46 = vpack.c.bf16 %v8745_v59, %v8744_v53  ;;  %v21364_v59 = vld [vmem:[#allocation3 + $0x87] sm:$0xff] }
 0x6a2   :  { %v21400_v6 = vld [vmem:[#allocation3 + $0x88] sm:$0xff] }
 0x6a3   :  { %15341 = vmatmul.mubr.msk.bf16.gmra.mrb[40].mxu1 %vm88_vm2, %v8469_v17  ;;  %v23589_v17 = vld [vmem:[#allocation195_spill] sm:$0xff] }
 0x6a4   :  { %15344 = vmatprep.mubr.msk.bf16.mxu1 %vm88_vm2, %v8470_v21  ;;  %v8740_v16 = vmul.f32 %v23589_v17, %v21180_v49  ;;  %v23590_v21 = vld [vmem:[#allocation194_spill] sm:$0xff] }
 0x6a5   :  { %v8741_v22 = vmul.f32 %v23590_v21, %v21190_v34 }
 0x6a7   :  { %v8755_v5 = vpack.c.bf16 %v8741_v22, %v8740_v16  ;;  %v23597_v16 = vld [vmem:[#allocation203_spill] sm:$0xff]  ;;  %v23598_v22 = vld [vmem:[#allocation202_spill] sm:$0xff] }
 0x6a8   :  { %v8748_v21 = vmul.f32 %v23597_v16, %v21223_v25  ;;  %v8749_v8 = vmul.f32 %v23598_v22, %v21233_v2  ;;  %v8933_v16 = vpack.c.bf16 %v21053_v55, %v21001_v12  ;;  %v8934_v22 = vpack.c.bf16 %v21090_v41, %v21069_v3 }
 0x6ab   :  { %15345 = vmatmul.mubr.msk.bf16.gmra.mrb[44].mxu1 %vm88_vm2, %v8471_v37  ;;  %v16391_v37 = vld [vmem:[%s22799_s5 + $0x170] sm:$0xff]  }
 0x6ac   :  { %15352 = vmatprep.mubr.msk.bf16.mxu1 %vm88_vm2, %v8754_v61  ;;  %v23595_v61 = vld [vmem:[#allocation200_spill] sm:$0xff] }
 0x6ad   :  { %v8747_v17 = vmul.f32 %v23595_v61, %v21221_v51  ;;  %v23601_v61 = vld [vmem:[#allocation207_spill] sm:$0xff] }
 0x6b3   :  { %15353 = vmatmul.mubr.msk.bf16.vlgmr.msra.gmra.mrb[32].mxu1 %vm88_vm2, %v8755_v5  ;;  %v8746_v5 = vmul.f32 %v23596_v57, %v21204_v31  ;;  %v23602_v57 = vld [vmem:[#allocation206_spill] sm:$0xff] }
 0x6b4   :  { %15369 = vmatpush3.bf16.msra.mxu1 %v16389_v29  ;;  %15356 = vmatprep.mubr.msk.bf16.mxu1 %vm88_vm2, %v8756_v43  ;;  %v8751_v43 = vmul.f32 %v23599_v60, %v21239_v39  ;;  %v8936_v60 = vpack.c.bf16 %v21145_v32, %v21130_v1 }
 0x6b5   :  { %15370 = vmatprep.subr.bf16.mxu1 %v16390_v4  ;;  %v8758_v29 = vpack.c.bf16 %v8747_v17, %v8746_v5  ;;  %v8752_v17 = vmul.f32 %v23601_v61, %v21241_v36  ;;  %v8753_v5 = vmul.f32 %v23602_v57, %v21364_v59 }
 0x6b6   :  { %v8760_v53 = vpack.c.bf16 %v8751_v43, %v8750_v44  ;;  %v8938_v43 = vpack.c.bf16 %v21168_v35, %v21160_v23  ;;  %v23603_v44 = vld [vmem:[#allocation209_spill] sm:$0xff] }
 0x6b8   :  { %15371 = vmatpush3.bf16.msra.mxu1 %v16390_v4  ;;  %v8759_v4 = vpack.c.bf16 %v8749_v8, %v8748_v21  ;;  %v16392_v21 = vld [vmem:[%s22799_s5 + $0x178] sm:$0xff]   ;;  %v8935_v8 = vpack.c.bf16 %v21118_v9, %v21061_v10 }
 0x6b9   :  { %15388 = vmatprep.subr.bf16.mxu1 %v16391_v37 }
 0x6bb   :  { %15357 = vmatmul.mubr.msk.bf16.gmra.mrb[36].mxu1 %vm88_vm2, %v8757_v46  ;;  %v8761_v46 = vpack.c.bf16 %v8753_v5, %v8752_v17  ;;  %v8939_v17 = vpack.c.bf16 %v21400_v6, %v21162_v56  ;;  %v16399_v5 = vld [vmem:[%s22799_s5 + $0x1c0] sm:$0xff]  }
 0x6bc   :  { %15360 = vmatprep.mubr.msk.bf16.mxu1 %vm88_vm2, %v8758_v29  ;;  %v8932_v29 = vpack.c.bf16 %v21023_v11, %v21008_v63  ;;  %v16393_v63 = vld [vmem:[%s22799_s5 + $0x180] sm:$0xff]   ;;  %15468 = vmatprep.subr.bf16.mxu0 %v16399_v5 }
 0x6bd   :  { %15469 = vmatpush3.bf16.msra.mxu0 %v16399_v5  ;;  %v23611_v5 = vld [vmem:[#allocation216_spill] sm:$0xff] }
 0x6c3   :  { %15361 = vmatmul.mubr.msk.bf16.gmra.mrb[40].mxu1 %vm88_vm2, %v8759_v4  ;;  %v9206_v4 = vmul.f32 %v23603_v44, %v21244_v14  ;;  %v23606_v14 = vld [vmem:[#allocation213_spill] sm:$0xff] }
 0x6c4   :  { %15364 = vmatprep.mubr.msk.bf16.mxu1 %vm88_vm2, %v8760_v53  ;;  %v23604_v53 = vld [vmem:[#allocation208_spill] sm:$0xff] }
 0x6c5   :  { %v9207_v61 = vmul.f32 %v23604_v53, %v21254_v0 }
 0x6c7   :  { %v9222_v57 = vpack.c.bf16 %v9207_v61, %v9206_v4  ;;  %v23609_v4 = vld [vmem:[#allocation214_spill] sm:$0xff] }
 0x6c8   :  { %v9213_v53 = vmul.f32 %v23609_v4, %v21287_v48  ;;  %v16395_v61 = vld [vmem:[%s22799_s5 + $0x190] sm:$0xff]  }
 0x6c9   :  { %v23616_v4 = vld [vmem:[#allocation219_spill] sm:$0xff] }
 0x6cb   :  { %15365 = vmatmul.mubr.msk.bf16.gmra.mrb[44].mxu1 %vm88_vm2, %v8761_v46  ;;  %v23605_v46 = vld [vmem:[#allocation210_spill] sm:$0xff] }
 0x6cc   :  { %15372 = vmatprep.mubr.msk.bf16.mxu1 %vm88_vm2, %v8932_v29  ;;  %v9209_v29 = vmul.f32 %v23605_v46, %v21266_v33  ;;  %v9215_v46 = vmul.f32 %v23611_v5, %v21296_v58  ;;  %v21447_v5 = vld [vmem:[#allocation3 + $0x89] sm:$0xff] }
 0x6d3   :  { %15373 = vmatmul.mubr.msk.bf16.vlgmr.msra.gmra.mrb[32].mxu1 %vm88_vm2, %v8933_v16  ;;  %v9210_v16 = vmul.f32 %v23606_v14, %v21259_v19 }
 0x6d4   :  { %15389 = vmatpush3.bf16.msra.mxu1 %v16391_v37  ;;  %15376 = vmatprep.mubr.msk.bf16.mxu1 %vm88_vm2, %v8934_v22  ;;  %v8937_v37 = vpack.c.bf16 %v21155_v42, %v21132_v28 }
 0x6d5   :  { %15390 = vmatprep.subr.bf16.mxu1 %v16392_v21 }
 0x6d8   :  { %15391 = vmatpush3.bf16.msra.mxu1 %v16392_v21  ;;  %v23607_v21 = vld [vmem:[#allocation212_spill] sm:$0xff] }
 0x6d9   :  { %15408 = vmatprep.subr.bf16.mxu1 %v16393_v63  ;;  %v9211_v22 = vmul.f32 %v23607_v21, %v21275_v27  ;;  %v23613_v21 = vld [vmem:[#allocation218_spill] sm:$0xff] }
 0x6db   :  { %15377 = vmatmul.mubr.msk.bf16.gmra.mrb[36].mxu1 %vm88_vm2, %v8935_v8  ;;  %v23608_v8 = vld [vmem:[#allocation211_spill] sm:$0xff]  ;;  %v9224_v44 = vpack.c.bf16 %v9211_v22, %v9210_v16  ;;  %v9217_v22 = vmul.f32 %v23613_v21, %v21308_v26  ;;  %v23620_v21 = vld [vmem:[#allocation224_spill] sm:$0xff] }
 0x6dc   :  { %15380 = vmatprep.mubr.msk.bf16.mxu1 %vm88_vm2, %v8936_v60  ;;  %v9208_v60 = vmul.f32 %v23608_v8, %v21256_v38  ;;  %v23614_v8 = vld [vmem:[#allocation221_spill] sm:$0xff] }
 0x6e3   :  { %15381 = vmatmul.mubr.msk.bf16.gmra.mrb[40].mxu1 %vm88_vm2, %v8937_v37  ;;  %v9223_v37 = vpack.c.bf16 %v9209_v29, %v9208_v60  ;;  %v23612_v29 = vld [vmem:[#allocation215_spill] sm:$0xff]  ;;  %v9218_v60 = vmul.f32 %v23614_v8, %v21301_v45  ;;  %v9497_v8 = vmul.f32 %v23620_v21, %v21180_v49 }
 0x6e4   :  { %15384 = vmatprep.mubr.msk.bf16.mxu1 %vm88_vm2, %v8938_v43  ;;  %v16394_v43 = vld [vmem:[%s22799_s5 + $0x188] sm:$0xff]   ;;  %v9212_v14 = vmul.f32 %v23612_v29, %v21277_v54  ;;  %v16396_v49 = vld [vmem:[%s22799_s5 + $0x198] sm:$0xff]  }
 0x6e5   :  { %v23618_v29 = vld [vmem:[#allocation222_spill] sm:$0xff]  ;;  %v23628_v21 = vld [vmem:[#allocation231_spill] sm:$0xff] }
 0x6eb   :  { %15385 = vmatmul.mubr.msk.bf16.gmra.mrb[44].mxu1 %vm88_vm2, %v8939_v17  ;;  %v23610_v17 = vld [vmem:[#allocation217_spill] sm:$0xff] }
 0x6ec   :  { %15392 = vmatprep.mubr.msk.bf16.mxu1 %vm88_vm2, %v9222_v57  ;;  %v9214_v57 = vmul.f32 %v23610_v17, %v21280_v62  ;;  %v9216_v17 = vmul.f32 %v23616_v4, %v21298_v52  ;;  %v23622_v4 = vld [vmem:[#allocation229_spill] sm:$0xff] }
 0x6ee   :  { %v9226_v16 = vpack.c.bf16 %v9215_v46, %v9214_v57  ;;  %v23617_v57 = vld [vmem:[#allocation223_spill] sm:$0xff] }
 0x6ef   :  { %v9220_v46 = vmul.f32 %v23617_v57, %v21316_v47 }
 0x6f3   :  { %15393 = vmatmul.mubr.msk.bf16.vlgmr.msra.gmra.mrb[32].mxu1 %vm88_vm2, %v9223_v37  ;;  %v23615_v37 = vld [vmem:[#allocation220_spill] sm:$0xff] }
 0x6f4   :  { %15409 = vmatpush3.bf16.msra.mxu1 %v16393_v63  ;;  %15396 = vmatprep.mubr.msk.bf16.mxu1 %vm88_vm2, %v9224_v44  ;;  %v9225_v63 = vpack.c.bf16 %v9213_v53, %v9212_v14  ;;  %v9219_v44 = vmul.f32 %v23615_v37, %v21314_v13  ;;  %v9221_v14 = vmul.f32 %v23618_v29, %v21447_v5  ;;  %v23621_v37 = vld [vmem:[#allocation226_spill] sm:$0xff] }
 0x6f5   :  { %15410 = vmatprep.subr.bf16.mxu1 %v16394_v43 }
 0x6f6   :  { %v9228_v53 = vpack.c.bf16 %v9219_v44, %v9218_v60  ;;  %v9499_v44 = vmul.f32 %v23621_v37, %v21183_v20  ;;  %v23625_v20 = vld [vmem:[#allocation230_spill] sm:$0xff]  ;;  %v23630_v37 = vld [vmem:[#allocation101_spill] sm:$0xff] }
 0x6f8   :  { %15411 = vmatpush3.bf16.msra.mxu1 %v16394_v43  ;;  %v9227_v43 = vpack.c.bf16 %v9217_v22, %v9216_v17  ;;  %v9229_v22 = vpack.c.bf16 %v9221_v14, %v9220_v46  ;;  %v9500_v17 = vmul.f32 %v23622_v4, %v21199_v24  ;;  %v9503_v24 = vmul.f32 %v23625_v20, %v21204_v31  ;;  %v23629_v31 = vld [vmem:[#allocation234_spill] sm:$0xff]  ;;  %v23632_v4 = vld [vmem:[#allocation99_spill] sm:$0xff] }
 0x6f9   :  { %15428 = vmatprep.subr.bf16.mxu1 %v16395_v61 }
 0x6fb   :  { %15397 = vmatmul.mubr.msk.bf16.gmra.mrb[36].mxu1 %vm88_vm2, %v9225_v63  ;;  %v23619_v63 = vld [vmem:[#allocation225_spill] sm:$0xff] }
 0x6fc   :  { %15400 = vmatprep.mubr.msk.bf16.mxu1 %vm88_vm2, %v9226_v16  ;;  %v9496_v16 = vmul.f32 %v23619_v63, %v21178_v18  ;;  %v23624_v18 = vld [vmem:[#allocation227_spill] sm:$0xff]  ;;  %v23627_v63 = vld [vmem:[#allocation232_spill] sm:$0xff] }
 0x6fd   :  { %v9498_v57 = vmul.f32 %v23624_v18, %v21190_v34  ;;  %v23626_v34 = vld [vmem:[#allocation233_spill] sm:$0xff]  ;;  %v23633_v18 = vld [vmem:[#allocation103_spill] sm:$0xff] }
 0x6fe   :  { %v9512_v60 = vpack.c.bf16 %v9497_v8, %v9496_v16  ;;  %v9504_v14 = vmul.f32 %v23626_v34, %v21221_v51  ;;  %v9505_v16 = vmul.f32 %v23627_v63, %v21223_v25  ;;  %v9502_v8 = vmul.f32 %v23628_v21, %v21212_v40  ;;  %v23639_v63 = vld [vmem:[#allocation107_spill] sm:$0xff] }
 0x6ff   :  { %v9513_v29 = vpack.c.bf16 %v9499_v44, %v9498_v57  ;;  %v9508_v51 = vmul.f32 %v23630_v37, %v21239_v39  ;;  %v23631_v44 = vld [vmem:[#allocation98_spill] sm:$0xff]  ;;  %v9506_v40 = vmul.f32 %v23632_v4, %v21233_v2  ;;  %v9510_v57 = vmul.f32 %v23633_v18, %v21364_v59  ;;  %v23635_v39 = vld [vmem:[#allocation105_spill] sm:$0xff] }
 0x700   :  { %v9509_v25 = vmul.f32 %v23631_v44, %v21241_v36  ;;  %v23636_v36 = vld [vmem:[#allocation102_spill] sm:$0xff] }
 0x701   :  { %v23649_v18 = vld [vmem:[#allocation18_spill] sm:$0xff] }
 0x703   :  { %15401 = vmatmul.mubr.msk.bf16.gmra.mrb[40].mxu1 %vm88_vm2, %v9227_v43  ;;  %v23623_v43 = vld [vmem:[#allocation228_spill] sm:$0xff] }
 0x704   :  { %15404 = vmatprep.mubr.msk.bf16.mxu1 %vm88_vm2, %v9228_v53  ;;  %v9501_v53 = vmul.f32 %v23623_v43, %v21201_v50  ;;  %v16397_v50 = vld [vmem:[%s22799_s5 + $0x1a0] sm:$0xff]   ;;  %v9518_v43 = vpack.c.bf16 %v9509_v25, %v9508_v51 }
 0x705   :  { %v23646_v25 = vld [vmem:[#allocation16_spill] sm:$0xff] }
 0x706   :  { %v9514_v46 = vpack.c.bf16 %v9501_v53, %v9500_v17  ;;  %v9399_v53 = vld [vmem:[#allocation3 + $0x8f] sm:$0xff]  ;;  %v9798_v4 = vmul.f32 %v23646_v25, %v21168_v35  ;;  %v23651_v35 = vld [vmem:[#allocation17_spill] sm:$0xff] }
 0x70b   :  { %15405 = vmatmul.mubr.msk.bf16.gmra.mrb[44].mxu1 %vm88_vm2, %v9229_v22  ;;  %v9516_v22 = vpack.c.bf16 %v9505_v16, %v9504_v14  ;;  %v23638_v14 = vld [vmem:[#allocation109_spill] sm:$0xff]  ;;  %v9788_v16 = vmul.f32 %v23639_v63, %v21053_v55  ;;  %v23642_v55 = vld [vmem:[#allocation14_spill] sm:$0xff] }
 0x70c   :  { %15412 = vmatprep.mubr.msk.bf16.mxu1 %vm88_vm2, %v9512_v60  ;;  %v9507_v60 = vmul.f32 %v23629_v31, %v21226_v15  ;;  %v23634_v15 = vld [vmem:[#allocation100_spill] sm:$0xff]  ;;  %v9790_v59 = vmul.f32 %v23638_v14, %v21090_v41  ;;  %v21558_v14 = vpop.permute.xlu0 %10438 }
 0x70d   :  { %23658 = vst [vmem:[#allocation73_spill] sm:$0xff] %v21558_v14 }
 0x70e   :  { %v9517_v17 = vpack.c.bf16 %v9507_v60, %v9506_v40  ;;  %v23644_v60 = vld [vmem:[#allocation10_spill] sm:$0xff] }
 0x70f   :  { %v9795_v37 = vmul.f32 %v23644_v60, %v21132_v28 }
 0x713   :  { %15413 = vmatmul.mubr.msk.bf16.vlgmr.msra.gmra.mrb[32].mxu1 %vm88_vm2, %v9513_v29  ;;  %v9511_v29 = vmul.f32 %v23634_v15, %v9399_v53  ;;  %v9689_v53 = vld [vmem:[#allocation3 + $0x90] sm:$0xff] }
 0x714   :  { %15429 = vmatpush3.bf16.msra.mxu1 %v16395_v61  ;;  %15416 = vmatprep.mubr.msk.bf16.mxu1 %vm88_vm2, %v9514_v46  ;;  %v9515_v61 = vpack.c.bf16 %v9503_v24, %v9502_v8  ;;  %v9787_v46 = vmul.f32 %v23636_v36, %v21001_v12  ;;  %v23637_v24 = vld [vmem:[#allocation104_spill] sm:$0xff]  ;;  %v16398_v12 = vld [vmem:[%s22799_s5 + $0x1a8] sm:$0xff]  }
 0x715   :  { %15430 = vmatprep.subr.bf16.mxu1 %v16396_v49  ;;  %v9519_v20 = vpack.c.bf16 %v9511_v29, %v9510_v57  ;;  %v9789_v34 = vmul.f32 %v23637_v24, %v21069_v3  ;;  %v23641_v3 = vld [vmem:[#allocation108_spill] sm:$0xff]  ;;  %v9800_v57 = vmul.f32 %v23649_v18, %v21400_v6  ;;  %v10077_v29 = vmul.f32 %v23651_v35, %v21256_v38  ;;  %v21554_v24 = vpop.permute.xlu1 %10443  ;;  %v23657_v38 = vld [vmem:[#allocation21_spill] sm:$0xff] }
 0x716   :  { %v9793_v41 = vmul.f32 %v23641_v3, %v21130_v1  ;;  %v23653_v36 = vld [vmem:[#allocation20_spill] sm:$0xff]  ;;  %23656 = vst [vmem:[#allocation125_spill] sm:$0xff] %v21554_v24 }
 0x717   :  { %v9803_v8 = vpack.c.bf16 %v9789_v34, %v9788_v16  ;;  %v10078_v34 = vmul.f32 %v23657_v38, %v21266_v33  ;;  %v23663_v33 = vld [vmem:[#allocation26_spill] sm:$0xff] }
 0x718   :  { %15431 = vmatpush3.bf16.msra.mxu1 %v16396_v49  ;;  %v9786_v49 = vmul.f32 %v23635_v39, %v21023_v11  ;;  %v23640_v11 = vld [vmem:[#allocation106_spill] sm:$0xff] }
 0x719   :  { %15448 = vmatprep.subr.bf16.mxu1 %v16397_v50  ;;  %v9791_v21 = vmul.f32 %v23640_v11, %v21061_v10  ;;  %v23643_v10 = vld [vmem:[#allocation11_spill] sm:$0xff]  ;;  %v21566_v11 = vpop.permute.xlu0 %10916 }
 0x71a   :  { %v9802_v2 = vpack.c.bf16 %v9787_v46, %v9786_v49  ;;  %v9792_v31 = vmul.f32 %v23643_v10, %v21118_v9  ;;  %v23648_v9 = vld [vmem:[#allocation13_spill] sm:$0xff]  ;;  %v10079_v46 = vmul.f32 %v23653_v36, %v21259_v19  ;;  %v21562_v19 = vpop.permute.xlu1 %10921  ;;  %23661 = vst [vmem:[#allocation126_spill] sm:$0xff] %v21566_v11 }
 0x71b   :  { %15417 = vmatmul.mubr.msk.bf16.gmra.mrb[36].mxu1 %vm88_vm2, %v9515_v61  ;;  %v9804_v61 = vpack.c.bf16 %v9791_v21, %v9790_v59  ;;  %23659 = vst [vmem:[#allocation72_spill] sm:$0xff] %v21562_v19 }
 0x71c   :  { %15420 = vmatprep.mubr.msk.bf16.mxu1 %vm88_vm2, %v9516_v22  ;;  %v9794_v22 = vmul.f32 %v23642_v55, %v21145_v32  ;;  %v9805_v51 = vpack.c.bf16 %v9793_v41, %v9792_v31  ;;  %v23647_v32 = vld [vmem:[#allocation12_spill] sm:$0xff]  ;;  %v10093_v59 = vpack.c.bf16 %v10079_v46, %v10078_v34 }
 0x71d   :  { %v9796_v40 = vmul.f32 %v23647_v32, %v21155_v42  ;;  %v23652_v42 = vld [vmem:[#allocation15_spill] sm:$0xff] }
 0x71e   :  { %v9806_v44 = vpack.c.bf16 %v9795_v37, %v9794_v22  ;;  %v9801_v39 = vmul.f32 %v23652_v42, %v9689_v53  ;;  %v21574_v55 = vpop.permute.xlu1 %10931  ;;  %v21577_v22 = vpop.permute.xlu0 %10926 }
 0x71f   :  { %23665 = vst [vmem:[#allocation127_spill] sm:$0xff] %v21574_v55  ;;  %23666 = vst [vmem:[#allocation78_spill] sm:$0xff] %v21577_v22 }
 0x720   :  { %v9809_v49 = vpack.c.bf16 %v9801_v39, %v9800_v57 }
 0x722   :  { %v21588_v60 = vpop.permute.xlu1 %10941 }
 0x723   :  { %15421 = vmatmul.mubr.msk.bf16.gmra.mrb[40].mxu1 %vm88_vm2, %v9517_v17  ;;  %v9799_v17 = vmul.f32 %v23648_v9, %v21162_v56  ;;  %23669 = vst [vmem:[#allocation80_spill] sm:$0xff] %v21588_v60 }
 0x724   :  { %15424 = vmatprep.mubr.msk.bf16.mxu1 %vm88_vm2, %v9518_v43 }
 0x725   :  { %v9808_v43 = vpack.c.bf16 %v9799_v17, %v9798_v4 }
 0x72b   :  { %15425 = vmatmul.mubr.msk.bf16.gmra.mrb[44].mxu1 %vm88_vm2, %v9519_v20  ;;  %v23654_v20 = vld [vmem:[#allocation23_spill] sm:$0xff] }
 0x72c   :  { %15432 = vmatprep.mubr.msk.bf16.mxu1 %vm88_vm2, %v9802_v2  ;;  %v10080_v6 = vmul.f32 %v23654_v20, %v21275_v27  ;;  %v23655_v2 = vld [vmem:[#allocation22_spill] sm:$0xff]  ;;  %v23660_v27 = vld [vmem:[#allocation24_spill] sm:$0xff] }
 0x72d   :  { %v10083_v16 = vmul.f32 %v23660_v27, %v21280_v62  ;;  %v10087_v62 = vmul.f32 %v20453_v7, %v21301_v45  ;;  %v23671_v7 = vld [vmem:[#allocation32_spill] sm:$0xff] }
 0x733   :  { %15433 = vmatmul.mubr.msk.bf16.vlgmr.msra.gmra.mrb[32].mxu1 %vm88_vm2, %v9803_v8  ;;  %v10085_v8 = vmul.f32 %v23663_v33, %v21298_v52  ;;  %v23667_v52 = vld [vmem:[#allocation29_spill] sm:$0xff] }
 0x734   :  { %15449 = vmatpush3.bf16.msra.mxu1 %v16397_v50  ;;  %15436 = vmatprep.mubr.msk.bf16.mxu1 %vm88_vm2, %v9804_v61  ;;  %v23645_v50 = vld [vmem:[#allocation110_spill] sm:$0xff]  ;;  %v10089_v10 = vmul.f32 %v23667_v52, %v21316_v47  ;;  %v21597_v47 = vpop.permute.xlu1 %10951 }
 0x735   :  { %15450 = vmatprep.subr.bf16.mxu1 %v16398_v12  ;;  %v9797_v1 = vmul.f32 %v23645_v50, %v21160_v23  ;;  %v23650_v23 = vld [vmem:[#allocation19_spill] sm:$0xff]  ;;  %23673 = vst [vmem:[#allocation129_spill] sm:$0xff] %v21597_v47 }
 0x736   :  { %v10076_v15 = vmul.f32 %v23650_v23, %v21254_v0  ;;  %v10081_v0 = vmul.f32 %v23655_v2, %v21277_v54  ;;  %v23662_v54 = vld [vmem:[#allocation27_spill] sm:$0xff]  ;;  %v16400_v2 = vld [vmem:[%s22799_s5 + $0x1c8] sm:$0xff]  }
 0x737   :  { %v9807_v28 = vpack.c.bf16 %v9797_v1, %v9796_v40  ;;  %v10084_v21 = vmul.f32 %v23662_v54, %v21296_v58  ;;  %v10088_v58 = vmul.f32 %v20480_v30, %v21314_v13  ;;  %v9979_v50 = vld [vmem:[#allocation3 + $0x91] sm:$0xff]  ;;  %v10090_v30 = vmul.f32 %v23671_v7, %v21447_v5  ;;  %15470 = vmatprep.subr.bf16.mxu0 %v16400_v2 }
 0x738   :  { %15451 = vmatpush3.bf16.msra.mxu1 %v16398_v12  ;;  %v10092_v56 = vpack.c.bf16 %v10077_v29, %v10076_v15  ;;  %v10094_v63 = vpack.c.bf16 %v10081_v0, %v10080_v6  ;;  %v23664_v12 = vld [vmem:[#allocation25_spill] sm:$0xff]  ;;  %v23672_v13 = vld [vmem:[#allocation30_spill] sm:$0xff]  ;;  %v21602_v25 = vpop.permute.xlu1 %10961  ;;  %15471 = vmatpush3.bf16.msra.mxu0 %v16400_v2 }
 0x739   :  { %v10082_v61 = vmul.f32 %v23664_v12, %v21287_v48  ;;  %v10096_v41 = vpack.c.bf16 %v10085_v8, %v10084_v21  ;;  %v23668_v48 = vld [vmem:[#allocation28_spill] sm:$0xff]  ;;  %v10091_v45 = vmul.f32 %v23672_v13, %v9979_v50  ;;  %23675 = vst [vmem:[#allocation81_spill] sm:$0xff] %v21602_v25 }
 0x73a   :  { %v10086_v31 = vmul.f32 %v23668_v48, %v21308_v26 }
 0x73b   :  { %15437 = vmatmul.mubr.msk.bf16.gmra.mrb[36].mxu1 %vm88_vm2, %v9805_v51  ;;  %v10095_v3 = vpack.c.bf16 %v10083_v16, %v10082_v61  ;;  %v21590_v51 = vpop.permute.xlu0 %10936  ;;  %v10099_v26 = vpack.c.bf16 %v10091_v45, %v10090_v30 }
 0x73c   :  { %15440 = vmatprep.mubr.msk.bf16.mxu1 %vm88_vm2, %v9806_v44  ;;  %v10097_v37 = vpack.c.bf16 %v10087_v62, %v10086_v31  ;;  %23670 = vst [vmem:[#allocation128_spill] sm:$0xff] %v21590_v51  ;;  %v10098_v44 = vpack.c.bf16 %v10089_v10, %v10088_v58  ;;  %v21606_v32 = vpop.permute.xlu1 %10971 }
 0x73d   :  { %23677 = vst [vmem:[#allocation131_spill] sm:$0xff] %v21606_v32 }
 0x73f   :  { %v21599_v1 = vpop.permute.xlu0 %10946 }
 0x740   :  { %23674 = vst [vmem:[#allocation79_spill] sm:$0xff] %v21599_v1  ;;  %v21610_v9 = vpop.permute.xlu1 %10981 }
 0x741   :  { %23679 = vst [vmem:[#allocation87_spill] sm:$0xff] %v21610_v9 }
 0x743   :  { %15441 = vmatmul.mubr.msk.bf16.gmra.mrb[40].mxu1 %vm88_vm2, %v9807_v28  ;;  %v21604_v4 = vpop.permute.xlu0 %10956 }
 0x744   :  { %15444 = vmatprep.mubr.msk.bf16.mxu1 %vm88_vm2, %v9808_v43  ;;  %23676 = vst [vmem:[#allocation82_spill] sm:$0xff] %v21604_v4  ;;  %v21614_v17 = vpop.permute.xlu1 %10991 }
 0x745   :  { %23681 = vst [vmem:[#allocation89_spill] sm:$0xff] %v21614_v17 }
 0x747   :  { %v21608_v40 = vpop.permute.xlu0 %10966 }
 0x748   :  { %23678 = vst [vmem:[#allocation130_spill] sm:$0xff] %v21608_v40  ;;  %v21618_v43 = vpop.permute.xlu1 %11211 }
 0x749   :  { %23683 = vst [vmem:[#allocation88_spill] sm:$0xff] %v21618_v43 }
 0x74b   :  { %15445 = vmatmul.mubr.msk.bf16.gmra.mrb[44].mxu1 %vm88_vm2, %v9809_v49  ;;  %v21612_v5 = vpop.permute.xlu0 %10976 }
 0x74c   :  { %15452 = vmatprep.mubr.msk.bf16.mxu1 %vm88_vm2, %v10092_v56  ;;  %23680 = vst [vmem:[#allocation132_spill] sm:$0xff] %v21612_v5  ;;  %v21622_v18 = vpop.permute.xlu1 %11221 }
 0x74d   :  { %23685 = vst [vmem:[#allocation93_spill] sm:$0xff] %v21622_v18 }
 0x74f   :  { %v21616_v28 = vpop.permute.xlu0 %10986 }
 0x750   :  { %23682 = vst [vmem:[#allocation133_spill] sm:$0xff] %v21616_v28  ;;  %v21626_v23 = vpop.permute.xlu1 %11231 }
 0x751   :  { %23687 = vst [vmem:[#allocation90_spill] sm:$0xff] %v21626_v23 }
 0x753   :  { %15453 = vmatmul.mubr.msk.bf16.vlgmr.msra.gmra.mrb[32].mxu1 %vm88_vm2, %v10093_v59  ;;  %v21620_v53 = vpop.permute.xlu0 %11206 }
 0x754   :  { %15456 = vmatprep.mubr.msk.bf16.mxu1 %vm88_vm2, %v10094_v63  ;;  %23684 = vst [vmem:[#allocation91_spill] sm:$0xff] %v21620_v53  ;;  %v21630_v35 = vpop.permute.xlu1 %11241  ;;  %v21664_v63 = vld [vmem:[%s22799_s5 + $0x1b0] sm:$0xff]  }
 0x755   :  { %23689 = vst [vmem:[#allocation97_spill] sm:$0xff] %v21630_v35  ;;  %15488 = vmatprep.subr.bf16.mxu0 %v21664_v63 }
 0x757   :  { %v21624_v57 = vpop.permute.xlu0 %11216 }
 0x758   :  { %23686 = vst [vmem:[#allocation92_spill] sm:$0xff] %v21624_v57  ;;  %v21634_v42 = vpop.permute.xlu1 %11251 }
 0x759   :  { %23691 = vst [vmem:[#allocation95_spill] sm:$0xff] %v21634_v42  ;;  %v21738_v42 = vld [vmem:[%s22800_s6 + $0x2] ss:$0 sm:$0xff] }
 0x75b   :  { %15457 = vmatmul.mubr.msk.bf16.gmra.mrb[36].mxu1 %vm88_vm2, %v10095_v3  ;;  %v21628_v15 = vpop.permute.xlu0 %11226 }
 0x75c   :  { %15460 = vmatprep.mubr.msk.bf16.mxu1 %vm88_vm2, %v10096_v41  ;;  %23688 = vst [vmem:[#allocation94_spill] sm:$0xff] %v21628_v15  ;;  %v21638_v49 = vpop.permute.xlu1 %11261 }
 0x75d   :  { %23693 = vst [vmem:[#allocation137_spill] sm:$0xff] %v21638_v49 }
 0x75f   :  { %v21632_v29 = vpop.permute.xlu0 %11236 }
 0x760   :  { %23690 = vst [vmem:[#allocation96_spill] sm:$0xff] %v21632_v29  ;;  %v21642_v36 = vpop.permute.xlu1 %11271 }
 0x761   :  { %23695 = vst [vmem:[#allocation135_spill] sm:$0xff] %v21642_v36 }
 0x763   :  { %15461 = vmatmul.mubr.msk.bf16.gmra.mrb[40].mxu1 %vm88_vm2, %v10097_v37  ;;  %v21636_v39 = vpop.permute.xlu0 %11246 }
 0x764   :  { %15464 = vmatprep.mubr.msk.bf16.mxu1 %vm88_vm2, %v10098_v44  ;;  %23692 = vst [vmem:[#allocation134_spill] sm:$0xff] %v21636_v39  ;;  %v21646_v20 = vpop.permute.xlu1 %11281 }
 0x765   :  { %23697 = vst [vmem:[#allocation141_spill] sm:$0xff] %v21646_v20 }
 0x767   :  { %v21640_v56 = vpop.permute.xlu0 %11256 }
 0x768   :  { %23694 = vst [vmem:[#allocation136_spill] sm:$0xff] %v21640_v56  ;;  %v21653_v0 = vpop.permute.xlu1 %11679 }
 0x76b   :  { %15465 = vmatmul.mubr.msk.bf16.gmra.mrb[44].mxu1 %vm88_vm2, %v10099_v26  ;;  %v21644_v46 = vpop.permute.xlu0 %11266 }
 0x76c   :  { %23696 = vst [vmem:[#allocation138_spill] sm:$0xff] %v21644_v46  ;;  %v21657_v34 = vpop.permute.xlu1 %11689 }
 0x76f   :  { %v21648_v6 = vpop.permute.xlu0 %11276 }
 0x770   :  { %23698 = vst [vmem:[#allocation140_spill] sm:$0xff] %v21648_v6  ;;  %v21666_v27 = vpop.permute.xlu1 %11699 }
 0x773   :  { %v21655_v38 = vpop.permute.xlu0 %11674 }
 0x774   :  { %v21671_v54 = vpop.permute.xlu1 %11709 }
 0x777   :  { %v21659_v59 = vpop.permute.xlu0 %11684 }
 0x778   :  { %v21675_v33 = vpop.permute.xlu1 %11719 }
 0x77b   :  { %v21668_v16 = vpop.permute.xlu0 %11694 }
 0x77c   :  { %v21679_v12 = vpop.permute.xlu1 %11729 }
 0x77f   :  { %v21673_v21 = vpop.permute.xlu0 %11704 }
 0x780   :  { %v21683_v3 = vpop.permute.xlu1 %11739 }
 0x783   :  { %v21677_v8 = vpop.permute.xlu0 %11714 }
 0x784   :  { %v21687_v62 = vpop.permute.xlu1 %11749 }
 0x785   :  { %23699 = vst [vmem:[#allocation139_spill] sm:$0xff] %v21687_v62 }
 0x787   :  { %v21681_v61 = vpop.permute.xlu0 %11724 }
 0x788   :  { %v21691_v52 = vpop.permute.xlu1 %11969 }
 0x78b   :  { %v21685_v41 = vpop.permute.xlu0 %11734 }
 0x78c   :  { %v21695_v48 = vpop.permute.xlu1 %11979 }
 0x78f   :  { %v21689_v58 = vpop.permute.xlu0 %11744 }
 0x790   :  { %23700 = vst [vmem:[#allocation143_spill] sm:$0xff] %v21689_v58  ;;  %v21699_v37 = vpop.permute.xlu1 %11989 }
 0x793   :  { %v21693_v10 = vpop.permute.xlu0 %11964 }
 0x794   :  { %v21703_v50 = vpop.permute.xlu1 %11999 }
 0x797   :  { %v21697_v31 = vpop.permute.xlu0 %11974 }
 0x798   :  { %v21707_v30 = vpop.permute.xlu1 %12009 }
 0x799   :  { %23701 = vst [vmem:[#allocation142_spill] sm:$0xff] %v21707_v30 }
 0x79b   :  { %v21701_v44 = vpop.permute.xlu0 %11984 }
 0x79c   :  { %v21711_v45 = vpop.permute.xlu1 %12019 }
 0x79d   :  { %23703 = vst [vmem:[#allocation58_spill] sm:$0xff] %v21711_v45 }
 0x79f   :  { %v21705_v7 = vpop.permute.xlu0 %11994 }
 0x7a0   :  { %v21715_v2 = vpop.permute.xlu1 %12029 }
 0x7a1   :  { %23705 = vst [vmem:[#allocation61_spill] sm:$0xff] %v21715_v2 }
 0x7a3   :  { %v21709_v13 = vpop.permute.xlu0 %12004 }
 0x7a4   :  { %23702 = vst [vmem:[#allocation57_spill] sm:$0xff] %v21709_v13  ;;  %v21719_v58 = vpop.permute.xlu1 %12039 }
 0x7a5   :  { %23707 = vst [vmem:[#allocation68_spill] sm:$0xff] %v21719_v58 }
 0x7a7   :  { %v21713_v26 = vpop.permute.xlu0 %12014 }
 0x7a8   :  { %23704 = vst [vmem:[#allocation59_spill] sm:$0xff] %v21713_v26  ;;  %v21723_v6 = vpop.permute.xlu1 %12259 }
 0x7ab   :  { %v21717_v62 = vpop.permute.xlu0 %12024 }
 0x7ac   :  { %23706 = vst [vmem:[#allocation67_spill] sm:$0xff] %v21717_v62  ;;  %v21727_v36 = vpop.permute.xlu1 %12269 }
 0x7ad   :  { %23710 = vst [vmem:[#allocation145_spill] sm:$0xff] %v21727_v36 }
 0x7af   :  { %v21721_v20 = vpop.permute.xlu0 %12034 }
 0x7b0   :  { %23708 = vst [vmem:[#allocation69_spill] sm:$0xff] %v21721_v20  ;;  %v21731_v56 = vpop.permute.xlu1 %12279  ;;  %v21743_v20 = vld [vmem:[%s22801_s7 + $0x2] ss:$0 sm:$0xff] }
 0x7b1   :  { %23712 = vst [vmem:[#allocation146_spill] sm:$0xff] %v21731_v56 }
 0x7b3   :  { %v21725_v46 = vpop.permute.xlu0 %12254 }
 0x7b4   :  { %23709 = vst [vmem:[#allocation70_spill] sm:$0xff] %v21725_v46  ;;  %v21745_v35 = vpop.permute.xlu1 %12289  ;;  %v23755_v46 = vld [vmem:[#allocation121_spill] sm:$0xff] }
 0x7b5   :  { %23714 = vst [vmem:[#allocation74_spill] sm:$0xff] %v21745_v35 }
 0x7b7   :  { %v21729_v49 = vpop.permute.xlu0 %12264 }
 0x7b8   :  { %23711 = vst [vmem:[#allocation144_spill] sm:$0xff] %v21729_v49  ;;  %v21757_v4 = vpop.permute.xlu1 %12299 }
 0x7b9   :  { %23716 = vst [vmem:[#allocation76_spill] sm:$0xff] %v21757_v4 }
 0x7bb   :  { %v21733_v39 = vpop.permute.xlu0 %12274 }
 0x7bc   :  { %23713 = vst [vmem:[#allocation147_spill] sm:$0xff] %v21733_v39  ;;  %v21771_v47 = vpop.permute.xlu1 %12309  ;;  %v23751_v39 = vld [vmem:[#allocation40_spill] sm:$0xff] }
 0x7bd   :  { %23718 = vst [vmem:[#allocation149_spill] sm:$0xff] %v21771_v47 }
 0x7bf   :  { %v21748_v23 = vpop.permute.xlu0 %12284 }
 0x7c0   :  { %23715 = vst [vmem:[#allocation75_spill] sm:$0xff] %v21748_v23  ;;  %v23750_v23 = vld [vmem:[#allocation38_spill] sm:$0xff] }
 0x7c3   :  { %v21760_v25 = vpop.permute.xlu0 %12294 }
 0x7c4   :  { %23717 = vst [vmem:[#allocation77_spill] sm:$0xff] %v21760_v25 }
 0x7c7   :  { %v21774_v1 = vpop.permute.xlu0 %12304 }
 0x7c8   :  { %23719 = vst [vmem:[#allocation148_spill] sm:$0xff] %v21774_v1 }
 0x7cb   :  { %v21800_v24 = vpop.permute.xlu0 %12314 }
 0x7cc   :  { %23728 = vst [vmem:[#allocation85_spill] sm:$0xff] %v21800_v24  ;;  %v23734_v24 = vld [vmem:[#allocation115_spill] sm:$0xff] }
 0x826   :  { %v15454_v58 = vpop.f32.mrb[32].mxu1 }
 0x827   :  { %v10264_v29 = vmul.f32 %v15454_v58, %v21738_v42  ;;  %v10175_v15 = vpop.f32.mrb[33].mxu1 }
 0x828   :  { %v10262_v18 = vmul.f32 %v21738_v42, %v10175_v15  ;;  %v15455_v57 = vpop.f32.mrb[34].mxu1 }
 0x829   :  { %v10288_v53 = vadd.f32 %v21743_v20, %v10264_v29  ;;  %v10265_v43 = vmul.f32 %v15455_v57, %v21738_v42  ;;  %v10178_v17 = vpop.f32.mrb[35].mxu1 }
 0x82a   :  { %v10286_v28 = vadd.f32 %v21743_v20, %v10262_v18  ;;  %v10263_v5 = vmul.f32 %v21738_v42, %v10178_v17 }
 0x82b   :  { %v10304_v9 = vmax.f32 %v10288_v53, 0.0  ;;  %v10289_v32 = vadd.f32 %v21743_v20, %v10265_v43 }
 0x82c   :  { %v10302_v40 = vmax.f32 %v10286_v28, 0.0  ;;  %v10287_v58 = vadd.f32 %v21743_v20, %v10263_v5 }
 0x82d   :  { %10320 = vst.msk [vmem:[#allocation3 + $0x20] sm:$0xff] %vm88_vm2, %v10304_v9  ;;  %v10305_v15 = vmax.f32 %v10289_v32, 0.0 }
 0x82e   :  { %10318 = vst.msk [vmem:[#allocation3 + $0x10] sm:$0xff] %vm88_vm2, %v10302_v40  ;;  %v10303_v57 = vmax.f32 %v10287_v58, 0.0  ;;  %v15458_v29 = vpop.f32.mrb[36].mxu1  ;;  %v10475_v58 = vld [vmem:[#allocation3 + $0x8] sm:$0xff] }
 0x82f   :  { %10321 = vst.msk [vmem:[#allocation3 + $0x28] sm:$0xff] %vm88_vm2, %v10305_v15  ;;  %v10268_v17 = vmul.f32 %v15458_v29, %v21738_v42  ;;  %v10191_v53 = vpop.f32.mrb[37].mxu1 }
 0x830   :  { %10319 = vst.msk [vmem:[#allocation3 + $0x18] sm:$0xff] %vm88_vm2, %v10303_v57  ;;  %v10266_v5 = vmul.f32 %v21738_v42, %v10191_v53  ;;  %v15459_v28 = vpop.f32.mrb[38].mxu1 }
 0x831   :  { %v10292_v43 = vadd.f32 %v21743_v20, %v10268_v17  ;;  %v10269_v32 = vmul.f32 %v15459_v28, %v21738_v42  ;;  %v10194_v9 = vpop.f32.mrb[39].mxu1 }
 0x832   :  { %v10290_v18 = vadd.f32 %v21743_v20, %v10266_v5  ;;  %v10267_v40 = vmul.f32 %v21738_v42, %v10194_v9  ;;  %v23722_v5 = vld [vmem:[#allocation34_spill] sm:$0xff] }
 0x833   :  { %v10308_v15 = vmax.f32 %v10292_v43, 0.0  ;;  %v10293_v29 = vadd.f32 %v21743_v20, %v10269_v32  ;;  %v10587_v9 = vmul.f32 %v23722_v5, %v10475_v58  ;;  %v23723_v32 = vld [vmem:[#allocation31_spill] sm:$0xff]  ;;  %v23726_v5 = vld [vmem:[#allocation33_spill] sm:$0xff] }
 0x834   :  { %v10306_v57 = vmax.f32 %v10290_v18, 0.0  ;;  %v10291_v53 = vadd.f32 %v21743_v20, %v10267_v40  ;;  %v21780_v51 = vld [vmem:[#allocation3 + $0x20] sm:$0xff] }
 0x835   :  { %10324 = vst.msk [vmem:[#allocation3 + $0x40] sm:$0xff] %vm88_vm2, %v10308_v15  ;;  %v10309_v17 = vmax.f32 %v10293_v29, 0.0  ;;  %v21778_v28 = vld [vmem:[#allocation3 + $0x10] sm:$0xff]  ;;  %23721 = vst [vmem:[#allocation151_spill] sm:$0xff] %v21780_v51  ;;  %v10590_v11 = vmul.f32 %v23726_v5, %v21780_v51  ;;  %v21952_v26 = vmul.f32 %v21723_v6, %v21780_v51 }
 0x836   :  { %23720 = vst [vmem:[#allocation150_spill] sm:$0xff] %v21778_v28  ;;  %10322 = vst.msk [vmem:[#allocation3 + $0x30] sm:$0xff] %vm88_vm2, %v10306_v57  ;;  %v10307_v60 = vmax.f32 %v10291_v53, 0.0  ;;  %v15462_v43 = vpop.f32.mrb[40].mxu1  ;;  %v10588_v55 = vmul.f32 %v23723_v32, %v21778_v28  ;;  %v23725_v57 = vld [vmem:[#allocation112_spill] sm:$0xff]  ;;  %v21796_v32 = vpop.permute.xlu1 %12319  ;;  %v21904_v25 = vld [vmem:[#allocation3 + $0x27] sm:$0xff] }
 0x837   :  { %10325 = vst.msk [vmem:[#allocation3 + $0x48] sm:$0xff] %vm88_vm2, %v10309_v17  ;;  %v10272_v18 = vmul.f32 %v15462_v43, %v21738_v42  ;;  %v10207_v40 = vpop.f32.mrb[41].mxu1  ;;  %v21788_v15 = vld [vmem:[#allocation3 + $0x18] sm:$0xff]  ;;  %23727 = vst [vmem:[#allocation84_spill] sm:$0xff] %v21796_v32 }
 0x838   :  { %23724 = vst [vmem:[#allocation83_spill] sm:$0xff] %v21788_v15  ;;  %10323 = vst.msk [vmem:[#allocation3 + $0x38] sm:$0xff] %vm88_vm2, %v10307_v60  ;;  %v10270_v29 = vmul.f32 %v21738_v42, %v10207_v40  ;;  %v15463_v22 = vpop.f32.mrb[42].mxu1  ;;  %v10603_v58 = vpack.c.bf16 %v10588_v55, %v10587_v9  ;;  %v10589_v53 = vmul.f32 %v23725_v57, %v21788_v15  ;;  %v16402_v9 = vld [vmem:[%s22799_s5 + $0x1b8] sm:$0xff]  }
 0x839   :  { %v10296_v17 = vadd.f32 %v21743_v20, %v10272_v18  ;;  %v10273_v43 = vmul.f32 %v15463_v22, %v21738_v42  ;;  %v10210_v19 = vpop.f32.mrb[43].mxu1  ;;  %v21809_v18 = vld [vmem:[#allocation3 + $0x28] sm:$0xff]  ;;  %23760 = vst [vmem:[#allocation164_spill] sm:$0xff] %v21952_v26 }
 0x83a   :  { %v10294_v60 = vadd.f32 %v21743_v20, %v10270_v29  ;;  %v10271_v40 = vmul.f32 %v21738_v42, %v10210_v19  ;;  %15472 = vmatprep.mubr.msk.bf16.mxu0 %vm88_vm2, %v10603_v58  ;;  %v10604_v55 = vpack.c.bf16 %v10590_v11, %v10589_v53  ;;  %23729 = vst [vmem:[#allocation86_spill] sm:$0xff] %v21809_v18 }
 0x83b   :  { %v10312_v57 = vmax.f32 %v10296_v17, 0.0  ;;  %v10297_v5 = vadd.f32 %v21743_v20, %v10273_v43  ;;  %v23730_v17 = vld [vmem:[#allocation113_spill] sm:$0xff] }
 0x83c   :  { %v10310_v22 = vmax.f32 %v10294_v60, 0.0  ;;  %v10295_v14 = vadd.f32 %v21743_v20, %v10271_v40  ;;  %15473 = vmatmul.mubr.msk.bf16.vlgmr.msra.gmra.mrb[32].mxu0 %vm88_vm2, %v10604_v55  ;;  %v21817_v29 = vld [vmem:[#allocation3 + $0x40] sm:$0xff]  ;;  %v10591_v43 = vmul.f32 %v23730_v17, %v21809_v18  ;;  %v23731_v60 = vld [vmem:[#allocation111_spill] sm:$0xff] }
 0x83d   :  { %10328 = vst.msk [vmem:[#allocation3 + $0x60] sm:$0xff] %vm88_vm2, %v10312_v57  ;;  %v10313_v19 = vmax.f32 %v10297_v5, 0.0  ;;  %15489 = vmatpush3.bf16.msra.mxu0 %v21664_v63  ;;  %v21815_v11 = vld [vmem:[#allocation3 + $0x30] sm:$0xff]  ;;  %v21829_v63 = vpop.permute.xlu1 %12329 }
 0x83e   :  { %10326 = vst.msk [vmem:[#allocation3 + $0x50] sm:$0xff] %vm88_vm2, %v10310_v22  ;;  %v10311_v58 = vmax.f32 %v10295_v14, 0.0  ;;  %v15466_v53 = vpop.f32.mrb[44].mxu1  ;;  %v10592_v40 = vmul.f32 %v23731_v60, %v21815_v11  ;;  %15490 = vmatprep.subr.bf16.mxu0 %v16402_v9  ;;  %v21827_v55 = vld [vmem:[%s22799_s5 + $0x1d0] sm:$0xff]   ;;  %23732 = vst [vmem:[#allocation153_spill] sm:$0xff] %v21829_v63  ;;  %v21835_v22 = vpop.permute.xlu0 %12324  ;;  %v21970_v6 = vld [vmem:[#allocation3 + $0x41] sm:$0xff] }
 0x83f   :  { %10329 = vst.msk [vmem:[#allocation3 + $0x68] sm:$0xff] %vm88_vm2, %v10313_v19  ;;  %v10276_v57 = vmul.f32 %v15466_v53, %v21738_v42  ;;  %v10223_v14 = vpop.f32.mrb[45].mxu1  ;;  %v21833_v5 = vld [vmem:[#allocation3 + $0x38] sm:$0xff]  ;;  %23733 = vst [vmem:[#allocation152_spill] sm:$0xff] %v21835_v22  ;;  %v23735_v63 = vld [vmem:[#allocation114_spill] sm:$0xff] }
 0x840   :  { %10327 = vst.msk [vmem:[#allocation3 + $0x58] sm:$0xff] %vm88_vm2, %v10311_v58  ;;  %v10274_v17 = vmul.f32 %v21738_v42, %v10223_v14  ;;  %v15467_v60 = vpop.f32.mrb[46].mxu1  ;;  %v10605_v32 = vpack.c.bf16 %v10592_v40, %v10591_v43  ;;  %v10593_v47 = vmul.f32 %v23734_v24, %v21833_v5  ;;  %v10594_v1 = vmul.f32 %v23735_v63, %v21817_v29  ;;  %v21850_v40 = vld [vmem:[#allocation3 + $0x48] sm:$0xff]  ;;  %v21925_v2 = vld [vmem:[#allocation3 + $0x37] sm:$0xff]  ;;  %v21933_v45 = vld [vmem:[#allocation3 + $0x3f] sm:$0xff] }
 0x841   :  { %v10300_v19 = vadd.f32 %v21743_v20, %v10276_v57  ;;  %v10277_v53 = vmul.f32 %v15467_v60, %v21738_v42  ;;  %v10226_v4 = vpop.f32.mrb[47].mxu1  ;;  %15491 = vmatpush3.bf16.msra.mxu0 %v16402_v9 }
 0x842   :  { %v10298_v22 = vadd.f32 %v21743_v20, %v10274_v17  ;;  %v10275_v58 = vmul.f32 %v21738_v42, %v10226_v4  ;;  %15476 = vmatprep.mubr.msk.bf16.mxu0 %vm88_vm2, %v10605_v32  ;;  %v10606_v14 = vpack.c.bf16 %v10594_v1, %v10593_v47  ;;  %15508 = vmatprep.subr.bf16.mxu0 %v21827_v55  ;;  %v21859_v47 = vpop.permute.xlu1 %12549  ;;  %v21861_v1 = vpop.permute.xlu0 %12544  ;;  %v23738_v32 = vld [vmem:[#allocation117_spill] sm:$0xff] }
 0x843   :  { %v10316_v43 = vmax.f32 %v10300_v19, 0.0  ;;  %v10301_v24 = vadd.f32 %v21743_v20, %v10277_v53  ;;  %23736 = vst [vmem:[#allocation155_spill] sm:$0xff] %v21859_v47  ;;  %23737 = vst [vmem:[#allocation154_spill] sm:$0xff] %v21861_v1  ;;  %v23749_v47 = vld [vmem:[#allocation37_spill] sm:$0xff] }
 0x844   :  { %v10314_v63 = vmax.f32 %v10298_v22, 0.0  ;;  %v10299_v57 = vadd.f32 %v21743_v20, %v10275_v58  ;;  %15477 = vmatmul.mubr.msk.bf16.gmra.mrb[36].mxu0 %vm88_vm2, %v10606_v14  ;;  %v21857_v4 = vld [vmem:[#allocation3 + $0x60] sm:$0xff]  ;;  %v10595_v22 = vmul.f32 %v23738_v32, %v21850_v40  ;;  %v23741_v58 = vld [vmem:[#allocation118_spill] sm:$0xff] }
 0x845   :  { %10332 = vst.msk [vmem:[#allocation3 + $0x80] sm:$0xff] %vm88_vm2, %v10316_v43  ;;  %v10317_v9 = vmax.f32 %v10301_v24, 0.0  ;;  %v21855_v17 = vld [vmem:[#allocation3 + $0x50] sm:$0xff]  ;;  %v23739_v20 = vld [vmem:[#allocation116_spill] sm:$0xff] }
 0x846   :  { %10330 = vst.msk [vmem:[#allocation3 + $0x70] sm:$0xff] %vm88_vm2, %v10314_v63  ;;  %v10315_v42 = vmax.f32 %v10299_v57, 0.0  ;;  %v10596_v60 = vmul.f32 %v23739_v20, %v21855_v17  ;;  %v23742_v43 = vld [vmem:[#allocation119_spill] sm:$0xff]  ;;  %v21877_v57 = vld [vmem:[#allocation3 + $0x68] sm:$0xff]  ;;  %v21881_v20 = vpop.permute.xlu1 %12559 }
 0x847   :  { %10333 = vst.msk [vmem:[#allocation3 + $0x88] sm:$0xff] %vm88_vm2, %v10317_v9  ;;  %v21869_v19 = vld [vmem:[#allocation3 + $0x58] sm:$0xff]  ;;  %v10598_v24 = vmul.f32 %v23742_v43, %v21857_v4  ;;  %v21879_v32 = vld [vmem:[#allocation3 + $0xf] sm:$0xff]  ;;  %23744 = vst [vmem:[#allocation160_spill] sm:$0xff] %v21881_v20  ;;  %v21883_v9 = vpop.permute.xlu0 %12554 }
 0x848   :  { %23740 = vst [vmem:[#allocation157_spill] sm:$0xff] %v21869_v19  ;;  %10331 = vst.msk [vmem:[#allocation3 + $0x78] sm:$0xff] %vm88_vm2, %v10315_v42  ;;  %v10607_v53 = vpack.c.bf16 %v10596_v60, %v10595_v22  ;;  %v10597_v14 = vmul.f32 %v23741_v58, %v21869_v19  ;;  %v21886_v42 = vld [vmem:[#allocation3 + $0x17] sm:$0xff]  ;;  %v21888_v22 = vld [vmem:[#allocation3 + $0x1f] sm:$0xff]  ;;  %v10447_v1 = vmul.f32 %v23749_v47, %v21879_v32 }
 0x849   :  { %23743 = vst [vmem:[#allocation156_spill] sm:$0xff] %v21879_v32  ;;  %23745 = vst [vmem:[#allocation159_spill] sm:$0xff] %v21883_v9  ;;  %v21890_v60 = vld [vmem:[#allocation3 + $0x2f] sm:$0xff]  ;;  %v10334_v58 = vld [vmem:[#allocation3 + $0x7] sm:$0xff]  ;;  %v21910_v56 = vmul.f32 %v23750_v23, %v21886_v42 }
 0x84a   :  { %15480 = vmatprep.mubr.msk.bf16.mxu0 %vm88_vm2, %v10607_v53  ;;  %v10608_v63 = vpack.c.bf16 %v10598_v24, %v10597_v14  ;;  %v23747_v24 = vld [vmem:[#allocation36_spill] sm:$0xff]  ;;  %v21914_v14 = vmul.f32 %v23751_v39, %v21888_v22  ;;  %v23754_v47 = vld [vmem:[#allocation35_spill] sm:$0xff]  ;;  %v21927_v23 = vld [vmem:[#allocation3 + $0x47] sm:$0xff] }
 0x84b   :  { %v10599_v20 = vmul.f32 %v23747_v24, %v21877_v57  ;;  %v23748_v9 = vld [vmem:[#allocation120_spill] sm:$0xff]  ;;  %v23752_v24 = vld [vmem:[#allocation39_spill] sm:$0xff]  ;;  %v23756_v39 = vld [vmem:[#allocation41_spill] sm:$0xff] }
 0x84c   :  { %15481 = vmatmul.mubr.msk.bf16.gmra.mrb[40].mxu0 %vm88_vm2, %v10608_v63  ;;  %v21894_v53 = vld [vmem:[#allocation3 + $0x80] sm:$0xff]  ;;  %v21918_v28 = vmul.f32 %v23752_v24, %v21890_v60  ;;  %v21931_v62 = vmul.f32 %v23756_v39, %v21904_v25  ;;  %v21968_v39 = vld [vmem:[#allocation3 + $0x31] sm:$0xff] }
 0x84d   :  { %v21892_v43 = vld [vmem:[#allocation3 + $0x70] sm:$0xff]  ;;  %23746 = vst [vmem:[#allocation158_spill] sm:$0xff] %v21894_v53  ;;  %v10602_v15 = vmul.f32 %v23755_v46, %v21894_v53  ;;  %v21935_v24 = vld [vmem:[#allocation3 + $0x21] sm:$0xff]  ;;  %v21946_v53 = vld [vmem:[#allocation3 + $0x19] sm:$0xff] }
 0x84e   :  { %v10600_v63 = vmul.f32 %v23748_v9, %v21892_v43  ;;  %v23753_v9 = vld [vmem:[#allocation122_spill] sm:$0xff]  ;;  %23764 = vst [vmem:[#allocation167_spill] sm:$0xff] %v21968_v39  ;;  %v21994_v18 = vld [vmem:[#allocation3 + $0x59] sm:$0xff]  ;;  %v21996_v30 = vld [vmem:[#allocation3 + $0x61] sm:$0xff]  ;;  %v22016_v19 = vmul.f32 %v21659_v59, %v21935_v24  ;;  %v22036_v59 = vmul.f32 %v21673_v21, %v21970_v6 }
 0x84f   :  { %v21906_v35 = vld [vmem:[#allocation3 + $0x78] sm:$0xff]  ;;  %v10446_v36 = vmul.f32 %v23753_v9, %v10334_v58  ;;  %v21937_v58 = vpop.permute.xlu1 %12569  ;;  %v21942_v9 = vld [vmem:[#allocation3 + $0x4f] sm:$0xff]  ;;  %v22056_v21 = vmul.f32 %v21675_v33, %v21994_v18 }
 0x850   :  { %v10609_v49 = vpack.c.bf16 %v10600_v63, %v10599_v20  ;;  %v10601_v32 = vmul.f32 %v23754_v47, %v21906_v35  ;;  %23757 = vst [vmem:[#allocation161_spill] sm:$0xff] %v21937_v58  ;;  %v21939_v20 = vpop.permute.xlu0 %12564  ;;  %v21944_v47 = vld [vmem:[#allocation3 + $0x11] sm:$0xff]  ;;  %v10463_v58 = vpack.c.bf16 %v21914_v14, %v21910_v56  ;;  %v22006_v26 = vld [vmem:[#allocation3 + $0x69] sm:$0xff]  ;;  %23770 = vst [vmem:[#allocation171_spill] sm:$0xff] %v22016_v19 }
 0x851   :  { %23758 = vst [vmem:[#allocation163_spill] sm:$0xff] %v21939_v20  ;;  %v10462_v46 = vpack.c.bf16 %v10447_v1, %v10446_v36  ;;  %23759 = vst [vmem:[#allocation162_spill] sm:$0xff] %v21944_v47  ;;  %v23761_v36 = vld [vmem:[#allocation44_spill] sm:$0xff]  ;;  %v23762_v1 = vld [vmem:[#allocation42_spill] sm:$0xff]  ;;  %v22004_v51 = vmul.f32 %v21655_v38, %v21944_v47  ;;  %v22024_v38 = vmul.f32 %v21668_v16, %v21968_v39 }
 0x852   :  { %15484 = vmatprep.mubr.msk.bf16.mxu0 %vm88_vm2, %v10609_v49  ;;  %v10610_v63 = vpack.c.bf16 %v10602_v15, %v10601_v32  ;;  %v10464_v49 = vpack.c.bf16 %v21918_v28, %v21931_v62  ;;  %v21960_v15 = vmul.f32 %v23761_v36, %v21925_v2  ;;  %v21964_v32 = vmul.f32 %v23762_v1, %v21927_v23  ;;  %v21966_v20 = vld [vmem:[#allocation3 + $0x29] sm:$0xff]  ;;  %v23765_v56 = vld [vmem:[#allocation43_spill] sm:$0xff] }
 0x853   :  { %23763 = vst [vmem:[#allocation165_spill] sm:$0xff] %v21966_v20  ;;  %v21975_v14 = vmul.f32 %v23765_v56, %v21933_v45  ;;  %v21977_v62 = vld [vmem:[#allocation3 + $0x39] sm:$0xff]  ;;  %v21979_v28 = vld [vmem:[#allocation3 + $0x49] sm:$0xff]  ;;  %v21981_v36 = vld [vmem:[#allocation3 + $0x51] sm:$0xff]  ;;  %v22020_v13 = vmul.f32 %v21657_v34, %v21966_v20  ;;  %v22046_v39 = vpop.permute.xlu1 %12579 }
 0x854   :  { %15485 = vmatmul.mubr.msk.bf16.gmra.mrb[44].mxu0 %vm88_vm2, %v10610_v63  ;;  %23766 = vst [vmem:[#allocation166_spill] sm:$0xff] %v21977_v62  ;;  %v23767_v63 = vld [vmem:[#allocation45_spill] sm:$0xff]  ;;  %23768 = vst [vmem:[#allocation168_spill] sm:$0xff] %v22004_v51  ;;  %v22028_v47 = vld [vmem:[#allocation3 + $0x79] sm:$0xff]  ;;  %v22040_v34 = vmul.f32 %v21671_v54, %v21979_v28  ;;  %v22044_v16 = vmul.f32 %v21677_v8, %v21981_v36  ;;  %v22048_v20 = vpop.permute.xlu0 %12574  ;;  %v22060_v54 = vmul.f32 %v21681_v61, %v21996_v30 }
 0x855   :  { %15492 = vmatprep.mubr.msk.bf16.mxu0 %vm88_vm2, %v10462_v46  ;;  %v21992_v56 = vmul.f32 %v23767_v63, %v21942_v9  ;;  %v22008_v46 = vld [vmem:[#allocation3 + $0x71] sm:$0xff]  ;;  %v22012_v63 = vmul.f32 %v21653_v0, %v21946_v53  ;;  %23771 = vst [vmem:[#allocation170_spill] sm:$0xff] %v22020_v13  ;;  %23772 = vst [vmem:[#allocation172_spill] sm:$0xff] %v22024_v38  ;;  %v22026_v1 = vld [vmem:[#allocation3 + $0x67] sm:$0xff]  ;;  %v22032_v0 = vmul.f32 %v21666_v27, %v21977_v62 }
 0x856   :  { %23774 = vst [vmem:[#allocation175_spill] sm:$0xff] %v22036_v59  ;;  %23775 = vst [vmem:[#allocation174_spill] sm:$0xff] %v22040_v34  ;;  %v22068_v27 = vmul.f32 %v21679_v12, %v22006_v26  ;;  %v22072_v62 = vmul.f32 %v21685_v41, %v22008_v46  ;;  %v10465_v33 = vpack.c.bf16 %v21975_v14, %v21960_v15  ;;  %v16404_v61 = vld [vmem:[%s22799_s5 + $0x1d8] sm:$0xff]   ;;  %v23807_v34 = vld [vmem:[#allocation70_spill] sm:$0xff] }
 0x857   :  { %23769 = vst [vmem:[#allocation169_spill] sm:$0xff] %v22012_v63  ;;  %23773 = vst [vmem:[#allocation173_spill] sm:$0xff] %v22032_v0  ;;  %v23782_v8 = vld [vmem:[#allocation47_spill] sm:$0xff]  ;;  %v22087_v12 = vmul.f32 %v21683_v3, %v22028_v47  ;;  %v10466_v41 = vpack.c.bf16 %v21992_v56, %v21964_v32  ;;  %v22093_v15 = vld [vmem:[#allocation3 + $0x5f] sm:$0xff]  ;;  %v22114_v14 = vmul.f32 %v21697_v31, %v21904_v25 }
 0x858   :  { %23776 = vst [vmem:[#allocation176_spill] sm:$0xff] %v22044_v16  ;;  %23777 = vst [vmem:[#allocation177_spill] sm:$0xff] %v22046_v39  ;;  %v22081_v38 = vmul.f32 %v23782_v8, %v22026_v1  ;;  %v22091_v59 = vld [vmem:[#allocation3 + $0x57] sm:$0xff]  ;;  %v22099_v8 = vmul.f32 %v21693_v10, %v21886_v42  ;;  %v22103_v39 = vmul.f32 %v21691_v52, %v21888_v22  ;;  %v22106_v3 = vld [vmem:[#allocation3 + $0x6f] sm:$0xff] }
 0x859   :  { %23778 = vst [vmem:[#allocation179_spill] sm:$0xff] %v22056_v21  ;;  %23779 = vst [vmem:[#allocation178_spill] sm:$0xff] %v22060_v54  ;;  %v22108_v32 = vld [vmem:[#allocation3 + $0x77] sm:$0xff]  ;;  %v22118_v10 = vmul.f32 %v21695_v48, %v21890_v60  ;;  %v22122_v52 = vmul.f32 %v21701_v44, %v21925_v2  ;;  %v22132_v31 = vmul.f32 %v21699_v37, %v21933_v45  ;;  %v12585_v44 = vpop.permute.xlu0 %12584  ;;  %v23792_v56 = vld [vmem:[#allocation57_spill] sm:$0xff] }
 0x85a   :  { %23780 = vst [vmem:[#allocation180_spill] sm:$0xff] %v22068_v27  ;;  %23781 = vst [vmem:[#allocation181_spill] sm:$0xff] %v22072_v62  ;;  %v22136_v48 = vmul.f32 %v21705_v7, %v21927_v23  ;;  %v22138_v62 = vpop.permute.xlu1 %12589  ;;  %v22149_v37 = vmul.f32 %v21703_v50, %v21942_v9  ;;  %v22153_v7 = vmul.f32 %v23792_v56, %v22091_v59  ;;  %v23796_v54 = vld [vmem:[#allocation59_spill] sm:$0xff]  ;;  %v23802_v56 = vld [vmem:[#allocation50_spill] sm:$0xff] }
 0x85b   :  { %23783 = vst [vmem:[#allocation183_spill] sm:$0xff] %v22087_v12  ;;  %23784 = vst [vmem:[#allocation182_spill] sm:$0xff] %v22099_v8  ;;  %v23794_v8 = vld [vmem:[#allocation142_spill] sm:$0xff]  ;;  %v22163_v27 = vmul.f32 %v23796_v54, %v22026_v1  ;;  %v23800_v50 = vld [vmem:[#allocation67_spill] sm:$0xff]  ;;  %v10456_v16 = vmul.f32 %v23802_v56, %v22091_v59 }
 0x85c   :  { %23785 = vst [vmem:[#allocation184_spill] sm:$0xff] %v22103_v39  ;;  %15493 = vmatmul.mubr.msk.bf16.vlgmr.msra.gmra.mrb[32].mxu0 %vm88_vm2, %v10463_v58  ;;  %23786 = vst [vmem:[#allocation185_spill] sm:$0xff] %v22114_v14  ;;  %v22126_v58 = vld [vmem:[#allocation3 + $0x7f] sm:$0xff]  ;;  %v22157_v39 = vmul.f32 %v23794_v8, %v22093_v15  ;;  %v23806_v21 = vld [vmem:[#allocation83_spill] sm:$0xff] }
 0x85d   :  { %23787 = vst [vmem:[#allocation187_spill] sm:$0xff] %v22118_v10  ;;  %23788 = vst [vmem:[#allocation186_spill] sm:$0xff] %v22122_v52  ;;  %15509 = vmatpush3.bf16.msra.mxu0 %v21827_v55  ;;  %15496 = vmatprep.mubr.msk.bf16.mxu0 %vm88_vm2, %v10464_v49  ;;  %v22143_v55 = vld [vmem:[%s22799_s5 + $0x1e0] sm:$0xff]   ;;  %v23798_v49 = vld [vmem:[#allocation58_spill] sm:$0xff]  ;;  %v22171_v10 = vmul.f32 %v23800_v50, %v22108_v32  ;;  %v22189_v56 = vmul.f32 %v23807_v34, %v23806_v21 }
 0x85e   :  { %23789 = vst [vmem:[#allocation188_spill] sm:$0xff] %v22132_v31  ;;  %23790 = vst [vmem:[#allocation189_spill] sm:$0xff] %v22136_v48  ;;  %15510 = vmatprep.subr.bf16.mxu0 %v16404_v61  ;;  %v22167_v14 = vmul.f32 %v23798_v49, %v22106_v3  ;;  %v23803_v54 = vld [vmem:[#allocation61_spill] sm:$0xff]  ;;  %v23805_v49 = vld [vmem:[#allocation48_spill] sm:$0xff] }
 0x85f   :  { %23791 = vst [vmem:[#allocation191_spill] sm:$0xff] %v22149_v37  ;;  %23793 = vst [vmem:[#allocation190_spill] sm:$0xff] %v22153_v7  ;;  %v22181_v52 = vmul.f32 %v23803_v54, %v22126_v58  ;;  %v10457_v31 = vmul.f32 %v23805_v49, %v22093_v15  ;;  %v23809_v0 = vld [vmem:[#allocation86_spill] sm:$0xff]  ;;  %v23810_v8 = vld [vmem:[#allocation144_spill] sm:$0xff]  ;;  %v12595_v37 = vpop.permute.xlu0 %12594 }
 0x860   :  { %23795 = vst [vmem:[#allocation192_spill] sm:$0xff] %v22157_v39  ;;  %23797 = vst [vmem:[#allocation193_spill] sm:$0xff] %v22163_v27  ;;  %v22193_v48 = vmul.f32 %v23810_v8, %v23809_v0  ;;  %v23812_v12 = vld [vmem:[#allocation145_spill] sm:$0xff]  ;;  %v23816_v34 = vld [vmem:[#allocation146_spill] sm:$0xff] }
 0x861   :  { %23799 = vst [vmem:[#allocation195_spill] sm:$0xff] %v22167_v14  ;;  %23801 = vst [vmem:[#allocation194_spill] sm:$0xff] %v22171_v10  ;;  %15511 = vmatpush3.bf16.msra.mxu0 %v16404_v61  ;;  %v22200_v49 = vmul.f32 %v23812_v12, %v21815_v11  ;;  %v23814_v61 = vld [vmem:[#allocation147_spill] sm:$0xff]  ;;  %v22208_v27 = vmul.f32 %v23816_v34, %v21817_v29  ;;  %v23818_v8 = vld [vmem:[#allocation46_spill] sm:$0xff] }
 0x862   :  { %23804 = vst [vmem:[#allocation196_spill] sm:$0xff] %v22181_v52  ;;  %23808 = vst [vmem:[#allocation197_spill] sm:$0xff] %v22189_v56  ;;  %15528 = vmatprep.subr.bf16.mxu0 %v22143_v55  ;;  %v22204_v50 = vmul.f32 %v23814_v61, %v21833_v5  ;;  %v10459_v14 = vmul.f32 %v23818_v8, %v22106_v3  ;;  %v23820_v54 = vld [vmem:[#allocation75_spill] sm:$0xff]  ;;  %v23822_v12 = vld [vmem:[#allocation74_spill] sm:$0xff]  ;;  %v12600_v61 = vpop.permute.xlu1 %12599 }
 0x863   :  { %23811 = vst [vmem:[#allocation199_spill] sm:$0xff] %v22193_v48  ;;  %23813 = vst [vmem:[#allocation198_spill] sm:$0xff] %v22200_v49  ;;  %v22216_v10 = vmul.f32 %v23820_v54, %v21850_v40  ;;  %v22220_v52 = vmul.f32 %v23822_v12, %v21855_v17  ;;  %v23824_v19 = vld [vmem:[#allocation157_spill] sm:$0xff]  ;;  %v23827_v54 = vld [vmem:[#allocation76_spill] sm:$0xff] }
 0x864   :  { %23815 = vst [vmem:[#allocation200_spill] sm:$0xff] %v22204_v50  ;;  %23817 = vst [vmem:[#allocation201_spill] sm:$0xff] %v22208_v27  ;;  %15497 = vmatmul.mubr.msk.bf16.gmra.mrb[36].mxu0 %vm88_vm2, %v10465_v33  ;;  %v23825_v39 = vld [vmem:[#allocation77_spill] sm:$0xff]  ;;  %v22233_v7 = vmul.f32 %v23827_v54, %v21857_v4  ;;  %v23829_v33 = vld [vmem:[#allocation148_spill] sm:$0xff]  ;;  %v10467_v27 = vpack.c.bf16 %v10457_v31, %v10456_v16 }
 0x865   :  { %23821 = vst [vmem:[#allocation203_spill] sm:$0xff] %v22216_v10  ;;  %23823 = vst [vmem:[#allocation202_spill] sm:$0xff] %v22220_v52  ;;  %v22229_v56 = vmul.f32 %v23825_v39, %v23824_v19  ;;  %15500 = vmatprep.mubr.msk.bf16.mxu0 %vm88_vm2, %v10466_v41  ;;  %v22240_v13 = vmul.f32 %v23829_v33, %v21877_v57  ;;  %v23831_v34 = vld [vmem:[#allocation149_spill] sm:$0xff]  ;;  %v23835_v41 = vld [vmem:[#allocation158_spill] sm:$0xff] }
 0x866   :  { %23828 = vst [vmem:[#allocation205_spill] sm:$0xff] %v22233_v7  ;;  %v22244_v8 = vmul.f32 %v23831_v34, %v21892_v43  ;;  %v23833_v39 = vld [vmem:[#allocation85_spill] sm:$0xff]  ;;  %v23836_v48 = vld [vmem:[#allocation84_spill] sm:$0xff]  ;;  %v23838_v12 = vld [vmem:[#allocation154_spill] sm:$0xff] }
 0x867   :  { %23826 = vst [vmem:[#allocation204_spill] sm:$0xff] %v22229_v56  ;;  %23830 = vst [vmem:[#allocation207_spill] sm:$0xff] %v22240_v13  ;;  %v22248_v50 = vmul.f32 %v23833_v39, %v21906_v35  ;;  %v22254_v49 = vmul.f32 %v23836_v48, %v23835_v41  ;;  %v22258_v33 = vmul.f32 %v23838_v12, %v21946_v53  ;;  %v23839_v10 = vld [vmem:[#allocation155_spill] sm:$0xff]  ;;  %v23840_v39 = vld [vmem:[#allocation165_spill] sm:$0xff] }
 0x868   :  { %23832 = vst [vmem:[#allocation206_spill] sm:$0xff] %v22244_v8  ;;  %v22264_v52 = vmul.f32 %v23839_v10, %v21935_v24  ;;  %v23841_v16 = vld [vmem:[#allocation159_spill] sm:$0xff]  ;;  %v23844_v56 = vld [vmem:[#allocation160_spill] sm:$0xff]  ;;  %v10468_v48 = vpack.c.bf16 %v10459_v14, %v22081_v38  ;;  %v23845_v34 = vld [vmem:[#allocation166_spill] sm:$0xff]  ;;  %v22293_v38 = vmul.f32 %v22048_v20, %v21979_v28 }
 0x869   :  { %23834 = vst [vmem:[#allocation209_spill] sm:$0xff] %v22248_v50  ;;  %23837 = vst [vmem:[#allocation208_spill] sm:$0xff] %v22254_v49  ;;  %v22268_v31 = vmul.f32 %v23841_v16, %v23840_v39  ;;  %v23843_v54 = vld [vmem:[#allocation167_spill] sm:$0xff]  ;;  %v22275_v51 = vld [vmem:[#allocation3 + $0x81] sm:$0xff]  ;;  %v12605_v50 = vpop.permute.xlu0 %12604  ;;  %v22302_v49 = vmul.f32 %v12585_v44, %v21994_v18  ;;  %v22306_v16 = vmul.f32 %v22138_v62, %v21996_v30 }
 0x86a   :  { %v22272_v7 = vmul.f32 %v23844_v56, %v23843_v54  ;;  %v23846_v13 = vld [vmem:[#allocation163_spill] sm:$0xff]  ;;  %v23848_v10 = vld [vmem:[#allocation161_spill] sm:$0xff]  ;;  %23850 = vst [vmem:[#allocation211_spill] sm:$0xff] %v22293_v38  ;;  %v22309_v56 = vmul.f32 %v12595_v37, %v22006_v26  ;;  %v23862_v37 = vld [vmem:[#allocation78_spill] sm:$0xff] }
 0x86b   :  { %23842 = vst [vmem:[#allocation210_spill] sm:$0xff] %v22268_v31  ;;  %v22281_v8 = vmul.f32 %v23846_v13, %v23845_v34  ;;  %v22285_v63 = vmul.f32 %v23848_v10, %v21970_v6  ;;  %v23851_v14 = vld [vmem:[#allocation177_spill] sm:$0xff]  ;;  %v12610_v13 = vpop.permute.xlu1 %12609  ;;  %23853 = vst [vmem:[#allocation217_spill] sm:$0xff] %v22302_v49  ;;  %v22317_v31 = vmul.f32 %v12605_v50, %v22028_v47 }
 0x86c   :  { %v22297_v12 = vmul.f32 %v23851_v14, %v21981_v36  ;;  %23854 = vst [vmem:[#allocation216_spill] sm:$0xff] %v22309_v56  ;;  %v22314_v14 = vmul.f32 %v12600_v61, %v22008_v46  ;;  %v22320_v10 = vmul.f32 %v12610_v13, %v22275_v51  ;;  %15501 = vmatmul.mubr.msk.bf16.gmra.mrb[40].mxu0 %vm88_vm2, %v10467_v27  ;;  %v23857_v61 = vld [vmem:[#allocation73_spill] sm:$0xff]  ;;  %v23860_v27 = vld [vmem:[#allocation72_spill] sm:$0xff] }
 0x86d   :  { %23847 = vst [vmem:[#allocation213_spill] sm:$0xff] %v22281_v8  ;;  %23849 = vst [vmem:[#allocation212_spill] sm:$0xff] %v22285_v63  ;;  %15504 = vmatprep.mubr.msk.bf16.mxu0 %vm88_vm2, %v10468_v48  ;;  %v10460_v50 = vmul.f32 %v23857_v61, %v22108_v32  ;;  %v23858_v20 = vld [vmem:[#allocation125_spill] sm:$0xff]  ;;  %v23861_v63 = vld [vmem:[#allocation126_spill] sm:$0xff]  ;;  %v10996_v44 = vmul.f32 %v23862_v37, %v21946_v53 }
 0x86e   :  { %23852 = vst [vmem:[#allocation214_spill] sm:$0xff] %v22297_v12  ;;  %23855 = vst [vmem:[#allocation215_spill] sm:$0xff] %v22317_v31  ;;  %v10461_v13 = vmul.f32 %v23858_v20, %v22126_v58  ;;  %v10882_v38 = vld [vmem:[#allocation3 + $0x9] sm:$0xff]  ;;  %v23863_v61 = vld [vmem:[#allocation127_spill] sm:$0xff] }
 0x86f   :  { %23856 = vst [vmem:[#allocation218_spill] sm:$0xff] %v22320_v10  ;;  %v23859_v12 = vld [vmem:[#allocation162_spill] sm:$0xff]  ;;  %v10994_v62 = vmul.f32 %v23861_v63, %v10882_v38  ;;  %v10997_v31 = vmul.f32 %v23863_v61, %v21935_v24  ;;  %v23864_v20 = vld [vmem:[#allocation80_spill] sm:$0xff]  ;;  %v23866_v53 = vld [vmem:[#allocation79_spill] sm:$0xff] }
 0x870   :  { %v10995_v8 = vmul.f32 %v23860_v27, %v23859_v12  ;;  %v10469_v49 = vpack.c.bf16 %v10461_v13, %v10460_v50  ;;  %v10999_v10 = vmul.f32 %v23864_v20, %v23843_v54  ;;  %v23865_v56 = vld [vmem:[#allocation128_spill] sm:$0xff]  ;;  %v16406_v63 = vld [vmem:[%s22799_s5 + $0x1e8] sm:$0xff]   ;;  %v11000_v24 = vmul.f32 %v23866_v53, %v23845_v34  ;;  %v23872_v50 = vld [vmem:[#allocation87_spill] sm:$0xff] }
 0x871   :  { %v10998_v12 = vmul.f32 %v23865_v56, %v23840_v39  ;;  %v11011_v27 = vpack.c.bf16 %v10997_v31, %v10996_v44  ;;  %v16407_v39 = vld [vmem:[%s22799_s5 + $0x1f0] sm:$0xff]   ;;  %v23868_v31 = vld [vmem:[#allocation81_spill] sm:$0xff]  ;;  %v23873_v13 = vld [vmem:[#allocation132_spill] sm:$0xff] }
 0x872   :  { %v11010_v48 = vpack.c.bf16 %v10995_v8, %v10994_v62  ;;  %v23867_v8 = vld [vmem:[#allocation129_spill] sm:$0xff]  ;;  %v11003_v56 = vmul.f32 %v23868_v31, %v21981_v36  ;;  %v23869_v38 = vld [vmem:[#allocation82_spill] sm:$0xff]  ;;  %v23871_v44 = vld [vmem:[#allocation131_spill] sm:$0xff]  ;;  %v11007_v36 = vmul.f32 %v23872_v50, %v22008_v46 }
 0x873   :  { %v11001_v54 = vmul.f32 %v23867_v8, %v21970_v6  ;;  %v23870_v6 = vld [vmem:[#allocation130_spill] sm:$0xff]  ;;  %v11005_v37 = vmul.f32 %v23871_v44, %v21996_v30  ;;  %v23874_v20 = vld [vmem:[#allocation133_spill] sm:$0xff]  ;;  %v23876_v30 = vld [vmem:[#allocation88_spill] sm:$0xff] }
 0x874   :  { %15505 = vmatmul.mubr.msk.bf16.gmra.mrb[44].mxu0 %vm88_vm2, %v10469_v49  ;;  %v11012_v49 = vpack.c.bf16 %v10999_v10, %v10998_v12  ;;  %v11002_v10 = vmul.f32 %v23869_v38, %v21979_v28  ;;  %v11004_v34 = vmul.f32 %v23870_v6, %v21994_v18  ;;  %v11006_v28 = vmul.f32 %v23873_v13, %v22006_v26  ;;  %v23875_v18 = vld [vmem:[#allocation89_spill] sm:$0xff]  ;;  %v23878_v46 = vld [vmem:[#allocation91_spill] sm:$0xff]  ;;  %v23879_v8 = vld [vmem:[#allocation92_spill] sm:$0xff] }
 0x875   :  { %15512 = vmatprep.mubr.msk.bf16.mxu0 %vm88_vm2, %v11010_v48  ;;  %v11008_v12 = vmul.f32 %v23874_v20, %v22028_v47  ;;  %v23880_v47 = vld [vmem:[#allocation93_spill] sm:$0xff]  ;;  %v23885_v44 = vld [vmem:[#allocation95_spill] sm:$0xff]  ;;  %v23886_v50 = vld [vmem:[#allocation134_spill] sm:$0xff] }
 0x876   :  { %v11014_v62 = vpack.c.bf16 %v11003_v56, %v11002_v10  ;;  %v11015_v48 = vpack.c.bf16 %v11005_v37, %v11004_v34  ;;  %v11016_v61 = vpack.c.bf16 %v11007_v36, %v11006_v28  ;;  %v11287_v31 = vmul.f32 %v23880_v47, %v21904_v25  ;;  %v23881_v56 = vld [vmem:[#allocation90_spill] sm:$0xff]  ;;  %v23884_v34 = vld [vmem:[#allocation97_spill] sm:$0xff] }
 0x877   :  { %v11289_v38 = vmul.f32 %v23881_v56, %v21925_v2  ;;  %v11291_v2 = vmul.f32 %v23884_v34, %v21927_v23  ;;  %v11293_v37 = vmul.f32 %v23885_v44, %v22091_v59  ;;  %v11292_v36 = vmul.f32 %v23886_v50, %v21942_v9  ;;  %v23888_v28 = vld [vmem:[#allocation137_spill] sm:$0xff]  ;;  %v23890_v20 = vld [vmem:[#allocation138_spill] sm:$0xff]  ;;  %v23917_v34 = vld [vmem:[#allocation180_spill] sm:$0xff] }
 0x878   :  { %v11296_v9 = vmul.f32 %v23890_v20, %v22106_v3  ;;  %v16410_v3 = vld [vmem:[%s22799_s5 + $0x208] sm:$0xff]   ;;  %v23920_v44 = vld [vmem:[#allocation183_spill] sm:$0xff] }
 0x879   :  { %v11304_v13 = vpack.c.bf16 %v11293_v37, %v11292_v36  ;;  %v23908_v47 = vld [vmem:[#allocation173_spill] sm:$0xff]  ;;  %v23923_v36 = vld [vmem:[#allocation143_spill] sm:$0xff] }
 0x87a   :  { %v23921_v37 = vld [vmem:[#allocation181_spill] sm:$0xff]  ;;  %v23928_v20 = vld [vmem:[#allocation187_spill] sm:$0xff] }
 0x87b   :  { %v23922_v50 = vpack.c.bf16 %v23920_v44, %v23921_v37  ;;  %v23966_v44 = vld [vmem:[#allocation208_spill] sm:$0xff]  ;;  %v23967_v37 = vld [vmem:[#allocation209_spill] sm:$0xff] }
 0x87c   :  { %15513 = vmatmul.mubr.msk.bf16.vlgmr.msra.gmra.mrb[32].mxu0 %vm88_vm2, %v11011_v27  ;;  %v11009_v27 = vmul.f32 %v23875_v18, %v22275_v51 }
 0x87d   :  { %15529 = vmatpush3.bf16.msra.mxu0 %v22143_v55  ;;  %15516 = vmatprep.mubr.msk.bf16.mxu0 %vm88_vm2, %v11012_v49  ;;  %v11013_v55 = vpack.c.bf16 %v11001_v54, %v11000_v24  ;;  %v23877_v49 = vld [vmem:[#allocation156_spill] sm:$0xff]  ;;  %v11286_v54 = vmul.f32 %v23879_v8, %v21888_v22  ;;  %v11477_v8 = vld [vmem:[#allocation3 + $0x88] sm:$0xff] }
 0x87e   :  { %15530 = vmatprep.subr.bf16.mxu0 %v16406_v63  ;;  %v11284_v53 = vmul.f32 %v23878_v46, %v23877_v49  ;;  %v11017_v24 = vpack.c.bf16 %v11009_v27, %v11008_v12  ;;  %v23883_v22 = vld [vmem:[#allocation96_spill] sm:$0xff]  ;;  %v11187_v27 = vld [vmem:[#allocation3 + $0x87] sm:$0xff] }
 0x87f   :  { %v11290_v25 = vmul.f32 %v23883_v22, %v21933_v45  ;;  %v23887_v45 = vld [vmem:[#allocation136_spill] sm:$0xff] }
 0x880   :  { %v11294_v23 = vmul.f32 %v23887_v45, %v22093_v15  ;;  %v23892_v15 = vld [vmem:[#allocation141_spill] sm:$0xff] }
 0x881   :  { %15531 = vmatpush3.bf16.msra.mxu0 %v16406_v63  ;;  %v11285_v63 = vmul.f32 %v23876_v30, %v21886_v42  ;;  %v23882_v42 = vld [vmem:[#allocation94_spill] sm:$0xff]  ;;  %v23891_v30 = vld [vmem:[#allocation140_spill] sm:$0xff]  ;;  %v11299_v49 = vmul.f32 %v23892_v15, %v11187_v27  ;;  %v23934_v15 = vld [vmem:[#allocation191_spill] sm:$0xff] }
 0x882   :  { %15548 = vmatprep.subr.bf16.mxu0 %v16407_v39  ;;  %v11288_v10 = vmul.f32 %v23882_v42, %v21890_v60  ;;  %v16409_v60 = vld [vmem:[%s22799_s5 + $0x200] sm:$0xff]   ;;  %v23911_v42 = vld [vmem:[#allocation174_spill] sm:$0xff] }
 0x883   :  { %v11300_v26 = vpack.c.bf16 %v11285_v63, %v11284_v53  ;;  %v11298_v63 = vmul.f32 %v23891_v30, %v22126_v58  ;;  %v23895_v53 = vld [vmem:[#allocation151_spill] sm:$0xff]  ;;  %v23897_v58 = vpack.c.bf16 %v21833_v5, %v21815_v11  ;;  %v23900_v11 = vpack.c.bf16 %v21877_v57, %v21857_v4  ;;  %v23902_v4 = vld [vmem:[#allocation169_spill] sm:$0xff] }
 0x884   :  { %15517 = vmatmul.mubr.msk.bf16.gmra.mrb[36].mxu0 %vm88_vm2, %v11013_v55  ;;  %v11301_v55 = vpack.c.bf16 %v11287_v31, %v11286_v54  ;;  %v11302_v6 = vpack.c.bf16 %v11289_v38, %v11288_v10  ;;  %v23901_v5 = vpack.c.bf16 %v21906_v35, %v21892_v43  ;;  %v16412_v35 = vld [vmem:[%s22799_s5 + $0x218] sm:$0xff]   ;;  %v23905_v43 = vld [vmem:[#allocation170_spill] sm:$0xff]  ;;  %v16413_v38 = vld [vmem:[%s22799_s5 + $0x220] sm:$0xff]  }
 0x885   :  { %15520 = vmatprep.mubr.msk.bf16.mxu0 %vm88_vm2, %v11014_v62  ;;  %v16408_v62 = vld [vmem:[%s22799_s5 + $0x1f8] sm:$0xff]   ;;  %v11307_v46 = vpack.c.bf16 %v11299_v49, %v11298_v63  ;;  %v16415_v63 = vld [vmem:[%s22799_s5 + $0x230] sm:$0xff]   ;;  %v23935_v49 = vld [vmem:[#allocation189_spill] sm:$0xff] }
 0x886   :  { %v23909_v31 = vld [vmem:[#allocation172_spill] sm:$0xff]  ;;  %v23912_v10 = vld [vmem:[#allocation175_spill] sm:$0xff] }
 0x887   :  { %v23910_v56 = vpack.c.bf16 %v23908_v47, %v23909_v31  ;;  %v23955_v31 = vld [vmem:[#allocation200_spill] sm:$0xff] }
 0x88c   :  { %15521 = vmatmul.mubr.msk.bf16.gmra.mrb[40].mxu0 %vm88_vm2, %v11015_v48  ;;  %v11295_v48 = vmul.f32 %v23888_v28, %v22026_v1  ;;  %v23893_v1 = vld [vmem:[#allocation150_spill] sm:$0xff]  ;;  %v23925_v28 = vld [vmem:[#allocation184_spill] sm:$0xff] }
 0x88d   :  { %15524 = vmatprep.mubr.msk.bf16.mxu0 %vm88_vm2, %v11016_v61  ;;  %v23889_v61 = vld [vmem:[#allocation135_spill] sm:$0xff] }
 0x88e   :  { %v11297_v59 = vmul.f32 %v23889_v61, %v22108_v32  ;;  %v11305_v12 = vpack.c.bf16 %v11295_v48, %v11294_v23  ;;  %v23894_v32 = vpack.c.bf16 %v23806_v21, %v23893_v1  ;;  %v16411_v21 = vld [vmem:[%s22799_s5 + $0x210] sm:$0xff]   ;;  %v23937_v1 = vld [vmem:[#allocation192_spill] sm:$0xff] }
 0x88f   :  { %v23926_v48 = vld [vmem:[#allocation182_spill] sm:$0xff] }
 0x890   :  { %v11306_v18 = vpack.c.bf16 %v11297_v59, %v11296_v9  ;;  %v23927_v61 = vpack.c.bf16 %v23925_v28, %v23926_v48  ;;  %v16414_v59 = vld [vmem:[%s22799_s5 + $0x228] sm:$0xff]   ;;  %v23971_v28 = vpack.c.bf16 %v22264_v52, %v22258_v33  ;;  %v23982_v33 = vld [vmem:[#allocation216_spill] sm:$0xff] }
 0x891   :  { %v23929_v9 = vld [vmem:[#allocation185_spill] sm:$0xff]  ;;  %v23972_v48 = vld [vmem:[#allocation210_spill] sm:$0xff] }
 0x894   :  { %15525 = vmatmul.mubr.msk.bf16.gmra.mrb[44].mxu0 %vm88_vm2, %v11017_v24  ;;  %v23896_v24 = vpack.c.bf16 %v23809_v0, %v23895_v53  ;;  %v23899_v0 = vpack.c.bf16 %v23824_v19, %v21855_v17  ;;  %v16418_v17 = vld [vmem:[%s22802_s8 + $0x8] sm:$0xff]   ;;  %v23903_v19 = vld [vmem:[#allocation168_spill] sm:$0xff] }
 0x895   :  { %15532 = vmatprep.mubr.msk.bf16.mxu0 %vm88_vm2, %v11300_v26  ;;  %v23898_v26 = vpack.c.bf16 %v21850_v40, %v21817_v29  ;;  %v11485_v29 = vpack.c.bf16 %v11477_v8, %v23835_v41  ;;  %v16417_v40 = vld [vmem:[%s22802_s8] sm:$0xff]   ;;  %v23904_v57 = vpack.c.bf16 %v23902_v4, %v23903_v19  ;;  %v23906_v41 = vld [vmem:[#allocation171_spill] sm:$0xff] }
 0x896   :  { %15648 = vmatprep.subr.bf16.mxu1 %v16417_v40  ;;  %v23907_v54 = vpack.c.bf16 %v23905_v43, %v23906_v41  ;;  %v11945_v53 = vld [vmem:[#allocation3 + $0x8f] sm:$0xff]  ;;  %v23948_v19 = vld [vmem:[#allocation164_spill] sm:$0xff] }
 0x897   :  { %15649 = vmatpush3.bf16.msra.mxu1 %v16417_v40  ;;  %v23947_v40 = vld [vmem:[#allocation68_spill] sm:$0xff]  ;;  %v23951_v41 = vld [vmem:[#allocation198_spill] sm:$0xff] }
 0x898   :  { %15650 = vmatprep.subr.bf16.mxu1 %v16418_v17  ;;  %v16416_v43 = vld [vmem:[%s22799_s5 + $0x238] sm:$0xff]  }
 0x89b   :  { %15651 = vmatpush3.bf16.msra.mxu1 %v16418_v17  ;;  %v12057_v17 = vmul.f32 %v23947_v40, %v11945_v53 }
 0x89c   :  { %15533 = vmatmul.mubr.msk.bf16.vlgmr.msra.gmra.mrb[32].mxu0 %vm88_vm2, %v11301_v55  ;;  %v23913_v55 = vpack.c.bf16 %v23911_v42, %v23912_v10  ;;  %v23958_v42 = vld [vmem:[#allocation203_spill] sm:$0xff] }
 0x89d   :  { %15549 = vmatpush3.bf16.msra.mxu0 %v16407_v39  ;;  %15536 = vmatprep.mubr.msk.bf16.mxu0 %vm88_vm2, %v11302_v6  ;;  %v11303_v39 = vpack.c.bf16 %v11291_v2, %v11290_v25  ;;  %v23915_v6 = vld [vmem:[#allocation176_spill] sm:$0xff]  ;;  %v11655_v25 = vld [vmem:[#allocation3 + $0x89] sm:$0xff] }
 0x89e   :  { %15550 = vmatprep.subr.bf16.mxu0 %v16408_v62  ;;  %v23918_v2 = vld [vmem:[#allocation178_spill] sm:$0xff] }
 0x8a1   :  { %15551 = vmatpush3.bf16.msra.mxu0 %v16408_v62  ;;  %v23914_v62 = vld [vmem:[#allocation179_spill] sm:$0xff] }
 0x8a2   :  { %15568 = vmatprep.subr.bf16.mxu0 %v16409_v60  ;;  %v23916_v22 = vpack.c.bf16 %v23914_v62, %v23915_v6  ;;  %v23961_v62 = vld [vmem:[#allocation204_spill] sm:$0xff] }
 0x8a4   :  { %15537 = vmatmul.mubr.msk.bf16.gmra.mrb[36].mxu0 %vm88_vm2, %v11303_v39  ;;  %v11766_v39 = vmul.f32 %v23923_v36, %v22275_v51  ;;  %v23931_v51 = vld [vmem:[#allocation188_spill] sm:$0xff] }
 0x8a5   :  { %15540 = vmatprep.mubr.msk.bf16.mxu0 %vm88_vm2, %v11304_v13  ;;  %v23924_v13 = vld [vmem:[#allocation139_spill] sm:$0xff]  ;;  %v23969_v36 = vld [vmem:[#allocation152_spill] sm:$0xff] }
 0x8a6   :  { %v11767_v45 = vmul.f32 %v23924_v13, %v11655_v25  ;;  %v23970_v13 = vld [vmem:[#allocation153_spill] sm:$0xff] }
 0x8a8   :  { %v11775_v23 = vpack.c.bf16 %v11767_v45, %v11766_v39  ;;  %v12346_v39 = vmul.f32 %v23969_v36, %v11477_v8  ;;  %v23977_v8 = vld [vmem:[#allocation214_spill] sm:$0xff] }
 0x8ac   :  { %15541 = vmatmul.mubr.msk.bf16.gmra.mrb[40].mxu0 %vm88_vm2, %v11305_v12  ;;  %v23930_v12 = vpack.c.bf16 %v23928_v20, %v23929_v9  ;;  %v23975_v20 = vld [vmem:[#allocation213_spill] sm:$0xff] }
 0x8ad   :  { %15544 = vmatprep.mubr.msk.bf16.mxu0 %vm88_vm2, %v11306_v18  ;;  %v23932_v18 = vld [vmem:[#allocation186_spill] sm:$0xff] }
 0x8ae   :  { %v23933_v30 = vpack.c.bf16 %v23931_v51, %v23932_v18  ;;  %v23980_v18 = vld [vmem:[#allocation217_spill] sm:$0xff] }
 0x8af   :  { %v23981_v52 = vpack.c.bf16 %v22306_v16, %v23980_v18  ;;  %v22609_v16 = vld [vmem:[%s22800_s6 + $0x3] ss:$0 sm:$0xff] }
 0x8b4   :  { %15545 = vmatmul.mubr.msk.bf16.gmra.mrb[44].mxu0 %vm88_vm2, %v11307_v46  ;;  %v23936_v46 = vpack.c.bf16 %v23934_v15, %v23935_v49  ;;  %v12615_v15 = vpop.permute.xlu0 %12614  ;;  %v23984_v49 = vld [vmem:[#allocation218_spill] sm:$0xff] }
 0x8b5   :  { %15552 = vmatprep.mubr.msk.bf16.mxu0 %vm88_vm2, %v23894_v32  ;;  %v23938_v32 = vld [vmem:[#allocation190_spill] sm:$0xff] }
 0x8bc   :  { %15553 = vmatmul.mubr.msk.bf16.vlgmr.msra.gmra.mrb[32].mxu0 %vm88_vm2, %v23896_v24  ;;  %v23940_v24 = vld [vmem:[#allocation195_spill] sm:$0xff] }
 0x8bd   :  { %15569 = vmatpush3.bf16.msra.mxu0 %v16409_v60  ;;  %15556 = vmatprep.mubr.msk.bf16.mxu0 %vm88_vm2, %v23897_v58  ;;  %v23919_v60 = vpack.c.bf16 %v23917_v34, %v23918_v2  ;;  %v23941_v58 = vld [vmem:[#allocation193_spill] sm:$0xff]  ;;  %v23964_v34 = vld [vmem:[#allocation207_spill] sm:$0xff] }
 0x8be   :  { %15570 = vmatprep.subr.bf16.mxu0 %v16410_v3 }
 0x8c1   :  { %15571 = vmatpush3.bf16.msra.mxu0 %v16410_v3  ;;  %v23939_v3 = vpack.c.bf16 %v23937_v1, %v23938_v32  ;;  %v12636_v32 = vmul.f32 %v12615_v15, %v11655_v25 }
 0x8c2   :  { %15588 = vmatprep.subr.bf16.mxu0 %v16411_v21 }
 0x8c4   :  { %15557 = vmatmul.mubr.msk.bf16.gmra.mrb[36].mxu0 %vm88_vm2, %v23898_v26  ;;  %v23943_v26 = vld [vmem:[#allocation196_spill] sm:$0xff] }
 0x8c5   :  { %15560 = vmatprep.mubr.msk.bf16.mxu0 %vm88_vm2, %v23899_v0  ;;  %v23944_v0 = vld [vmem:[#allocation194_spill] sm:$0xff] }
 0x8cc   :  { %15561 = vmatmul.mubr.msk.bf16.gmra.mrb[40].mxu0 %vm88_vm2, %v23900_v11  ;;  %v23945_v11 = vpack.c.bf16 %v23943_v26, %v23944_v0 }
 0x8cd   :  { %15564 = vmatprep.mubr.msk.bf16.mxu0 %vm88_vm2, %v23901_v5  ;;  %v23946_v5 = vld [vmem:[#allocation69_spill] sm:$0xff] }
 0x8d4   :  { %15565 = vmatmul.mubr.msk.bf16.gmra.mrb[44].mxu0 %vm88_vm2, %v11485_v29  ;;  %v12056_v29 = vmul.f32 %v23946_v5, %v11187_v27  ;;  %v23954_v27 = vld [vmem:[#allocation201_spill] sm:$0xff] }
 0x8d5   :  { %15572 = vmatprep.mubr.msk.bf16.mxu0 %vm88_vm2, %v23904_v57  ;;  %v23949_v57 = vld [vmem:[#allocation197_spill] sm:$0xff] }
 0x8d6   :  { %v12065_v4 = vpack.c.bf16 %v12057_v17, %v12056_v29  ;;  %v23987_v17 = vld [vmem:[#allocation49_spill] sm:$0xff] }
 0x8dc   :  { %15573 = vmatmul.mubr.msk.bf16.vlgmr.msra.gmra.mrb[32].mxu0 %vm88_vm2, %v23907_v54  ;;  %v23952_v54 = vld [vmem:[#allocation199_spill] sm:$0xff] }
 0x8dd   :  { %15589 = vmatpush3.bf16.msra.mxu0 %v16411_v21  ;;  %15576 = vmatprep.mubr.msk.bf16.mxu0 %vm88_vm2, %v23910_v56  ;;  %v23942_v21 = vpack.c.bf16 %v23940_v24, %v23941_v58  ;;  %v23953_v47 = vpack.c.bf16 %v23951_v41, %v23952_v54  ;;  %v23956_v56 = vpack.c.bf16 %v23954_v27, %v23955_v31  ;;  %v22614_v24 = vld [vmem:[%s22801_s7 + $0x3] ss:$0 sm:$0xff] }
 0x8de   :  { %15590 = vmatprep.subr.bf16.mxu0 %v16412_v35 }
 0x8e1   :  { %15591 = vmatpush3.bf16.msra.mxu0 %v16412_v35  ;;  %v23950_v35 = vpack.c.bf16 %v23948_v19, %v23949_v57 }
 0x8e2   :  { %15608 = vmatprep.subr.bf16.mxu0 %v16413_v38 }
 0x8e4   :  { %15577 = vmatmul.mubr.msk.bf16.gmra.mrb[36].mxu0 %vm88_vm2, %v23913_v55  ;;  %v23960_v55 = vld [vmem:[#allocation205_spill] sm:$0xff] }
 0x8e5   :  { %15580 = vmatprep.mubr.msk.bf16.mxu0 %vm88_vm2, %v23916_v22  ;;  %v23962_v6 = vpack.c.bf16 %v23960_v55, %v23961_v62  ;;  %v23963_v22 = vld [vmem:[#allocation206_spill] sm:$0xff] }
 0x8e6   :  { %v23965_v2 = vpack.c.bf16 %v23963_v22, %v23964_v34 }
 0x8ec   :  { %15581 = vmatmul.mubr.msk.bf16.gmra.mrb[40].mxu0 %vm88_vm2, %v23919_v60  ;;  %v12235_v60 = vld [vmem:[#allocation3 + $0x90] sm:$0xff] }
 0x8ed   :  { %15584 = vmatprep.mubr.msk.bf16.mxu0 %vm88_vm2, %v23922_v50  ;;  %v23968_v50 = vpack.c.bf16 %v23966_v44, %v23967_v37  ;;  %v12347_v45 = vmul.f32 %v23970_v13, %v12235_v60 }
 0x8f4   :  { %15585 = vmatmul.mubr.msk.bf16.gmra.mrb[44].mxu0 %vm88_vm2, %v11775_v23  ;;  %v12355_v23 = vpack.c.bf16 %v12347_v45, %v12346_v39 }
 0x8f5   :  { %15592 = vmatprep.mubr.msk.bf16.mxu0 %vm88_vm2, %v23927_v61  ;;  %v23973_v61 = vpack.c.bf16 %v22272_v7, %v23972_v48  ;;  %v23983_v7 = vpack.c.bf16 %v22314_v14, %v23982_v33  ;;  %v24001_v33 = vld [vmem:[#allocation56_spill] sm:$0xff] }
 0x8fc   :  { %15593 = vmatmul.mubr.msk.bf16.vlgmr.msra.gmra.mrb[32].mxu0 %vm88_vm2, %v23930_v12  ;;  %v23978_v12 = vld [vmem:[#allocation211_spill] sm:$0xff] }
 0x8fd   :  { %15609 = vmatpush3.bf16.msra.mxu0 %v16413_v38  ;;  %15596 = vmatprep.mubr.msk.bf16.mxu0 %vm88_vm2, %v23933_v30  ;;  %v23957_v38 = vld [vmem:[#allocation202_spill] sm:$0xff]  ;;  %v23979_v51 = vpack.c.bf16 %v23977_v8, %v23978_v12  ;;  %v12620_v30 = vpop.permute.xlu1 %12619 }
 0x8fe   :  { %15610 = vmatprep.subr.bf16.mxu0 %v16414_v59  ;;  %v23959_v10 = vpack.c.bf16 %v23957_v38, %v23958_v42 }
 0x901   :  { %15611 = vmatpush3.bf16.msra.mxu0 %v16414_v59  ;;  %v23974_v59 = vld [vmem:[#allocation212_spill] sm:$0xff] }
 0x902   :  { %15628 = vmatprep.subr.bf16.mxu0 %v16415_v63  ;;  %v23976_v9 = vpack.c.bf16 %v23974_v59, %v23975_v20  ;;  %v23997_v20 = vld [vmem:[#allocation60_spill] sm:$0xff] }
 0x904   :  { %15597 = vmatmul.mubr.msk.bf16.gmra.mrb[36].mxu0 %vm88_vm2, %v23936_v46  ;;  %v23985_v46 = vld [vmem:[#allocation215_spill] sm:$0xff] }
 0x905   :  { %15600 = vmatprep.mubr.msk.bf16.mxu0 %vm88_vm2, %v23939_v3  ;;  %v23986_v1 = vpack.c.bf16 %v23984_v49, %v23985_v46 }
 0x90c   :  { %15601 = vmatmul.mubr.msk.bf16.gmra.mrb[40].mxu0 %vm88_vm2, %v23942_v21 }
 0x90d   :  { %15604 = vmatprep.mubr.msk.bf16.mxu0 %vm88_vm2, %v23945_v11 }
 0x914   :  { %15605 = vmatmul.mubr.msk.bf16.gmra.mrb[44].mxu0 %vm88_vm2, %v12065_v4  ;;  %v23988_v4 = vmax.f32 %v23987_v17, 0.0 }
 0x915   :  { %15612 = vmatprep.mubr.msk.bf16.mxu0 %vm88_vm2, %v23950_v35  ;;  %v23989_v35 = vld [vmem:[#allocation53_spill] sm:$0xff] }
 0x91c   :  { %15613 = vmatmul.mubr.msk.bf16.vlgmr.msra.gmra.mrb[32].mxu0 %vm88_vm2, %v23953_v47  ;;  %v23991_v47 = vld [vmem:[#allocation51_spill] sm:$0xff] }
 0x91d   :  { %15629 = vmatpush3.bf16.msra.mxu0 %v16415_v63  ;;  %15616 = vmatprep.mubr.msk.bf16.mxu0 %vm88_vm2, %v23956_v56  ;;  %v12525_v63 = vld [vmem:[#allocation3 + $0x91] sm:$0xff]  ;;  %v23992_v27 = vmax.f32 %v23991_v47, 0.0  ;;  %v23993_v56 = vld [vmem:[#allocation52_spill] sm:$0xff] }
 0x91e   :  { %15630 = vmatprep.subr.bf16.mxu0 %v16416_v43  ;;  %v12637_v3 = vmul.f32 %v12620_v30, %v12525_v63  ;;  %v23994_v38 = vmax.f32 %v23993_v56, 0.0 }
 0x920   :  { %v12645_v53 = vpack.c.bf16 %v12637_v3, %v12636_v32 }
 0x921   :  { %15631 = vmatpush3.bf16.msra.mxu0 %v16416_v43  ;;  %v23990_v43 = vmax.f32 %v23989_v35, 0.0 }
 0x924   :  { %15617 = vmatmul.mubr.msk.bf16.gmra.mrb[36].mxu0 %vm88_vm2, %v23959_v10 }
 0x925   :  { %15620 = vmatprep.mubr.msk.bf16.mxu0 %vm88_vm2, %v23962_v6 }
 0x92c   :  { %15621 = vmatmul.mubr.msk.bf16.gmra.mrb[40].mxu0 %vm88_vm2, %v23965_v2 }
 0x92d   :  { %15624 = vmatprep.mubr.msk.bf16.mxu0 %vm88_vm2, %v23968_v50 }
 0x934   :  { %15625 = vmatmul.mubr.msk.bf16.gmra.mrb[44].mxu0 %vm88_vm2, %v12355_v23 }
 0x935   :  { %15632 = vmatprep.mubr.msk.bf16.mxu0 %vm88_vm2, %v23971_v28  ;;  %v23995_v28 = vld [vmem:[#allocation54_spill] sm:$0xff] }
 0x936   :  { %v23996_v48 = vmax.f32 %v23995_v28, 0.0 }
 0x93c   :  { %15633 = vmatmul.mubr.msk.bf16.vlgmr.msra.gmra.mrb[32].mxu0 %vm88_vm2, %v23973_v61 }
 0x93d   :  { %15636 = vmatprep.mubr.msk.bf16.mxu0 %vm88_vm2, %v23976_v9  ;;  %v23998_v9 = vmax.f32 %v23997_v20, 0.0 }
 0x944   :  { %15637 = vmatmul.mubr.msk.bf16.gmra.mrb[36].mxu0 %vm88_vm2, %v23979_v51  ;;  %v23999_v51 = vld [vmem:[#allocation55_spill] sm:$0xff] }
 0x945   :  { %15640 = vmatprep.mubr.msk.bf16.mxu0 %vm88_vm2, %v23981_v52  ;;  %v24000_v18 = vmax.f32 %v23999_v51, 0.0 }
 0x94c   :  { %15641 = vmatmul.mubr.msk.bf16.gmra.mrb[40].mxu0 %vm88_vm2, %v23983_v7  ;;  %v24002_v7 = vmax.f32 %v24001_v33, 0.0 }
 0x94d   :  { %15644 = vmatprep.mubr.msk.bf16.mxu0 %vm88_vm2, %v23986_v1 }
 0x954   :  { %15645 = vmatmul.mubr.msk.bf16.gmra.mrb[44].mxu0 %vm88_vm2, %v12645_v53 }
 0xa0f   :  { %v15634_v14 = vpop.f32.mrb[32].mxu0 }
 0xa10   :  { %v12810_v58 = vmul.f32 %v15634_v14, %v22609_v16  ;;  %v12721_v21 = vpop.f32.mrb[33].mxu0 }
 0xa11   :  { %v12808_v25 = vmul.f32 %v22609_v16, %v12721_v21  ;;  %v15635_v26 = vpop.f32.mrb[34].mxu0 }
 0xa12   :  { %v12834_v0 = vadd.f32 %v22614_v24, %v12810_v58  ;;  %v12811_v11 = vmul.f32 %v15635_v26, %v22609_v16  ;;  %v12724_v5 = vpop.f32.mrb[35].mxu0 }
 0xa13   :  { %v12832_v29 = vadd.f32 %v22614_v24, %v12808_v25  ;;  %v12809_v40 = vmul.f32 %v22609_v16, %v12724_v5 }
 0xa14   :  { %v12850_v19 = vadd.f32 %v12834_v0, %v23988_v4  ;;  %v12835_v57 = vadd.f32 %v22614_v24, %v12811_v11 }
 0xa15   :  { %v12848_v41 = vadd.f32 %v12832_v29, %v23990_v43  ;;  %v12833_v54 = vadd.f32 %v22614_v24, %v12809_v40  ;;  %v24003_v29 = vld [vmem:[#allocation63_spill] sm:$0xff] }
 0xa16   :  { %v12851_v31 = vadd.f32 %v12835_v57, %v23992_v27  ;;  %v12866_v55 = vmax.f32 %v12850_v19, 0.0  ;;  %v24004_v40 = vmax.f32 %v24003_v29, 0.0  ;;  %v24005_v19 = vld [vmem:[#allocation64_spill] sm:$0xff]  ;;  %v24009_v27 = vld [vmem:[#allocation62_spill] sm:$0xff] }
 0xa17   :  { %v12849_v42 = vadd.f32 %v12833_v54, %v23994_v38  ;;  %v15638_v10 = vpop.f32.mrb[36].mxu0  ;;  %v12864_v34 = vmax.f32 %v12848_v41, 0.0  ;;  %v24006_v57 = vmax.f32 %v24005_v19, 0.0  ;;  %v24007_v41 = vld [vmem:[#allocation65_spill] sm:$0xff] }
 0xa18   :  { %v12867_v62 = vmax.f32 %v12851_v31, 0.0  ;;  %v12814_v6 = vmul.f32 %v15638_v10, %v22609_v16  ;;  %v12737_v22 = vpop.f32.mrb[37].mxu0  ;;  %v24008_v54 = vmax.f32 %v24007_v41, 0.0  ;;  %v24010_v31 = vmax.f32 %v24009_v27, 0.0 }
 0xa19   :  { %v12865_v2 = vmax.f32 %v12849_v42, 0.0  ;;  %v12812_v60 = vmul.f32 %v22609_v16, %v12737_v22  ;;  %v15639_v44 = vpop.f32.mrb[38].mxu0 }
 0xa1a   :  { %v12881_v37 = vpack.c.bf16 %v12867_v62, %v12866_v55  ;;  %v12838_v50 = vadd.f32 %v22614_v24, %v12814_v6  ;;  %v12815_v36 = vmul.f32 %v15639_v44, %v22609_v16  ;;  %v12740_v39 = vpop.f32.mrb[39].mxu0 }
 0xa1b   :  { %v12880_v13 = vpack.c.bf16 %v12865_v2, %v12864_v34  ;;  %v12836_v45 = vadd.f32 %v22614_v24, %v12812_v60  ;;  %v12813_v23 = vmul.f32 %v22609_v16, %v12740_v39 }
 0xa1c   :  { %v12854_v61 = vadd.f32 %v12838_v50, %v23996_v48  ;;  %v12839_v59 = vadd.f32 %v22614_v24, %v12815_v36 }
 0xa1d   :  { %v12852_v8 = vadd.f32 %v12836_v45, %v23998_v9  ;;  %v12837_v12 = vadd.f32 %v22614_v24, %v12813_v23  ;;  %15652 = vmatprep.mubr.msk.bf16.mxu1 %vm88_vm2, %v12880_v13  ;;  %v24011_v45 = vld [vmem:[#allocation66_spill] sm:$0xff] }
 0xa1e   :  { %v12855_v52 = vadd.f32 %v12839_v59, %v24000_v18  ;;  %15653 = vmatmul.mubr.msk.bf16.vlgmr.msra.gmra.mrb[48].mxu1 %vm88_vm2, %v12881_v37  ;;  %v12870_v15 = vmax.f32 %v12854_v61, 0.0  ;;  %v24012_v23 = vmax.f32 %v24011_v45, 0.0  ;;  %v24013_v61 = vld [vmem:[#allocation124_spill] sm:$0xff]  ;;  %v24017_v18 = vld [vmem:[#allocation123_spill] sm:$0xff] }
 0xa1f   :  { %v12853_v30 = vadd.f32 %v12837_v12, %v24002_v7  ;;  %v15642_v63 = vpop.f32.mrb[40].mxu0  ;;  %v12868_v32 = vmax.f32 %v12852_v8, 0.0  ;;  %v24014_v59 = vmax.f32 %v24013_v61, 0.0  ;;  %v24015_v8 = vld [vmem:[#allocation71_spill] sm:$0xff] }
 0xa20   :  { %v12871_v49 = vmax.f32 %v12855_v52, 0.0  ;;  %v12818_v46 = vmul.f32 %v15642_v63, %v22609_v16  ;;  %v12753_v1 = vpop.f32.mrb[41].mxu0  ;;  %v24016_v12 = vmax.f32 %v24015_v8, 0.0  ;;  %v24018_v52 = vmax.f32 %v24017_v18, 0.0 }
 0xa21   :  { %v12869_v3 = vmax.f32 %v12853_v30, 0.0  ;;  %v12816_v53 = vmul.f32 %v22609_v16, %v12753_v1  ;;  %v15643_v14 = vpop.f32.mrb[42].mxu0  ;;  %v22696_v1 = vld [vmem:[%s22804_s10] ss:$0 sm:$0xff] }
 0xa22   :  { %v12883_v58 = vpack.c.bf16 %v12871_v49, %v12870_v15  ;;  %v12842_v21 = vadd.f32 %v22614_v24, %v12818_v46  ;;  %v12819_v25 = vmul.f32 %v15643_v14, %v22609_v16  ;;  %v12756_v26 = vpop.f32.mrb[43].mxu0 }
 0xa23   :  { %v12882_v0 = vpack.c.bf16 %v12869_v3, %v12868_v32  ;;  %v12840_v11 = vadd.f32 %v22614_v24, %v12816_v53  ;;  %v12817_v5 = vmul.f32 %v22609_v16, %v12756_v26 }
 0xa24   :  { %v12858_v17 = vadd.f32 %v12842_v21, %v24004_v40  ;;  %v12843_v4 = vadd.f32 %v22614_v24, %v12819_v25 }
 0xa25   :  { %v12856_v35 = vadd.f32 %v12840_v11, %v24006_v57  ;;  %v12841_v43 = vadd.f32 %v22614_v24, %v12817_v5  ;;  %15656 = vmatprep.mubr.msk.bf16.mxu1 %vm88_vm2, %v12882_v0 }
 0xa26   :  { %v12859_v47 = vadd.f32 %v12843_v4, %v24008_v54  ;;  %15657 = vmatmul.mubr.msk.bf16.gmra.mrb[52].mxu1 %vm88_vm2, %v12883_v58  ;;  %v12874_v42 = vmax.f32 %v12858_v17, 0.0 }
 0xa27   :  { %v12857_v56 = vadd.f32 %v12841_v43, %v24010_v31  ;;  %v15646_v38 = vpop.f32.mrb[44].mxu0  ;;  %v12872_v6 = vmax.f32 %v12856_v35, 0.0 }
 0xa28   :  { %v12875_v10 = vmax.f32 %v12859_v47, 0.0  ;;  %v12822_v55 = vmul.f32 %v15646_v38, %v22609_v16  ;;  %v12769_v62 = vpop.f32.mrb[45].mxu0 }
 0xa29   :  { %v12873_v22 = vmax.f32 %v12857_v56, 0.0  ;;  %v12820_v34 = vmul.f32 %v22609_v16, %v12769_v62  ;;  %v15647_v2 = vpop.f32.mrb[46].mxu0 }
 0xa2a   :  { %v12885_v60 = vpack.c.bf16 %v12875_v10, %v12874_v42  ;;  %v12846_v44 = vadd.f32 %v22614_v24, %v12822_v55  ;;  %v12823_v37 = vmul.f32 %v15647_v2, %v22609_v16  ;;  %v12772_v50 = vpop.f32.mrb[47].mxu0 }
 0xa2b   :  { %v12884_v36 = vpack.c.bf16 %v12873_v22, %v12872_v6  ;;  %v12844_v39 = vadd.f32 %v22614_v24, %v12820_v34  ;;  %v12821_v13 = vmul.f32 %v22609_v16, %v12772_v50 }
 0xa2c   :  { %v12862_v28 = vadd.f32 %v12846_v44, %v24012_v23  ;;  %v12847_v48 = vadd.f32 %v22614_v24, %v12823_v37 }
 0xa2d   :  { %v12860_v20 = vadd.f32 %v12844_v39, %v24014_v59  ;;  %v12845_v9 = vadd.f32 %v22614_v24, %v12821_v13  ;;  %15660 = vmatprep.mubr.msk.bf16.mxu1 %vm88_vm2, %v12884_v36  ;;  %v22691_v24 = vld [vmem:[%s22803_s9] ss:$0 sm:$0xff] }
 0xa2e   :  { %v12863_v51 = vadd.f32 %v12847_v48, %v24016_v12  ;;  %15661 = vmatmul.mubr.msk.bf16.gmra.mrb[56].mxu1 %vm88_vm2, %v12885_v60  ;;  %v12878_v33 = vmax.f32 %v12862_v28, 0.0 }
 0xa2f   :  { %v12861_v16 = vadd.f32 %v12845_v9, %v24018_v52  ;;  %v12876_v30 = vmax.f32 %v12860_v20, 0.0 }
 0xa30   :  { %v12879_v7 = vmax.f32 %v12863_v51, 0.0 }
 0xa31   :  { %v12877_v63 = vmax.f32 %v12861_v16, 0.0 }
 0xa32   :  { %v12887_v15 = vpack.c.bf16 %v12879_v7, %v12878_v33 }
 0xa33   :  { %v12886_v49 = vpack.c.bf16 %v12877_v63, %v12876_v30 }
 0xa35   :  { %15664 = vmatprep.mubr.msk.bf16.mxu1 %vm88_vm2, %v12886_v49 }
 0xa36   :  { %15665 = vmatmul.mubr.msk.bf16.gmra.mrb[60].mxu1 %vm88_vm2, %v12887_v15 }
 0xaf1   :  { %v15654_v46 = vpop.f32.mrb[48].mxu1 }
 0xaf2   :  { %v13034_v32 = vmul.f32 %v15654_v46, %v22691_v24  ;;  %v12962_v3 = vpop.f32.mrb[49].mxu1 }
 0xaf3   :  { %v13032_v53 = vmul.f32 %v22691_v24, %v12962_v3  ;;  %v15655_v14 = vpop.f32.mrb[50].mxu1 }
 0xaf4   :  { %v13057_v58 = vadd.f32 %v22696_v1, %v13034_v32  ;;  %v13035_v21 = vmul.f32 %v15655_v14, %v22691_v24  ;;  %v12965_v25 = vpop.f32.mrb[51].mxu1 }
 0xaf5   :  { %v13055_v26 = vadd.f32 %v22696_v1, %v13032_v53  ;;  %v13033_v0 = vmul.f32 %v22691_v24, %v12965_v25 }
 0xaf6   :  { %v13073_v11 = vmax.f32 %v13057_v58, 0.0  ;;  %v13058_v5 = vadd.f32 %v22696_v1, %v13035_v21 }
 0xaf7   :  { %v13071_v29 = vmax.f32 %v13055_v26, 0.0  ;;  %v13056_v40 = vadd.f32 %v22696_v1, %v13033_v0 }
 0xaf8   :  { %13090 = vst.msk [vmem:[%s22805_s11 + $0x10] sm:$0xff] %vm13087_vm3, %v13073_v11  ;;  %v13074_v17 = vmax.f32 %v13058_v5, 0.0 }
 0xaf9   :  { %13088 = vst.msk [vmem:[%s22805_s11] sm:$0xff] %vm13087_vm3, %v13071_v29  ;;  %v13072_v4 = vmax.f32 %v13056_v40, 0.0  ;;  %v15658_v19 = vpop.f32.mrb[52].mxu1 }
 0xafa   :  { %13091 = vst.msk [vmem:[%s22805_s11 + $0x18] sm:$0xff] %vm13087_vm3, %v13074_v17  ;;  %v13038_v57 = vmul.f32 %v15658_v19, %v22691_v24  ;;  %v12978_v35 = vpop.f32.mrb[53].mxu1 }
 0xafb   :  { %13089 = vst.msk [vmem:[%s22805_s11 + $0x8] sm:$0xff] %vm13087_vm3, %v13072_v4  ;;  %v13036_v43 = vmul.f32 %v22691_v24, %v12978_v35  ;;  %v15659_v41 = vpop.f32.mrb[54].mxu1 }
 0xafc   :  { %v13061_v54 = vadd.f32 %v22696_v1, %v13038_v57  ;;  %v13039_v47 = vmul.f32 %v15659_v41, %v22691_v24  ;;  %v12981_v27 = vpop.f32.mrb[55].mxu1 }
 0xafd   :  { %v13059_v31 = vadd.f32 %v22696_v1, %v13036_v43  ;;  %v13037_v56 = vmul.f32 %v22691_v24, %v12981_v27 }
 0xafe   :  { %v13077_v38 = vmax.f32 %v13061_v54, 0.0  ;;  %v13062_v42 = vadd.f32 %v22696_v1, %v13039_v47 }
 0xaff   :  { %v13075_v10 = vmax.f32 %v13059_v31, 0.0  ;;  %v13060_v55 = vadd.f32 %v22696_v1, %v13037_v56 }
 0xb00   :  { %13094 = vst.msk [vmem:[%s22805_s11 + $0x30] sm:$0xff] %vm13087_vm3, %v13077_v38  ;;  %v13078_v62 = vmax.f32 %v13062_v42, 0.0 }
 0xb01   :  { %13092 = vst.msk [vmem:[%s22805_s11 + $0x20] sm:$0xff] %vm13087_vm3, %v13075_v10  ;;  %v13076_v6 = vmax.f32 %v13060_v55, 0.0  ;;  %v15662_v22 = vpop.f32.mrb[56].mxu1 }
 0xb02   :  { %13095 = vst.msk [vmem:[%s22805_s11 + $0x38] sm:$0xff] %vm13087_vm3, %v13078_v62  ;;  %v13042_v34 = vmul.f32 %v15662_v22, %v22691_v24  ;;  %v12994_v2 = vpop.f32.mrb[57].mxu1 }
 0xb03   :  { %13093 = vst.msk [vmem:[%s22805_s11 + $0x28] sm:$0xff] %vm13087_vm3, %v13076_v6  ;;  %v13040_v60 = vmul.f32 %v22691_v24, %v12994_v2  ;;  %v15663_v44 = vpop.f32.mrb[58].mxu1 }
 0xb04   :  { %v13065_v37 = vadd.f32 %v22696_v1, %v13042_v34  ;;  %v13043_v50 = vmul.f32 %v15663_v44, %v22691_v24  ;;  %v12997_v36 = vpop.f32.mrb[59].mxu1 }
 0xb05   :  { %v13063_v39 = vadd.f32 %v22696_v1, %v13040_v60  ;;  %v13041_v13 = vmul.f32 %v22691_v24, %v12997_v36 }
 0xb06   :  { %v13081_v45 = vmax.f32 %v13065_v37, 0.0  ;;  %v13066_v23 = vadd.f32 %v22696_v1, %v13043_v50 }
 0xb07   :  { %v13079_v28 = vmax.f32 %v13063_v39, 0.0  ;;  %v13064_v48 = vadd.f32 %v22696_v1, %v13041_v13 }
 0xb08   :  { %13098 = vst.msk [vmem:[%s22805_s11 + $0x50] sm:$0xff] %vm13087_vm3, %v13081_v45  ;;  %v13082_v61 = vmax.f32 %v13066_v23, 0.0 }
 0xb09   :  { %13096 = vst.msk [vmem:[%s22805_s11 + $0x40] sm:$0xff] %vm13087_vm3, %v13079_v28  ;;  %v13080_v59 = vmax.f32 %v13064_v48, 0.0  ;;  %v15666_v20 = vpop.f32.mrb[60].mxu1 }
 0xb0a   :  { %13099 = vst.msk [vmem:[%s22805_s11 + $0x58] sm:$0xff] %vm13087_vm3, %v13082_v61  ;;  %v13046_v9 = vmul.f32 %v15666_v20, %v22691_v24  ;;  %v13010_v8 = vpop.f32.mrb[61].mxu1 }
 0xb0b   :  { %13097 = vst.msk [vmem:[%s22805_s11 + $0x48] sm:$0xff] %vm13087_vm3, %v13080_v59  ;;  %v13044_v12 = vmul.f32 %v22691_v24, %v13010_v8  ;;  %v15667_v51 = vpop.f32.mrb[62].mxu1 }
 0xb0c   :  { %v13069_v18 = vadd.f32 %v22696_v1, %v13046_v9  ;;  %v13047_v52 = vmul.f32 %v15667_v51, %v22691_v24  ;;  %v13013_v16 = vpop.f32.mrb[63].mxu1 }
 0xb0d   :  { %v13067_v33 = vadd.f32 %v22696_v1, %v13044_v12  ;;  %v13045_v7 = vmul.f32 %v22691_v24, %v13013_v16 }
 0xb0e   :  { %v13085_v30 = vmax.f32 %v13069_v18, 0.0  ;;  %v13070_v63 = vadd.f32 %v22696_v1, %v13047_v52 }
 0xb0f   :  { %v13083_v15 = vmax.f32 %v13067_v33, 0.0  ;;  %v13068_v49 = vadd.f32 %v22696_v1, %v13045_v7 }
 0xb10   :  { %13102 = vst.msk [vmem:[%s22805_s11 + $0x70] sm:$0xff] %vm13087_vm3, %v13085_v30  ;;  %v13086_v46 = vmax.f32 %v13070_v63, 0.0 }
 0xb11   :  { %13100 = vst.msk [vmem:[%s22805_s11 + $0x60] sm:$0xff] %vm13087_vm3, %v13083_v15  ;;  %v13084_v32 = vmax.f32 %v13068_v49, 0.0 }
 0xb12   :  { %13103 = vst.msk [vmem:[%s22805_s11 + $0x78] sm:$0xff] %vm13087_vm3, %v13086_v46 }
 0xb13   :  { %13101 = vst.msk [vmem:[%s22805_s11 + $0x68] sm:$0xff] %vm13087_vm3, %v13084_v32 }
 0xb14   :  { %13108 = vsyncpa [#allocation5], 1 }
 0xb15   :  { %13109 = vsyncpa [#allocation7], 1 }

</bundles_post_ra>
